<compile_context>
chip_gen: v5e
topology: v5e:2x2
jax: 0.10.0
libtpu: 0.0.40
codegen_flags: <defaults>
</compile_context>

<pallas_src>
import math
import jax
import jax.numpy as jnp
from jax.experimental import pallas as pl
from jax.experimental.pallas import tpu as pltpu

# ----------------------------- configuration (small, synthetic) -----------------------------
B = 2
ENC_IN = DEC_IN = C_OUT = 4
SEQ_LEN = 16
LABEL_LEN = 8
PRED_LEN = 8
L_DEC = LABEL_LEN + PRED_LEN
NUM_DECOMP = 2
D_MODEL = 32
N_HEADS = 4
DH = D_MODEL // N_HEADS
D_FF = 64
E_LAYERS = 1
D_LAYERS = 1
KERNEL_SIZE = 3      # token-embedding conv kernel (circular padding)
QK_KER = 3           # LogSparse causal conv kernel for Q/K
N_MARKS = 4          # number of time features (embed='timeF')
OUT_PAD = 128        # lane-dense padding of the final output projection

F32 = jnp.float32
BF16 = jnp.bfloat16


# ----------------------------- weight slab packing -----------------------------
class Slab:
    """Concatenate weights along one axis into a single slab; remember static (offset, size)."""

    def __init__(self, axis):
        self.axis = axis
        self.parts = []
        self.off = {}
        self.n = 0

    def add(self, name, arr):
        self.off[name] = (self.n, arr.shape[self.axis])
        self.parts.append(arr)
        self.n += arr.shape[self.axis]

    def build(self, dtype):
        return jnp.concatenate(self.parts, axis=self.axis).astype(dtype)

    def slc(self, ref, name):
        o, s = self.off[name]
        return ref[o:o + s, :] if self.axis == 0 else ref[:, o:o + s]


# ----------------------------- in-kernel helpers (operate on values) -----------------------------
def _mm(x, w):
    """MXU matmul: bf16 operands, f32 accumulation."""
    return jnp.dot(x.astype(BF16), w.astype(BF16), preferred_element_type=F32)


def _shift_rows(x, s, circular):
    """Output row j reads input row j - s (static s).  circular wraps; otherwise zero-fill (causal).
    Implemented as static slice-concat on sublanes (no (L,L) shift-matrix matmuls)."""
    L, C = x.shape
    if circular:
        s = s % L
    if s == 0:
        return x
    top = x[L - s:, :] if circular else jnp.zeros((s, C), x.dtype)
    return jnp.concatenate([top, x[:L - s, :]], axis=0)


def _conv1d(x, w, ker, circular):
    """Conv1d over rows: lane-concat the ker shifted copies -> single (L, ker*C) @ (ker*C, N) matmul."""
    pad = (ker - 1) // 2 if circular else ker - 1
    taps = jnp.concatenate([_shift_rows(x, pad - i, circular) for i in range(ker)], axis=1)
    return _mm(taps, w)


def _layernorm(x, gamma, beta, eps=1e-5):
    mean = jnp.mean(x, axis=-1, keepdims=True)
    var = jnp.mean((x - mean) ** 2, axis=-1, keepdims=True)
    return (x - mean) * jax.lax.rsqrt(var + eps) * gamma + beta


def _ffn(x, w1, b1, w2, b2):
    h = jax.nn.gelu(_mm(x, w1) + b1)
    return _mm(h, w2) + b2


_QKT_DN = (((1,), (1,)), ((), ()))   # contract last dims of q and k (no explicit transpose)


def _mha(q, k, v, wo, bo, causal):
    """Multi-head softmax attention.  q already carries the 1/sqrt(dh) scale (folded into W_q).
    Per-head contexts are lane-concatenated -> single (Lq,D)@(D,D) output projection."""
    Lq, Lk = q.shape[0], k.shape[0]
    if causal:
        row = jax.lax.broadcasted_iota(jnp.int32, (Lq, Lk), 0)
        col = jax.lax.broadcasted_iota(jnp.int32, (Lq, Lk), 1)
        keep = col <= row
    ctx = []
    for h in range(N_HEADS):
        lo, hi = h * DH, (h + 1) * DH
        s = jax.lax.dot_general(q[:, lo:hi].astype(BF16), k[:, lo:hi].astype(BF16),
                                _QKT_DN, preferred_element_type=F32)
        if causal:
            s = jnp.where(keep, s, -1e30)
        m = jnp.max(s, axis=-1, keepdims=True)
        p = jnp.exp(s - m)
        p = p * pl.reciprocal(jnp.sum(p, axis=-1, keepdims=True), approx=True)
        ctx.append(jnp.dot(p.astype(BF16), v[:, lo:hi].astype(BF16),
                           preferred_element_type=F32))
    o = jnp.concatenate(ctx, axis=1)            # (Lq, D), heads on lanes
    return _mm(o, wo) + bo


def _get_wt(x):
    """Haar-like moving-average cascade standing in for the pywt wavelet decomposition.
    x:(L,C) -> (freq (L, NUM_DECOMP*C), trend (L, C))."""
    details = []
    cur = x
    for _ in range(NUM_DECOMP):
        prev = jnp.concatenate([cur[:1, :], cur[:-1, :]], axis=0)
        trend = 0.5 * (cur + prev)
        details.append(cur - trend)
        cur = trend
    return jnp.concatenate(details, axis=1), cur


# ----------------------------- fused whole-model kernel -----------------------------
def make_kernel(sl):
    wemb, w32, w64, w96, bias, lns = (sl['wemb'], sl['w32'], sl['w64'],
                                      sl['w96'], sl['bias'], sl['lns'])
    D = D_MODEL

    def kernel(xe_ref, me_ref, xd_ref, md_ref,
               wemb_ref, w32_ref, w64_ref, w96_ref, bias_ref, ln_ref, pos_ref,
               out_ref):
        WE = lambda n: wemb.slc(wemb_ref, n)
        W32 = lambda n: w32.slc(w32_ref, n)
        W64 = lambda n: w64.slc(w64_ref, n)
        W96 = lambda n: w96.slc(w96_ref, n)
        Bi = lambda n: bias.slc(bias_ref, n)

        def LN(n):
            gb = lns.slc(ln_ref, n)          # (2, D) rows = [gamma, beta]
            return gb[0:1, :], gb[1:2, :]

        xe = xe_ref[0]                        # (SEQ_LEN, ENC_IN)
        me = me_ref[0]                        # (SEQ_LEN, N_MARKS)
        xd = xd_ref[0]                        # (L_DEC, DEC_IN)
        md = md_ref[0]                        # (L_DEC, N_MARKS)
        pos = pos_ref[...]                    # (16, D) f32

        # ---- wavelet-style decomposition + decoder placeholders (in-kernel preprocessing) ----
        ef_raw, et_raw = _get_wt(xe)
        df_lab, dt_lab = _get_wt(xd[:LABEL_LEN, :])
        dt_place = jnp.mean(dt_lab, axis=0, keepdims=True)
        dt_raw = jnp.concatenate(
            [dt_lab, jnp.broadcast_to(dt_place, (PRED_LEN, DEC_IN))], axis=0)
        df_raw = jnp.concatenate(
            [df_lab, jnp.zeros((PRED_LEN, NUM_DECOMP * DEC_IN), df_lab.dtype)], axis=0)

        # ---- embeddings (freq: token conv only; trend: token conv + temporal + positional) ----
        enc_f = _conv1d(ef_raw, WE('enc_wF'), KERNEL_SIZE, circular=True)
        enc_t = (_conv1d(et_raw, WE('enc_wT'), KERNEL_SIZE, circular=True)
                 + _mm(me, WE('enc_wTemp')) + pos[:SEQ_LEN, :])
        dec_f = _conv1d(df_raw, WE('dec_wF'), KERNEL_SIZE, circular=True)
        dec_t = (_conv1d(dt_raw, WE('dec_wT'), KERNEL_SIZE, circular=True)
                 + _mm(md, WE('dec_wTemp')) + pos[:L_DEC, :])

        # ---- encoder layers ----
        for l in range(E_LAYERS):
            p = f'e{l}_'
            # freq stream: dense softmax self-attention (FFTAttention stand-in), fused QKV
            qkv = _mm(enc_f, W32(p + 'wqkv_f')) + Bi(p + 'bqkv_f')
            a = _mha(qkv[:, :D], qkv[:, D:2 * D], qkv[:, 2 * D:],
                     W32(p + 'wo_f'), Bi(p + 'bo_f'), causal=False)
            g, b = LN(p + 'ln1_f')
            enc_f = _layernorm(enc_f + a, g, b)
            f = _ffn(enc_f, W32(p + 'w1_f'), Bi(p + 'b1_f'), W64(p + 'w2_f'), Bi(p + 'b2_f'))
            g, b = LN(p + 'ln2_f')
            enc_f = _layernorm(enc_f + f, g, b)

            # trend stream: LogSparse (causal-conv Q/K fused), non-causal scores
            qk = _conv1d(enc_t, W96(p + 'wqk_t'), QK_KER, circular=False) + Bi(p + 'bqk_t')
            v = _mm(enc_t, W32(p + 'wv_t')) + Bi(p + 'bv_t')
            a = _mha(qk[:, :D], qk[:, D:], v, W32(p + 'wo_t'), Bi(p + 'bo_t'), causal=False)
            g, b = LN(p + 'ln1_t')
            enc_t = _layernorm(enc_t + a, g, b)
            f = _ffn(enc_t, W32(p + 'w1_t'), Bi(p + 'b1_t'), W64(p + 'w2_t'), Bi(p + 'b2_t'))
            g, b = LN(p + 'ln2_t')
            enc_t = _layernorm(enc_t + f, g, b)

        g, b = LN('enc_norm_f')
        enc_f = _layernorm(enc_f, g, b)
        g, b = LN('enc_norm_t')
        enc_t = _layernorm(enc_t, g, b)

        # ---- decoder layers ----
        for l in range(D_LAYERS):
            p = f'd{l}_'
            # freq self-attention (non-causal, FFTAttention stand-in)
            qkv = _mm(dec_f, W32(p + 'wqkv_sf')) + Bi(p + 'bqkv_sf')
            a = _mha(qkv[:, :D], qkv[:, D:2 * D], qkv[:, 2 * D:],
                     W32(p + 'wo_sf'), Bi(p + 'bo_sf'), causal=False)
            g, b = LN(p + 'ln1_f')
            dec_f = _layernorm(dec_f + a, g, b)

            # trend self-attention (LogSparse, causal mask)
            qk = _conv1d(dec_t, W96(p + 'wqk_st'), QK_KER, circular=False) + Bi(p + 'bqk_st')
            v = _mm(dec_t, W32(p + 'wv_st')) + Bi(p + 'bv_st')
            a = _mha(qk[:, :D], qk[:, D:], v, W32(p + 'wo_st'), Bi(p + 'bo_st'), causal=True)
            g, b = LN(p + 'ln1_t')
            dec_t = _layernorm(dec_t + a, g, b)

            # freq cross-attention (fused KV from encoder)
            q = _mm(dec_f, W32(p + 'wq_cf')) + Bi(p + 'bq_cf')
            kv = _mm(enc_f, W32(p + 'wkv_cf')) + Bi(p + 'bkv_cf')
            a = _mha(q, kv[:, :D], kv[:, D:], W32(p + 'wo_cf'), Bi(p + 'bo_cf'), causal=False)
            g, b = LN(p + 'ln2_f')
            dec_f = _layernorm(dec_f + a, g, b)

            # trend cross-attention (LogSparse: conv Q from x, conv K from enc, linear V)
            q = _conv1d(dec_t, W96(p + 'wqc_ct'), QK_KER, circular=False) + Bi(p + 'bqc_ct')
            k = _conv1d(enc_t, W96(p + 'wkc_ct'), QK_KER, circular=False) + Bi(p + 'bkc_ct')
            v = _mm(enc_t, W32(p + 'wv_ct')) + Bi(p + 'bv_ct')
            a = _mha(q, k, v, W32(p + 'wo_ct'), Bi(p + 'bo_ct'), causal=False)
            g, b = LN(p + 'ln2_t')
            dec_t = _layernorm(dec_t + a, g, b)

            # FFNs
            f = _ffn(dec_f, W32(p + 'w1_f'), Bi(p + 'b1_f'), W64(p + 'w2_f'), Bi(p + 'b2_f'))
            g, b = LN(p + 'ln3_f')
            dec_f = _layernorm(dec_f + f, g, b)
            f = _ffn(dec_t, W32(p + 'w1_t'), Bi(p + 'b1_t'), W64(p + 'w2_t'), Bi(p + 'b2_t'))
            g, b = LN(p + 'ln3_t')
            dec_t = _layernorm(dec_t + f, g, b)

        # ---- head: final norms + (freq + trend) + MLPLayer(out) + padded out-projection ----
        g, b = LN('dec_norm_f')
        hf = _layernorm(dec_f, g, b)
        g, b = LN('dec_norm_t')
        ht = _layernorm(dec_t, g, b)
        h = _ffn(hf + ht, W32('head_w1'), Bi('head_b1'), W64('head_w2'), Bi('head_b2'))
        out_ref[0] = _mm(h, W32('head_wout')) + Bi('head_bout')   # (L_DEC, 128) lane-dense store

    return kernel


# ----------------------------- wrapper (single pallas_call, grid over batch) -----------------------------
def make_forward(slabs):
    kernel = make_kernel(slabs)

    @jax.jit
    def forward(weights, x_enc, x_mark_enc, x_dec, x_mark_dec):
        Bn = x_enc.shape[0]
        batched = (x_enc, x_mark_enc, x_dec, x_mark_dec)
        in_specs = []
        for x in batched:
            nd = x.ndim - 1
            in_specs.append(pl.BlockSpec((1,) + x.shape[1:],
                                         lambda bi, nd=nd: (bi,) + (0,) * nd))
        for w in weights:
            nd = w.ndim
            in_specs.append(pl.BlockSpec(w.shape, lambda bi, nd=nd: (0,) * nd))
        out = pl.pallas_call(
            kernel,
            grid=(Bn,),
            in_specs=in_specs,
            out_specs=pl.BlockSpec((1, L_DEC, OUT_PAD), lambda bi: (bi, 0, 0)),
            out_shape=jax.ShapeDtypeStruct((Bn, L_DEC, OUT_PAD), F32),
            compiler_params=pltpu.CompilerParams(
                dimension_semantics=("parallel",)),
        )(*batched, *weights)
        return out[:, -PRED_LEN:, :C_OUT]

    return forward


# ----------------------------- deterministic parameter init (packed slabs) -----------------------------
def positional_embedding(L, D):
    pos = jnp.arange(L, dtype=F32)[:, None]
    div = jnp.exp(jnp.arange(0, D, 2, dtype=F32) * (-math.log(10000.0) / D))
    pe = jnp.zeros((L, D), F32)
    pe = pe.at[:, 0::2].set(jnp.sin(pos * div))
    pe = pe.at[:, 1::2].set(jnp.cos(pos * div))
    return pe


class KeyGen:
    def __init__(self, key):
        self.key = key

    def __call__(self):
        self.key, sub = jax.random.split(self.key)
        return sub


def init_params():
    kg = KeyGen(jax.random.PRNGKey(0))
    D, Dff, K3 = D_MODEL, D_FF, QK_KER
    scale_q = 1.0 / math.sqrt(DH)   # softmax scale folded into Q projections

    def W(din, dout):
        return jax.random.normal(kg(), (din, dout), F32) * 0.02

    def Bz(n):
        return jnp.zeros((1, n), F32)

    wemb, w32, w64, w96 = Slab(0), Slab(1), Slab(1), Slab(1)
    bias, lns = Slab(1), Slab(0)

    def add_ln(name):
        lns.add(name, jnp.concatenate([jnp.ones((1, D), F32), jnp.zeros((1, D), F32)], axis=0))

    # DataEmbedding weights (token convs without bias; temporal linear for trend streams)
    wemb.add('enc_wF', W(KERNEL_SIZE * NUM_DECOMP * ENC_IN, D))
    wemb.add('enc_wT', W(KERNEL_SIZE * ENC_IN, D))
    wemb.add('enc_wTemp', W(N_MARKS, D))
    wemb.add('dec_wF', W(KERNEL_SIZE * NUM_DECOMP * DEC_IN, D))
    wemb.add('dec_wT', W(KERNEL_SIZE * DEC_IN, D))
    wemb.add('dec_wTemp', W(N_MARKS, D))

    for l in range(E_LAYERS):
        p = f'e{l}_'
        w32.add(p + 'wqkv_f', jnp.concatenate([W(D, D) * scale_q, W(D, D), W(D, D)], axis=1))
        bias.add(p + 'bqkv_f', Bz(3 * D))
        w32.add(p + 'wo_f', W(D, D)); bias.add(p + 'bo_f', Bz(D))
        add_ln(p + 'ln1_f')
        w32.add(p + 'w1_f', W(D, Dff)); bias.add(p + 'b1_f', Bz(Dff))
        w64.add(p + 'w2_f', W(Dff, D)); bias.add(p + 'b2_f', Bz(D))
        add_ln(p + 'ln2_f')
        w96.add(p + 'wqk_t', jnp.concatenate([W(K3 * D, D) * scale_q, W(K3 * D, D)], axis=1))
        bias.add(p + 'bqk_t', Bz(2 * D))
        w32.add(p + 'wv_t', W(D, D)); bias.add(p + 'bv_t', Bz(D))
        w32.add(p + 'wo_t', W(D, D)); bias.add(p + 'bo_t', Bz(D))
        add_ln(p + 'ln1_t')
        w32.add(p + 'w1_t', W(D, Dff)); bias.add(p + 'b1_t', Bz(Dff))
        w64.add(p + 'w2_t', W(Dff, D)); bias.add(p + 'b2_t', Bz(D))
        add_ln(p + 'ln2_t')
    add_ln('enc_norm_f')
    add_ln('enc_norm_t')

    for l in range(D_LAYERS):
        p = f'd{l}_'
        w32.add(p + 'wqkv_sf', jnp.concatenate([W(D, D) * scale_q, W(D, D), W(D, D)], axis=1))
        bias.add(p + 'bqkv_sf', Bz(3 * D))
        w32.add(p + 'wo_sf', W(D, D)); bias.add(p + 'bo_sf', Bz(D))
        add_ln(p + 'ln1_f')
        w96.add(p + 'wqk_st', jnp.concatenate([W(K3 * D, D) * scale_q, W(K3 * D, D)], axis=1))
        bias.add(p + 'bqk_st', Bz(2 * D))
        w32.add(p + 'wv_st', W(D, D)); bias.add(p + 'bv_st', Bz(D))
        w32.add(p + 'wo_st', W(D, D)); bias.add(p + 'bo_st', Bz(D))
        add_ln(p + 'ln1_t')
        w32.add(p + 'wq_cf', W(D, D) * scale_q); bias.add(p + 'bq_cf', Bz(D))
        w32.add(p + 'wkv_cf', jnp.concatenate([W(D, D), W(D, D)], axis=1))
        bias.add(p + 'bkv_cf', Bz(2 * D))
        w32.add(p + 'wo_cf', W(D, D)); bias.add(p + 'bo_cf', Bz(D))
        add_ln(p + 'ln2_f')
        w96.add(p + 'wqc_ct', W(K3 * D, D) * scale_q); bias.add(p + 'bqc_ct', Bz(D))
        w96.add(p + 'wkc_ct', W(K3 * D, D)); bias.add(p + 'bkc_ct', Bz(D))
        w32.add(p + 'wv_ct', W(D, D)); bias.add(p + 'bv_ct', Bz(D))
        w32.add(p + 'wo_ct', W(D, D)); bias.add(p + 'bo_ct', Bz(D))
        add_ln(p + 'ln2_t')
        w32.add(p + 'w1_f', W(D, Dff)); bias.add(p + 'b1_f', Bz(Dff))
        w64.add(p + 'w2_f', W(Dff, D)); bias.add(p + 'b2_f', Bz(D))
        add_ln(p + 'ln3_f')
        w32.add(p + 'w1_t', W(D, Dff)); bias.add(p + 'b1_t', Bz(Dff))
        w64.add(p + 'w2_t', W(Dff, D)); bias.add(p + 'b2_t', Bz(D))
        add_ln(p + 'ln3_t')
    add_ln('dec_norm_f')
    add_ln('dec_norm_t')

    # head: MLPLayer(d_model -> d_ff -> d_model) + out_projection padded to 128 lanes
    w32.add('head_w1', W(D, Dff)); bias.add('head_b1', Bz(Dff))
    w64.add('head_w2', W(Dff, D)); bias.add('head_b2', Bz(D))
    w_out = jnp.zeros((D, OUT_PAD), F32).at[:, :C_OUT].set(W(D, C_OUT))
    w32.add('head_wout', w_out); bias.add('head_bout', Bz(OUT_PAD))

    arrays = [wemb.build(BF16), w32.build(BF16), w64.build(BF16), w96.build(BF16),
              bias.build(F32), lns.build(F32),
              positional_embedding(max(SEQ_LEN, L_DEC), D_MODEL)]
    slabs = dict(wemb=wemb, w32=w32, w64=w64, w96=w96, bias=bias, lns=lns)
    return arrays, slabs


# ----------------------------- main -----------------------------
if __name__ == "__main__":
    weights, slabs = init_params()
    forward = make_forward(slabs)

    key = jax.random.PRNGKey(0)
    k1, k2, k3, k4 = jax.random.split(key, 4)
    x_enc = jax.random.normal(k1, (B, SEQ_LEN, ENC_IN), F32)
    x_mark_enc = jax.random.normal(k2, (B, SEQ_LEN, N_MARKS), F32)
    x_dec = jax.random.normal(k3, (B, LABEL_LEN + PRED_LEN, DEC_IN), F32)
    x_mark_dec = jax.random.normal(k4, (B, LABEL_LEN + PRED_LEN, N_MARKS), F32)

    out = forward(weights, x_enc, x_mark_enc, x_dec, x_mark_dec)
    jax.block_until_ready(out)

    assert out.shape == (B, PRED_LEN, C_OUT), out.shape
    assert bool(jnp.all(jnp.isfinite(out)))
    print("KERNEL_OK")
</pallas_src>

<mosaic_0001>
module attributes {stable_mosaic.version = 11 : i64} {
  func.func @kernel(%arg0: i32, %arg1: memref<1x16x4xf32, #tpu.memory_space<vmem>>, %arg2: memref<1x16x4xf32, #tpu.memory_space<vmem>>, %arg3: memref<1x16x4xf32, #tpu.memory_space<vmem>>, %arg4: memref<1x16x4xf32, #tpu.memory_space<vmem>>, %arg5: memref<80x32xbf16, #tpu.memory_space<vmem>>, %arg6: memref<32x1024xbf16, #tpu.memory_space<vmem>>, %arg7: memref<64x160xbf16, #tpu.memory_space<vmem>>, %arg8: memref<96x192xbf16, #tpu.memory_space<vmem>>, %arg9: memref<1x1376xf32, #tpu.memory_space<vmem>>, %arg10: memref<28x32xf32, #tpu.memory_space<vmem>>, %arg11: memref<16x32xf32, #tpu.memory_space<vmem>>, %arg12: memref<1x16x128xf32, #tpu.memory_space<vmem>>) attributes {dimension_semantics = [#tpu.dimension_semantics<parallel>], iteration_bounds = array<i64: 2>, scalar_prefetch = 0 : i64, scratch_operands = 0 : i64, tpu.core_type = #tpu.core_type<tc>, window_params = [{transform_indices = @transform_0, window_bounds = array<i64: 1, 16, 4>}, {transform_indices = @transform_1, window_bounds = array<i64: 1, 16, 4>}, {transform_indices = @transform_2, window_bounds = array<i64: 1, 16, 4>}, {transform_indices = @transform_3, window_bounds = array<i64: 1, 16, 4>}, {pipeline_mode = #tpu.pipeline_mode<synchronous>, transform_indices = @transform_4, window_bounds = array<i64: 80, 32>}, {pipeline_mode = #tpu.pipeline_mode<synchronous>, transform_indices = @transform_5, window_bounds = array<i64: 32, 1024>}, {pipeline_mode = #tpu.pipeline_mode<synchronous>, transform_indices = @transform_6, window_bounds = array<i64: 64, 160>}, {pipeline_mode = #tpu.pipeline_mode<synchronous>, transform_indices = @transform_7, window_bounds = array<i64: 96, 192>}, {pipeline_mode = #tpu.pipeline_mode<synchronous>, transform_indices = @transform_8, window_bounds = array<i64: 1, 1376>}, {pipeline_mode = #tpu.pipeline_mode<synchronous>, transform_indices = @transform_9, window_bounds = array<i64: 28, 32>}, {pipeline_mode = #tpu.pipeline_mode<synchronous>, transform_indices = @transform_10, window_bounds = array<i64: 16, 32>}, {transform_indices = @transform_11, window_bounds = array<i64: 1, 16, 128>}]} {
    %c0 = arith.constant 0 : index
    %c0_0 = arith.constant 0 : index
    %c0_1 = arith.constant 0 : index
    %0 = vector.load %arg1[%c0, %c0_0, %c0_1] : memref<1x16x4xf32, #tpu.memory_space<vmem>>, vector<1x16x4xf32>
    %1 = vector.shape_cast %0 : vector<1x16x4xf32> to vector<16x4xf32>
    %c0_2 = arith.constant 0 : index
    %c0_3 = arith.constant 0 : index
    %c0_4 = arith.constant 0 : index
    %2 = vector.load %arg2[%c0_2, %c0_3, %c0_4] : memref<1x16x4xf32, #tpu.memory_space<vmem>>, vector<1x16x4xf32>
    %3 = vector.shape_cast %2 : vector<1x16x4xf32> to vector<16x4xf32>
    %c0_5 = arith.constant 0 : index
    %c0_6 = arith.constant 0 : index
    %c0_7 = arith.constant 0 : index
    %4 = vector.load %arg3[%c0_5, %c0_6, %c0_7] : memref<1x16x4xf32, #tpu.memory_space<vmem>>, vector<1x16x4xf32>
    %5 = vector.shape_cast %4 : vector<1x16x4xf32> to vector<16x4xf32>
    %c0_8 = arith.constant 0 : index
    %c0_9 = arith.constant 0 : index
    %c0_10 = arith.constant 0 : index
    %6 = vector.load %arg4[%c0_8, %c0_9, %c0_10] : memref<1x16x4xf32, #tpu.memory_space<vmem>>, vector<1x16x4xf32>
    %7 = vector.shape_cast %6 : vector<1x16x4xf32> to vector<16x4xf32>
    %c0_11 = arith.constant 0 : index
    %c0_12 = arith.constant 0 : index
    %8 = vector.load %arg11[%c0_11, %c0_12] : memref<16x32xf32, #tpu.memory_space<vmem>>, vector<16x32xf32>
    %9 = vector.extract_strided_slice %1 {offsets = [0, 0], sizes = [1, 4], strides = [1, 1]} : vector<16x4xf32> to vector<1x4xf32>
    %10 = vector.extract_strided_slice %1 {offsets = [0, 0], sizes = [15, 4], strides = [1, 1]} : vector<16x4xf32> to vector<15x4xf32>
    %11 = tpu.concatenate %9, %10 in 0 : vector<1x4xf32>, vector<15x4xf32> -> vector<16x4xf32>
    %12 = arith.addf %1, %11 : vector<16x4xf32>
    %cst = arith.constant 5.000000e-01 : f32
    %13 = vector.broadcast %cst : f32 to vector<16x4xf32>
    %14 = arith.mulf %13, %12 : vector<16x4xf32>
    %15 = arith.subf %1, %14 : vector<16x4xf32>
    %16 = vector.extract_strided_slice %14 {offsets = [0, 0], sizes = [1, 4], strides = [1, 1]} : vector<16x4xf32> to vector<1x4xf32>
    %17 = vector.extract_strided_slice %14 {offsets = [0, 0], sizes = [15, 4], strides = [1, 1]} : vector<16x4xf32> to vector<15x4xf32>
    %18 = tpu.concatenate %16, %17 in 0 : vector<1x4xf32>, vector<15x4xf32> -> vector<16x4xf32>
    %19 = arith.addf %14, %18 : vector<16x4xf32>
    %cst_13 = arith.constant 5.000000e-01 : f32
    %20 = vector.broadcast %cst_13 : f32 to vector<16x4xf32>
    %21 = arith.mulf %20, %19 : vector<16x4xf32>
    %22 = arith.subf %14, %21 : vector<16x4xf32>
    %23 = tpu.concatenate %15, %22 in 1 : vector<16x4xf32>, vector<16x4xf32> -> vector<16x8xf32>
    %24 = vector.extract_strided_slice %5 {offsets = [0, 0], sizes = [8, 4], strides = [1, 1]} : vector<16x4xf32> to vector<8x4xf32>
    %25 = vector.extract_strided_slice %24 {offsets = [0, 0], sizes = [1, 4], strides = [1, 1]} : vector<8x4xf32> to vector<1x4xf32>
    %26 = vector.extract_strided_slice %24 {offsets = [0, 0], sizes = [7, 4], strides = [1, 1]} : vector<8x4xf32> to vector<7x4xf32>
    %27 = tpu.concatenate %25, %26 in 0 : vector<1x4xf32>, vector<7x4xf32> -> vector<8x4xf32>
    %28 = arith.addf %24, %27 : vector<8x4xf32>
    %cst_14 = arith.constant 5.000000e-01 : f32
    %29 = vector.broadcast %cst_14 : f32 to vector<8x4xf32>
    %30 = arith.mulf %29, %28 : vector<8x4xf32>
    %31 = arith.subf %24, %30 : vector<8x4xf32>
    %32 = vector.extract_strided_slice %30 {offsets = [0, 0], sizes = [1, 4], strides = [1, 1]} : vector<8x4xf32> to vector<1x4xf32>
    %33 = vector.extract_strided_slice %30 {offsets = [0, 0], sizes = [7, 4], strides = [1, 1]} : vector<8x4xf32> to vector<7x4xf32>
    %34 = tpu.concatenate %32, %33 in 0 : vector<1x4xf32>, vector<7x4xf32> -> vector<8x4xf32>
    %35 = arith.addf %30, %34 : vector<8x4xf32>
    %cst_15 = arith.constant 5.000000e-01 : f32
    %36 = vector.broadcast %cst_15 : f32 to vector<8x4xf32>
    %37 = arith.mulf %36, %35 : vector<8x4xf32>
    %38 = arith.subf %30, %37 : vector<8x4xf32>
    %39 = tpu.concatenate %31, %38 in 1 : vector<8x4xf32>, vector<8x4xf32> -> vector<8x8xf32>
    %cst_16 = arith.constant dense<0.000000e+00> : vector<4xf32>
    %40 = vector.multi_reduction <add>, %37, %cst_16 [0] : vector<8x4xf32> to vector<4xf32>
    %41 = vector.shape_cast %40 : vector<4xf32> to vector<1x4xf32>
    %cst_17 = arith.constant 8.000000e+00 : f32
    %42 = vector.broadcast %cst_17 : f32 to vector<1x4xf32>
    %43 = arith.divf %41, %42 : vector<1x4xf32>
    %44 = vector.shape_cast %43 : vector<1x4xf32> to vector<1x4xf32>
    %45 = vector.broadcast %44 : vector<1x4xf32> to vector<8x4xf32>
    %46 = tpu.concatenate %37, %45 in 0 : vector<8x4xf32>, vector<8x4xf32> -> vector<16x4xf32>
    %cst_18 = arith.constant 0.000000e+00 : f32
    %47 = vector.broadcast %cst_18 : f32 to vector<8x8xf32>
    %48 = tpu.concatenate %39, %47 in 0 : vector<8x8xf32>, vector<8x8xf32> -> vector<16x8xf32>
    %c0_19 = arith.constant 0 : index
    %c0_20 = arith.constant 0 : index
    %49 = vector.load %arg5[%c0_19, %c0_20] : memref<80x32xbf16, #tpu.memory_space<vmem>>, vector<24x32xbf16>
    %50 = vector.extract_strided_slice %23 {offsets = [15, 0], sizes = [1, 8], strides = [1, 1]} : vector<16x8xf32> to vector<1x8xf32>
    %51 = vector.extract_strided_slice %23 {offsets = [0, 0], sizes = [15, 8], strides = [1, 1]} : vector<16x8xf32> to vector<15x8xf32>
    %52 = tpu.concatenate %50, %51 in 0 : vector<1x8xf32>, vector<15x8xf32> -> vector<16x8xf32>
    %53 = vector.extract_strided_slice %23 {offsets = [1, 0], sizes = [15, 8], strides = [1, 1]} : vector<16x8xf32> to vector<15x8xf32>
    %54 = vector.extract_strided_slice %23 {offsets = [0, 0], sizes = [1, 8], strides = [1, 1]} : vector<16x8xf32> to vector<1x8xf32>
    %55 = tpu.concatenate %53, %54 in 0 : vector<15x8xf32>, vector<1x8xf32> -> vector<16x8xf32>
    %56 = tpu.concatenate %52, %23, %55 in 1 : vector<16x8xf32>, vector<16x8xf32>, vector<16x8xf32> -> vector<16x24xf32>
    %57 = arith.truncf %56 : vector<16x24xf32> to vector<16x24xbf16>
    %cst_21 = arith.constant dense<0.000000e+00> : vector<16x32xf32>
    %58 = tpu.matmul %57, %49, %cst_21 {dimension_numbers = #tpu.dot_dimension_numbers<[1], [0], [0], [1], [0, 0, 1, 1], [], []>} : vector<16x24xbf16>, vector<24x32xbf16>, vector<16x32xf32> -> vector<16x32xf32>
    %c24 = arith.constant 24 : index
    %c0_22 = arith.constant 0 : index
    %59 = vector.load %arg5[%c24, %c0_22] : memref<80x32xbf16, #tpu.memory_space<vmem>>, vector<12x32xbf16>
    %60 = vector.extract_strided_slice %21 {offsets = [15, 0], sizes = [1, 4], strides = [1, 1]} : vector<16x4xf32> to vector<1x4xf32>
    %61 = vector.extract_strided_slice %21 {offsets = [0, 0], sizes = [15, 4], strides = [1, 1]} : vector<16x4xf32> to vector<15x4xf32>
    %62 = tpu.concatenate %60, %61 in 0 : vector<1x4xf32>, vector<15x4xf32> -> vector<16x4xf32>
    %63 = vector.extract_strided_slice %21 {offsets = [1, 0], sizes = [15, 4], strides = [1, 1]} : vector<16x4xf32> to vector<15x4xf32>
    %64 = vector.extract_strided_slice %21 {offsets = [0, 0], sizes = [1, 4], strides = [1, 1]} : vector<16x4xf32> to vector<1x4xf32>
    %65 = tpu.concatenate %63, %64 in 0 : vector<15x4xf32>, vector<1x4xf32> -> vector<16x4xf32>
    %66 = tpu.concatenate %62, %21, %65 in 1 : vector<16x4xf32>, vector<16x4xf32>, vector<16x4xf32> -> vector<16x12xf32>
    %67 = arith.truncf %66 : vector<16x12xf32> to vector<16x12xbf16>
    %cst_23 = arith.constant dense<0.000000e+00> : vector<16x32xf32>
    %68 = tpu.matmul %67, %59, %cst_23 {dimension_numbers = #tpu.dot_dimension_numbers<[1], [0], [0], [1], [0, 0, 1, 1], [], []>} : vector<16x12xbf16>, vector<12x32xbf16>, vector<16x32xf32> -> vector<16x32xf32>
    %c36 = arith.constant 36 : index
    %c0_24 = arith.constant 0 : index
    %69 = vector.load %arg5[%c36, %c0_24] : memref<80x32xbf16, #tpu.memory_space<vmem>>, vector<4x32xbf16>
    %70 = arith.truncf %3 : vector<16x4xf32> to vector<16x4xbf16>
    %cst_25 = arith.constant dense<0.000000e+00> : vector<16x32xf32>
    %71 = tpu.matmul %70, %69, %cst_25 {dimension_numbers = #tpu.dot_dimension_numbers<[1], [0], [0], [1], [0, 0, 1, 1], [], []>} : vector<16x4xbf16>, vector<4x32xbf16>, vector<16x32xf32> -> vector<16x32xf32>
    %72 = arith.addf %68, %71 : vector<16x32xf32>
    %73 = arith.addf %72, %8 : vector<16x32xf32>
    %c40 = arith.constant 40 : index
    %c0_26 = arith.constant 0 : index
    %74 = vector.load %arg5[%c40, %c0_26] : memref<80x32xbf16, #tpu.memory_space<vmem>>, vector<24x32xbf16>
    %75 = vector.extract_strided_slice %48 {offsets = [15, 0], sizes = [1, 8], strides = [1, 1]} : vector<16x8xf32> to vector<1x8xf32>
    %76 = vector.extract_strided_slice %48 {offsets = [0, 0], sizes = [15, 8], strides = [1, 1]} : vector<16x8xf32> to vector<15x8xf32>
    %77 = tpu.concatenate %75, %76 in 0 : vector<1x8xf32>, vector<15x8xf32> -> vector<16x8xf32>
    %78 = vector.extract_strided_slice %48 {offsets = [1, 0], sizes = [15, 8], strides = [1, 1]} : vector<16x8xf32> to vector<15x8xf32>
    %79 = vector.extract_strided_slice %48 {offsets = [0, 0], sizes = [1, 8], strides = [1, 1]} : vector<16x8xf32> to vector<1x8xf32>
    %80 = tpu.concatenate %78, %79 in 0 : vector<15x8xf32>, vector<1x8xf32> -> vector<16x8xf32>
    %81 = tpu.concatenate %77, %48, %80 in 1 : vector<16x8xf32>, vector<16x8xf32>, vector<16x8xf32> -> vector<16x24xf32>
    %82 = arith.truncf %81 : vector<16x24xf32> to vector<16x24xbf16>
    %cst_27 = arith.constant dense<0.000000e+00> : vector<16x32xf32>
    %83 = tpu.matmul %82, %74, %cst_27 {dimension_numbers = #tpu.dot_dimension_numbers<[1], [0], [0], [1], [0, 0, 1, 1], [], []>} : vector<16x24xbf16>, vector<24x32xbf16>, vector<16x32xf32> -> vector<16x32xf32>
    %c64 = arith.constant 64 : index
    %c0_28 = arith.constant 0 : index
    %84 = vector.load %arg5[%c64, %c0_28] : memref<80x32xbf16, #tpu.memory_space<vmem>>, vector<12x32xbf16>
    %85 = vector.extract_strided_slice %46 {offsets = [15, 0], sizes = [1, 4], strides = [1, 1]} : vector<16x4xf32> to vector<1x4xf32>
    %86 = vector.extract_strided_slice %46 {offsets = [0, 0], sizes = [15, 4], strides = [1, 1]} : vector<16x4xf32> to vector<15x4xf32>
    %87 = tpu.concatenate %85, %86 in 0 : vector<1x4xf32>, vector<15x4xf32> -> vector<16x4xf32>
    %88 = vector.extract_strided_slice %46 {offsets = [1, 0], sizes = [15, 4], strides = [1, 1]} : vector<16x4xf32> to vector<15x4xf32>
    %89 = vector.extract_strided_slice %46 {offsets = [0, 0], sizes = [1, 4], strides = [1, 1]} : vector<16x4xf32> to vector<1x4xf32>
    %90 = tpu.concatenate %88, %89 in 0 : vector<15x4xf32>, vector<1x4xf32> -> vector<16x4xf32>
    %91 = tpu.concatenate %87, %46, %90 in 1 : vector<16x4xf32>, vector<16x4xf32>, vector<16x4xf32> -> vector<16x12xf32>
    %92 = arith.truncf %91 : vector<16x12xf32> to vector<16x12xbf16>
    %cst_29 = arith.constant dense<0.000000e+00> : vector<16x32xf32>
    %93 = tpu.matmul %92, %84, %cst_29 {dimension_numbers = #tpu.dot_dimension_numbers<[1], [0], [0], [1], [0, 0, 1, 1], [], []>} : vector<16x12xbf16>, vector<12x32xbf16>, vector<16x32xf32> -> vector<16x32xf32>
    %c76 = arith.constant 76 : index
    %c0_30 = arith.constant 0 : index
    %94 = vector.load %arg5[%c76, %c0_30] : memref<80x32xbf16, #tpu.memory_space<vmem>>, vector<4x32xbf16>
    %95 = arith.truncf %7 : vector<16x4xf32> to vector<16x4xbf16>
    %cst_31 = arith.constant dense<0.000000e+00> : vector<16x32xf32>
    %96 = tpu.matmul %95, %94, %cst_31 {dimension_numbers = #tpu.dot_dimension_numbers<[1], [0], [0], [1], [0, 0, 1, 1], [], []>} : vector<16x4xbf16>, vector<4x32xbf16>, vector<16x32xf32> -> vector<16x32xf32>
    %97 = arith.addf %93, %96 : vector<16x32xf32>
    %98 = arith.addf %97, %8 : vector<16x32xf32>
    %c0_32 = arith.constant 0 : index
    %c0_33 = arith.constant 0 : index
    %99 = vector.load %arg6[%c0_32, %c0_33] : memref<32x1024xbf16, #tpu.memory_space<vmem>>, vector<32x96xbf16>
    %100 = arith.truncf %58 : vector<16x32xf32> to vector<16x32xbf16>
    %cst_34 = arith.constant dense<0.000000e+00> : vector<16x96xf32>
    %101 = tpu.matmul %100, %99, %cst_34 {dimension_numbers = #tpu.dot_dimension_numbers<[1], [0], [0], [1], [0, 0, 1, 1], [], []>} : vector<16x32xbf16>, vector<32x96xbf16>, vector<16x96xf32> -> vector<16x96xf32>
    %c0_35 = arith.constant 0 : index
    %c0_36 = arith.constant 0 : index
    %102 = vector.load %arg9[%c0_35, %c0_36] : memref<1x1376xf32, #tpu.memory_space<vmem>>, vector<1x96xf32>
    %103 = vector.broadcast %102 : vector<1x96xf32> to vector<16x96xf32>
    %104 = arith.addf %101, %103 : vector<16x96xf32>
    %105 = vector.extract_strided_slice %104 {offsets = [0, 0], sizes = [16, 32], strides = [1, 1]} : vector<16x96xf32> to vector<16x32xf32>
    %106 = vector.extract_strided_slice %104 {offsets = [0, 32], sizes = [16, 32], strides = [1, 1]} : vector<16x96xf32> to vector<16x32xf32>
    %107 = vector.extract_strided_slice %104 {offsets = [0, 64], sizes = [16, 32], strides = [1, 1]} : vector<16x96xf32> to vector<16x32xf32>
    %c0_37 = arith.constant 0 : index
    %c96 = arith.constant 96 : index
    %108 = vector.load %arg6[%c0_37, %c96] : memref<32x1024xbf16, #tpu.memory_space<vmem>>, vector<32x32xbf16>
    %c0_38 = arith.constant 0 : index
    %c96_39 = arith.constant 96 : index
    %109 = vector.load %arg9[%c0_38, %c96_39] : memref<1x1376xf32, #tpu.memory_space<vmem>>, vector<1x32xf32>
    %110 = vector.extract_strided_slice %105 {offsets = [0, 0], sizes = [16, 8], strides = [1, 1]} : vector<16x32xf32> to vector<16x8xf32>
    %111 = arith.truncf %110 : vector<16x8xf32> to vector<16x8xbf16>
    %112 = vector.extract_strided_slice %106 {offsets = [0, 0], sizes = [16, 8], strides = [1, 1]} : vector<16x32xf32> to vector<16x8xf32>
    %113 = arith.truncf %112 : vector<16x8xf32> to vector<16x8xbf16>
    %cst_40 = arith.constant dense<0.000000e+00> : vector<16x16xf32>
    %114 = tpu.matmul %111, %113, %cst_40 {dimension_numbers = #tpu.dot_dimension_numbers<[1], [1], [0], [0], [0, 0, 1, 0], [], []>} : vector<16x8xbf16>, vector<16x8xbf16>, vector<16x16xf32> -> vector<16x16xf32>
    %cst_41 = arith.constant dense<0xFF800000> : vector<16xf32>
    %115 = vector.multi_reduction <maximumf>, %114, %cst_41 [1] : vector<16x16xf32> to vector<16xf32>
    %116 = vector.shape_cast %115 : vector<16xf32> to vector<16x1xf32>
    %117 = vector.broadcast %116 : vector<16x1xf32> to vector<16x16xf32>
    %118 = arith.subf %114, %117 : vector<16x16xf32>
    %119 = math.exp %118 : vector<16x16xf32>
    %cst_42 = arith.constant dense<0.000000e+00> : vector<16xf32>
    %120 = vector.multi_reduction <add>, %119, %cst_42 [1] : vector<16x16xf32> to vector<16xf32>
    %121 = vector.shape_cast %120 : vector<16xf32> to vector<16x1xf32>
    %122 = tpu.reciprocal %121 {approx = true} : vector<16x1xf32> -> vector<16x1xf32>
    %123 = vector.broadcast %122 : vector<16x1xf32> to vector<16x16xf32>
    %124 = arith.mulf %119, %123 : vector<16x16xf32>
    %125 = arith.truncf %124 : vector<16x16xf32> to vector<16x16xbf16>
    %126 = vector.extract_strided_slice %107 {offsets = [0, 0], sizes = [16, 8], strides = [1, 1]} : vector<16x32xf32> to vector<16x8xf32>
    %127 = arith.truncf %126 : vector<16x8xf32> to vector<16x8xbf16>
    %cst_43 = arith.constant dense<0.000000e+00> : vector<16x8xf32>
    %128 = tpu.matmul %125, %127, %cst_43 {dimension_numbers = #tpu.dot_dimension_numbers<[1], [0], [0], [1], [0, 0, 1, 1], [], []>} : vector<16x16xbf16>, vector<16x8xbf16>, vector<16x8xf32> -> vector<16x8xf32>
    %129 = vector.extract_strided_slice %105 {offsets = [0, 8], sizes = [16, 8], strides = [1, 1]} : vector<16x32xf32> to vector<16x8xf32>
    %130 = arith.truncf %129 : vector<16x8xf32> to vector<16x8xbf16>
    %131 = vector.extract_strided_slice %106 {offsets = [0, 8], sizes = [16, 8], strides = [1, 1]} : vector<16x32xf32> to vector<16x8xf32>
    %132 = arith.truncf %131 : vector<16x8xf32> to vector<16x8xbf16>
    %cst_44 = arith.constant dense<0.000000e+00> : vector<16x16xf32>
    %133 = tpu.matmul %130, %132, %cst_44 {dimension_numbers = #tpu.dot_dimension_numbers<[1], [1], [0], [0], [0, 0, 1, 0], [], []>} : vector<16x8xbf16>, vector<16x8xbf16>, vector<16x16xf32> -> vector<16x16xf32>
    %cst_45 = arith.constant dense<0xFF800000> : vector<16xf32>
    %134 = vector.multi_reduction <maximumf>, %133, %cst_45 [1] : vector<16x16xf32> to vector<16xf32>
    %135 = vector.shape_cast %134 : vector<16xf32> to vector<16x1xf32>
    %136 = vector.broadcast %135 : vector<16x1xf32> to vector<16x16xf32>
    %137 = arith.subf %133, %136 : vector<16x16xf32>
    %138 = math.exp %137 : vector<16x16xf32>
    %cst_46 = arith.constant dense<0.000000e+00> : vector<16xf32>
    %139 = vector.multi_reduction <add>, %138, %cst_46 [1] : vector<16x16xf32> to vector<16xf32>
    %140 = vector.shape_cast %139 : vector<16xf32> to vector<16x1xf32>
    %141 = tpu.reciprocal %140 {approx = true} : vector<16x1xf32> -> vector<16x1xf32>
    %142 = vector.broadcast %141 : vector<16x1xf32> to vector<16x16xf32>
    %143 = arith.mulf %138, %142 : vector<16x16xf32>
    %144 = arith.truncf %143 : vector<16x16xf32> to vector<16x16xbf16>
    %145 = vector.extract_strided_slice %107 {offsets = [0, 8], sizes = [16, 8], strides = [1, 1]} : vector<16x32xf32> to vector<16x8xf32>
    %146 = arith.truncf %145 : vector<16x8xf32> to vector<16x8xbf16>
    %cst_47 = arith.constant dense<0.000000e+00> : vector<16x8xf32>
    %147 = tpu.matmul %144, %146, %cst_47 {dimension_numbers = #tpu.dot_dimension_numbers<[1], [0], [0], [1], [0, 0, 1, 1], [], []>} : vector<16x16xbf16>, vector<16x8xbf16>, vector<16x8xf32> -> vector<16x8xf32>
    %148 = vector.extract_strided_slice %105 {offsets = [0, 16], sizes = [16, 8], strides = [1, 1]} : vector<16x32xf32> to vector<16x8xf32>
    %149 = arith.truncf %148 : vector<16x8xf32> to vector<16x8xbf16>
    %150 = vector.extract_strided_slice %106 {offsets = [0, 16], sizes = [16, 8], strides = [1, 1]} : vector<16x32xf32> to vector<16x8xf32>
    %151 = arith.truncf %150 : vector<16x8xf32> to vector<16x8xbf16>
    %cst_48 = arith.constant dense<0.000000e+00> : vector<16x16xf32>
    %152 = tpu.matmul %149, %151, %cst_48 {dimension_numbers = #tpu.dot_dimension_numbers<[1], [1], [0], [0], [0, 0, 1, 0], [], []>} : vector<16x8xbf16>, vector<16x8xbf16>, vector<16x16xf32> -> vector<16x16xf32>
    %cst_49 = arith.constant dense<0xFF800000> : vector<16xf32>
    %153 = vector.multi_reduction <maximumf>, %152, %cst_49 [1] : vector<16x16xf32> to vector<16xf32>
    %154 = vector.shape_cast %153 : vector<16xf32> to vector<16x1xf32>
    %155 = vector.broadcast %154 : vector<16x1xf32> to vector<16x16xf32>
    %156 = arith.subf %152, %155 : vector<16x16xf32>
    %157 = math.exp %156 : vector<16x16xf32>
    %cst_50 = arith.constant dense<0.000000e+00> : vector<16xf32>
    %158 = vector.multi_reduction <add>, %157, %cst_50 [1] : vector<16x16xf32> to vector<16xf32>
    %159 = vector.shape_cast %158 : vector<16xf32> to vector<16x1xf32>
    %160 = tpu.reciprocal %159 {approx = true} : vector<16x1xf32> -> vector<16x1xf32>
    %161 = vector.broadcast %160 : vector<16x1xf32> to vector<16x16xf32>
    %162 = arith.mulf %157, %161 : vector<16x16xf32>
    %163 = arith.truncf %162 : vector<16x16xf32> to vector<16x16xbf16>
    %164 = vector.extract_strided_slice %107 {offsets = [0, 16], sizes = [16, 8], strides = [1, 1]} : vector<16x32xf32> to vector<16x8xf32>
    %165 = arith.truncf %164 : vector<16x8xf32> to vector<16x8xbf16>
    %cst_51 = arith.constant dense<0.000000e+00> : vector<16x8xf32>
    %166 = tpu.matmul %163, %165, %cst_51 {dimension_numbers = #tpu.dot_dimension_numbers<[1], [0], [0], [1], [0, 0, 1, 1], [], []>} : vector<16x16xbf16>, vector<16x8xbf16>, vector<16x8xf32> -> vector<16x8xf32>
    %167 = vector.extract_strided_slice %105 {offsets = [0, 24], sizes = [16, 8], strides = [1, 1]} : vector<16x32xf32> to vector<16x8xf32>
    %168 = arith.truncf %167 : vector<16x8xf32> to vector<16x8xbf16>
    %169 = vector.extract_strided_slice %106 {offsets = [0, 24], sizes = [16, 8], strides = [1, 1]} : vector<16x32xf32> to vector<16x8xf32>
    %170 = arith.truncf %169 : vector<16x8xf32> to vector<16x8xbf16>
    %cst_52 = arith.constant dense<0.000000e+00> : vector<16x16xf32>
    %171 = tpu.matmul %168, %170, %cst_52 {dimension_numbers = #tpu.dot_dimension_numbers<[1], [1], [0], [0], [0, 0, 1, 0], [], []>} : vector<16x8xbf16>, vector<16x8xbf16>, vector<16x16xf32> -> vector<16x16xf32>
    %cst_53 = arith.constant dense<0xFF800000> : vector<16xf32>
    %172 = vector.multi_reduction <maximumf>, %171, %cst_53 [1] : vector<16x16xf32> to vector<16xf32>
    %173 = vector.shape_cast %172 : vector<16xf32> to vector<16x1xf32>
    %174 = vector.broadcast %173 : vector<16x1xf32> to vector<16x16xf32>
    %175 = arith.subf %171, %174 : vector<16x16xf32>
    %176 = math.exp %175 : vector<16x16xf32>
    %cst_54 = arith.constant dense<0.000000e+00> : vector<16xf32>
    %177 = vector.multi_reduction <add>, %176, %cst_54 [1] : vector<16x16xf32> to vector<16xf32>
    %178 = vector.shape_cast %177 : vector<16xf32> to vector<16x1xf32>
    %179 = tpu.reciprocal %178 {approx = true} : vector<16x1xf32> -> vector<16x1xf32>
    %180 = vector.broadcast %179 : vector<16x1xf32> to vector<16x16xf32>
    %181 = arith.mulf %176, %180 : vector<16x16xf32>
    %182 = arith.truncf %181 : vector<16x16xf32> to vector<16x16xbf16>
    %183 = vector.extract_strided_slice %107 {offsets = [0, 24], sizes = [16, 8], strides = [1, 1]} : vector<16x32xf32> to vector<16x8xf32>
    %184 = arith.truncf %183 : vector<16x8xf32> to vector<16x8xbf16>
    %cst_55 = arith.constant dense<0.000000e+00> : vector<16x8xf32>
    %185 = tpu.matmul %182, %184, %cst_55 {dimension_numbers = #tpu.dot_dimension_numbers<[1], [0], [0], [1], [0, 0, 1, 1], [], []>} : vector<16x16xbf16>, vector<16x8xbf16>, vector<16x8xf32> -> vector<16x8xf32>
    %186 = tpu.concatenate %128, %147, %166, %185 in 1 : vector<16x8xf32>, vector<16x8xf32>, vector<16x8xf32>, vector<16x8xf32> -> vector<16x32xf32>
    %187 = arith.truncf %186 : vector<16x32xf32> to vector<16x32xbf16>
    %cst_56 = arith.constant dense<0.000000e+00> : vector<16x32xf32>
    %188 = tpu.matmul %187, %108, %cst_56 {dimension_numbers = #tpu.dot_dimension_numbers<[1], [0], [0], [1], [0, 0, 1, 1], [], []>} : vector<16x32xbf16>, vector<32x32xbf16>, vector<16x32xf32> -> vector<16x32xf32>
    %189 = vector.broadcast %109 : vector<1x32xf32> to vector<16x32xf32>
    %190 = arith.addf %188, %189 : vector<16x32xf32>
    %c0_57 = arith.constant 0 : index
    %c0_58 = arith.constant 0 : index
    %191 = vector.load %arg10[%c0_57, %c0_58] : memref<28x32xf32, #tpu.memory_space<vmem>>, vector<2x32xf32>
    %192 = vector.extract_strided_slice %191 {offsets = [0, 0], sizes = [1, 32], strides = [1, 1]} : vector<2x32xf32> to vector<1x32xf32>
    %193 = vector.extract_strided_slice %191 {offsets = [1, 0], sizes = [1, 32], strides = [1, 1]} : vector<2x32xf32> to vector<1x32xf32>
    %194 = arith.addf %58, %190 : vector<16x32xf32>
    %cst_59 = arith.constant dense<0.000000e+00> : vector<16xf32>
    %195 = vector.multi_reduction <add>, %194, %cst_59 [1] : vector<16x32xf32> to vector<16xf32>
    %196 = vector.shape_cast %195 : vector<16xf32> to vector<16x1xf32>
    %cst_60 = arith.constant 3.200000e+01 : f32
    %197 = vector.broadcast %cst_60 : f32 to vector<16x1xf32>
    %198 = arith.divf %196, %197 : vector<16x1xf32>
    %199 = vector.broadcast %198 : vector<16x1xf32> to vector<16x32xf32>
    %200 = arith.subf %194, %199 : vector<16x32xf32>
    %201 = arith.mulf %200, %200 : vector<16x32xf32>
    %cst_61 = arith.constant dense<0.000000e+00> : vector<16xf32>
    %202 = vector.multi_reduction <add>, %201, %cst_61 [1] : vector<16x32xf32> to vector<16xf32>
    %203 = vector.shape_cast %202 : vector<16xf32> to vector<16x1xf32>
    %cst_62 = arith.constant 3.200000e+01 : f32
    %204 = vector.broadcast %cst_62 : f32 to vector<16x1xf32>
    %205 = arith.divf %203, %204 : vector<16x1xf32>
    %206 = vector.broadcast %198 : vector<16x1xf32> to vector<16x32xf32>
    %207 = arith.subf %194, %206 : vector<16x32xf32>
    %cst_63 = arith.constant 9.99999974E-6 : f32
    %208 = vector.broadcast %cst_63 : f32 to vector<16x1xf32>
    %209 = arith.addf %205, %208 : vector<16x1xf32>
    %210 = math.rsqrt %209 : vector<16x1xf32>
    %211 = vector.broadcast %210 : vector<16x1xf32> to vector<16x32xf32>
    %212 = arith.mulf %207, %211 : vector<16x32xf32>
    %213 = vector.broadcast %192 : vector<1x32xf32> to vector<16x32xf32>
    %214 = arith.mulf %212, %213 : vector<16x32xf32>
    %215 = vector.broadcast %193 : vector<1x32xf32> to vector<16x32xf32>
    %216 = arith.addf %214, %215 : vector<16x32xf32>
    %c0_64 = arith.constant 0 : index
    %c128 = arith.constant 128 : index
    %217 = vector.load %arg6[%c0_64, %c128] : memref<32x1024xbf16, #tpu.memory_space<vmem>>, vector<32x64xbf16>
    %c0_65 = arith.constant 0 : index
    %c128_66 = arith.constant 128 : index
    %218 = vector.load %arg9[%c0_65, %c128_66] : memref<1x1376xf32, #tpu.memory_space<vmem>>, vector<1x64xf32>
    %c0_67 = arith.constant 0 : index
    %c0_68 = arith.constant 0 : index
    %219 = vector.load %arg7[%c0_67, %c0_68] : memref<64x160xbf16, #tpu.memory_space<vmem>>, vector<64x32xbf16>
    %c0_69 = arith.constant 0 : index
    %c192 = arith.constant 192 : index
    %220 = vector.load %arg9[%c0_69, %c192] : memref<1x1376xf32, #tpu.memory_space<vmem>>, vector<1x32xf32>
    %221 = arith.truncf %216 : vector<16x32xf32> to vector<16x32xbf16>
    %cst_70 = arith.constant dense<0.000000e+00> : vector<16x64xf32>
    %222 = tpu.matmul %221, %217, %cst_70 {dimension_numbers = #tpu.dot_dimension_numbers<[1], [0], [0], [1], [0, 0, 1, 1], [], []>} : vector<16x32xbf16>, vector<32x64xbf16>, vector<16x64xf32> -> vector<16x64xf32>
    %223 = vector.broadcast %218 : vector<1x64xf32> to vector<16x64xf32>
    %224 = arith.addf %222, %223 : vector<16x64xf32>
    %225 = arith.mulf %224, %224 : vector<16x64xf32>
    %226 = arith.mulf %224, %225 : vector<16x64xf32>
    %cst_71 = arith.constant 4.471500e-02 : f32
    %227 = vector.broadcast %cst_71 : f32 to vector<16x64xf32>
    %228 = arith.mulf %227, %226 : vector<16x64xf32>
    %229 = arith.addf %224, %228 : vector<16x64xf32>
    %cst_72 = arith.constant 0.797884583 : f32
    %230 = vector.broadcast %cst_72 : f32 to vector<16x64xf32>
    %231 = arith.mulf %230, %229 : vector<16x64xf32>
    %232 = math.tanh %231 : vector<16x64xf32>
    %cst_73 = arith.constant 1.000000e+00 : f32
    %233 = vector.broadcast %cst_73 : f32 to vector<16x64xf32>
    %234 = arith.addf %233, %232 : vector<16x64xf32>
    %cst_74 = arith.constant 5.000000e-01 : f32
    %235 = vector.broadcast %cst_74 : f32 to vector<16x64xf32>
    %236 = arith.mulf %235, %234 : vector<16x64xf32>
    %237 = arith.mulf %224, %236 : vector<16x64xf32>
    %238 = arith.truncf %237 : vector<16x64xf32> to vector<16x64xbf16>
    %cst_75 = arith.constant dense<0.000000e+00> : vector<16x32xf32>
    %239 = tpu.matmul %238, %219, %cst_75 {dimension_numbers = #tpu.dot_dimension_numbers<[1], [0], [0], [1], [0, 0, 1, 1], [], []>} : vector<16x64xbf16>, vector<64x32xbf16>, vector<16x32xf32> -> vector<16x32xf32>
    %240 = vector.broadcast %220 : vector<1x32xf32> to vector<16x32xf32>
    %241 = arith.addf %239, %240 : vector<16x32xf32>
    %c2 = arith.constant 2 : index
    %c0_76 = arith.constant 0 : index
    %242 = vector.load %arg10[%c2, %c0_76] : memref<28x32xf32, #tpu.memory_space<vmem>>, vector<2x32xf32>
    %243 = vector.extract_strided_slice %242 {offsets = [0, 0], sizes = [1, 32], strides = [1, 1]} : vector<2x32xf32> to vector<1x32xf32>
    %244 = vector.extract_strided_slice %242 {offsets = [1, 0], sizes = [1, 32], strides = [1, 1]} : vector<2x32xf32> to vector<1x32xf32>
    %245 = arith.addf %216, %241 : vector<16x32xf32>
    %cst_77 = arith.constant dense<0.000000e+00> : vector<16xf32>
    %246 = vector.multi_reduction <add>, %245, %cst_77 [1] : vector<16x32xf32> to vector<16xf32>
    %247 = vector.shape_cast %246 : vector<16xf32> to vector<16x1xf32>
    %cst_78 = arith.constant 3.200000e+01 : f32
    %248 = vector.broadcast %cst_78 : f32 to vector<16x1xf32>
    %249 = arith.divf %247, %248 : vector<16x1xf32>
    %250 = vector.broadcast %249 : vector<16x1xf32> to vector<16x32xf32>
    %251 = arith.subf %245, %250 : vector<16x32xf32>
    %252 = arith.mulf %251, %251 : vector<16x32xf32>
    %cst_79 = arith.constant dense<0.000000e+00> : vector<16xf32>
    %253 = vector.multi_reduction <add>, %252, %cst_79 [1] : vector<16x32xf32> to vector<16xf32>
    %254 = vector.shape_cast %253 : vector<16xf32> to vector<16x1xf32>
    %cst_80 = arith.constant 3.200000e+01 : f32
    %255 = vector.broadcast %cst_80 : f32 to vector<16x1xf32>
    %256 = arith.divf %254, %255 : vector<16x1xf32>
    %257 = vector.broadcast %249 : vector<16x1xf32> to vector<16x32xf32>
    %258 = arith.subf %245, %257 : vector<16x32xf32>
    %cst_81 = arith.constant 9.99999974E-6 : f32
    %259 = vector.broadcast %cst_81 : f32 to vector<16x1xf32>
    %260 = arith.addf %256, %259 : vector<16x1xf32>
    %261 = math.rsqrt %260 : vector<16x1xf32>
    %262 = vector.broadcast %261 : vector<16x1xf32> to vector<16x32xf32>
    %263 = arith.mulf %258, %262 : vector<16x32xf32>
    %264 = vector.broadcast %243 : vector<1x32xf32> to vector<16x32xf32>
    %265 = arith.mulf %263, %264 : vector<16x32xf32>
    %266 = vector.broadcast %244 : vector<1x32xf32> to vector<16x32xf32>
    %267 = arith.addf %265, %266 : vector<16x32xf32>
    %c0_82 = arith.constant 0 : index
    %c0_83 = arith.constant 0 : index
    %268 = vector.load %arg8[%c0_82, %c0_83] : memref<96x192xbf16, #tpu.memory_space<vmem>>, vector<96x64xbf16>
    %cst_84 = arith.constant 0.000000e+00 : f32
    %269 = vector.broadcast %cst_84 : f32 to vector<2x32xf32>
    %270 = vector.extract_strided_slice %73 {offsets = [0, 0], sizes = [14, 32], strides = [1, 1]} : vector<16x32xf32> to vector<14x32xf32>
    %271 = tpu.concatenate %269, %270 in 0 : vector<2x32xf32>, vector<14x32xf32> -> vector<16x32xf32>
    %cst_85 = arith.constant 0.000000e+00 : f32
    %272 = vector.broadcast %cst_85 : f32 to vector<1x32xf32>
    %273 = vector.extract_strided_slice %73 {offsets = [0, 0], sizes = [15, 32], strides = [1, 1]} : vector<16x32xf32> to vector<15x32xf32>
    %274 = tpu.concatenate %272, %273 in 0 : vector<1x32xf32>, vector<15x32xf32> -> vector<16x32xf32>
    %275 = tpu.concatenate %271, %274, %73 in 1 : vector<16x32xf32>, vector<16x32xf32>, vector<16x32xf32> -> vector<16x96xf32>
    %276 = arith.truncf %275 : vector<16x96xf32> to vector<16x96xbf16>
    %cst_86 = arith.constant dense<0.000000e+00> : vector<16x64xf32>
    %277 = tpu.matmul %276, %268, %cst_86 {dimension_numbers = #tpu.dot_dimension_numbers<[1], [0], [0], [1], [0, 0, 1, 1], [], []>} : vector<16x96xbf16>, vector<96x64xbf16>, vector<16x64xf32> -> vector<16x64xf32>
    %c0_87 = arith.constant 0 : index
    %c224 = arith.constant 224 : index
    %278 = vector.load %arg9[%c0_87, %c224] : memref<1x1376xf32, #tpu.memory_space<vmem>>, vector<1x64xf32>
    %279 = vector.broadcast %278 : vector<1x64xf32> to vector<16x64xf32>
    %280 = arith.addf %277, %279 : vector<16x64xf32>
    %c0_88 = arith.constant 0 : index
    %c192_89 = arith.constant 192 : index
    %281 = vector.load %arg6[%c0_88, %c192_89] : memref<32x1024xbf16, #tpu.memory_space<vmem>>, vector<32x32xbf16>
    %282 = arith.truncf %73 : vector<16x32xf32> to vector<16x32xbf16>
    %cst_90 = arith.constant dense<0.000000e+00> : vector<16x32xf32>
    %283 = tpu.matmul %282, %281, %cst_90 {dimension_numbers = #tpu.dot_dimension_numbers<[1], [0], [0], [1], [0, 0, 1, 1], [], []>} : vector<16x32xbf16>, vector<32x32xbf16>, vector<16x32xf32> -> vector<16x32xf32>
    %c0_91 = arith.constant 0 : index
    %c288 = arith.constant 288 : index
    %284 = vector.load %arg9[%c0_91, %c288] : memref<1x1376xf32, #tpu.memory_space<vmem>>, vector<1x32xf32>
    %285 = vector.broadcast %284 : vector<1x32xf32> to vector<16x32xf32>
    %286 = arith.addf %283, %285 : vector<16x32xf32>
    %287 = vector.extract_strided_slice %280 {offsets = [0, 0], sizes = [16, 32], strides = [1, 1]} : vector<16x64xf32> to vector<16x32xf32>
    %288 = vector.extract_strided_slice %280 {offsets = [0, 32], sizes = [16, 32], strides = [1, 1]} : vector<16x64xf32> to vector<16x32xf32>
    %c0_92 = arith.constant 0 : index
    %c224_93 = arith.constant 224 : index
    %289 = vector.load %arg6[%c0_92, %c224_93] : memref<32x1024xbf16, #tpu.memory_space<vmem>>, vector<32x32xbf16>
    %c0_94 = arith.constant 0 : index
    %c320 = arith.constant 320 : index
    %290 = vector.load %arg9[%c0_94, %c320] : memref<1x1376xf32, #tpu.memory_space<vmem>>, vector<1x32xf32>
    %291 = vector.extract_strided_slice %287 {offsets = [0, 0], sizes = [16, 8], strides = [1, 1]} : vector<16x32xf32> to vector<16x8xf32>
    %292 = arith.truncf %291 : vector<16x8xf32> to vector<16x8xbf16>
    %293 = vector.extract_strided_slice %288 {offsets = [0, 0], sizes = [16, 8], strides = [1, 1]} : vector<16x32xf32> to vector<16x8xf32>
    %294 = arith.truncf %293 : vector<16x8xf32> to vector<16x8xbf16>
    %cst_95 = arith.constant dense<0.000000e+00> : vector<16x16xf32>
    %295 = tpu.matmul %292, %294, %cst_95 {dimension_numbers = #tpu.dot_dimension_numbers<[1], [1], [0], [0], [0, 0, 1, 0], [], []>} : vector<16x8xbf16>, vector<16x8xbf16>, vector<16x16xf32> -> vector<16x16xf32>
    %cst_96 = arith.constant dense<0xFF800000> : vector<16xf32>
    %296 = vector.multi_reduction <maximumf>, %295, %cst_96 [1] : vector<16x16xf32> to vector<16xf32>
    %297 = vector.shape_cast %296 : vector<16xf32> to vector<16x1xf32>
    %298 = vector.broadcast %297 : vector<16x1xf32> to vector<16x16xf32>
    %299 = arith.subf %295, %298 : vector<16x16xf32>
    %300 = math.exp %299 : vector<16x16xf32>
    %cst_97 = arith.constant dense<0.000000e+00> : vector<16xf32>
    %301 = vector.multi_reduction <add>, %300, %cst_97 [1] : vector<16x16xf32> to vector<16xf32>
    %302 = vector.shape_cast %301 : vector<16xf32> to vector<16x1xf32>
    %303 = tpu.reciprocal %302 {approx = true} : vector<16x1xf32> -> vector<16x1xf32>
    %304 = vector.broadcast %303 : vector<16x1xf32> to vector<16x16xf32>
    %305 = arith.mulf %300, %304 : vector<16x16xf32>
    %306 = arith.truncf %305 : vector<16x16xf32> to vector<16x16xbf16>
    %307 = vector.extract_strided_slice %286 {offsets = [0, 0], sizes = [16, 8], strides = [1, 1]} : vector<16x32xf32> to vector<16x8xf32>
    %308 = arith.truncf %307 : vector<16x8xf32> to vector<16x8xbf16>
    %cst_98 = arith.constant dense<0.000000e+00> : vector<16x8xf32>
    %309 = tpu.matmul %306, %308, %cst_98 {dimension_numbers = #tpu.dot_dimension_numbers<[1], [0], [0], [1], [0, 0, 1, 1], [], []>} : vector<16x16xbf16>, vector<16x8xbf16>, vector<16x8xf32> -> vector<16x8xf32>
    %310 = vector.extract_strided_slice %287 {offsets = [0, 8], sizes = [16, 8], strides = [1, 1]} : vector<16x32xf32> to vector<16x8xf32>
    %311 = arith.truncf %310 : vector<16x8xf32> to vector<16x8xbf16>
    %312 = vector.extract_strided_slice %288 {offsets = [0, 8], sizes = [16, 8], strides = [1, 1]} : vector<16x32xf32> to vector<16x8xf32>
    %313 = arith.truncf %312 : vector<16x8xf32> to vector<16x8xbf16>
    %cst_99 = arith.constant dense<0.000000e+00> : vector<16x16xf32>
    %314 = tpu.matmul %311, %313, %cst_99 {dimension_numbers = #tpu.dot_dimension_numbers<[1], [1], [0], [0], [0, 0, 1, 0], [], []>} : vector<16x8xbf16>, vector<16x8xbf16>, vector<16x16xf32> -> vector<16x16xf32>
    %cst_100 = arith.constant dense<0xFF800000> : vector<16xf32>
    %315 = vector.multi_reduction <maximumf>, %314, %cst_100 [1] : vector<16x16xf32> to vector<16xf32>
    %316 = vector.shape_cast %315 : vector<16xf32> to vector<16x1xf32>
    %317 = vector.broadcast %316 : vector<16x1xf32> to vector<16x16xf32>
    %318 = arith.subf %314, %317 : vector<16x16xf32>
    %319 = math.exp %318 : vector<16x16xf32>
    %cst_101 = arith.constant dense<0.000000e+00> : vector<16xf32>
    %320 = vector.multi_reduction <add>, %319, %cst_101 [1] : vector<16x16xf32> to vector<16xf32>
    %321 = vector.shape_cast %320 : vector<16xf32> to vector<16x1xf32>
    %322 = tpu.reciprocal %321 {approx = true} : vector<16x1xf32> -> vector<16x1xf32>
    %323 = vector.broadcast %322 : vector<16x1xf32> to vector<16x16xf32>
    %324 = arith.mulf %319, %323 : vector<16x16xf32>
    %325 = arith.truncf %324 : vector<16x16xf32> to vector<16x16xbf16>
    %326 = vector.extract_strided_slice %286 {offsets = [0, 8], sizes = [16, 8], strides = [1, 1]} : vector<16x32xf32> to vector<16x8xf32>
    %327 = arith.truncf %326 : vector<16x8xf32> to vector<16x8xbf16>
    %cst_102 = arith.constant dense<0.000000e+00> : vector<16x8xf32>
    %328 = tpu.matmul %325, %327, %cst_102 {dimension_numbers = #tpu.dot_dimension_numbers<[1], [0], [0], [1], [0, 0, 1, 1], [], []>} : vector<16x16xbf16>, vector<16x8xbf16>, vector<16x8xf32> -> vector<16x8xf32>
    %329 = vector.extract_strided_slice %287 {offsets = [0, 16], sizes = [16, 8], strides = [1, 1]} : vector<16x32xf32> to vector<16x8xf32>
    %330 = arith.truncf %329 : vector<16x8xf32> to vector<16x8xbf16>
    %331 = vector.extract_strided_slice %288 {offsets = [0, 16], sizes = [16, 8], strides = [1, 1]} : vector<16x32xf32> to vector<16x8xf32>
    %332 = arith.truncf %331 : vector<16x8xf32> to vector<16x8xbf16>
    %cst_103 = arith.constant dense<0.000000e+00> : vector<16x16xf32>
    %333 = tpu.matmul %330, %332, %cst_103 {dimension_numbers = #tpu.dot_dimension_numbers<[1], [1], [0], [0], [0, 0, 1, 0], [], []>} : vector<16x8xbf16>, vector<16x8xbf16>, vector<16x16xf32> -> vector<16x16xf32>
    %cst_104 = arith.constant dense<0xFF800000> : vector<16xf32>
    %334 = vector.multi_reduction <maximumf>, %333, %cst_104 [1] : vector<16x16xf32> to vector<16xf32>
    %335 = vector.shape_cast %334 : vector<16xf32> to vector<16x1xf32>
    %336 = vector.broadcast %335 : vector<16x1xf32> to vector<16x16xf32>
    %337 = arith.subf %333, %336 : vector<16x16xf32>
    %338 = math.exp %337 : vector<16x16xf32>
    %cst_105 = arith.constant dense<0.000000e+00> : vector<16xf32>
    %339 = vector.multi_reduction <add>, %338, %cst_105 [1] : vector<16x16xf32> to vector<16xf32>
    %340 = vector.shape_cast %339 : vector<16xf32> to vector<16x1xf32>
    %341 = tpu.reciprocal %340 {approx = true} : vector<16x1xf32> -> vector<16x1xf32>
    %342 = vector.broadcast %341 : vector<16x1xf32> to vector<16x16xf32>
    %343 = arith.mulf %338, %342 : vector<16x16xf32>
    %344 = arith.truncf %343 : vector<16x16xf32> to vector<16x16xbf16>
    %345 = vector.extract_strided_slice %286 {offsets = [0, 16], sizes = [16, 8], strides = [1, 1]} : vector<16x32xf32> to vector<16x8xf32>
    %346 = arith.truncf %345 : vector<16x8xf32> to vector<16x8xbf16>
    %cst_106 = arith.constant dense<0.000000e+00> : vector<16x8xf32>
    %347 = tpu.matmul %344, %346, %cst_106 {dimension_numbers = #tpu.dot_dimension_numbers<[1], [0], [0], [1], [0, 0, 1, 1], [], []>} : vector<16x16xbf16>, vector<16x8xbf16>, vector<16x8xf32> -> vector<16x8xf32>
    %348 = vector.extract_strided_slice %287 {offsets = [0, 24], sizes = [16, 8], strides = [1, 1]} : vector<16x32xf32> to vector<16x8xf32>
    %349 = arith.truncf %348 : vector<16x8xf32> to vector<16x8xbf16>
    %350 = vector.extract_strided_slice %288 {offsets = [0, 24], sizes = [16, 8], strides = [1, 1]} : vector<16x32xf32> to vector<16x8xf32>
    %351 = arith.truncf %350 : vector<16x8xf32> to vector<16x8xbf16>
    %cst_107 = arith.constant dense<0.000000e+00> : vector<16x16xf32>
    %352 = tpu.matmul %349, %351, %cst_107 {dimension_numbers = #tpu.dot_dimension_numbers<[1], [1], [0], [0], [0, 0, 1, 0], [], []>} : vector<16x8xbf16>, vector<16x8xbf16>, vector<16x16xf32> -> vector<16x16xf32>
    %cst_108 = arith.constant dense<0xFF800000> : vector<16xf32>
    %353 = vector.multi_reduction <maximumf>, %352, %cst_108 [1] : vector<16x16xf32> to vector<16xf32>
    %354 = vector.shape_cast %353 : vector<16xf32> to vector<16x1xf32>
    %355 = vector.broadcast %354 : vector<16x1xf32> to vector<16x16xf32>
    %356 = arith.subf %352, %355 : vector<16x16xf32>
    %357 = math.exp %356 : vector<16x16xf32>
    %cst_109 = arith.constant dense<0.000000e+00> : vector<16xf32>
    %358 = vector.multi_reduction <add>, %357, %cst_109 [1] : vector<16x16xf32> to vector<16xf32>
    %359 = vector.shape_cast %358 : vector<16xf32> to vector<16x1xf32>
    %360 = tpu.reciprocal %359 {approx = true} : vector<16x1xf32> -> vector<16x1xf32>
    %361 = vector.broadcast %360 : vector<16x1xf32> to vector<16x16xf32>
    %362 = arith.mulf %357, %361 : vector<16x16xf32>
    %363 = arith.truncf %362 : vector<16x16xf32> to vector<16x16xbf16>
    %364 = vector.extract_strided_slice %286 {offsets = [0, 24], sizes = [16, 8], strides = [1, 1]} : vector<16x32xf32> to vector<16x8xf32>
    %365 = arith.truncf %364 : vector<16x8xf32> to vector<16x8xbf16>
    %cst_110 = arith.constant dense<0.000000e+00> : vector<16x8xf32>
    %366 = tpu.matmul %363, %365, %cst_110 {dimension_numbers = #tpu.dot_dimension_numbers<[1], [0], [0], [1], [0, 0, 1, 1], [], []>} : vector<16x16xbf16>, vector<16x8xbf16>, vector<16x8xf32> -> vector<16x8xf32>
    %367 = tpu.concatenate %309, %328, %347, %366 in 1 : vector<16x8xf32>, vector<16x8xf32>, vector<16x8xf32>, vector<16x8xf32> -> vector<16x32xf32>
    %368 = arith.truncf %367 : vector<16x32xf32> to vector<16x32xbf16>
    %cst_111 = arith.constant dense<0.000000e+00> : vector<16x32xf32>
    %369 = tpu.matmul %368, %289, %cst_111 {dimension_numbers = #tpu.dot_dimension_numbers<[1], [0], [0], [1], [0, 0, 1, 1], [], []>} : vector<16x32xbf16>, vector<32x32xbf16>, vector<16x32xf32> -> vector<16x32xf32>
    %370 = vector.broadcast %290 : vector<1x32xf32> to vector<16x32xf32>
    %371 = arith.addf %369, %370 : vector<16x32xf32>
    %c4 = arith.constant 4 : index
    %c0_112 = arith.constant 0 : index
    %372 = vector.load %arg10[%c4, %c0_112] : memref<28x32xf32, #tpu.memory_space<vmem>>, vector<2x32xf32>
    %373 = vector.extract_strided_slice %372 {offsets = [0, 0], sizes = [1, 32], strides = [1, 1]} : vector<2x32xf32> to vector<1x32xf32>
    %374 = vector.extract_strided_slice %372 {offsets = [1, 0], sizes = [1, 32], strides = [1, 1]} : vector<2x32xf32> to vector<1x32xf32>
    %375 = arith.addf %73, %371 : vector<16x32xf32>
    %cst_113 = arith.constant dense<0.000000e+00> : vector<16xf32>
    %376 = vector.multi_reduction <add>, %375, %cst_113 [1] : vector<16x32xf32> to vector<16xf32>
    %377 = vector.shape_cast %376 : vector<16xf32> to vector<16x1xf32>
    %cst_114 = arith.constant 3.200000e+01 : f32
    %378 = vector.broadcast %cst_114 : f32 to vector<16x1xf32>
    %379 = arith.divf %377, %378 : vector<16x1xf32>
    %380 = vector.broadcast %379 : vector<16x1xf32> to vector<16x32xf32>
    %381 = arith.subf %375, %380 : vector<16x32xf32>
    %382 = arith.mulf %381, %381 : vector<16x32xf32>
    %cst_115 = arith.constant dense<0.000000e+00> : vector<16xf32>
    %383 = vector.multi_reduction <add>, %382, %cst_115 [1] : vector<16x32xf32> to vector<16xf32>
    %384 = vector.shape_cast %383 : vector<16xf32> to vector<16x1xf32>
    %cst_116 = arith.constant 3.200000e+01 : f32
    %385 = vector.broadcast %cst_116 : f32 to vector<16x1xf32>
    %386 = arith.divf %384, %385 : vector<16x1xf32>
    %387 = vector.broadcast %379 : vector<16x1xf32> to vector<16x32xf32>
    %388 = arith.subf %375, %387 : vector<16x32xf32>
    %cst_117 = arith.constant 9.99999974E-6 : f32
    %389 = vector.broadcast %cst_117 : f32 to vector<16x1xf32>
    %390 = arith.addf %386, %389 : vector<16x1xf32>
    %391 = math.rsqrt %390 : vector<16x1xf32>
    %392 = vector.broadcast %391 : vector<16x1xf32> to vector<16x32xf32>
    %393 = arith.mulf %388, %392 : vector<16x32xf32>
    %394 = vector.broadcast %373 : vector<1x32xf32> to vector<16x32xf32>
    %395 = arith.mulf %393, %394 : vector<16x32xf32>
    %396 = vector.broadcast %374 : vector<1x32xf32> to vector<16x32xf32>
    %397 = arith.addf %395, %396 : vector<16x32xf32>
    %c0_118 = arith.constant 0 : index
    %c256 = arith.constant 256 : index
    %398 = vector.load %arg6[%c0_118, %c256] : memref<32x1024xbf16, #tpu.memory_space<vmem>>, vector<32x64xbf16>
    %c0_119 = arith.constant 0 : index
    %c352 = arith.constant 352 : index
    %399 = vector.load %arg9[%c0_119, %c352] : memref<1x1376xf32, #tpu.memory_space<vmem>>, vector<1x64xf32>
    %c0_120 = arith.constant 0 : index
    %c32 = arith.constant 32 : index
    %400 = vector.load %arg7[%c0_120, %c32] : memref<64x160xbf16, #tpu.memory_space<vmem>>, vector<64x32xbf16>
    %c0_121 = arith.constant 0 : index
    %c416 = arith.constant 416 : index
    %401 = vector.load %arg9[%c0_121, %c416] : memref<1x1376xf32, #tpu.memory_space<vmem>>, vector<1x32xf32>
    %402 = arith.truncf %397 : vector<16x32xf32> to vector<16x32xbf16>
    %cst_122 = arith.constant dense<0.000000e+00> : vector<16x64xf32>
    %403 = tpu.matmul %402, %398, %cst_122 {dimension_numbers = #tpu.dot_dimension_numbers<[1], [0], [0], [1], [0, 0, 1, 1], [], []>} : vector<16x32xbf16>, vector<32x64xbf16>, vector<16x64xf32> -> vector<16x64xf32>
    %404 = vector.broadcast %399 : vector<1x64xf32> to vector<16x64xf32>
    %405 = arith.addf %403, %404 : vector<16x64xf32>
    %406 = arith.mulf %405, %405 : vector<16x64xf32>
    %407 = arith.mulf %405, %406 : vector<16x64xf32>
    %cst_123 = arith.constant 4.471500e-02 : f32
    %408 = vector.broadcast %cst_123 : f32 to vector<16x64xf32>
    %409 = arith.mulf %408, %407 : vector<16x64xf32>
    %410 = arith.addf %405, %409 : vector<16x64xf32>
    %cst_124 = arith.constant 0.797884583 : f32
    %411 = vector.broadcast %cst_124 : f32 to vector<16x64xf32>
    %412 = arith.mulf %411, %410 : vector<16x64xf32>
    %413 = math.tanh %412 : vector<16x64xf32>
    %cst_125 = arith.constant 1.000000e+00 : f32
    %414 = vector.broadcast %cst_125 : f32 to vector<16x64xf32>
    %415 = arith.addf %414, %413 : vector<16x64xf32>
    %cst_126 = arith.constant 5.000000e-01 : f32
    %416 = vector.broadcast %cst_126 : f32 to vector<16x64xf32>
    %417 = arith.mulf %416, %415 : vector<16x64xf32>
    %418 = arith.mulf %405, %417 : vector<16x64xf32>
    %419 = arith.truncf %418 : vector<16x64xf32> to vector<16x64xbf16>
    %cst_127 = arith.constant dense<0.000000e+00> : vector<16x32xf32>
    %420 = tpu.matmul %419, %400, %cst_127 {dimension_numbers = #tpu.dot_dimension_numbers<[1], [0], [0], [1], [0, 0, 1, 1], [], []>} : vector<16x64xbf16>, vector<64x32xbf16>, vector<16x32xf32> -> vector<16x32xf32>
    %421 = vector.broadcast %401 : vector<1x32xf32> to vector<16x32xf32>
    %422 = arith.addf %420, %421 : vector<16x32xf32>
    %c6 = arith.constant 6 : index
    %c0_128 = arith.constant 0 : index
    %423 = vector.load %arg10[%c6, %c0_128] : memref<28x32xf32, #tpu.memory_space<vmem>>, vector<2x32xf32>
    %424 = vector.extract_strided_slice %423 {offsets = [0, 0], sizes = [1, 32], strides = [1, 1]} : vector<2x32xf32> to vector<1x32xf32>
    %425 = vector.extract_strided_slice %423 {offsets = [1, 0], sizes = [1, 32], strides = [1, 1]} : vector<2x32xf32> to vector<1x32xf32>
    %426 = arith.addf %397, %422 : vector<16x32xf32>
    %cst_129 = arith.constant dense<0.000000e+00> : vector<16xf32>
    %427 = vector.multi_reduction <add>, %426, %cst_129 [1] : vector<16x32xf32> to vector<16xf32>
    %428 = vector.shape_cast %427 : vector<16xf32> to vector<16x1xf32>
    %cst_130 = arith.constant 3.200000e+01 : f32
    %429 = vector.broadcast %cst_130 : f32 to vector<16x1xf32>
    %430 = arith.divf %428, %429 : vector<16x1xf32>
    %431 = vector.broadcast %430 : vector<16x1xf32> to vector<16x32xf32>
    %432 = arith.subf %426, %431 : vector<16x32xf32>
    %433 = arith.mulf %432, %432 : vector<16x32xf32>
    %cst_131 = arith.constant dense<0.000000e+00> : vector<16xf32>
    %434 = vector.multi_reduction <add>, %433, %cst_131 [1] : vector<16x32xf32> to vector<16xf32>
    %435 = vector.shape_cast %434 : vector<16xf32> to vector<16x1xf32>
    %cst_132 = arith.constant 3.200000e+01 : f32
    %436 = vector.broadcast %cst_132 : f32 to vector<16x1xf32>
    %437 = arith.divf %435, %436 : vector<16x1xf32>
    %438 = vector.broadcast %430 : vector<16x1xf32> to vector<16x32xf32>
    %439 = arith.subf %426, %438 : vector<16x32xf32>
    %cst_133 = arith.constant 9.99999974E-6 : f32
    %440 = vector.broadcast %cst_133 : f32 to vector<16x1xf32>
    %441 = arith.addf %437, %440 : vector<16x1xf32>
    %442 = math.rsqrt %441 : vector<16x1xf32>
    %443 = vector.broadcast %442 : vector<16x1xf32> to vector<16x32xf32>
    %444 = arith.mulf %439, %443 : vector<16x32xf32>
    %445 = vector.broadcast %424 : vector<1x32xf32> to vector<16x32xf32>
    %446 = arith.mulf %444, %445 : vector<16x32xf32>
    %447 = vector.broadcast %425 : vector<1x32xf32> to vector<16x32xf32>
    %448 = arith.addf %446, %447 : vector<16x32xf32>
    %c8 = arith.constant 8 : index
    %c0_134 = arith.constant 0 : index
    %449 = vector.load %arg10[%c8, %c0_134] : memref<28x32xf32, #tpu.memory_space<vmem>>, vector<2x32xf32>
    %450 = vector.extract_strided_slice %449 {offsets = [0, 0], sizes = [1, 32], strides = [1, 1]} : vector<2x32xf32> to vector<1x32xf32>
    %451 = vector.extract_strided_slice %449 {offsets = [1, 0], sizes = [1, 32], strides = [1, 1]} : vector<2x32xf32> to vector<1x32xf32>
    %cst_135 = arith.constant dense<0.000000e+00> : vector<16xf32>
    %452 = vector.multi_reduction <add>, %267, %cst_135 [1] : vector<16x32xf32> to vector<16xf32>
    %453 = vector.shape_cast %452 : vector<16xf32> to vector<16x1xf32>
    %cst_136 = arith.constant 3.200000e+01 : f32
    %454 = vector.broadcast %cst_136 : f32 to vector<16x1xf32>
    %455 = arith.divf %453, %454 : vector<16x1xf32>
    %456 = vector.broadcast %455 : vector<16x1xf32> to vector<16x32xf32>
    %457 = arith.subf %267, %456 : vector<16x32xf32>
    %458 = arith.mulf %457, %457 : vector<16x32xf32>
    %cst_137 = arith.constant dense<0.000000e+00> : vector<16xf32>
    %459 = vector.multi_reduction <add>, %458, %cst_137 [1] : vector<16x32xf32> to vector<16xf32>
    %460 = vector.shape_cast %459 : vector<16xf32> to vector<16x1xf32>
    %cst_138 = arith.constant 3.200000e+01 : f32
    %461 = vector.broadcast %cst_138 : f32 to vector<16x1xf32>
    %462 = arith.divf %460, %461 : vector<16x1xf32>
    %463 = vector.broadcast %455 : vector<16x1xf32> to vector<16x32xf32>
    %464 = arith.subf %267, %463 : vector<16x32xf32>
    %cst_139 = arith.constant 9.99999974E-6 : f32
    %465 = vector.broadcast %cst_139 : f32 to vector<16x1xf32>
    %466 = arith.addf %462, %465 : vector<16x1xf32>
    %467 = math.rsqrt %466 : vector<16x1xf32>
    %468 = vector.broadcast %467 : vector<16x1xf32> to vector<16x32xf32>
    %469 = arith.mulf %464, %468 : vector<16x32xf32>
    %470 = vector.broadcast %450 : vector<1x32xf32> to vector<16x32xf32>
    %471 = arith.mulf %469, %470 : vector<16x32xf32>
    %472 = vector.broadcast %451 : vector<1x32xf32> to vector<16x32xf32>
    %473 = arith.addf %471, %472 : vector<16x32xf32>
    %c10 = arith.constant 10 : index
    %c0_140 = arith.constant 0 : index
    %474 = vector.load %arg10[%c10, %c0_140] : memref<28x32xf32, #tpu.memory_space<vmem>>, vector<2x32xf32>
    %475 = vector.extract_strided_slice %474 {offsets = [0, 0], sizes = [1, 32], strides = [1, 1]} : vector<2x32xf32> to vector<1x32xf32>
    %476 = vector.extract_strided_slice %474 {offsets = [1, 0], sizes = [1, 32], strides = [1, 1]} : vector<2x32xf32> to vector<1x32xf32>
    %cst_141 = arith.constant dense<0.000000e+00> : vector<16xf32>
    %477 = vector.multi_reduction <add>, %448, %cst_141 [1] : vector<16x32xf32> to vector<16xf32>
    %478 = vector.shape_cast %477 : vector<16xf32> to vector<16x1xf32>
    %cst_142 = arith.constant 3.200000e+01 : f32
    %479 = vector.broadcast %cst_142 : f32 to vector<16x1xf32>
    %480 = arith.divf %478, %479 : vector<16x1xf32>
    %481 = vector.broadcast %480 : vector<16x1xf32> to vector<16x32xf32>
    %482 = arith.subf %448, %481 : vector<16x32xf32>
    %483 = arith.mulf %482, %482 : vector<16x32xf32>
    %cst_143 = arith.constant dense<0.000000e+00> : vector<16xf32>
    %484 = vector.multi_reduction <add>, %483, %cst_143 [1] : vector<16x32xf32> to vector<16xf32>
    %485 = vector.shape_cast %484 : vector<16xf32> to vector<16x1xf32>
    %cst_144 = arith.constant 3.200000e+01 : f32
    %486 = vector.broadcast %cst_144 : f32 to vector<16x1xf32>
    %487 = arith.divf %485, %486 : vector<16x1xf32>
    %488 = vector.broadcast %480 : vector<16x1xf32> to vector<16x32xf32>
    %489 = arith.subf %448, %488 : vector<16x32xf32>
    %cst_145 = arith.constant 9.99999974E-6 : f32
    %490 = vector.broadcast %cst_145 : f32 to vector<16x1xf32>
    %491 = arith.addf %487, %490 : vector<16x1xf32>
    %492 = math.rsqrt %491 : vector<16x1xf32>
    %493 = vector.broadcast %492 : vector<16x1xf32> to vector<16x32xf32>
    %494 = arith.mulf %489, %493 : vector<16x32xf32>
    %495 = vector.broadcast %475 : vector<1x32xf32> to vector<16x32xf32>
    %496 = arith.mulf %494, %495 : vector<16x32xf32>
    %497 = vector.broadcast %476 : vector<1x32xf32> to vector<16x32xf32>
    %498 = arith.addf %496, %497 : vector<16x32xf32>
    %c0_146 = arith.constant 0 : index
    %c320_147 = arith.constant 320 : index
    %499 = vector.load %arg6[%c0_146, %c320_147] : memref<32x1024xbf16, #tpu.memory_space<vmem>>, vector<32x96xbf16>
    %500 = arith.truncf %83 : vector<16x32xf32> to vector<16x32xbf16>
    %cst_148 = arith.constant dense<0.000000e+00> : vector<16x96xf32>
    %501 = tpu.matmul %500, %499, %cst_148 {dimension_numbers = #tpu.dot_dimension_numbers<[1], [0], [0], [1], [0, 0, 1, 1], [], []>} : vector<16x32xbf16>, vector<32x96xbf16>, vector<16x96xf32> -> vector<16x96xf32>
    %c0_149 = arith.constant 0 : index
    %c448 = arith.constant 448 : index
    %502 = vector.load %arg9[%c0_149, %c448] : memref<1x1376xf32, #tpu.memory_space<vmem>>, vector<1x96xf32>
    %503 = vector.broadcast %502 : vector<1x96xf32> to vector<16x96xf32>
    %504 = arith.addf %501, %503 : vector<16x96xf32>
    %505 = vector.extract_strided_slice %504 {offsets = [0, 0], sizes = [16, 32], strides = [1, 1]} : vector<16x96xf32> to vector<16x32xf32>
    %506 = vector.extract_strided_slice %504 {offsets = [0, 32], sizes = [16, 32], strides = [1, 1]} : vector<16x96xf32> to vector<16x32xf32>
    %507 = vector.extract_strided_slice %504 {offsets = [0, 64], sizes = [16, 32], strides = [1, 1]} : vector<16x96xf32> to vector<16x32xf32>
    %c0_150 = arith.constant 0 : index
    %c416_151 = arith.constant 416 : index
    %508 = vector.load %arg6[%c0_150, %c416_151] : memref<32x1024xbf16, #tpu.memory_space<vmem>>, vector<32x32xbf16>
    %c0_152 = arith.constant 0 : index
    %c544 = arith.constant 544 : index
    %509 = vector.load %arg9[%c0_152, %c544] : memref<1x1376xf32, #tpu.memory_space<vmem>>, vector<1x32xf32>
    %510 = vector.extract_strided_slice %505 {offsets = [0, 0], sizes = [16, 8], strides = [1, 1]} : vector<16x32xf32> to vector<16x8xf32>
    %511 = arith.truncf %510 : vector<16x8xf32> to vector<16x8xbf16>
    %512 = vector.extract_strided_slice %506 {offsets = [0, 0], sizes = [16, 8], strides = [1, 1]} : vector<16x32xf32> to vector<16x8xf32>
    %513 = arith.truncf %512 : vector<16x8xf32> to vector<16x8xbf16>
    %cst_153 = arith.constant dense<0.000000e+00> : vector<16x16xf32>
    %514 = tpu.matmul %511, %513, %cst_153 {dimension_numbers = #tpu.dot_dimension_numbers<[1], [1], [0], [0], [0, 0, 1, 0], [], []>} : vector<16x8xbf16>, vector<16x8xbf16>, vector<16x16xf32> -> vector<16x16xf32>
    %cst_154 = arith.constant dense<0xFF800000> : vector<16xf32>
    %515 = vector.multi_reduction <maximumf>, %514, %cst_154 [1] : vector<16x16xf32> to vector<16xf32>
    %516 = vector.shape_cast %515 : vector<16xf32> to vector<16x1xf32>
    %517 = vector.broadcast %516 : vector<16x1xf32> to vector<16x16xf32>
    %518 = arith.subf %514, %517 : vector<16x16xf32>
    %519 = math.exp %518 : vector<16x16xf32>
    %cst_155 = arith.constant dense<0.000000e+00> : vector<16xf32>
    %520 = vector.multi_reduction <add>, %519, %cst_155 [1] : vector<16x16xf32> to vector<16xf32>
    %521 = vector.shape_cast %520 : vector<16xf32> to vector<16x1xf32>
    %522 = tpu.reciprocal %521 {approx = true} : vector<16x1xf32> -> vector<16x1xf32>
    %523 = vector.broadcast %522 : vector<16x1xf32> to vector<16x16xf32>
    %524 = arith.mulf %519, %523 : vector<16x16xf32>
    %525 = arith.truncf %524 : vector<16x16xf32> to vector<16x16xbf16>
    %526 = vector.extract_strided_slice %507 {offsets = [0, 0], sizes = [16, 8], strides = [1, 1]} : vector<16x32xf32> to vector<16x8xf32>
    %527 = arith.truncf %526 : vector<16x8xf32> to vector<16x8xbf16>
    %cst_156 = arith.constant dense<0.000000e+00> : vector<16x8xf32>
    %528 = tpu.matmul %525, %527, %cst_156 {dimension_numbers = #tpu.dot_dimension_numbers<[1], [0], [0], [1], [0, 0, 1, 1], [], []>} : vector<16x16xbf16>, vector<16x8xbf16>, vector<16x8xf32> -> vector<16x8xf32>
    %529 = vector.extract_strided_slice %505 {offsets = [0, 8], sizes = [16, 8], strides = [1, 1]} : vector<16x32xf32> to vector<16x8xf32>
    %530 = arith.truncf %529 : vector<16x8xf32> to vector<16x8xbf16>
    %531 = vector.extract_strided_slice %506 {offsets = [0, 8], sizes = [16, 8], strides = [1, 1]} : vector<16x32xf32> to vector<16x8xf32>
    %532 = arith.truncf %531 : vector<16x8xf32> to vector<16x8xbf16>
    %cst_157 = arith.constant dense<0.000000e+00> : vector<16x16xf32>
    %533 = tpu.matmul %530, %532, %cst_157 {dimension_numbers = #tpu.dot_dimension_numbers<[1], [1], [0], [0], [0, 0, 1, 0], [], []>} : vector<16x8xbf16>, vector<16x8xbf16>, vector<16x16xf32> -> vector<16x16xf32>
    %cst_158 = arith.constant dense<0xFF800000> : vector<16xf32>
    %534 = vector.multi_reduction <maximumf>, %533, %cst_158 [1] : vector<16x16xf32> to vector<16xf32>
    %535 = vector.shape_cast %534 : vector<16xf32> to vector<16x1xf32>
    %536 = vector.broadcast %535 : vector<16x1xf32> to vector<16x16xf32>
    %537 = arith.subf %533, %536 : vector<16x16xf32>
    %538 = math.exp %537 : vector<16x16xf32>
    %cst_159 = arith.constant dense<0.000000e+00> : vector<16xf32>
    %539 = vector.multi_reduction <add>, %538, %cst_159 [1] : vector<16x16xf32> to vector<16xf32>
    %540 = vector.shape_cast %539 : vector<16xf32> to vector<16x1xf32>
    %541 = tpu.reciprocal %540 {approx = true} : vector<16x1xf32> -> vector<16x1xf32>
    %542 = vector.broadcast %541 : vector<16x1xf32> to vector<16x16xf32>
    %543 = arith.mulf %538, %542 : vector<16x16xf32>
    %544 = arith.truncf %543 : vector<16x16xf32> to vector<16x16xbf16>
    %545 = vector.extract_strided_slice %507 {offsets = [0, 8], sizes = [16, 8], strides = [1, 1]} : vector<16x32xf32> to vector<16x8xf32>
    %546 = arith.truncf %545 : vector<16x8xf32> to vector<16x8xbf16>
    %cst_160 = arith.constant dense<0.000000e+00> : vector<16x8xf32>
    %547 = tpu.matmul %544, %546, %cst_160 {dimension_numbers = #tpu.dot_dimension_numbers<[1], [0], [0], [1], [0, 0, 1, 1], [], []>} : vector<16x16xbf16>, vector<16x8xbf16>, vector<16x8xf32> -> vector<16x8xf32>
    %548 = vector.extract_strided_slice %505 {offsets = [0, 16], sizes = [16, 8], strides = [1, 1]} : vector<16x32xf32> to vector<16x8xf32>
    %549 = arith.truncf %548 : vector<16x8xf32> to vector<16x8xbf16>
    %550 = vector.extract_strided_slice %506 {offsets = [0, 16], sizes = [16, 8], strides = [1, 1]} : vector<16x32xf32> to vector<16x8xf32>
    %551 = arith.truncf %550 : vector<16x8xf32> to vector<16x8xbf16>
    %cst_161 = arith.constant dense<0.000000e+00> : vector<16x16xf32>
    %552 = tpu.matmul %549, %551, %cst_161 {dimension_numbers = #tpu.dot_dimension_numbers<[1], [1], [0], [0], [0, 0, 1, 0], [], []>} : vector<16x8xbf16>, vector<16x8xbf16>, vector<16x16xf32> -> vector<16x16xf32>
    %cst_162 = arith.constant dense<0xFF800000> : vector<16xf32>
    %553 = vector.multi_reduction <maximumf>, %552, %cst_162 [1] : vector<16x16xf32> to vector<16xf32>
    %554 = vector.shape_cast %553 : vector<16xf32> to vector<16x1xf32>
    %555 = vector.broadcast %554 : vector<16x1xf32> to vector<16x16xf32>
    %556 = arith.subf %552, %555 : vector<16x16xf32>
    %557 = math.exp %556 : vector<16x16xf32>
    %cst_163 = arith.constant dense<0.000000e+00> : vector<16xf32>
    %558 = vector.multi_reduction <add>, %557, %cst_163 [1] : vector<16x16xf32> to vector<16xf32>
    %559 = vector.shape_cast %558 : vector<16xf32> to vector<16x1xf32>
    %560 = tpu.reciprocal %559 {approx = true} : vector<16x1xf32> -> vector<16x1xf32>
    %561 = vector.broadcast %560 : vector<16x1xf32> to vector<16x16xf32>
    %562 = arith.mulf %557, %561 : vector<16x16xf32>
    %563 = arith.truncf %562 : vector<16x16xf32> to vector<16x16xbf16>
    %564 = vector.extract_strided_slice %507 {offsets = [0, 16], sizes = [16, 8], strides = [1, 1]} : vector<16x32xf32> to vector<16x8xf32>
    %565 = arith.truncf %564 : vector<16x8xf32> to vector<16x8xbf16>
    %cst_164 = arith.constant dense<0.000000e+00> : vector<16x8xf32>
    %566 = tpu.matmul %563, %565, %cst_164 {dimension_numbers = #tpu.dot_dimension_numbers<[1], [0], [0], [1], [0, 0, 1, 1], [], []>} : vector<16x16xbf16>, vector<16x8xbf16>, vector<16x8xf32> -> vector<16x8xf32>
    %567 = vector.extract_strided_slice %505 {offsets = [0, 24], sizes = [16, 8], strides = [1, 1]} : vector<16x32xf32> to vector<16x8xf32>
    %568 = arith.truncf %567 : vector<16x8xf32> to vector<16x8xbf16>
    %569 = vector.extract_strided_slice %506 {offsets = [0, 24], sizes = [16, 8], strides = [1, 1]} : vector<16x32xf32> to vector<16x8xf32>
    %570 = arith.truncf %569 : vector<16x8xf32> to vector<16x8xbf16>
    %cst_165 = arith.constant dense<0.000000e+00> : vector<16x16xf32>
    %571 = tpu.matmul %568, %570, %cst_165 {dimension_numbers = #tpu.dot_dimension_numbers<[1], [1], [0], [0], [0, 0, 1, 0], [], []>} : vector<16x8xbf16>, vector<16x8xbf16>, vector<16x16xf32> -> vector<16x16xf32>
    %cst_166 = arith.constant dense<0xFF800000> : vector<16xf32>
    %572 = vector.multi_reduction <maximumf>, %571, %cst_166 [1] : vector<16x16xf32> to vector<16xf32>
    %573 = vector.shape_cast %572 : vector<16xf32> to vector<16x1xf32>
    %574 = vector.broadcast %573 : vector<16x1xf32> to vector<16x16xf32>
    %575 = arith.subf %571, %574 : vector<16x16xf32>
    %576 = math.exp %575 : vector<16x16xf32>
    %cst_167 = arith.constant dense<0.000000e+00> : vector<16xf32>
    %577 = vector.multi_reduction <add>, %576, %cst_167 [1] : vector<16x16xf32> to vector<16xf32>
    %578 = vector.shape_cast %577 : vector<16xf32> to vector<16x1xf32>
    %579 = tpu.reciprocal %578 {approx = true} : vector<16x1xf32> -> vector<16x1xf32>
    %580 = vector.broadcast %579 : vector<16x1xf32> to vector<16x16xf32>
    %581 = arith.mulf %576, %580 : vector<16x16xf32>
    %582 = arith.truncf %581 : vector<16x16xf32> to vector<16x16xbf16>
    %583 = vector.extract_strided_slice %507 {offsets = [0, 24], sizes = [16, 8], strides = [1, 1]} : vector<16x32xf32> to vector<16x8xf32>
    %584 = arith.truncf %583 : vector<16x8xf32> to vector<16x8xbf16>
    %cst_168 = arith.constant dense<0.000000e+00> : vector<16x8xf32>
    %585 = tpu.matmul %582, %584, %cst_168 {dimension_numbers = #tpu.dot_dimension_numbers<[1], [0], [0], [1], [0, 0, 1, 1], [], []>} : vector<16x16xbf16>, vector<16x8xbf16>, vector<16x8xf32> -> vector<16x8xf32>
    %586 = tpu.concatenate %528, %547, %566, %585 in 1 : vector<16x8xf32>, vector<16x8xf32>, vector<16x8xf32>, vector<16x8xf32> -> vector<16x32xf32>
    %587 = arith.truncf %586 : vector<16x32xf32> to vector<16x32xbf16>
    %cst_169 = arith.constant dense<0.000000e+00> : vector<16x32xf32>
    %588 = tpu.matmul %587, %508, %cst_169 {dimension_numbers = #tpu.dot_dimension_numbers<[1], [0], [0], [1], [0, 0, 1, 1], [], []>} : vector<16x32xbf16>, vector<32x32xbf16>, vector<16x32xf32> -> vector<16x32xf32>
    %589 = vector.broadcast %509 : vector<1x32xf32> to vector<16x32xf32>
    %590 = arith.addf %588, %589 : vector<16x32xf32>
    %c12 = arith.constant 12 : index
    %c0_170 = arith.constant 0 : index
    %591 = vector.load %arg10[%c12, %c0_170] : memref<28x32xf32, #tpu.memory_space<vmem>>, vector<2x32xf32>
    %592 = vector.extract_strided_slice %591 {offsets = [0, 0], sizes = [1, 32], strides = [1, 1]} : vector<2x32xf32> to vector<1x32xf32>
    %593 = vector.extract_strided_slice %591 {offsets = [1, 0], sizes = [1, 32], strides = [1, 1]} : vector<2x32xf32> to vector<1x32xf32>
    %594 = arith.addf %83, %590 : vector<16x32xf32>
    %cst_171 = arith.constant dense<0.000000e+00> : vector<16xf32>
    %595 = vector.multi_reduction <add>, %594, %cst_171 [1] : vector<16x32xf32> to vector<16xf32>
    %596 = vector.shape_cast %595 : vector<16xf32> to vector<16x1xf32>
    %cst_172 = arith.constant 3.200000e+01 : f32
    %597 = vector.broadcast %cst_172 : f32 to vector<16x1xf32>
    %598 = arith.divf %596, %597 : vector<16x1xf32>
    %599 = vector.broadcast %598 : vector<16x1xf32> to vector<16x32xf32>
    %600 = arith.subf %594, %599 : vector<16x32xf32>
    %601 = arith.mulf %600, %600 : vector<16x32xf32>
    %cst_173 = arith.constant dense<0.000000e+00> : vector<16xf32>
    %602 = vector.multi_reduction <add>, %601, %cst_173 [1] : vector<16x32xf32> to vector<16xf32>
    %603 = vector.shape_cast %602 : vector<16xf32> to vector<16x1xf32>
    %cst_174 = arith.constant 3.200000e+01 : f32
    %604 = vector.broadcast %cst_174 : f32 to vector<16x1xf32>
    %605 = arith.divf %603, %604 : vector<16x1xf32>
    %606 = vector.broadcast %598 : vector<16x1xf32> to vector<16x32xf32>
    %607 = arith.subf %594, %606 : vector<16x32xf32>
    %cst_175 = arith.constant 9.99999974E-6 : f32
    %608 = vector.broadcast %cst_175 : f32 to vector<16x1xf32>
    %609 = arith.addf %605, %608 : vector<16x1xf32>
    %610 = math.rsqrt %609 : vector<16x1xf32>
    %611 = vector.broadcast %610 : vector<16x1xf32> to vector<16x32xf32>
    %612 = arith.mulf %607, %611 : vector<16x32xf32>
    %613 = vector.broadcast %592 : vector<1x32xf32> to vector<16x32xf32>
    %614 = arith.mulf %612, %613 : vector<16x32xf32>
    %615 = vector.broadcast %593 : vector<1x32xf32> to vector<16x32xf32>
    %616 = arith.addf %614, %615 : vector<16x32xf32>
    %c0_176 = arith.constant 0 : index
    %c64_177 = arith.constant 64 : index
    %617 = vector.load %arg8[%c0_176, %c64_177] : memref<96x192xbf16, #tpu.memory_space<vmem>>, vector<96x64xbf16>
    %cst_178 = arith.constant 0.000000e+00 : f32
    %618 = vector.broadcast %cst_178 : f32 to vector<2x32xf32>
    %619 = vector.extract_strided_slice %98 {offsets = [0, 0], sizes = [14, 32], strides = [1, 1]} : vector<16x32xf32> to vector<14x32xf32>
    %620 = tpu.concatenate %618, %619 in 0 : vector<2x32xf32>, vector<14x32xf32> -> vector<16x32xf32>
    %cst_179 = arith.constant 0.000000e+00 : f32
    %621 = vector.broadcast %cst_179 : f32 to vector<1x32xf32>
    %622 = vector.extract_strided_slice %98 {offsets = [0, 0], sizes = [15, 32], strides = [1, 1]} : vector<16x32xf32> to vector<15x32xf32>
    %623 = tpu.concatenate %621, %622 in 0 : vector<1x32xf32>, vector<15x32xf32> -> vector<16x32xf32>
    %624 = tpu.concatenate %620, %623, %98 in 1 : vector<16x32xf32>, vector<16x32xf32>, vector<16x32xf32> -> vector<16x96xf32>
    %625 = arith.truncf %624 : vector<16x96xf32> to vector<16x96xbf16>
    %cst_180 = arith.constant dense<0.000000e+00> : vector<16x64xf32>
    %626 = tpu.matmul %625, %617, %cst_180 {dimension_numbers = #tpu.dot_dimension_numbers<[1], [0], [0], [1], [0, 0, 1, 1], [], []>} : vector<16x96xbf16>, vector<96x64xbf16>, vector<16x64xf32> -> vector<16x64xf32>
    %c0_181 = arith.constant 0 : index
    %c576 = arith.constant 576 : index
    %627 = vector.load %arg9[%c0_181, %c576] : memref<1x1376xf32, #tpu.memory_space<vmem>>, vector<1x64xf32>
    %628 = vector.broadcast %627 : vector<1x64xf32> to vector<16x64xf32>
    %629 = arith.addf %626, %628 : vector<16x64xf32>
    %c0_182 = arith.constant 0 : index
    %c448_183 = arith.constant 448 : index
    %630 = vector.load %arg6[%c0_182, %c448_183] : memref<32x1024xbf16, #tpu.memory_space<vmem>>, vector<32x32xbf16>
    %631 = arith.truncf %98 : vector<16x32xf32> to vector<16x32xbf16>
    %cst_184 = arith.constant dense<0.000000e+00> : vector<16x32xf32>
    %632 = tpu.matmul %631, %630, %cst_184 {dimension_numbers = #tpu.dot_dimension_numbers<[1], [0], [0], [1], [0, 0, 1, 1], [], []>} : vector<16x32xbf16>, vector<32x32xbf16>, vector<16x32xf32> -> vector<16x32xf32>
    %c0_185 = arith.constant 0 : index
    %c640 = arith.constant 640 : index
    %633 = vector.load %arg9[%c0_185, %c640] : memref<1x1376xf32, #tpu.memory_space<vmem>>, vector<1x32xf32>
    %634 = vector.broadcast %633 : vector<1x32xf32> to vector<16x32xf32>
    %635 = arith.addf %632, %634 : vector<16x32xf32>
    %636 = vector.extract_strided_slice %629 {offsets = [0, 0], sizes = [16, 32], strides = [1, 1]} : vector<16x64xf32> to vector<16x32xf32>
    %637 = vector.extract_strided_slice %629 {offsets = [0, 32], sizes = [16, 32], strides = [1, 1]} : vector<16x64xf32> to vector<16x32xf32>
    %c0_186 = arith.constant 0 : index
    %c480 = arith.constant 480 : index
    %638 = vector.load %arg6[%c0_186, %c480] : memref<32x1024xbf16, #tpu.memory_space<vmem>>, vector<32x32xbf16>
    %c0_187 = arith.constant 0 : index
    %c672 = arith.constant 672 : index
    %639 = vector.load %arg9[%c0_187, %c672] : memref<1x1376xf32, #tpu.memory_space<vmem>>, vector<1x32xf32>
    %640 = tpu.iota {dimensions = array<i32: 0>} : vector<16x16xi32>
    %641 = tpu.iota {dimensions = array<i32: 1>} : vector<16x16xi32>
    %642 = arith.cmpi sle, %641, %640 : vector<16x16xi32>
    %643 = vector.extract_strided_slice %636 {offsets = [0, 0], sizes = [16, 8], strides = [1, 1]} : vector<16x32xf32> to vector<16x8xf32>
    %644 = arith.truncf %643 : vector<16x8xf32> to vector<16x8xbf16>
    %645 = vector.extract_strided_slice %637 {offsets = [0, 0], sizes = [16, 8], strides = [1, 1]} : vector<16x32xf32> to vector<16x8xf32>
    %646 = arith.truncf %645 : vector<16x8xf32> to vector<16x8xbf16>
    %cst_188 = arith.constant dense<0.000000e+00> : vector<16x16xf32>
    %647 = tpu.matmul %644, %646, %cst_188 {dimension_numbers = #tpu.dot_dimension_numbers<[1], [1], [0], [0], [0, 0, 1, 0], [], []>} : vector<16x8xbf16>, vector<16x8xbf16>, vector<16x16xf32> -> vector<16x16xf32>
    %cst_189 = arith.constant -1.000000e+30 : f32
    %648 = vector.broadcast %cst_189 : f32 to vector<16x16xf32>
    %649 = arith.select %642, %647, %648 : vector<16x16xi1>, vector<16x16xf32>
    %cst_190 = arith.constant dense<0xFF800000> : vector<16xf32>
    %650 = vector.multi_reduction <maximumf>, %649, %cst_190 [1] : vector<16x16xf32> to vector<16xf32>
    %651 = vector.shape_cast %650 : vector<16xf32> to vector<16x1xf32>
    %652 = vector.broadcast %651 : vector<16x1xf32> to vector<16x16xf32>
    %653 = arith.subf %649, %652 : vector<16x16xf32>
    %654 = math.exp %653 : vector<16x16xf32>
    %cst_191 = arith.constant dense<0.000000e+00> : vector<16xf32>
    %655 = vector.multi_reduction <add>, %654, %cst_191 [1] : vector<16x16xf32> to vector<16xf32>
    %656 = vector.shape_cast %655 : vector<16xf32> to vector<16x1xf32>
    %657 = tpu.reciprocal %656 {approx = true} : vector<16x1xf32> -> vector<16x1xf32>
    %658 = vector.broadcast %657 : vector<16x1xf32> to vector<16x16xf32>
    %659 = arith.mulf %654, %658 : vector<16x16xf32>
    %660 = arith.truncf %659 : vector<16x16xf32> to vector<16x16xbf16>
    %661 = vector.extract_strided_slice %635 {offsets = [0, 0], sizes = [16, 8], strides = [1, 1]} : vector<16x32xf32> to vector<16x8xf32>
    %662 = arith.truncf %661 : vector<16x8xf32> to vector<16x8xbf16>
    %cst_192 = arith.constant dense<0.000000e+00> : vector<16x8xf32>
    %663 = tpu.matmul %660, %662, %cst_192 {dimension_numbers = #tpu.dot_dimension_numbers<[1], [0], [0], [1], [0, 0, 1, 1], [], []>} : vector<16x16xbf16>, vector<16x8xbf16>, vector<16x8xf32> -> vector<16x8xf32>
    %664 = vector.extract_strided_slice %636 {offsets = [0, 8], sizes = [16, 8], strides = [1, 1]} : vector<16x32xf32> to vector<16x8xf32>
    %665 = arith.truncf %664 : vector<16x8xf32> to vector<16x8xbf16>
    %666 = vector.extract_strided_slice %637 {offsets = [0, 8], sizes = [16, 8], strides = [1, 1]} : vector<16x32xf32> to vector<16x8xf32>
    %667 = arith.truncf %666 : vector<16x8xf32> to vector<16x8xbf16>
    %cst_193 = arith.constant dense<0.000000e+00> : vector<16x16xf32>
    %668 = tpu.matmul %665, %667, %cst_193 {dimension_numbers = #tpu.dot_dimension_numbers<[1], [1], [0], [0], [0, 0, 1, 0], [], []>} : vector<16x8xbf16>, vector<16x8xbf16>, vector<16x16xf32> -> vector<16x16xf32>
    %cst_194 = arith.constant -1.000000e+30 : f32
    %669 = vector.broadcast %cst_194 : f32 to vector<16x16xf32>
    %670 = arith.select %642, %668, %669 : vector<16x16xi1>, vector<16x16xf32>
    %cst_195 = arith.constant dense<0xFF800000> : vector<16xf32>
    %671 = vector.multi_reduction <maximumf>, %670, %cst_195 [1] : vector<16x16xf32> to vector<16xf32>
    %672 = vector.shape_cast %671 : vector<16xf32> to vector<16x1xf32>
    %673 = vector.broadcast %672 : vector<16x1xf32> to vector<16x16xf32>
    %674 = arith.subf %670, %673 : vector<16x16xf32>
    %675 = math.exp %674 : vector<16x16xf32>
    %cst_196 = arith.constant dense<0.000000e+00> : vector<16xf32>
    %676 = vector.multi_reduction <add>, %675, %cst_196 [1] : vector<16x16xf32> to vector<16xf32>
    %677 = vector.shape_cast %676 : vector<16xf32> to vector<16x1xf32>
    %678 = tpu.reciprocal %677 {approx = true} : vector<16x1xf32> -> vector<16x1xf32>
    %679 = vector.broadcast %678 : vector<16x1xf32> to vector<16x16xf32>
    %680 = arith.mulf %675, %679 : vector<16x16xf32>
    %681 = arith.truncf %680 : vector<16x16xf32> to vector<16x16xbf16>
    %682 = vector.extract_strided_slice %635 {offsets = [0, 8], sizes = [16, 8], strides = [1, 1]} : vector<16x32xf32> to vector<16x8xf32>
    %683 = arith.truncf %682 : vector<16x8xf32> to vector<16x8xbf16>
    %cst_197 = arith.constant dense<0.000000e+00> : vector<16x8xf32>
    %684 = tpu.matmul %681, %683, %cst_197 {dimension_numbers = #tpu.dot_dimension_numbers<[1], [0], [0], [1], [0, 0, 1, 1], [], []>} : vector<16x16xbf16>, vector<16x8xbf16>, vector<16x8xf32> -> vector<16x8xf32>
    %685 = vector.extract_strided_slice %636 {offsets = [0, 16], sizes = [16, 8], strides = [1, 1]} : vector<16x32xf32> to vector<16x8xf32>
    %686 = arith.truncf %685 : vector<16x8xf32> to vector<16x8xbf16>
    %687 = vector.extract_strided_slice %637 {offsets = [0, 16], sizes = [16, 8], strides = [1, 1]} : vector<16x32xf32> to vector<16x8xf32>
    %688 = arith.truncf %687 : vector<16x8xf32> to vector<16x8xbf16>
    %cst_198 = arith.constant dense<0.000000e+00> : vector<16x16xf32>
    %689 = tpu.matmul %686, %688, %cst_198 {dimension_numbers = #tpu.dot_dimension_numbers<[1], [1], [0], [0], [0, 0, 1, 0], [], []>} : vector<16x8xbf16>, vector<16x8xbf16>, vector<16x16xf32> -> vector<16x16xf32>
    %cst_199 = arith.constant -1.000000e+30 : f32
    %690 = vector.broadcast %cst_199 : f32 to vector<16x16xf32>
    %691 = arith.select %642, %689, %690 : vector<16x16xi1>, vector<16x16xf32>
    %cst_200 = arith.constant dense<0xFF800000> : vector<16xf32>
    %692 = vector.multi_reduction <maximumf>, %691, %cst_200 [1] : vector<16x16xf32> to vector<16xf32>
    %693 = vector.shape_cast %692 : vector<16xf32> to vector<16x1xf32>
    %694 = vector.broadcast %693 : vector<16x1xf32> to vector<16x16xf32>
    %695 = arith.subf %691, %694 : vector<16x16xf32>
    %696 = math.exp %695 : vector<16x16xf32>
    %cst_201 = arith.constant dense<0.000000e+00> : vector<16xf32>
    %697 = vector.multi_reduction <add>, %696, %cst_201 [1] : vector<16x16xf32> to vector<16xf32>
    %698 = vector.shape_cast %697 : vector<16xf32> to vector<16x1xf32>
    %699 = tpu.reciprocal %698 {approx = true} : vector<16x1xf32> -> vector<16x1xf32>
    %700 = vector.broadcast %699 : vector<16x1xf32> to vector<16x16xf32>
    %701 = arith.mulf %696, %700 : vector<16x16xf32>
    %702 = arith.truncf %701 : vector<16x16xf32> to vector<16x16xbf16>
    %703 = vector.extract_strided_slice %635 {offsets = [0, 16], sizes = [16, 8], strides = [1, 1]} : vector<16x32xf32> to vector<16x8xf32>
    %704 = arith.truncf %703 : vector<16x8xf32> to vector<16x8xbf16>
    %cst_202 = arith.constant dense<0.000000e+00> : vector<16x8xf32>
    %705 = tpu.matmul %702, %704, %cst_202 {dimension_numbers = #tpu.dot_dimension_numbers<[1], [0], [0], [1], [0, 0, 1, 1], [], []>} : vector<16x16xbf16>, vector<16x8xbf16>, vector<16x8xf32> -> vector<16x8xf32>
    %706 = vector.extract_strided_slice %636 {offsets = [0, 24], sizes = [16, 8], strides = [1, 1]} : vector<16x32xf32> to vector<16x8xf32>
    %707 = arith.truncf %706 : vector<16x8xf32> to vector<16x8xbf16>
    %708 = vector.extract_strided_slice %637 {offsets = [0, 24], sizes = [16, 8], strides = [1, 1]} : vector<16x32xf32> to vector<16x8xf32>
    %709 = arith.truncf %708 : vector<16x8xf32> to vector<16x8xbf16>
    %cst_203 = arith.constant dense<0.000000e+00> : vector<16x16xf32>
    %710 = tpu.matmul %707, %709, %cst_203 {dimension_numbers = #tpu.dot_dimension_numbers<[1], [1], [0], [0], [0, 0, 1, 0], [], []>} : vector<16x8xbf16>, vector<16x8xbf16>, vector<16x16xf32> -> vector<16x16xf32>
    %cst_204 = arith.constant -1.000000e+30 : f32
    %711 = vector.broadcast %cst_204 : f32 to vector<16x16xf32>
    %712 = arith.select %642, %710, %711 : vector<16x16xi1>, vector<16x16xf32>
    %cst_205 = arith.constant dense<0xFF800000> : vector<16xf32>
    %713 = vector.multi_reduction <maximumf>, %712, %cst_205 [1] : vector<16x16xf32> to vector<16xf32>
    %714 = vector.shape_cast %713 : vector<16xf32> to vector<16x1xf32>
    %715 = vector.broadcast %714 : vector<16x1xf32> to vector<16x16xf32>
    %716 = arith.subf %712, %715 : vector<16x16xf32>
    %717 = math.exp %716 : vector<16x16xf32>
    %cst_206 = arith.constant dense<0.000000e+00> : vector<16xf32>
    %718 = vector.multi_reduction <add>, %717, %cst_206 [1] : vector<16x16xf32> to vector<16xf32>
    %719 = vector.shape_cast %718 : vector<16xf32> to vector<16x1xf32>
    %720 = tpu.reciprocal %719 {approx = true} : vector<16x1xf32> -> vector<16x1xf32>
    %721 = vector.broadcast %720 : vector<16x1xf32> to vector<16x16xf32>
    %722 = arith.mulf %717, %721 : vector<16x16xf32>
    %723 = arith.truncf %722 : vector<16x16xf32> to vector<16x16xbf16>
    %724 = vector.extract_strided_slice %635 {offsets = [0, 24], sizes = [16, 8], strides = [1, 1]} : vector<16x32xf32> to vector<16x8xf32>
    %725 = arith.truncf %724 : vector<16x8xf32> to vector<16x8xbf16>
    %cst_207 = arith.constant dense<0.000000e+00> : vector<16x8xf32>
    %726 = tpu.matmul %723, %725, %cst_207 {dimension_numbers = #tpu.dot_dimension_numbers<[1], [0], [0], [1], [0, 0, 1, 1], [], []>} : vector<16x16xbf16>, vector<16x8xbf16>, vector<16x8xf32> -> vector<16x8xf32>
    %727 = tpu.concatenate %663, %684, %705, %726 in 1 : vector<16x8xf32>, vector<16x8xf32>, vector<16x8xf32>, vector<16x8xf32> -> vector<16x32xf32>
    %728 = arith.truncf %727 : vector<16x32xf32> to vector<16x32xbf16>
    %cst_208 = arith.constant dense<0.000000e+00> : vector<16x32xf32>
    %729 = tpu.matmul %728, %638, %cst_208 {dimension_numbers = #tpu.dot_dimension_numbers<[1], [0], [0], [1], [0, 0, 1, 1], [], []>} : vector<16x32xbf16>, vector<32x32xbf16>, vector<16x32xf32> -> vector<16x32xf32>
    %730 = vector.broadcast %639 : vector<1x32xf32> to vector<16x32xf32>
    %731 = arith.addf %729, %730 : vector<16x32xf32>
    %c14 = arith.constant 14 : index
    %c0_209 = arith.constant 0 : index
    %732 = vector.load %arg10[%c14, %c0_209] : memref<28x32xf32, #tpu.memory_space<vmem>>, vector<2x32xf32>
    %733 = vector.extract_strided_slice %732 {offsets = [0, 0], sizes = [1, 32], strides = [1, 1]} : vector<2x32xf32> to vector<1x32xf32>
    %734 = vector.extract_strided_slice %732 {offsets = [1, 0], sizes = [1, 32], strides = [1, 1]} : vector<2x32xf32> to vector<1x32xf32>
    %735 = arith.addf %98, %731 : vector<16x32xf32>
    %cst_210 = arith.constant dense<0.000000e+00> : vector<16xf32>
    %736 = vector.multi_reduction <add>, %735, %cst_210 [1] : vector<16x32xf32> to vector<16xf32>
    %737 = vector.shape_cast %736 : vector<16xf32> to vector<16x1xf32>
    %cst_211 = arith.constant 3.200000e+01 : f32
    %738 = vector.broadcast %cst_211 : f32 to vector<16x1xf32>
    %739 = arith.divf %737, %738 : vector<16x1xf32>
    %740 = vector.broadcast %739 : vector<16x1xf32> to vector<16x32xf32>
    %741 = arith.subf %735, %740 : vector<16x32xf32>
    %742 = arith.mulf %741, %741 : vector<16x32xf32>
    %cst_212 = arith.constant dense<0.000000e+00> : vector<16xf32>
    %743 = vector.multi_reduction <add>, %742, %cst_212 [1] : vector<16x32xf32> to vector<16xf32>
    %744 = vector.shape_cast %743 : vector<16xf32> to vector<16x1xf32>
    %cst_213 = arith.constant 3.200000e+01 : f32
    %745 = vector.broadcast %cst_213 : f32 to vector<16x1xf32>
    %746 = arith.divf %744, %745 : vector<16x1xf32>
    %747 = vector.broadcast %739 : vector<16x1xf32> to vector<16x32xf32>
    %748 = arith.subf %735, %747 : vector<16x32xf32>
    %cst_214 = arith.constant 9.99999974E-6 : f32
    %749 = vector.broadcast %cst_214 : f32 to vector<16x1xf32>
    %750 = arith.addf %746, %749 : vector<16x1xf32>
    %751 = math.rsqrt %750 : vector<16x1xf32>
    %752 = vector.broadcast %751 : vector<16x1xf32> to vector<16x32xf32>
    %753 = arith.mulf %748, %752 : vector<16x32xf32>
    %754 = vector.broadcast %733 : vector<1x32xf32> to vector<16x32xf32>
    %755 = arith.mulf %753, %754 : vector<16x32xf32>
    %756 = vector.broadcast %734 : vector<1x32xf32> to vector<16x32xf32>
    %757 = arith.addf %755, %756 : vector<16x32xf32>
    %c0_215 = arith.constant 0 : index
    %c512 = arith.constant 512 : index
    %758 = vector.load %arg6[%c0_215, %c512] : memref<32x1024xbf16, #tpu.memory_space<vmem>>, vector<32x32xbf16>
    %759 = arith.truncf %616 : vector<16x32xf32> to vector<16x32xbf16>
    %cst_216 = arith.constant dense<0.000000e+00> : vector<16x32xf32>
    %760 = tpu.matmul %759, %758, %cst_216 {dimension_numbers = #tpu.dot_dimension_numbers<[1], [0], [0], [1], [0, 0, 1, 1], [], []>} : vector<16x32xbf16>, vector<32x32xbf16>, vector<16x32xf32> -> vector<16x32xf32>
    %c0_217 = arith.constant 0 : index
    %c704 = arith.constant 704 : index
    %761 = vector.load %arg9[%c0_217, %c704] : memref<1x1376xf32, #tpu.memory_space<vmem>>, vector<1x32xf32>
    %762 = vector.broadcast %761 : vector<1x32xf32> to vector<16x32xf32>
    %763 = arith.addf %760, %762 : vector<16x32xf32>
    %c0_218 = arith.constant 0 : index
    %c544_219 = arith.constant 544 : index
    %764 = vector.load %arg6[%c0_218, %c544_219] : memref<32x1024xbf16, #tpu.memory_space<vmem>>, vector<32x64xbf16>
    %765 = arith.truncf %473 : vector<16x32xf32> to vector<16x32xbf16>
    %cst_220 = arith.constant dense<0.000000e+00> : vector<16x64xf32>
    %766 = tpu.matmul %765, %764, %cst_220 {dimension_numbers = #tpu.dot_dimension_numbers<[1], [0], [0], [1], [0, 0, 1, 1], [], []>} : vector<16x32xbf16>, vector<32x64xbf16>, vector<16x64xf32> -> vector<16x64xf32>
    %c0_221 = arith.constant 0 : index
    %c736 = arith.constant 736 : index
    %767 = vector.load %arg9[%c0_221, %c736] : memref<1x1376xf32, #tpu.memory_space<vmem>>, vector<1x64xf32>
    %768 = vector.broadcast %767 : vector<1x64xf32> to vector<16x64xf32>
    %769 = arith.addf %766, %768 : vector<16x64xf32>
    %770 = vector.extract_strided_slice %769 {offsets = [0, 0], sizes = [16, 32], strides = [1, 1]} : vector<16x64xf32> to vector<16x32xf32>
    %771 = vector.extract_strided_slice %769 {offsets = [0, 32], sizes = [16, 32], strides = [1, 1]} : vector<16x64xf32> to vector<16x32xf32>
    %c0_222 = arith.constant 0 : index
    %c608 = arith.constant 608 : index
    %772 = vector.load %arg6[%c0_222, %c608] : memref<32x1024xbf16, #tpu.memory_space<vmem>>, vector<32x32xbf16>
    %c0_223 = arith.constant 0 : index
    %c800 = arith.constant 800 : index
    %773 = vector.load %arg9[%c0_223, %c800] : memref<1x1376xf32, #tpu.memory_space<vmem>>, vector<1x32xf32>
    %774 = vector.extract_strided_slice %763 {offsets = [0, 0], sizes = [16, 8], strides = [1, 1]} : vector<16x32xf32> to vector<16x8xf32>
    %775 = arith.truncf %774 : vector<16x8xf32> to vector<16x8xbf16>
    %776 = vector.extract_strided_slice %770 {offsets = [0, 0], sizes = [16, 8], strides = [1, 1]} : vector<16x32xf32> to vector<16x8xf32>
    %777 = arith.truncf %776 : vector<16x8xf32> to vector<16x8xbf16>
    %cst_224 = arith.constant dense<0.000000e+00> : vector<16x16xf32>
    %778 = tpu.matmul %775, %777, %cst_224 {dimension_numbers = #tpu.dot_dimension_numbers<[1], [1], [0], [0], [0, 0, 1, 0], [], []>} : vector<16x8xbf16>, vector<16x8xbf16>, vector<16x16xf32> -> vector<16x16xf32>
    %cst_225 = arith.constant dense<0xFF800000> : vector<16xf32>
    %779 = vector.multi_reduction <maximumf>, %778, %cst_225 [1] : vector<16x16xf32> to vector<16xf32>
    %780 = vector.shape_cast %779 : vector<16xf32> to vector<16x1xf32>
    %781 = vector.broadcast %780 : vector<16x1xf32> to vector<16x16xf32>
    %782 = arith.subf %778, %781 : vector<16x16xf32>
    %783 = math.exp %782 : vector<16x16xf32>
    %cst_226 = arith.constant dense<0.000000e+00> : vector<16xf32>
    %784 = vector.multi_reduction <add>, %783, %cst_226 [1] : vector<16x16xf32> to vector<16xf32>
    %785 = vector.shape_cast %784 : vector<16xf32> to vector<16x1xf32>
    %786 = tpu.reciprocal %785 {approx = true} : vector<16x1xf32> -> vector<16x1xf32>
    %787 = vector.broadcast %786 : vector<16x1xf32> to vector<16x16xf32>
    %788 = arith.mulf %783, %787 : vector<16x16xf32>
    %789 = arith.truncf %788 : vector<16x16xf32> to vector<16x16xbf16>
    %790 = vector.extract_strided_slice %771 {offsets = [0, 0], sizes = [16, 8], strides = [1, 1]} : vector<16x32xf32> to vector<16x8xf32>
    %791 = arith.truncf %790 : vector<16x8xf32> to vector<16x8xbf16>
    %cst_227 = arith.constant dense<0.000000e+00> : vector<16x8xf32>
    %792 = tpu.matmul %789, %791, %cst_227 {dimension_numbers = #tpu.dot_dimension_numbers<[1], [0], [0], [1], [0, 0, 1, 1], [], []>} : vector<16x16xbf16>, vector<16x8xbf16>, vector<16x8xf32> -> vector<16x8xf32>
    %793 = vector.extract_strided_slice %763 {offsets = [0, 8], sizes = [16, 8], strides = [1, 1]} : vector<16x32xf32> to vector<16x8xf32>
    %794 = arith.truncf %793 : vector<16x8xf32> to vector<16x8xbf16>
    %795 = vector.extract_strided_slice %770 {offsets = [0, 8], sizes = [16, 8], strides = [1, 1]} : vector<16x32xf32> to vector<16x8xf32>
    %796 = arith.truncf %795 : vector<16x8xf32> to vector<16x8xbf16>
    %cst_228 = arith.constant dense<0.000000e+00> : vector<16x16xf32>
    %797 = tpu.matmul %794, %796, %cst_228 {dimension_numbers = #tpu.dot_dimension_numbers<[1], [1], [0], [0], [0, 0, 1, 0], [], []>} : vector<16x8xbf16>, vector<16x8xbf16>, vector<16x16xf32> -> vector<16x16xf32>
    %cst_229 = arith.constant dense<0xFF800000> : vector<16xf32>
    %798 = vector.multi_reduction <maximumf>, %797, %cst_229 [1] : vector<16x16xf32> to vector<16xf32>
    %799 = vector.shape_cast %798 : vector<16xf32> to vector<16x1xf32>
    %800 = vector.broadcast %799 : vector<16x1xf32> to vector<16x16xf32>
    %801 = arith.subf %797, %800 : vector<16x16xf32>
    %802 = math.exp %801 : vector<16x16xf32>
    %cst_230 = arith.constant dense<0.000000e+00> : vector<16xf32>
    %803 = vector.multi_reduction <add>, %802, %cst_230 [1] : vector<16x16xf32> to vector<16xf32>
    %804 = vector.shape_cast %803 : vector<16xf32> to vector<16x1xf32>
    %805 = tpu.reciprocal %804 {approx = true} : vector<16x1xf32> -> vector<16x1xf32>
    %806 = vector.broadcast %805 : vector<16x1xf32> to vector<16x16xf32>
    %807 = arith.mulf %802, %806 : vector<16x16xf32>
    %808 = arith.truncf %807 : vector<16x16xf32> to vector<16x16xbf16>
    %809 = vector.extract_strided_slice %771 {offsets = [0, 8], sizes = [16, 8], strides = [1, 1]} : vector<16x32xf32> to vector<16x8xf32>
    %810 = arith.truncf %809 : vector<16x8xf32> to vector<16x8xbf16>
    %cst_231 = arith.constant dense<0.000000e+00> : vector<16x8xf32>
    %811 = tpu.matmul %808, %810, %cst_231 {dimension_numbers = #tpu.dot_dimension_numbers<[1], [0], [0], [1], [0, 0, 1, 1], [], []>} : vector<16x16xbf16>, vector<16x8xbf16>, vector<16x8xf32> -> vector<16x8xf32>
    %812 = vector.extract_strided_slice %763 {offsets = [0, 16], sizes = [16, 8], strides = [1, 1]} : vector<16x32xf32> to vector<16x8xf32>
    %813 = arith.truncf %812 : vector<16x8xf32> to vector<16x8xbf16>
    %814 = vector.extract_strided_slice %770 {offsets = [0, 16], sizes = [16, 8], strides = [1, 1]} : vector<16x32xf32> to vector<16x8xf32>
    %815 = arith.truncf %814 : vector<16x8xf32> to vector<16x8xbf16>
    %cst_232 = arith.constant dense<0.000000e+00> : vector<16x16xf32>
    %816 = tpu.matmul %813, %815, %cst_232 {dimension_numbers = #tpu.dot_dimension_numbers<[1], [1], [0], [0], [0, 0, 1, 0], [], []>} : vector<16x8xbf16>, vector<16x8xbf16>, vector<16x16xf32> -> vector<16x16xf32>
    %cst_233 = arith.constant dense<0xFF800000> : vector<16xf32>
    %817 = vector.multi_reduction <maximumf>, %816, %cst_233 [1] : vector<16x16xf32> to vector<16xf32>
    %818 = vector.shape_cast %817 : vector<16xf32> to vector<16x1xf32>
    %819 = vector.broadcast %818 : vector<16x1xf32> to vector<16x16xf32>
    %820 = arith.subf %816, %819 : vector<16x16xf32>
    %821 = math.exp %820 : vector<16x16xf32>
    %cst_234 = arith.constant dense<0.000000e+00> : vector<16xf32>
    %822 = vector.multi_reduction <add>, %821, %cst_234 [1] : vector<16x16xf32> to vector<16xf32>
    %823 = vector.shape_cast %822 : vector<16xf32> to vector<16x1xf32>
    %824 = tpu.reciprocal %823 {approx = true} : vector<16x1xf32> -> vector<16x1xf32>
    %825 = vector.broadcast %824 : vector<16x1xf32> to vector<16x16xf32>
    %826 = arith.mulf %821, %825 : vector<16x16xf32>
    %827 = arith.truncf %826 : vector<16x16xf32> to vector<16x16xbf16>
    %828 = vector.extract_strided_slice %771 {offsets = [0, 16], sizes = [16, 8], strides = [1, 1]} : vector<16x32xf32> to vector<16x8xf32>
    %829 = arith.truncf %828 : vector<16x8xf32> to vector<16x8xbf16>
    %cst_235 = arith.constant dense<0.000000e+00> : vector<16x8xf32>
    %830 = tpu.matmul %827, %829, %cst_235 {dimension_numbers = #tpu.dot_dimension_numbers<[1], [0], [0], [1], [0, 0, 1, 1], [], []>} : vector<16x16xbf16>, vector<16x8xbf16>, vector<16x8xf32> -> vector<16x8xf32>
    %831 = vector.extract_strided_slice %763 {offsets = [0, 24], sizes = [16, 8], strides = [1, 1]} : vector<16x32xf32> to vector<16x8xf32>
    %832 = arith.truncf %831 : vector<16x8xf32> to vector<16x8xbf16>
    %833 = vector.extract_strided_slice %770 {offsets = [0, 24], sizes = [16, 8], strides = [1, 1]} : vector<16x32xf32> to vector<16x8xf32>
    %834 = arith.truncf %833 : vector<16x8xf32> to vector<16x8xbf16>
    %cst_236 = arith.constant dense<0.000000e+00> : vector<16x16xf32>
    %835 = tpu.matmul %832, %834, %cst_236 {dimension_numbers = #tpu.dot_dimension_numbers<[1], [1], [0], [0], [0, 0, 1, 0], [], []>} : vector<16x8xbf16>, vector<16x8xbf16>, vector<16x16xf32> -> vector<16x16xf32>
    %cst_237 = arith.constant dense<0xFF800000> : vector<16xf32>
    %836 = vector.multi_reduction <maximumf>, %835, %cst_237 [1] : vector<16x16xf32> to vector<16xf32>
    %837 = vector.shape_cast %836 : vector<16xf32> to vector<16x1xf32>
    %838 = vector.broadcast %837 : vector<16x1xf32> to vector<16x16xf32>
    %839 = arith.subf %835, %838 : vector<16x16xf32>
    %840 = math.exp %839 : vector<16x16xf32>
    %cst_238 = arith.constant dense<0.000000e+00> : vector<16xf32>
    %841 = vector.multi_reduction <add>, %840, %cst_238 [1] : vector<16x16xf32> to vector<16xf32>
    %842 = vector.shape_cast %841 : vector<16xf32> to vector<16x1xf32>
    %843 = tpu.reciprocal %842 {approx = true} : vector<16x1xf32> -> vector<16x1xf32>
    %844 = vector.broadcast %843 : vector<16x1xf32> to vector<16x16xf32>
    %845 = arith.mulf %840, %844 : vector<16x16xf32>
    %846 = arith.truncf %845 : vector<16x16xf32> to vector<16x16xbf16>
    %847 = vector.extract_strided_slice %771 {offsets = [0, 24], sizes = [16, 8], strides = [1, 1]} : vector<16x32xf32> to vector<16x8xf32>
    %848 = arith.truncf %847 : vector<16x8xf32> to vector<16x8xbf16>
    %cst_239 = arith.constant dense<0.000000e+00> : vector<16x8xf32>
    %849 = tpu.matmul %846, %848, %cst_239 {dimension_numbers = #tpu.dot_dimension_numbers<[1], [0], [0], [1], [0, 0, 1, 1], [], []>} : vector<16x16xbf16>, vector<16x8xbf16>, vector<16x8xf32> -> vector<16x8xf32>
    %850 = tpu.concatenate %792, %811, %830, %849 in 1 : vector<16x8xf32>, vector<16x8xf32>, vector<16x8xf32>, vector<16x8xf32> -> vector<16x32xf32>
    %851 = arith.truncf %850 : vector<16x32xf32> to vector<16x32xbf16>
    %cst_240 = arith.constant dense<0.000000e+00> : vector<16x32xf32>
    %852 = tpu.matmul %851, %772, %cst_240 {dimension_numbers = #tpu.dot_dimension_numbers<[1], [0], [0], [1], [0, 0, 1, 1], [], []>} : vector<16x32xbf16>, vector<32x32xbf16>, vector<16x32xf32> -> vector<16x32xf32>
    %853 = vector.broadcast %773 : vector<1x32xf32> to vector<16x32xf32>
    %854 = arith.addf %852, %853 : vector<16x32xf32>
    %c16 = arith.constant 16 : index
    %c0_241 = arith.constant 0 : index
    %855 = vector.load %arg10[%c16, %c0_241] : memref<28x32xf32, #tpu.memory_space<vmem>>, vector<2x32xf32>
    %856 = vector.extract_strided_slice %855 {offsets = [0, 0], sizes = [1, 32], strides = [1, 1]} : vector<2x32xf32> to vector<1x32xf32>
    %857 = vector.extract_strided_slice %855 {offsets = [1, 0], sizes = [1, 32], strides = [1, 1]} : vector<2x32xf32> to vector<1x32xf32>
    %858 = arith.addf %616, %854 : vector<16x32xf32>
    %cst_242 = arith.constant dense<0.000000e+00> : vector<16xf32>
    %859 = vector.multi_reduction <add>, %858, %cst_242 [1] : vector<16x32xf32> to vector<16xf32>
    %860 = vector.shape_cast %859 : vector<16xf32> to vector<16x1xf32>
    %cst_243 = arith.constant 3.200000e+01 : f32
    %861 = vector.broadcast %cst_243 : f32 to vector<16x1xf32>
    %862 = arith.divf %860, %861 : vector<16x1xf32>
    %863 = vector.broadcast %862 : vector<16x1xf32> to vector<16x32xf32>
    %864 = arith.subf %858, %863 : vector<16x32xf32>
    %865 = arith.mulf %864, %864 : vector<16x32xf32>
    %cst_244 = arith.constant dense<0.000000e+00> : vector<16xf32>
    %866 = vector.multi_reduction <add>, %865, %cst_244 [1] : vector<16x32xf32> to vector<16xf32>
    %867 = vector.shape_cast %866 : vector<16xf32> to vector<16x1xf32>
    %cst_245 = arith.constant 3.200000e+01 : f32
    %868 = vector.broadcast %cst_245 : f32 to vector<16x1xf32>
    %869 = arith.divf %867, %868 : vector<16x1xf32>
    %870 = vector.broadcast %862 : vector<16x1xf32> to vector<16x32xf32>
    %871 = arith.subf %858, %870 : vector<16x32xf32>
    %cst_246 = arith.constant 9.99999974E-6 : f32
    %872 = vector.broadcast %cst_246 : f32 to vector<16x1xf32>
    %873 = arith.addf %869, %872 : vector<16x1xf32>
    %874 = math.rsqrt %873 : vector<16x1xf32>
    %875 = vector.broadcast %874 : vector<16x1xf32> to vector<16x32xf32>
    %876 = arith.mulf %871, %875 : vector<16x32xf32>
    %877 = vector.broadcast %856 : vector<1x32xf32> to vector<16x32xf32>
    %878 = arith.mulf %876, %877 : vector<16x32xf32>
    %879 = vector.broadcast %857 : vector<1x32xf32> to vector<16x32xf32>
    %880 = arith.addf %878, %879 : vector<16x32xf32>
    %c0_247 = arith.constant 0 : index
    %c128_248 = arith.constant 128 : index
    %881 = vector.load %arg8[%c0_247, %c128_248] : memref<96x192xbf16, #tpu.memory_space<vmem>>, vector<96x32xbf16>
    %cst_249 = arith.constant 0.000000e+00 : f32
    %882 = vector.broadcast %cst_249 : f32 to vector<2x32xf32>
    %883 = vector.extract_strided_slice %757 {offsets = [0, 0], sizes = [14, 32], strides = [1, 1]} : vector<16x32xf32> to vector<14x32xf32>
    %884 = tpu.concatenate %882, %883 in 0 : vector<2x32xf32>, vector<14x32xf32> -> vector<16x32xf32>
    %cst_250 = arith.constant 0.000000e+00 : f32
    %885 = vector.broadcast %cst_250 : f32 to vector<1x32xf32>
    %886 = vector.extract_strided_slice %757 {offsets = [0, 0], sizes = [15, 32], strides = [1, 1]} : vector<16x32xf32> to vector<15x32xf32>
    %887 = tpu.concatenate %885, %886 in 0 : vector<1x32xf32>, vector<15x32xf32> -> vector<16x32xf32>
    %888 = tpu.concatenate %884, %887, %757 in 1 : vector<16x32xf32>, vector<16x32xf32>, vector<16x32xf32> -> vector<16x96xf32>
    %889 = arith.truncf %888 : vector<16x96xf32> to vector<16x96xbf16>
    %cst_251 = arith.constant dense<0.000000e+00> : vector<16x32xf32>
    %890 = tpu.matmul %889, %881, %cst_251 {dimension_numbers = #tpu.dot_dimension_numbers<[1], [0], [0], [1], [0, 0, 1, 1], [], []>} : vector<16x96xbf16>, vector<96x32xbf16>, vector<16x32xf32> -> vector<16x32xf32>
    %c0_252 = arith.constant 0 : index
    %c832 = arith.constant 832 : index
    %891 = vector.load %arg9[%c0_252, %c832] : memref<1x1376xf32, #tpu.memory_space<vmem>>, vector<1x32xf32>
    %892 = vector.broadcast %891 : vector<1x32xf32> to vector<16x32xf32>
    %893 = arith.addf %890, %892 : vector<16x32xf32>
    %c0_253 = arith.constant 0 : index
    %c160 = arith.constant 160 : index
    %894 = vector.load %arg8[%c0_253, %c160] : memref<96x192xbf16, #tpu.memory_space<vmem>>, vector<96x32xbf16>
    %cst_254 = arith.constant 0.000000e+00 : f32
    %895 = vector.broadcast %cst_254 : f32 to vector<2x32xf32>
    %896 = vector.extract_strided_slice %498 {offsets = [0, 0], sizes = [14, 32], strides = [1, 1]} : vector<16x32xf32> to vector<14x32xf32>
    %897 = tpu.concatenate %895, %896 in 0 : vector<2x32xf32>, vector<14x32xf32> -> vector<16x32xf32>
    %cst_255 = arith.constant 0.000000e+00 : f32
    %898 = vector.broadcast %cst_255 : f32 to vector<1x32xf32>
    %899 = vector.extract_strided_slice %498 {offsets = [0, 0], sizes = [15, 32], strides = [1, 1]} : vector<16x32xf32> to vector<15x32xf32>
    %900 = tpu.concatenate %898, %899 in 0 : vector<1x32xf32>, vector<15x32xf32> -> vector<16x32xf32>
    %901 = tpu.concatenate %897, %900, %498 in 1 : vector<16x32xf32>, vector<16x32xf32>, vector<16x32xf32> -> vector<16x96xf32>
    %902 = arith.truncf %901 : vector<16x96xf32> to vector<16x96xbf16>
    %cst_256 = arith.constant dense<0.000000e+00> : vector<16x32xf32>
    %903 = tpu.matmul %902, %894, %cst_256 {dimension_numbers = #tpu.dot_dimension_numbers<[1], [0], [0], [1], [0, 0, 1, 1], [], []>} : vector<16x96xbf16>, vector<96x32xbf16>, vector<16x32xf32> -> vector<16x32xf32>
    %c0_257 = arith.constant 0 : index
    %c864 = arith.constant 864 : index
    %904 = vector.load %arg9[%c0_257, %c864] : memref<1x1376xf32, #tpu.memory_space<vmem>>, vector<1x32xf32>
    %905 = vector.broadcast %904 : vector<1x32xf32> to vector<16x32xf32>
    %906 = arith.addf %903, %905 : vector<16x32xf32>
    %c0_258 = arith.constant 0 : index
    %c640_259 = arith.constant 640 : index
    %907 = vector.load %arg6[%c0_258, %c640_259] : memref<32x1024xbf16, #tpu.memory_space<vmem>>, vector<32x32xbf16>
    %908 = arith.truncf %498 : vector<16x32xf32> to vector<16x32xbf16>
    %cst_260 = arith.constant dense<0.000000e+00> : vector<16x32xf32>
    %909 = tpu.matmul %908, %907, %cst_260 {dimension_numbers = #tpu.dot_dimension_numbers<[1], [0], [0], [1], [0, 0, 1, 1], [], []>} : vector<16x32xbf16>, vector<32x32xbf16>, vector<16x32xf32> -> vector<16x32xf32>
    %c0_261 = arith.constant 0 : index
    %c896 = arith.constant 896 : index
    %910 = vector.load %arg9[%c0_261, %c896] : memref<1x1376xf32, #tpu.memory_space<vmem>>, vector<1x32xf32>
    %911 = vector.broadcast %910 : vector<1x32xf32> to vector<16x32xf32>
    %912 = arith.addf %909, %911 : vector<16x32xf32>
    %c0_262 = arith.constant 0 : index
    %c672_263 = arith.constant 672 : index
    %913 = vector.load %arg6[%c0_262, %c672_263] : memref<32x1024xbf16, #tpu.memory_space<vmem>>, vector<32x32xbf16>
    %c0_264 = arith.constant 0 : index
    %c928 = arith.constant 928 : index
    %914 = vector.load %arg9[%c0_264, %c928] : memref<1x1376xf32, #tpu.memory_space<vmem>>, vector<1x32xf32>
    %915 = vector.extract_strided_slice %893 {offsets = [0, 0], sizes = [16, 8], strides = [1, 1]} : vector<16x32xf32> to vector<16x8xf32>
    %916 = arith.truncf %915 : vector<16x8xf32> to vector<16x8xbf16>
    %917 = vector.extract_strided_slice %906 {offsets = [0, 0], sizes = [16, 8], strides = [1, 1]} : vector<16x32xf32> to vector<16x8xf32>
    %918 = arith.truncf %917 : vector<16x8xf32> to vector<16x8xbf16>
    %cst_265 = arith.constant dense<0.000000e+00> : vector<16x16xf32>
    %919 = tpu.matmul %916, %918, %cst_265 {dimension_numbers = #tpu.dot_dimension_numbers<[1], [1], [0], [0], [0, 0, 1, 0], [], []>} : vector<16x8xbf16>, vector<16x8xbf16>, vector<16x16xf32> -> vector<16x16xf32>
    %cst_266 = arith.constant dense<0xFF800000> : vector<16xf32>
    %920 = vector.multi_reduction <maximumf>, %919, %cst_266 [1] : vector<16x16xf32> to vector<16xf32>
    %921 = vector.shape_cast %920 : vector<16xf32> to vector<16x1xf32>
    %922 = vector.broadcast %921 : vector<16x1xf32> to vector<16x16xf32>
    %923 = arith.subf %919, %922 : vector<16x16xf32>
    %924 = math.exp %923 : vector<16x16xf32>
    %cst_267 = arith.constant dense<0.000000e+00> : vector<16xf32>
    %925 = vector.multi_reduction <add>, %924, %cst_267 [1] : vector<16x16xf32> to vector<16xf32>
    %926 = vector.shape_cast %925 : vector<16xf32> to vector<16x1xf32>
    %927 = tpu.reciprocal %926 {approx = true} : vector<16x1xf32> -> vector<16x1xf32>
    %928 = vector.broadcast %927 : vector<16x1xf32> to vector<16x16xf32>
    %929 = arith.mulf %924, %928 : vector<16x16xf32>
    %930 = arith.truncf %929 : vector<16x16xf32> to vector<16x16xbf16>
    %931 = vector.extract_strided_slice %912 {offsets = [0, 0], sizes = [16, 8], strides = [1, 1]} : vector<16x32xf32> to vector<16x8xf32>
    %932 = arith.truncf %931 : vector<16x8xf32> to vector<16x8xbf16>
    %cst_268 = arith.constant dense<0.000000e+00> : vector<16x8xf32>
    %933 = tpu.matmul %930, %932, %cst_268 {dimension_numbers = #tpu.dot_dimension_numbers<[1], [0], [0], [1], [0, 0, 1, 1], [], []>} : vector<16x16xbf16>, vector<16x8xbf16>, vector<16x8xf32> -> vector<16x8xf32>
    %934 = vector.extract_strided_slice %893 {offsets = [0, 8], sizes = [16, 8], strides = [1, 1]} : vector<16x32xf32> to vector<16x8xf32>
    %935 = arith.truncf %934 : vector<16x8xf32> to vector<16x8xbf16>
    %936 = vector.extract_strided_slice %906 {offsets = [0, 8], sizes = [16, 8], strides = [1, 1]} : vector<16x32xf32> to vector<16x8xf32>
    %937 = arith.truncf %936 : vector<16x8xf32> to vector<16x8xbf16>
    %cst_269 = arith.constant dense<0.000000e+00> : vector<16x16xf32>
    %938 = tpu.matmul %935, %937, %cst_269 {dimension_numbers = #tpu.dot_dimension_numbers<[1], [1], [0], [0], [0, 0, 1, 0], [], []>} : vector<16x8xbf16>, vector<16x8xbf16>, vector<16x16xf32> -> vector<16x16xf32>
    %cst_270 = arith.constant dense<0xFF800000> : vector<16xf32>
    %939 = vector.multi_reduction <maximumf>, %938, %cst_270 [1] : vector<16x16xf32> to vector<16xf32>
    %940 = vector.shape_cast %939 : vector<16xf32> to vector<16x1xf32>
    %941 = vector.broadcast %940 : vector<16x1xf32> to vector<16x16xf32>
    %942 = arith.subf %938, %941 : vector<16x16xf32>
    %943 = math.exp %942 : vector<16x16xf32>
    %cst_271 = arith.constant dense<0.000000e+00> : vector<16xf32>
    %944 = vector.multi_reduction <add>, %943, %cst_271 [1] : vector<16x16xf32> to vector<16xf32>
    %945 = vector.shape_cast %944 : vector<16xf32> to vector<16x1xf32>
    %946 = tpu.reciprocal %945 {approx = true} : vector<16x1xf32> -> vector<16x1xf32>
    %947 = vector.broadcast %946 : vector<16x1xf32> to vector<16x16xf32>
    %948 = arith.mulf %943, %947 : vector<16x16xf32>
    %949 = arith.truncf %948 : vector<16x16xf32> to vector<16x16xbf16>
    %950 = vector.extract_strided_slice %912 {offsets = [0, 8], sizes = [16, 8], strides = [1, 1]} : vector<16x32xf32> to vector<16x8xf32>
    %951 = arith.truncf %950 : vector<16x8xf32> to vector<16x8xbf16>
    %cst_272 = arith.constant dense<0.000000e+00> : vector<16x8xf32>
    %952 = tpu.matmul %949, %951, %cst_272 {dimension_numbers = #tpu.dot_dimension_numbers<[1], [0], [0], [1], [0, 0, 1, 1], [], []>} : vector<16x16xbf16>, vector<16x8xbf16>, vector<16x8xf32> -> vector<16x8xf32>
    %953 = vector.extract_strided_slice %893 {offsets = [0, 16], sizes = [16, 8], strides = [1, 1]} : vector<16x32xf32> to vector<16x8xf32>
    %954 = arith.truncf %953 : vector<16x8xf32> to vector<16x8xbf16>
    %955 = vector.extract_strided_slice %906 {offsets = [0, 16], sizes = [16, 8], strides = [1, 1]} : vector<16x32xf32> to vector<16x8xf32>
    %956 = arith.truncf %955 : vector<16x8xf32> to vector<16x8xbf16>
    %cst_273 = arith.constant dense<0.000000e+00> : vector<16x16xf32>
    %957 = tpu.matmul %954, %956, %cst_273 {dimension_numbers = #tpu.dot_dimension_numbers<[1], [1], [0], [0], [0, 0, 1, 0], [], []>} : vector<16x8xbf16>, vector<16x8xbf16>, vector<16x16xf32> -> vector<16x16xf32>
    %cst_274 = arith.constant dense<0xFF800000> : vector<16xf32>
    %958 = vector.multi_reduction <maximumf>, %957, %cst_274 [1] : vector<16x16xf32> to vector<16xf32>
    %959 = vector.shape_cast %958 : vector<16xf32> to vector<16x1xf32>
    %960 = vector.broadcast %959 : vector<16x1xf32> to vector<16x16xf32>
    %961 = arith.subf %957, %960 : vector<16x16xf32>
    %962 = math.exp %961 : vector<16x16xf32>
    %cst_275 = arith.constant dense<0.000000e+00> : vector<16xf32>
    %963 = vector.multi_reduction <add>, %962, %cst_275 [1] : vector<16x16xf32> to vector<16xf32>
    %964 = vector.shape_cast %963 : vector<16xf32> to vector<16x1xf32>
    %965 = tpu.reciprocal %964 {approx = true} : vector<16x1xf32> -> vector<16x1xf32>
    %966 = vector.broadcast %965 : vector<16x1xf32> to vector<16x16xf32>
    %967 = arith.mulf %962, %966 : vector<16x16xf32>
    %968 = arith.truncf %967 : vector<16x16xf32> to vector<16x16xbf16>
    %969 = vector.extract_strided_slice %912 {offsets = [0, 16], sizes = [16, 8], strides = [1, 1]} : vector<16x32xf32> to vector<16x8xf32>
    %970 = arith.truncf %969 : vector<16x8xf32> to vector<16x8xbf16>
    %cst_276 = arith.constant dense<0.000000e+00> : vector<16x8xf32>
    %971 = tpu.matmul %968, %970, %cst_276 {dimension_numbers = #tpu.dot_dimension_numbers<[1], [0], [0], [1], [0, 0, 1, 1], [], []>} : vector<16x16xbf16>, vector<16x8xbf16>, vector<16x8xf32> -> vector<16x8xf32>
    %972 = vector.extract_strided_slice %893 {offsets = [0, 24], sizes = [16, 8], strides = [1, 1]} : vector<16x32xf32> to vector<16x8xf32>
    %973 = arith.truncf %972 : vector<16x8xf32> to vector<16x8xbf16>
    %974 = vector.extract_strided_slice %906 {offsets = [0, 24], sizes = [16, 8], strides = [1, 1]} : vector<16x32xf32> to vector<16x8xf32>
    %975 = arith.truncf %974 : vector<16x8xf32> to vector<16x8xbf16>
    %cst_277 = arith.constant dense<0.000000e+00> : vector<16x16xf32>
    %976 = tpu.matmul %973, %975, %cst_277 {dimension_numbers = #tpu.dot_dimension_numbers<[1], [1], [0], [0], [0, 0, 1, 0], [], []>} : vector<16x8xbf16>, vector<16x8xbf16>, vector<16x16xf32> -> vector<16x16xf32>
    %cst_278 = arith.constant dense<0xFF800000> : vector<16xf32>
    %977 = vector.multi_reduction <maximumf>, %976, %cst_278 [1] : vector<16x16xf32> to vector<16xf32>
    %978 = vector.shape_cast %977 : vector<16xf32> to vector<16x1xf32>
    %979 = vector.broadcast %978 : vector<16x1xf32> to vector<16x16xf32>
    %980 = arith.subf %976, %979 : vector<16x16xf32>
    %981 = math.exp %980 : vector<16x16xf32>
    %cst_279 = arith.constant dense<0.000000e+00> : vector<16xf32>
    %982 = vector.multi_reduction <add>, %981, %cst_279 [1] : vector<16x16xf32> to vector<16xf32>
    %983 = vector.shape_cast %982 : vector<16xf32> to vector<16x1xf32>
    %984 = tpu.reciprocal %983 {approx = true} : vector<16x1xf32> -> vector<16x1xf32>
    %985 = vector.broadcast %984 : vector<16x1xf32> to vector<16x16xf32>
    %986 = arith.mulf %981, %985 : vector<16x16xf32>
    %987 = arith.truncf %986 : vector<16x16xf32> to vector<16x16xbf16>
    %988 = vector.extract_strided_slice %912 {offsets = [0, 24], sizes = [16, 8], strides = [1, 1]} : vector<16x32xf32> to vector<16x8xf32>
    %989 = arith.truncf %988 : vector<16x8xf32> to vector<16x8xbf16>
    %cst_280 = arith.constant dense<0.000000e+00> : vector<16x8xf32>
    %990 = tpu.matmul %987, %989, %cst_280 {dimension_numbers = #tpu.dot_dimension_numbers<[1], [0], [0], [1], [0, 0, 1, 1], [], []>} : vector<16x16xbf16>, vector<16x8xbf16>, vector<16x8xf32> -> vector<16x8xf32>
    %991 = tpu.concatenate %933, %952, %971, %990 in 1 : vector<16x8xf32>, vector<16x8xf32>, vector<16x8xf32>, vector<16x8xf32> -> vector<16x32xf32>
    %992 = arith.truncf %991 : vector<16x32xf32> to vector<16x32xbf16>
    %cst_281 = arith.constant dense<0.000000e+00> : vector<16x32xf32>
    %993 = tpu.matmul %992, %913, %cst_281 {dimension_numbers = #tpu.dot_dimension_numbers<[1], [0], [0], [1], [0, 0, 1, 1], [], []>} : vector<16x32xbf16>, vector<32x32xbf16>, vector<16x32xf32> -> vector<16x32xf32>
    %994 = vector.broadcast %914 : vector<1x32xf32> to vector<16x32xf32>
    %995 = arith.addf %993, %994 : vector<16x32xf32>
    %c18 = arith.constant 18 : index
    %c0_282 = arith.constant 0 : index
    %996 = vector.load %arg10[%c18, %c0_282] : memref<28x32xf32, #tpu.memory_space<vmem>>, vector<2x32xf32>
    %997 = vector.extract_strided_slice %996 {offsets = [0, 0], sizes = [1, 32], strides = [1, 1]} : vector<2x32xf32> to vector<1x32xf32>
    %998 = vector.extract_strided_slice %996 {offsets = [1, 0], sizes = [1, 32], strides = [1, 1]} : vector<2x32xf32> to vector<1x32xf32>
    %999 = arith.addf %757, %995 : vector<16x32xf32>
    %cst_283 = arith.constant dense<0.000000e+00> : vector<16xf32>
    %1000 = vector.multi_reduction <add>, %999, %cst_283 [1] : vector<16x32xf32> to vector<16xf32>
    %1001 = vector.shape_cast %1000 : vector<16xf32> to vector<16x1xf32>
    %cst_284 = arith.constant 3.200000e+01 : f32
    %1002 = vector.broadcast %cst_284 : f32 to vector<16x1xf32>
    %1003 = arith.divf %1001, %1002 : vector<16x1xf32>
    %1004 = vector.broadcast %1003 : vector<16x1xf32> to vector<16x32xf32>
    %1005 = arith.subf %999, %1004 : vector<16x32xf32>
    %1006 = arith.mulf %1005, %1005 : vector<16x32xf32>
    %cst_285 = arith.constant dense<0.000000e+00> : vector<16xf32>
    %1007 = vector.multi_reduction <add>, %1006, %cst_285 [1] : vector<16x32xf32> to vector<16xf32>
    %1008 = vector.shape_cast %1007 : vector<16xf32> to vector<16x1xf32>
    %cst_286 = arith.constant 3.200000e+01 : f32
    %1009 = vector.broadcast %cst_286 : f32 to vector<16x1xf32>
    %1010 = arith.divf %1008, %1009 : vector<16x1xf32>
    %1011 = vector.broadcast %1003 : vector<16x1xf32> to vector<16x32xf32>
    %1012 = arith.subf %999, %1011 : vector<16x32xf32>
    %cst_287 = arith.constant 9.99999974E-6 : f32
    %1013 = vector.broadcast %cst_287 : f32 to vector<16x1xf32>
    %1014 = arith.addf %1010, %1013 : vector<16x1xf32>
    %1015 = math.rsqrt %1014 : vector<16x1xf32>
    %1016 = vector.broadcast %1015 : vector<16x1xf32> to vector<16x32xf32>
    %1017 = arith.mulf %1012, %1016 : vector<16x32xf32>
    %1018 = vector.broadcast %997 : vector<1x32xf32> to vector<16x32xf32>
    %1019 = arith.mulf %1017, %1018 : vector<16x32xf32>
    %1020 = vector.broadcast %998 : vector<1x32xf32> to vector<16x32xf32>
    %1021 = arith.addf %1019, %1020 : vector<16x32xf32>
    %c0_288 = arith.constant 0 : index
    %c704_289 = arith.constant 704 : index
    %1022 = vector.load %arg6[%c0_288, %c704_289] : memref<32x1024xbf16, #tpu.memory_space<vmem>>, vector<32x64xbf16>
    %c0_290 = arith.constant 0 : index
    %c960 = arith.constant 960 : index
    %1023 = vector.load %arg9[%c0_290, %c960] : memref<1x1376xf32, #tpu.memory_space<vmem>>, vector<1x64xf32>
    %c0_291 = arith.constant 0 : index
    %c64_292 = arith.constant 64 : index
    %1024 = vector.load %arg7[%c0_291, %c64_292] : memref<64x160xbf16, #tpu.memory_space<vmem>>, vector<64x32xbf16>
    %c0_293 = arith.constant 0 : index
    %c1024 = arith.constant 1024 : index
    %1025 = vector.load %arg9[%c0_293, %c1024] : memref<1x1376xf32, #tpu.memory_space<vmem>>, vector<1x32xf32>
    %1026 = arith.truncf %880 : vector<16x32xf32> to vector<16x32xbf16>
    %cst_294 = arith.constant dense<0.000000e+00> : vector<16x64xf32>
    %1027 = tpu.matmul %1026, %1022, %cst_294 {dimension_numbers = #tpu.dot_dimension_numbers<[1], [0], [0], [1], [0, 0, 1, 1], [], []>} : vector<16x32xbf16>, vector<32x64xbf16>, vector<16x64xf32> -> vector<16x64xf32>
    %1028 = vector.broadcast %1023 : vector<1x64xf32> to vector<16x64xf32>
    %1029 = arith.addf %1027, %1028 : vector<16x64xf32>
    %1030 = arith.mulf %1029, %1029 : vector<16x64xf32>
    %1031 = arith.mulf %1029, %1030 : vector<16x64xf32>
    %cst_295 = arith.constant 4.471500e-02 : f32
    %1032 = vector.broadcast %cst_295 : f32 to vector<16x64xf32>
    %1033 = arith.mulf %1032, %1031 : vector<16x64xf32>
    %1034 = arith.addf %1029, %1033 : vector<16x64xf32>
    %cst_296 = arith.constant 0.797884583 : f32
    %1035 = vector.broadcast %cst_296 : f32 to vector<16x64xf32>
    %1036 = arith.mulf %1035, %1034 : vector<16x64xf32>
    %1037 = math.tanh %1036 : vector<16x64xf32>
    %cst_297 = arith.constant 1.000000e+00 : f32
    %1038 = vector.broadcast %cst_297 : f32 to vector<16x64xf32>
    %1039 = arith.addf %1038, %1037 : vector<16x64xf32>
    %cst_298 = arith.constant 5.000000e-01 : f32
    %1040 = vector.broadcast %cst_298 : f32 to vector<16x64xf32>
    %1041 = arith.mulf %1040, %1039 : vector<16x64xf32>
    %1042 = arith.mulf %1029, %1041 : vector<16x64xf32>
    %1043 = arith.truncf %1042 : vector<16x64xf32> to vector<16x64xbf16>
    %cst_299 = arith.constant dense<0.000000e+00> : vector<16x32xf32>
    %1044 = tpu.matmul %1043, %1024, %cst_299 {dimension_numbers = #tpu.dot_dimension_numbers<[1], [0], [0], [1], [0, 0, 1, 1], [], []>} : vector<16x64xbf16>, vector<64x32xbf16>, vector<16x32xf32> -> vector<16x32xf32>
    %1045 = vector.broadcast %1025 : vector<1x32xf32> to vector<16x32xf32>
    %1046 = arith.addf %1044, %1045 : vector<16x32xf32>
    %c20 = arith.constant 20 : index
    %c0_300 = arith.constant 0 : index
    %1047 = vector.load %arg10[%c20, %c0_300] : memref<28x32xf32, #tpu.memory_space<vmem>>, vector<2x32xf32>
    %1048 = vector.extract_strided_slice %1047 {offsets = [0, 0], sizes = [1, 32], strides = [1, 1]} : vector<2x32xf32> to vector<1x32xf32>
    %1049 = vector.extract_strided_slice %1047 {offsets = [1, 0], sizes = [1, 32], strides = [1, 1]} : vector<2x32xf32> to vector<1x32xf32>
    %1050 = arith.addf %880, %1046 : vector<16x32xf32>
    %cst_301 = arith.constant dense<0.000000e+00> : vector<16xf32>
    %1051 = vector.multi_reduction <add>, %1050, %cst_301 [1] : vector<16x32xf32> to vector<16xf32>
    %1052 = vector.shape_cast %1051 : vector<16xf32> to vector<16x1xf32>
    %cst_302 = arith.constant 3.200000e+01 : f32
    %1053 = vector.broadcast %cst_302 : f32 to vector<16x1xf32>
    %1054 = arith.divf %1052, %1053 : vector<16x1xf32>
    %1055 = vector.broadcast %1054 : vector<16x1xf32> to vector<16x32xf32>
    %1056 = arith.subf %1050, %1055 : vector<16x32xf32>
    %1057 = arith.mulf %1056, %1056 : vector<16x32xf32>
    %cst_303 = arith.constant dense<0.000000e+00> : vector<16xf32>
    %1058 = vector.multi_reduction <add>, %1057, %cst_303 [1] : vector<16x32xf32> to vector<16xf32>
    %1059 = vector.shape_cast %1058 : vector<16xf32> to vector<16x1xf32>
    %cst_304 = arith.constant 3.200000e+01 : f32
    %1060 = vector.broadcast %cst_304 : f32 to vector<16x1xf32>
    %1061 = arith.divf %1059, %1060 : vector<16x1xf32>
    %1062 = vector.broadcast %1054 : vector<16x1xf32> to vector<16x32xf32>
    %1063 = arith.subf %1050, %1062 : vector<16x32xf32>
    %cst_305 = arith.constant 9.99999974E-6 : f32
    %1064 = vector.broadcast %cst_305 : f32 to vector<16x1xf32>
    %1065 = arith.addf %1061, %1064 : vector<16x1xf32>
    %1066 = math.rsqrt %1065 : vector<16x1xf32>
    %1067 = vector.broadcast %1066 : vector<16x1xf32> to vector<16x32xf32>
    %1068 = arith.mulf %1063, %1067 : vector<16x32xf32>
    %1069 = vector.broadcast %1048 : vector<1x32xf32> to vector<16x32xf32>
    %1070 = arith.mulf %1068, %1069 : vector<16x32xf32>
    %1071 = vector.broadcast %1049 : vector<1x32xf32> to vector<16x32xf32>
    %1072 = arith.addf %1070, %1071 : vector<16x32xf32>
    %c0_306 = arith.constant 0 : index
    %c768 = arith.constant 768 : index
    %1073 = vector.load %arg6[%c0_306, %c768] : memref<32x1024xbf16, #tpu.memory_space<vmem>>, vector<32x64xbf16>
    %c0_307 = arith.constant 0 : index
    %c1056 = arith.constant 1056 : index
    %1074 = vector.load %arg9[%c0_307, %c1056] : memref<1x1376xf32, #tpu.memory_space<vmem>>, vector<1x64xf32>
    %c0_308 = arith.constant 0 : index
    %c96_309 = arith.constant 96 : index
    %1075 = vector.load %arg7[%c0_308, %c96_309] : memref<64x160xbf16, #tpu.memory_space<vmem>>, vector<64x32xbf16>
    %c0_310 = arith.constant 0 : index
    %c1120 = arith.constant 1120 : index
    %1076 = vector.load %arg9[%c0_310, %c1120] : memref<1x1376xf32, #tpu.memory_space<vmem>>, vector<1x32xf32>
    %1077 = arith.truncf %1021 : vector<16x32xf32> to vector<16x32xbf16>
    %cst_311 = arith.constant dense<0.000000e+00> : vector<16x64xf32>
    %1078 = tpu.matmul %1077, %1073, %cst_311 {dimension_numbers = #tpu.dot_dimension_numbers<[1], [0], [0], [1], [0, 0, 1, 1], [], []>} : vector<16x32xbf16>, vector<32x64xbf16>, vector<16x64xf32> -> vector<16x64xf32>
    %1079 = vector.broadcast %1074 : vector<1x64xf32> to vector<16x64xf32>
    %1080 = arith.addf %1078, %1079 : vector<16x64xf32>
    %1081 = arith.mulf %1080, %1080 : vector<16x64xf32>
    %1082 = arith.mulf %1080, %1081 : vector<16x64xf32>
    %cst_312 = arith.constant 4.471500e-02 : f32
    %1083 = vector.broadcast %cst_312 : f32 to vector<16x64xf32>
    %1084 = arith.mulf %1083, %1082 : vector<16x64xf32>
    %1085 = arith.addf %1080, %1084 : vector<16x64xf32>
    %cst_313 = arith.constant 0.797884583 : f32
    %1086 = vector.broadcast %cst_313 : f32 to vector<16x64xf32>
    %1087 = arith.mulf %1086, %1085 : vector<16x64xf32>
    %1088 = math.tanh %1087 : vector<16x64xf32>
    %cst_314 = arith.constant 1.000000e+00 : f32
    %1089 = vector.broadcast %cst_314 : f32 to vector<16x64xf32>
    %1090 = arith.addf %1089, %1088 : vector<16x64xf32>
    %cst_315 = arith.constant 5.000000e-01 : f32
    %1091 = vector.broadcast %cst_315 : f32 to vector<16x64xf32>
    %1092 = arith.mulf %1091, %1090 : vector<16x64xf32>
    %1093 = arith.mulf %1080, %1092 : vector<16x64xf32>
    %1094 = arith.truncf %1093 : vector<16x64xf32> to vector<16x64xbf16>
    %cst_316 = arith.constant dense<0.000000e+00> : vector<16x32xf32>
    %1095 = tpu.matmul %1094, %1075, %cst_316 {dimension_numbers = #tpu.dot_dimension_numbers<[1], [0], [0], [1], [0, 0, 1, 1], [], []>} : vector<16x64xbf16>, vector<64x32xbf16>, vector<16x32xf32> -> vector<16x32xf32>
    %1096 = vector.broadcast %1076 : vector<1x32xf32> to vector<16x32xf32>
    %1097 = arith.addf %1095, %1096 : vector<16x32xf32>
    %c22 = arith.constant 22 : index
    %c0_317 = arith.constant 0 : index
    %1098 = vector.load %arg10[%c22, %c0_317] : memref<28x32xf32, #tpu.memory_space<vmem>>, vector<2x32xf32>
    %1099 = vector.extract_strided_slice %1098 {offsets = [0, 0], sizes = [1, 32], strides = [1, 1]} : vector<2x32xf32> to vector<1x32xf32>
    %1100 = vector.extract_strided_slice %1098 {offsets = [1, 0], sizes = [1, 32], strides = [1, 1]} : vector<2x32xf32> to vector<1x32xf32>
    %1101 = arith.addf %1021, %1097 : vector<16x32xf32>
    %cst_318 = arith.constant dense<0.000000e+00> : vector<16xf32>
    %1102 = vector.multi_reduction <add>, %1101, %cst_318 [1] : vector<16x32xf32> to vector<16xf32>
    %1103 = vector.shape_cast %1102 : vector<16xf32> to vector<16x1xf32>
    %cst_319 = arith.constant 3.200000e+01 : f32
    %1104 = vector.broadcast %cst_319 : f32 to vector<16x1xf32>
    %1105 = arith.divf %1103, %1104 : vector<16x1xf32>
    %1106 = vector.broadcast %1105 : vector<16x1xf32> to vector<16x32xf32>
    %1107 = arith.subf %1101, %1106 : vector<16x32xf32>
    %1108 = arith.mulf %1107, %1107 : vector<16x32xf32>
    %cst_320 = arith.constant dense<0.000000e+00> : vector<16xf32>
    %1109 = vector.multi_reduction <add>, %1108, %cst_320 [1] : vector<16x32xf32> to vector<16xf32>
    %1110 = vector.shape_cast %1109 : vector<16xf32> to vector<16x1xf32>
    %cst_321 = arith.constant 3.200000e+01 : f32
    %1111 = vector.broadcast %cst_321 : f32 to vector<16x1xf32>
    %1112 = arith.divf %1110, %1111 : vector<16x1xf32>
    %1113 = vector.broadcast %1105 : vector<16x1xf32> to vector<16x32xf32>
    %1114 = arith.subf %1101, %1113 : vector<16x32xf32>
    %cst_322 = arith.constant 9.99999974E-6 : f32
    %1115 = vector.broadcast %cst_322 : f32 to vector<16x1xf32>
    %1116 = arith.addf %1112, %1115 : vector<16x1xf32>
    %1117 = math.rsqrt %1116 : vector<16x1xf32>
    %1118 = vector.broadcast %1117 : vector<16x1xf32> to vector<16x32xf32>
    %1119 = arith.mulf %1114, %1118 : vector<16x32xf32>
    %1120 = vector.broadcast %1099 : vector<1x32xf32> to vector<16x32xf32>
    %1121 = arith.mulf %1119, %1120 : vector<16x32xf32>
    %1122 = vector.broadcast %1100 : vector<1x32xf32> to vector<16x32xf32>
    %1123 = arith.addf %1121, %1122 : vector<16x32xf32>
    %c24_323 = arith.constant 24 : index
    %c0_324 = arith.constant 0 : index
    %1124 = vector.load %arg10[%c24_323, %c0_324] : memref<28x32xf32, #tpu.memory_space<vmem>>, vector<2x32xf32>
    %1125 = vector.extract_strided_slice %1124 {offsets = [0, 0], sizes = [1, 32], strides = [1, 1]} : vector<2x32xf32> to vector<1x32xf32>
    %1126 = vector.extract_strided_slice %1124 {offsets = [1, 0], sizes = [1, 32], strides = [1, 1]} : vector<2x32xf32> to vector<1x32xf32>
    %cst_325 = arith.constant dense<0.000000e+00> : vector<16xf32>
    %1127 = vector.multi_reduction <add>, %1072, %cst_325 [1] : vector<16x32xf32> to vector<16xf32>
    %1128 = vector.shape_cast %1127 : vector<16xf32> to vector<16x1xf32>
    %cst_326 = arith.constant 3.200000e+01 : f32
    %1129 = vector.broadcast %cst_326 : f32 to vector<16x1xf32>
    %1130 = arith.divf %1128, %1129 : vector<16x1xf32>
    %1131 = vector.broadcast %1130 : vector<16x1xf32> to vector<16x32xf32>
    %1132 = arith.subf %1072, %1131 : vector<16x32xf32>
    %1133 = arith.mulf %1132, %1132 : vector<16x32xf32>
    %cst_327 = arith.constant dense<0.000000e+00> : vector<16xf32>
    %1134 = vector.multi_reduction <add>, %1133, %cst_327 [1] : vector<16x32xf32> to vector<16xf32>
    %1135 = vector.shape_cast %1134 : vector<16xf32> to vector<16x1xf32>
    %cst_328 = arith.constant 3.200000e+01 : f32
    %1136 = vector.broadcast %cst_328 : f32 to vector<16x1xf32>
    %1137 = arith.divf %1135, %1136 : vector<16x1xf32>
    %1138 = vector.broadcast %1130 : vector<16x1xf32> to vector<16x32xf32>
    %1139 = arith.subf %1072, %1138 : vector<16x32xf32>
    %cst_329 = arith.constant 9.99999974E-6 : f32
    %1140 = vector.broadcast %cst_329 : f32 to vector<16x1xf32>
    %1141 = arith.addf %1137, %1140 : vector<16x1xf32>
    %1142 = math.rsqrt %1141 : vector<16x1xf32>
    %1143 = vector.broadcast %1142 : vector<16x1xf32> to vector<16x32xf32>
    %1144 = arith.mulf %1139, %1143 : vector<16x32xf32>
    %1145 = vector.broadcast %1125 : vector<1x32xf32> to vector<16x32xf32>
    %1146 = arith.mulf %1144, %1145 : vector<16x32xf32>
    %1147 = vector.broadcast %1126 : vector<1x32xf32> to vector<16x32xf32>
    %1148 = arith.addf %1146, %1147 : vector<16x32xf32>
    %c26 = arith.constant 26 : index
    %c0_330 = arith.constant 0 : index
    %1149 = vector.load %arg10[%c26, %c0_330] : memref<28x32xf32, #tpu.memory_space<vmem>>, vector<2x32xf32>
    %1150 = vector.extract_strided_slice %1149 {offsets = [0, 0], sizes = [1, 32], strides = [1, 1]} : vector<2x32xf32> to vector<1x32xf32>
    %1151 = vector.extract_strided_slice %1149 {offsets = [1, 0], sizes = [1, 32], strides = [1, 1]} : vector<2x32xf32> to vector<1x32xf32>
    %cst_331 = arith.constant dense<0.000000e+00> : vector<16xf32>
    %1152 = vector.multi_reduction <add>, %1123, %cst_331 [1] : vector<16x32xf32> to vector<16xf32>
    %1153 = vector.shape_cast %1152 : vector<16xf32> to vector<16x1xf32>
    %cst_332 = arith.constant 3.200000e+01 : f32
    %1154 = vector.broadcast %cst_332 : f32 to vector<16x1xf32>
    %1155 = arith.divf %1153, %1154 : vector<16x1xf32>
    %1156 = vector.broadcast %1155 : vector<16x1xf32> to vector<16x32xf32>
    %1157 = arith.subf %1123, %1156 : vector<16x32xf32>
    %1158 = arith.mulf %1157, %1157 : vector<16x32xf32>
    %cst_333 = arith.constant dense<0.000000e+00> : vector<16xf32>
    %1159 = vector.multi_reduction <add>, %1158, %cst_333 [1] : vector<16x32xf32> to vector<16xf32>
    %1160 = vector.shape_cast %1159 : vector<16xf32> to vector<16x1xf32>
    %cst_334 = arith.constant 3.200000e+01 : f32
    %1161 = vector.broadcast %cst_334 : f32 to vector<16x1xf32>
    %1162 = arith.divf %1160, %1161 : vector<16x1xf32>
    %1163 = vector.broadcast %1155 : vector<16x1xf32> to vector<16x32xf32>
    %1164 = arith.subf %1123, %1163 : vector<16x32xf32>
    %cst_335 = arith.constant 9.99999974E-6 : f32
    %1165 = vector.broadcast %cst_335 : f32 to vector<16x1xf32>
    %1166 = arith.addf %1162, %1165 : vector<16x1xf32>
    %1167 = math.rsqrt %1166 : vector<16x1xf32>
    %1168 = vector.broadcast %1167 : vector<16x1xf32> to vector<16x32xf32>
    %1169 = arith.mulf %1164, %1168 : vector<16x32xf32>
    %1170 = vector.broadcast %1150 : vector<1x32xf32> to vector<16x32xf32>
    %1171 = arith.mulf %1169, %1170 : vector<16x32xf32>
    %1172 = vector.broadcast %1151 : vector<1x32xf32> to vector<16x32xf32>
    %1173 = arith.addf %1171, %1172 : vector<16x32xf32>
    %1174 = arith.addf %1148, %1173 : vector<16x32xf32>
    %c0_336 = arith.constant 0 : index
    %c832_337 = arith.constant 832 : index
    %1175 = vector.load %arg6[%c0_336, %c832_337] : memref<32x1024xbf16, #tpu.memory_space<vmem>>, vector<32x64xbf16>
    %c0_338 = arith.constant 0 : index
    %c1152 = arith.constant 1152 : index
    %1176 = vector.load %arg9[%c0_338, %c1152] : memref<1x1376xf32, #tpu.memory_space<vmem>>, vector<1x64xf32>
    %c0_339 = arith.constant 0 : index
    %c128_340 = arith.constant 128 : index
    %1177 = vector.load %arg7[%c0_339, %c128_340] : memref<64x160xbf16, #tpu.memory_space<vmem>>, vector<64x32xbf16>
    %c0_341 = arith.constant 0 : index
    %c1216 = arith.constant 1216 : index
    %1178 = vector.load %arg9[%c0_341, %c1216] : memref<1x1376xf32, #tpu.memory_space<vmem>>, vector<1x32xf32>
    %1179 = arith.truncf %1174 : vector<16x32xf32> to vector<16x32xbf16>
    %cst_342 = arith.constant dense<0.000000e+00> : vector<16x64xf32>
    %1180 = tpu.matmul %1179, %1175, %cst_342 {dimension_numbers = #tpu.dot_dimension_numbers<[1], [0], [0], [1], [0, 0, 1, 1], [], []>} : vector<16x32xbf16>, vector<32x64xbf16>, vector<16x64xf32> -> vector<16x64xf32>
    %1181 = vector.broadcast %1176 : vector<1x64xf32> to vector<16x64xf32>
    %1182 = arith.addf %1180, %1181 : vector<16x64xf32>
    %1183 = arith.mulf %1182, %1182 : vector<16x64xf32>
    %1184 = arith.mulf %1182, %1183 : vector<16x64xf32>
    %cst_343 = arith.constant 4.471500e-02 : f32
    %1185 = vector.broadcast %cst_343 : f32 to vector<16x64xf32>
    %1186 = arith.mulf %1185, %1184 : vector<16x64xf32>
    %1187 = arith.addf %1182, %1186 : vector<16x64xf32>
    %cst_344 = arith.constant 0.797884583 : f32
    %1188 = vector.broadcast %cst_344 : f32 to vector<16x64xf32>
    %1189 = arith.mulf %1188, %1187 : vector<16x64xf32>
    %1190 = math.tanh %1189 : vector<16x64xf32>
    %cst_345 = arith.constant 1.000000e+00 : f32
    %1191 = vector.broadcast %cst_345 : f32 to vector<16x64xf32>
    %1192 = arith.addf %1191, %1190 : vector<16x64xf32>
    %cst_346 = arith.constant 5.000000e-01 : f32
    %1193 = vector.broadcast %cst_346 : f32 to vector<16x64xf32>
    %1194 = arith.mulf %1193, %1192 : vector<16x64xf32>
    %1195 = arith.mulf %1182, %1194 : vector<16x64xf32>
    %1196 = arith.truncf %1195 : vector<16x64xf32> to vector<16x64xbf16>
    %cst_347 = arith.constant dense<0.000000e+00> : vector<16x32xf32>
    %1197 = tpu.matmul %1196, %1177, %cst_347 {dimension_numbers = #tpu.dot_dimension_numbers<[1], [0], [0], [1], [0, 0, 1, 1], [], []>} : vector<16x64xbf16>, vector<64x32xbf16>, vector<16x32xf32> -> vector<16x32xf32>
    %1198 = vector.broadcast %1178 : vector<1x32xf32> to vector<16x32xf32>
    %1199 = arith.addf %1197, %1198 : vector<16x32xf32>
    %c0_348 = arith.constant 0 : index
    %c896_349 = arith.constant 896 : index
    %1200 = vector.load %arg6[%c0_348, %c896_349] : memref<32x1024xbf16, #tpu.memory_space<vmem>>, vector<32x128xbf16>
    %1201 = arith.truncf %1199 : vector<16x32xf32> to vector<16x32xbf16>
    %cst_350 = arith.constant dense<0.000000e+00> : vector<16x128xf32>
    %1202 = tpu.matmul %1201, %1200, %cst_350 {dimension_numbers = #tpu.dot_dimension_numbers<[1], [0], [0], [1], [0, 0, 1, 1], [], []>} : vector<16x32xbf16>, vector<32x128xbf16>, vector<16x128xf32> -> vector<16x128xf32>
    %c0_351 = arith.constant 0 : index
    %c1248 = arith.constant 1248 : index
    %1203 = vector.load %arg9[%c0_351, %c1248] : memref<1x1376xf32, #tpu.memory_space<vmem>>, vector<1x128xf32>
    %1204 = vector.broadcast %1203 : vector<1x128xf32> to vector<16x128xf32>
    %1205 = arith.addf %1202, %1204 : vector<16x128xf32>
    %c0_352 = arith.constant 0 : index
    %c0_353 = arith.constant 0 : index
    %c0_354 = arith.constant 0 : index
    %1206 = vector.load %arg12[%c0_352, %c0_353, %c0_354] : memref<1x16x128xf32, #tpu.memory_space<vmem>>, vector<1x16x128xf32>
    %1207 = vector.shape_cast %1206 : vector<1x16x128xf32> to vector<16x128xf32>
    %1208 = vector.shape_cast %1205 : vector<16x128xf32> to vector<1x16x128xf32>
    tpu.vector_store %arg12[%c0_352, %c0_353, %c0_354], %1208 {strides = array<i32>} : memref<1x16x128xf32, #tpu.memory_space<vmem>>, vector<1x16x128xf32>,
    return
  }
  func.func @transform_0(%arg0: i32) -> (i32, i32, i32) {
    %c0_i32 = arith.constant 0 : i32
    %c0_i32_0 = arith.constant 0 : i32
    %c0_i32_1 = arith.constant 0 : i32
    return %arg0, %c0_i32, %c0_i32_0 : i32, i32, i32
  }
  func.func @transform_1(%arg0: i32) -> (i32, i32, i32) {
    %c0_i32 = arith.constant 0 : i32
    %c0_i32_0 = arith.constant 0 : i32
    %c0_i32_1 = arith.constant 0 : i32
    return %arg0, %c0_i32, %c0_i32_0 : i32, i32, i32
  }
  func.func @transform_2(%arg0: i32) -> (i32, i32, i32) {
    %c0_i32 = arith.constant 0 : i32
    %c0_i32_0 = arith.constant 0 : i32
    %c0_i32_1 = arith.constant 0 : i32
    return %arg0, %c0_i32, %c0_i32_0 : i32, i32, i32
  }
  func.func @transform_3(%arg0: i32) -> (i32, i32, i32) {
    %c0_i32 = arith.constant 0 : i32
    %c0_i32_0 = arith.constant 0 : i32
    %c0_i32_1 = arith.constant 0 : i32
    return %arg0, %c0_i32, %c0_i32_0 : i32, i32, i32
  }
  func.func @transform_4(%arg0: i32) -> (i32, i32) {
    %c0_i32 = arith.constant 0 : i32
    %c0_i32_0 = arith.constant 0 : i32
    %c0_i32_1 = arith.constant 0 : i32
    return %c0_i32, %c0_i32_0 : i32, i32
  }
  func.func @transform_5(%arg0: i32) -> (i32, i32) {
    %c0_i32 = arith.constant 0 : i32
    %c0_i32_0 = arith.constant 0 : i32
    %c0_i32_1 = arith.constant 0 : i32
    return %c0_i32, %c0_i32_0 : i32, i32
  }
  func.func @transform_6(%arg0: i32) -> (i32, i32) {
    %c0_i32 = arith.constant 0 : i32
    %c0_i32_0 = arith.constant 0 : i32
    %c0_i32_1 = arith.constant 0 : i32
    return %c0_i32, %c0_i32_0 : i32, i32
  }
  func.func @transform_7(%arg0: i32) -> (i32, i32) {
    %c0_i32 = arith.constant 0 : i32
    %c0_i32_0 = arith.constant 0 : i32
    %c0_i32_1 = arith.constant 0 : i32
    return %c0_i32, %c0_i32_0 : i32, i32
  }
  func.func @transform_8(%arg0: i32) -> (i32, i32) {
    %c0_i32 = arith.constant 0 : i32
    %c0_i32_0 = arith.constant 0 : i32
    %c0_i32_1 = arith.constant 0 : i32
    return %c0_i32, %c0_i32_0 : i32, i32
  }
  func.func @transform_9(%arg0: i32) -> (i32, i32) {
    %c0_i32 = arith.constant 0 : i32
    %c0_i32_0 = arith.constant 0 : i32
    %c0_i32_1 = arith.constant 0 : i32
    return %c0_i32, %c0_i32_0 : i32, i32
  }
  func.func @transform_10(%arg0: i32) -> (i32, i32) {
    %c0_i32 = arith.constant 0 : i32
    %c0_i32_0 = arith.constant 0 : i32
    %c0_i32_1 = arith.constant 0 : i32
    return %c0_i32, %c0_i32_0 : i32, i32
  }
  func.func @transform_11(%arg0: i32) -> (i32, i32, i32) {
    %c0_i32 = arith.constant 0 : i32
    %c0_i32_0 = arith.constant 0 : i32
    %c0_i32_1 = arith.constant 0 : i32
    return %arg0, %c0_i32, %c0_i32_0 : i32, i32, i32
  }
}

</mosaic_0001>

<bundles_post_ra>
// kernel: forward.1
= control target key start
LH: loop header
LB: loop body
LE: loop exit
PB: predicated region body
PF: predicated region fallthrough
CT: control target
= control target key end

     0   :  { %16 = vsyncpa [#allocation3], 0  ;;  %s7464_s0 = inlined_call_operand.vmem [shape: f32[2,16,4], index: 0, kind: input, shape index: {}]   ;;  %s7465_s1 = inlined_call_operand.vmem [shape: f32[2,16,4], index: 1, kind: input, shape index: {}]   ;;  %s7466_s2 = inlined_call_operand.vmem [shape: f32[2,16,4], index: 2, kind: input, shape index: {}]   ;;  %s7467_s3 = inlined_call_operand.vmem [shape: f32[2,16,4], index: 3, kind: input, shape index: {}]   ;;  %s7468_s4 = inlined_call_operand.vmem [shape: bf16[80,32], index: 4, kind: input, shape index: {}]   ;;  %s7469_s5 = inlined_call_operand.hbm [shape: bf16[32,1024], index: 5, kind: input, shape index: {}]   ;;  %s7470_s6 = inlined_call_operand.vmem [shape: bf16[64,160], index: 6, kind: input, shape index: {}]   ;;  %s7471_s7 = inlined_call_operand.hbm [shape: bf16[96,192], index: 7, kind: input, shape index: {}]   ;;  %s7472_s8 = inlined_call_operand.vmem [shape: f32[1,1376], index: 8, kind: input, shape index: {}]   ;;  %s7473_s9 = inlined_call_operand.vmem [shape: f32[28,32], index: 9, kind: input, shape index: {}]   ;;  %s7474_s10 = inlined_call_operand.vmem [shape: f32[16,32], index: 10, kind: input, shape index: {}]   ;;  %s7475_s11 = inlined_call_operand.vmem [shape: f32[2,16,128], index: 11, kind: output, shape index: {}]  }
   0x1   :  { %17 = vsyncpa [#allocation5], 0  ;;  %s5848_s17 = smov 0  }
   0x2 LB: > { %s319_s20 = sshll.u32 %s7469_s5, 4  ;;  %s4848_s21 = sadd.s32 4294967295, %s5761_s17   ;;  %s5761_s17 = sphi %s5848_s17, %s23_s17   ;;  %s320_s20 = int_to_ptr.hbm [resolvable:$true] %s319_s20 }
   0x3   : > { %p4850_p0 = scmp.ge.s32.totalorder %s5761_s17, 1  ;;  %p305_p1 = scmp.lt.s32.totalorder %s5761_s17, 3 }
   0x4   : > { %p5191_p2 = scmp.eq.s32.totalorder %s4848_s21, 0  ;;  %s5763_s23 = smov [#allocation2]  }
   0x5   : > { %p5859_p3 = pnand %p4850_p0, %p305_p1  ;;  %s321_s24 = sshll.u32 %s5763_s23, 4  ;;  %s322_s24 = int_to_ptr.vmem [resolvable:$true] %s321_s24 }
   0x6   : > { %s336_s27 = sshll.u32 %s7471_s7, 4  ;;  %s5764_s28 = smov [#allocation4]   ;;  %s337_s27 = int_to_ptr.hbm [resolvable:$true] %s336_s27 }
   0x7   : > { %p5184_p4 = pneg %p5859_p3  ;;  %s338_s29 = sshll.u32 %s5764_s28, 4  ;;  %s339_s29 = int_to_ptr.vmem [resolvable:$true] %s338_s29 }
   0x8   : > { %s5765_s30 = smov 512   ;;  %s5766_s12 = smov 32  }
   0x9   : > { %p5185_p5 = pnand %p5191_p2, %p5184_p4  ;;  %s5767_s13 = smov 128  }
   0xa   : > { %s5768_s14 = smov 8   ;;  %395 = sbr.rel (%p5859_p3) target bundleno = 8263 (0x2047), region = 64 }
   0xb   : > { %5187 = dma.hbm_to_vmem [thread:$0]  (!%p5185_p5), %s320_s20, 2048, %s322_s24, [#allocation3], %s5765_s30, %s5765_s30, %s5766_s12  }
   0xc   : > { %5190 = dma.hbm_to_vmem [thread:$0]  (!%p5185_p5), %s337_s27, 1536, %s339_s29, [#allocation5], %s5767_s13, %s5767_s13, %s5768_s14  }
   0xf   : > { %5752 = dma.done.wait (%p5191_p2), [#allocation3], 2048  }
  0x10   : > { %5754 = vsyncadd (%p5191_p2), [#allocation3], 4294965248 }
  0x11   : > { %5756 = dma.done.wait (%p5191_p2), [#allocation5], 1536  }
  0x12   : > { %5758 = vsyncadd (%p5191_p2), [#allocation5], 4294965760  ;;  %p456_p6 = scmp.lt.s32.totalorder %s4848_s21, 1  ;;  %vm493_vm0 = vcmask 1040384   ;;  %s5769_s20 = smov 4   ;;  %vm528_vm1 = vcmask 31744  }
  0x13   : > { %vm577_vm2 = vcmask 1046528   ;;  %s7485_s22 = smov 16   ;;  %v567_v38 = vld [vmem:[%s7468_s4 + $0x8] sm:$0xf]  ;;  %vm617_vm3 = vcmask 1043456   ;;  %v5132_v42 = vld [vmem:[%s7468_s4] sm:$0xff] }
  0x14   : > { %s7499_s21 = smov (!%p456_p6, %s4848_s21), 1  ;;  %v609_v39 = vunpack.c.l.b16 %v567_v38  ;;  %vm597_vm4 = vcmask 64512   ;;  %vm600_vm5 = vcmask 130048   ;;  %vm613_vm6 = vcmask 195584   ;;  %s7479_s26 = smov 88  }
  0x15   : > { %s5875_s15 = sshll.u32 %s7499_s21, 4  ;;  %s5770_s21 = smov 8   ;;  %vm900_vm7 = vcmask 261120   ;;  %vm706_vm9 = vcmask 1045504   ;;  %vm702_vm10 = vcmask 97280   ;;  %vm679_vm11 = vcmask 1041408  }
  0x16   : > { %s460_s19 = scalar_lea.vmem %s7464_s0, %s5875_s15  ;;  %v611_v40 = vpack.c.b16 %v609_v39, %v609_v39  ;;  %s470_s27 = scalar_lea.vmem %s7466_s2, %s5875_s15  ;;  %vm1395_vm12 = vcmask 523264   ;;  %vm1555_vm13 = vcmask 785408  }
  0x17   : > { %v482_v0 = vld [vmem:[%s460_s19] sm:$0xff]  ;;  %v483_v1 = vld [vmem:[%s460_s19 + $0x8] sm:$0xff]  ;;  %s5777_s28 = smov 112   ;;  %s7481_s29 = smov 72  }
  0x18   : > { %v494_v2 = vrot.slane %v482_v0, 7  ;;  %v495_v3 = vrot.slane %v483_v1, 7  ;;  %v619_v41 = vsel %vm617_vm3, %v611_v40, 0  ;;  %v486_v43 = vld [vmem:[%s470_s27] sm:$0xff]  ;;  %s5776_s27 = smov 96   ;;  %s7483_s30 = smov 80  }
  0x19   : > { %627 = vmatpush.bf16.msra.mxu0 %v619_v41  ;;  %v532_v44 = vrot.slane %v486_v43, 7  ;;  %s5780_s12 = smov 104   ;;  %s465_s13 = scalar_lea.vmem %s7465_s1, %s5875_s15 }
  0x1a   : > { %v496_v4 = vsel %vm493_vm0, %v494_v2, %v495_v3  ;;  %v499_v5 = vsel %vm493_vm0, %v482_v0, %v494_v2  ;;  %v5137_v2 = vld [vmem:[#allocation2 + $0x5c] sm:$0xf0]  ;;  %s475_s23 = scalar_lea.vmem %s7467_s3, %s5875_s15  ;;  %s7478_s14 = smov 48  }
  0x1b   : > { %v500_v6 = vadd.f32 %v499_v5, %v482_v0  ;;  %v501_v7 = vadd.f32 %v496_v4, %v483_v1  ;;  %v534_v45 = vsel %vm493_vm0, %v486_v43, %v532_v44  ;;  %s5783_s16 = smov 64   ;;  %s7476_s18 = smov 40  }
  0x1c   : > { %v535_v46 = vadd.f32 %v534_v45, %v486_v43  ;;  %s5785_s24 = smov 32   ;;  %s7487_s25 = smov 24  }
  0x1d   : > { %v502_v8 = vmul.f32 0.5, %v500_v6  ;;  %v503_v9 = vmul.f32 0.5, %v501_v7  ;;  %628 = vmatpush.bf16.msra.mxu0 %v5132_v42  ;;  %v4891_v7 = vld [vmem:[#allocation2] sm:$0xf] }
  0x1e   : > { %v536_v47 = vmul.f32 0.5, %v535_v46 }
  0x1f   : > { %v508_v10 = vrot.slane %v502_v8, 7  ;;  %v509_v11 = vrot.slane %v503_v9, 7  ;;  %v504_v21 = vsub.f32 %v482_v0, %v502_v8  ;;  %v505_v22 = vsub.f32 %v483_v1, %v503_v9  ;;  %v4895_v1 = vld [vmem:[#allocation2 + $0x40] sm:$0xf] }
  0x20   : > { %v539_v48 = vrot.slane %v536_v47, 7  ;;  %v537_v0 = vsub.f32 %v486_v43, %v536_v47  ;;  %v5922_v3 = vor.u32 %v5137_v2, %v4895_v1 }
  0x21   : > { %v510_v12 = vsel %vm493_vm0, %v508_v10, %v509_v11  ;;  %v513_v13 = vsel %vm493_vm0, %v502_v8, %v508_v10  ;;  %v5772_v10 = vmov 0.0  }
  0x22   : > { %v514_v14 = vadd.f32 %v513_v13, %v502_v8  ;;  %v515_v15 = vadd.f32 %v510_v12, %v503_v9  ;;  %v541_v49 = vsel %vm493_vm0, %v536_v47, %v539_v48  ;;  %910 = vmatpush.bf16.msrb.mxu0 %v5922_v3  ;;  %v739_v11 = vrot.slane %v5772_v10, 1 }
  0x23   : > { %v542_v50 = vadd.f32 %v541_v49, %v536_v47 }
  0x24   : > { %v5885_v16 = vmul.f32 0.5, %v514_v14  ;;  %v5887_v17 = vmul.f32 0.5, %v515_v15 }
  0x25   : > { %v5913_v51 = vmul.f32 0.5, %v542_v50 }
  0x26   : > { %v518_v18 = vsub.f32 %v502_v8, %v5885_v16  ;;  %v519_v19 = vsub.f32 %v503_v9, %v5887_v17  ;;  %v5136_v8 = vld [vmem:[#allocation2 + $0x1c] sm:$0xf0] }
  0x27   : > { %v544_v52 = vsub.f32 %v536_v47, %v5913_v51  ;;  %v5926_v9 = vor.u32 %v5136_v8, %v4891_v7  ;;  %v5133_v7 = vld [vmem:[%s7468_s4 + $0xc] sm:$0x30] }
  0x28   : > { %v5228_v20 = vpack.i.bf16 %v519_v19, %v518_v18  ;;  %v728_v18 = vld [vmem:[%s7468_s4 + $0x1c] sm:$0xf] }
  0x29   : > { %911 = vmatpush.bf16.msrb.mxu0 %v5926_v9  ;;  %v767_v19 = vunpack.c.l.b16 %v728_v18 }
  0x2a   : > { %5229 = vrot.lane.b32.xlu0 %v5228_v20, %s5769_s20 }
  0x2b   : > { %v769_v20 = vpack.c.b16 %v767_v19, %v767_v19 }
  0x9c   : > { %v5230_v23 = vpop.permute.xlu0 %5229 }
  0x9d   : > { %v5232_v24 = vunpack.i.h.bf16 %v5230_v23  ;;  %v5231_v25 = vunpack.i.l.bf16 %v5230_v23 }
  0x9f   : > { %v529_v26 = vsel %vm528_vm1, %v504_v21, %v5231_v25  ;;  %v530_v27 = vsel %vm528_vm1, %v505_v22, %v5232_v24  ;;  %v775_v21 = vsel %vm617_vm3, %v769_v20, 0 }
  0xa0   : > { %v572_v28 = vrot.slane %v529_v26, 7  ;;  %v5233_v29 = vpack.i.bf16 %v530_v27, %v529_v26  ;;  %v569_v30 = vrot.slane %v530_v27, 7  ;;  %v578_v31 = vrot.slane %v529_v26, 1  ;;  %783 = vmatpush.bf16.msra.mxu3 %v775_v21 }
  0xa1   : > { %v579_v32 = vrot.slane %v530_v27, 1  ;;  %v730_v26 = vrot.slane %v5772_v10, 7  ;;  %v5243_v27 = vpack.i.bf16 %v5887_v17, %v5885_v16 }
  0xa2   : > { %5234 = vrot.lane.b32.xlu0 %v5233_v29, %s5770_s21  ;;  %v573_v33 = vsel %vm493_vm0, %v572_v28, %v569_v30  ;;  %v576_v34 = vsel %vm493_vm0, %v569_v30, %v572_v28  ;;  %v5134_v28 = vld [vmem:[%s7468_s4 + $0x14] sm:$0xff]  ;;  %v550_v29 = vsel %vm528_vm1, %v5913_v51, 0.0 }
  0xa3   : > { %v580_v35 = vsel %vm577_vm2, %v578_v31, %v579_v32  ;;  %v583_v36 = vsel %vm577_vm2, %v579_v32, %v578_v31  ;;  %v551_v30 = vrot.slane %v550_v29, 4  ;;  %v5773_v31 = vmov 8.0   ;;  %5244 = vrot.lane.b32.xlu2 %v5243_v27, %s5769_s20 }
  0xa4   : > { %v5238_v37 = vpack.i.bf16 %v583_v36, %v580_v35  ;;  %5413 = vrcp.f32 %v5773_v31  ;;  %784 = vmatpush.bf16.msra.mxu3 %v5134_v28  ;;  %v646_v36 = vrot.slane %v5885_v16, 1  ;;  %v638_v27 = vrot.slane %v5887_v17, 7 }
  0xa5   : > { %v641_v28 = vrot.slane %v5885_v16, 7  ;;  %v797_v16 = vrot.slane %v5913_v51, 7 }
  0xa6   : > { %5239 = vrot.lane.b32.xlu1 %v5238_v37, %s7485_s22  ;;  %v647_v37 = vrot.slane %v5887_v17, 1 }
  0xa8   : > { %v648_v40 = vsel %vm577_vm2, %v646_v36, %v647_v37  ;;  %v651_v41 = vsel %vm577_vm2, %v647_v37, %v646_v36  ;;  %v670_v36 = vld [vmem:[%s7468_s4 + $0x10] sm:$0xc] }
  0xa9   : > { %v5248_v43 = vpack.i.bf16 %v651_v41, %v648_v40  ;;  %v673_v37 = vunpack.c.l.b16 %v670_v36  ;;  %v4886_v41 = vld [vmem:[%s7468_s4 + $0x20] sm:$0xf] }
  0xaa   : > { %v5414_v38 = vpop.eup %5413 }
  0xab   : > { %v558_v42 = vmul.f32 8.0, %v5414_v38  ;;  %5249 = vrot.lane.b32.xlu2 %v5248_v43, %s5770_s21  ;;  %vm562_vm8 = vweird.f32 %v5414_v38  ;;  %v674_v43 = vpack.c.b16 %v673_v37, %v673_v37 }
  0xad   : > { %v559_v45 = vsub.f32 1.0, %v558_v42  ;;  %v5135_v42 = vld [vmem:[%s7468_s4 + $0x20] sm:$0x30] }
  0xae   : > { %546 = vrot.lane.b32.xlu1 %v544_v52, %s5769_s20  ;;  %v802_v52 = vrot.slane %v5913_v51, 1 }
  0xaf   : > { %v560_v46 = vmul.f32 %v5414_v38, %v559_v45  ;;  %v4887_v45 = vor.u32 %v5135_v42, %v4886_v41 }
  0xb1   : > { %v561_v48 = vadd.f32 %v5414_v38, %v560_v46  ;;  %v675_v46 = vrot.slane %v674_v43, 2 }
  0xb3   : > { %v563_v49 = vsel %vm562_vm8, %v5414_v38, %v561_v48 }
  0xfd   : > { %v5245_v19 = vpop.permute.xlu2 %5244 }
  0xfe   : > { %v5247_v20 = vunpack.i.h.bf16 %v5245_v19  ;;  %v5246_v21 = vunpack.i.l.bf16 %v5245_v19 }
 0x114   : > { %v5235_v53 = vpop.permute.xlu0 %5234 }
 0x115   : > { %v5237_v54 = vunpack.i.h.bf16 %v5235_v53  ;;  %v5236_v55 = vunpack.i.l.bf16 %v5235_v53 }
 0x117   : > { %v598_v59 = vsel %vm597_vm4, %v576_v34, %v5236_v55  ;;  %v599_v60 = vsel %vm597_vm4, %v573_v33, %v5237_v54  ;;  %v552_v34 = vadd.f32 %v551_v30, %v550_v29  ;;  %v642_v29 = vsel %vm493_vm0, %v641_v28, %v638_v27 }
 0x118   : > { %v5240_v56 = vpop.permute.xlu1 %5239  ;;  %v645_v30 = vsel %vm493_vm0, %v638_v27, %v641_v28 }
 0x119   : > { %v5242_v57 = vunpack.i.h.bf16 %v5240_v56  ;;  %v5241_v58 = vunpack.i.l.bf16 %v5240_v56  ;;  %v553_v35 = vrot.slane %v552_v34, 2  ;;  %v665_v31 = vsel %vm528_vm1, %v645_v30, %v5246_v21 }
 0x11b   : > { %v601_v61 = vsel %vm600_vm5, %v598_v59, %v5241_v58  ;;  %v602_v62 = vsel %vm600_vm5, %v599_v60, %v5242_v57  ;;  %v554_v39 = vadd.f32 %v553_v35, %v552_v34 }
 0x11c   : > { %v603_v63 = vpack.c.bf16 %v602_v62, %v601_v61 }
 0x11d   : > { %v555_v44 = vrot.slane %v554_v39, 1 }
 0x11e   : > { %4871 = vmatmul.msk.bf16.vlgmr.msra.gmra.mxu0 %vm613_vm6, %v603_v63 }
 0x11f   : > { %v556_v47 = vadd.f32 %v555_v44, %v554_v39 }
 0x120   : > { %v547_v4 = vpop.permute.xlu1 %546 }
 0x121   : > { %v549_v5 = vsel %vm528_vm1, %v537_v0, %v547_v4  ;;  %v5959_v50 = vmul.f32 %v563_v49, %v556_v47  ;;  %v861_v47 = vsel %vm706_vm9, %v4887_v45, 0 }
 0x122   : > { %v738_v6 = vrot.slane %v549_v5, 1  ;;  %v5253_v12 = vpack.i.bf16 0.0, %v549_v5  ;;  %v733_v25 = vrot.slane %v549_v5, 7 }
 0x123   : > { %v803_v53 = vrot.slane %v5959_v50, 1  ;;  %v5263_v5 = vpack.i.bf16 %v5959_v50, %v5913_v51  ;;  %v794_v17 = vrot.slane %v5959_v50, 7  ;;  %v681_v50 = vsel %vm679_vm11, %v675_v46, 0 }
 0x124   : > { %v740_v13 = vsel %vm577_vm2, %v738_v6, %v739_v11  ;;  %v743_v14 = vsel %vm577_vm2, %v739_v11, %v738_v6  ;;  %5254 = vrot.lane.b32.xlu0 %v5253_v12, %s5770_s21  ;;  %v734_v32 = vsel %vm493_vm0, %v733_v25, %v730_v26  ;;  %v737_v33 = vsel %vm493_vm0, %v730_v26, %v733_v25  ;;  %v4875_v6 = vld [vmem:[%s7468_s4 + $0xc] sm:$0xf]  ;;  %v5984_v12 = vld [vmem:[%s7472_s8] ss:$0 sm:$0xff] }
 0x125   : > { %v5258_v15 = vpack.i.bf16 %v743_v14, %v740_v13  ;;  %v804_v54 = vsel %vm577_vm2, %v802_v52, %v803_v53  ;;  %v807_v55 = vsel %vm577_vm2, %v803_v53, %v802_v52  ;;  %5264 = vrot.lane.b32.xlu2 %v5263_v5, %s5769_s20  ;;  %v4876_v8 = vor.u32 %v5133_v7, %v4875_v6  ;;  %s5774_s20 = smov 120   ;;  %v484_v53 = vld [vmem:[%s465_s13] sm:$0xff] }
 0x126   : > { %v5268_v56 = vpack.i.bf16 %v807_v55, %v804_v54  ;;  %v798_v44 = vsel %vm493_vm0, %v797_v16, %v794_v17  ;;  %v801_v51 = vsel %vm493_vm0, %v794_v17, %v797_v16  ;;  %v485_v54 = vld [vmem:[%s465_s13 + $0x8] sm:$0xff]  ;;  %690 = vmatpush.bf16.msra.mxu1 %v681_v50  ;;  %s7477_s13 = smov 56  }
 0x127   : > { %5259 = vrot.lane.b32.xlu1 %v5258_v15, %s7485_s22  ;;  %v708_v11 = vsel %vm706_vm9, %v4876_v8, 0 }
 0x128   : > { %717 = vmatpush.bf16.msra.mxu2 %v708_v11 }
 0x12c   : > { %5269 = vrot.lane.b32.xlu0 %v5268_v56, %s5770_s21  ;;  %870 = vmatpush.bf16.msrb.mxu2 %v861_v47 }
 0x196   : > { %v5255_v57 = vpop.permute.xlu0 %5254 }
 0x197   : > { %v5257_v58 = vunpack.i.h.bf16 %v5255_v57  ;;  %v5256_v59 = vunpack.i.l.bf16 %v5255_v57  ;;  %v671_v57 = vpack.c.bf16 %v485_v54, %v484_v53 }
 0x199   : > { %v5260_v60 = vpop.permute.xlu1 %5259  ;;  %v757_v63 = vsel %vm597_vm4, %v737_v33, %v5256_v59  ;;  %v758_v0 = vsel %vm597_vm4, %v734_v32, %v5257_v58  ;;  %v666_v32 = vsel %vm528_vm1, %v642_v29, %v5247_v20  ;;  %4872 = vmatmul.msk.bf16.vlgmr.msra.gmra.mxu1 %vm528_vm1, %v671_v57 }
 0x19a   : > { %v5262_v61 = vunpack.i.h.bf16 %v5260_v60  ;;  %v5261_v62 = vunpack.i.l.bf16 %v5260_v60 }
 0x19b   : > { %v5937_v22 = vpop.f32.mrf.mxu0 }
 0x19c   : > { %v759_v1 = vsel %vm600_vm5, %v757_v63, %v5261_v62  ;;  %v760_v2 = vsel %vm600_vm5, %v758_v0, %v5262_v61  ;;  %v826_v61 = vld [vmem:[%s7468_s4 + $0x24] sm:$0xc] }
 0x19d   : > { %v761_v4 = vpack.c.bf16 %v760_v2, %v759_v1  ;;  %v829_v62 = vunpack.c.l.b16 %v826_v61  ;;  %v487_v2 = vld [vmem:[%s475_s23] sm:$0xff] }
 0x19e   : > { %v5270_v52 = vpop.permute.xlu0 %5269 }
 0x19f   : > { %4882 = vmatmul.msk.bf16.vlgmr.msra.gmra.mxu3 %vm613_vm6, %v761_v4  ;;  %v5272_v55 = vunpack.i.h.bf16 %v5270_v52  ;;  %v5271_v56 = vunpack.i.l.bf16 %v5270_v52  ;;  %v830_v63 = vpack.c.b16 %v829_v62, %v829_v62  ;;  %v488_v4 = vld [vmem:[%s475_s23 + $0x8] sm:$0xff] }
 0x1a0   : > { %v827_v5 = vpack.c.bf16 %v488_v4, %v487_v2 }
 0x1a1   : > { %v831_v0 = vrot.slane %v830_v63, 2 }
 0x1a3   : > { %v5939_v23 = vpop.f32.mrf.mxu0  ;;  %v836_v1 = vsel %vm679_vm11, %v831_v0, 0 }
 0x1a4   : > { %v883_v24 = vpack.c.bf16 %v5939_v23, %v5937_v22  ;;  %845 = vmatpush.bf16.msrb.mxu1 %v836_v1 }
 0x1a6   : > { %4897 = vmatmul.msk.bf16.vlgmr.msrb.gmra.mxu0 %vm900_vm7, %v883_v24  ;;  %v5250_v24 = vpop.permute.xlu2 %5249 }
 0x1a7   : > { %v5252_v25 = vunpack.i.h.bf16 %v5250_v24  ;;  %v5251_v26 = vunpack.i.l.bf16 %v5250_v24 }
 0x1a9   : > { %v667_v33 = vsel %vm597_vm4, %v665_v31, %v5251_v26  ;;  %v668_v34 = vsel %vm597_vm4, %v666_v32, %v5252_v25  ;;  %4883 = vmatmul.msk.bf16.vlgmr.msrb.gmra.mxu1 %vm528_vm1, %v827_v5  ;;  %v6067_v31 = vld [vmem:[%s7474_s10] sm:$0xff] }
 0x1aa   : > { %v669_v35 = vpack.c.bf16 %v668_v34, %v667_v33 }
 0x1ac   : > { %4877 = vmatmul.msk.bf16.vlgmr.msra.gmra.mxu2 %vm702_vm10, %v669_v35 }
 0x1ae   : > { %v5265_v38 = vpop.permute.xlu2 %5264 }
 0x1af   : > { %v5267_v39 = vunpack.i.h.bf16 %v5265_v38  ;;  %v5266_v40 = vunpack.i.l.bf16 %v5265_v38 }
 0x1b1   : > { %v822_v48 = vsel %vm528_vm1, %v798_v44, %v5267_v39  ;;  %v821_v49 = vsel %vm528_vm1, %v801_v51, %v5266_v40 }
 0x1b2   : > { %v824_v58 = vsel %vm597_vm4, %v822_v48, %v5272_v55  ;;  %v823_v59 = vsel %vm597_vm4, %v821_v49, %v5271_v56 }
 0x1b3   : > { %v825_v60 = vpack.c.bf16 %v824_v58, %v823_v59 }
 0x1bc   : > { %4888 = vmatmul.msk.bf16.vlgmr.msrb.gmra.mxu2 %vm702_vm10, %v825_v60 }
 0x216   : > { %v6058_v25 = vpop.f32.mrf.mxu1 }
 0x21e   : > { %v6062_v27 = vpop.f32.mrf.mxu1 }
 0x222   : > { %v6074_v34 = vpop.f32.mrf.mxu3 }
 0x223   : > { %v913_v10 = vpop.f32.mrf.mxu0 }
 0x224   : > { %v914_v14 = vadd.f32 %v5984_v12, %v913_v10 }
 0x226   : > { %v847_v29 = vpop.f32.mrf.mxu1 }
 0x22a   : > { %v6076_v17 = vpop.f32.mrf.mxu3 }
 0x22b   : > { %v915_v13 = vpop.f32.mrf.mxu0 }
 0x22c   : > { %v916_v15 = vadd.f32 %v5984_v12, %v915_v13 }
 0x22e   : > { %v5988_v18 = vpack.c.bf16 %v916_v15, %v914_v14 }
 0x22f   : > { %v6056_v24 = vpop.f32.mrf.mxu2 }
 0x230   : > { %985 = vrot.lane.b32.xlu0 %v5988_v18, %s5774_s20  ;;  %987 = vrot.lane.b32.xlu2 %v5988_v18, %s7479_s26 }
 0x231   : > { %920 = vrot.lane.b32.xlu1 %v5988_v18, %s5776_s27 }
 0x237   : > { %v6060_v26 = vpop.f32.mrf.mxu2 }
 0x238   : > { %1052 = vrot.lane.b32.xlu0 %v5988_v18, %s5777_s28  ;;  %1121 = vrot.lane.b32.xlu2 %v5988_v18, %s7481_s29 }
 0x239   : > { %1054 = vrot.lane.b32.xlu1 %v5988_v18, %s7483_s30 }
 0x23f   : > { %v872_v28 = vpop.f32.mrf.mxu2 }
 0x240   : > { %v873_v30 = vadd.f32 %v872_v28, %v847_v29 }
 0x241   : > { %1119 = vrot.lane.b32.xlu1 %v5988_v18, %s5780_s12 }
 0x242   : > { %v6070_v32 = vadd.f32 %v873_v30, %v6067_v31 }
 0x247   : > { %v6072_v33 = vpop.f32.mrf.mxu2 }
 0x28a   : > { %v988_v6 = vpop.permute.xlu2 %987 }
 0x28b   : > { %v993_v7 = vsel %vm597_vm4, %v988_v6, 0 }
 0x28c   : > { %1002 = vmatpush.bf16.xpose.msra.mxu2 %v993_v7 }
 0x292   : > { %v1122_v8 = vpop.permute.xlu2 %1121 }
 0x293   : > { %v1127_v10 = vsel %vm597_vm4, %v1122_v8, 0 }
 0x294   : > { %1136 = vmatpush.bf16.xpose.msrb.mxu2 %v1127_v10 }
 0x2a2   : > { %v986_v11 = vpop.permute.xlu0 %985 }
 0x2a3   : > { %v921_v13 = vpop.permute.xlu1 %920  ;;  %4900 = vmatmul.msk.bf16.vlgmr.msra.gmra.mxu2 %vm597_vm4, %v986_v11 }
 0x2a4   : > { %v926_v14 = vsel %vm597_vm4, %v921_v13, 0 }
 0x2a5   : > { %935 = vmatpush.bf16.xpose.msrb.mxu3 %v926_v14 }
 0x2aa   : > { %v1053_v21 = vpop.permute.xlu0 %1052 }
 0x2ab   : > { %v1055_v15 = vpop.permute.xlu1 %1054 }
 0x2ac   : > { %v1060_v19 = vsel %vm597_vm4, %v1055_v15, 0  ;;  %4898 = vmatmul.msk.bf16.vlgmr.msrb.gmra.mxu3 %vm597_vm4, %v5988_v18 }
 0x2ad   : > { %1069 = vmatpush.bf16.xpose.msra.mxu3 %v1060_v19 }
 0x2b3   : > { %v1120_v20 = vpop.permute.xlu1 %1119 }
 0x2b4   : > { %4904 = vmatmul.msk.bf16.vlgmr.msrb.gmra.mxu2 %vm597_vm4, %v1120_v20 }
 0x2bc   : > { %4902 = vmatmul.msk.bf16.vlgmr.msra.gmra.mxu3 %vm597_vm4, %v1053_v21 }
 0x326   : > { %v1004_v35 = vpop.f32.mrf.mxu2 }
 0x327   : > { %v1009_v16 = vsel %vm600_vm5, %v1004_v35, -inf }
 0x328   : > { %1010 = vmax.xlane.f32.xlu1 %v1009_v16 }
 0x32e   : > { %v1006_v36 = vpop.f32.mrf.mxu2 }
 0x32f   : > { %v937_v37 = vpop.f32.mrf.mxu3  ;;  %v1012_v41 = vsel %vm600_vm5, %v1006_v36, -inf }
 0x330   : > { %v942_v38 = vsel %vm600_vm5, %v937_v37, -inf }
 0x331   : > { %943 = vmax.xlane.f32.xlu2 %v942_v38 }
 0x337   : > { %v939_v39 = vpop.f32.mrf.mxu3  ;;  %v1138_v40 = vpop.f32.mrf.mxu2 }
 0x338   : > { %v945_v42 = vsel %vm600_vm5, %v939_v39, -inf  ;;  %v1143_v43 = vsel %vm600_vm5, %v1138_v40, -inf }
 0x339   : > { %1013 = vmax.xlane.f32.xlu2 %v1012_v41  ;;  %946 = vmax.xlane.f32.xlu0 %v945_v42  ;;  %v720_v41 = vadd.f32 %v6056_v24, %v6058_v25  ;;  %v722_v42 = vadd.f32 %v6060_v26, %v6062_v27 }
 0x33a   : > { %1144 = vmax.xlane.f32.xlu1 %v1143_v43  ;;  %v490_v43 = vld [vmem:[%s7474_s10 + $0x8] sm:$0xff] }
 0x33f   : > { %v1071_v44 = vpop.f32.mrf.mxu3  ;;  %v6084_v45 = vpop.f32.mrf.mxu2 }
 0x340   : > { %v1076_v51 = vsel %vm600_vm5, %v1071_v44, -inf  ;;  %v1146_v48 = vsel %vm600_vm5, %v6084_v45, -inf }
 0x341   : > { %1077 = vmax.xlane.f32.xlu2 %v1076_v51 }
 0x347   : > { %v1073_v46 = vpop.f32.mrf.mxu3 }
 0x348   : > { %v1079_v47 = vsel %vm600_vm5, %v1073_v46, -inf }
 0x349   : > { %1080 = vmax.xlane.f32.xlu0 %v1079_v47  ;;  %1147 = vmax.xlane.f32.xlu2 %v1146_v48 }
 0x39b   : > { %v1011_v49 = vpop.xlane.xlu1 %1010 }
 0x39c   : > { %v1015_v50 = vsub.f32 %v1004_v35, %v1011_v49 }
 0x39e   : > { %v1017_v52 = vmul.f32 1.442695, %v1015_v50 }
 0x3a0   : > { %5415 = vpow2.f32 %v1017_v52 }
 0x3a4   : > { %v944_v53 = vpop.xlane.xlu2 %943 }
 0x3a5   : > { %v948_v54 = vsub.f32 %v937_v37, %v944_v53 }
 0x3a6   : > { %v6089_v55 = vpop.eup %5415 }
 0x3a7   : > { %v950_v56 = vmul.f32 1.442695, %v948_v54  ;;  %v1021_v57 = vsel %vm600_vm5, %v6089_v55, 0.0 }
 0x3a8   : > { %1022 = vadd.xlane.f32.xlu2 %v1021_v57 }
 0x3a9   : > { %5417 = vpow2.f32 %v950_v56 }
 0x3ac   : > { %v1014_v58 = vpop.xlane.xlu2 %1013  ;;  %v947_v59 = vpop.xlane.xlu0 %946 }
 0x3ad   : > { %v1016_v60 = vsub.f32 %v1006_v36, %v1014_v58  ;;  %v949_v61 = vsub.f32 %v939_v39, %v947_v59  ;;  %v1145_v2 = vpop.xlane.xlu1 %1144 }
 0x3ae   : > { %v1149_v7 = vsub.f32 %v1138_v40, %v1145_v2 }
 0x3af   : > { %v6093_v62 = vpop.eup %5417  ;;  %v1019_v63 = vmul.f32 1.442695, %v1016_v60  ;;  %v952_v0 = vmul.f32 1.442695, %v949_v61 }
 0x3b0   : > { %v954_v1 = vsel %vm600_vm5, %v6093_v62, 0.0  ;;  %v1151_v14 = vmul.f32 1.442695, %v1149_v7 }
 0x3b1   : > { %5419 = vpow2.f32 %v1019_v63  ;;  %955 = vadd.xlane.f32.xlu0 %v954_v1 }
 0x3b2   : > { %5421 = vpow2.f32 %v952_v0 }
 0x3b4   : > { %v1078_v4 = vpop.xlane.xlu2 %1077 }
 0x3b5   : > { %v1082_v5 = vsub.f32 %v1071_v44, %v1078_v4  ;;  %v6131_v44 = vadd.f32 %v722_v42, %v490_v43  ;;  %v4951_v42 = vld [vmem:[#allocation4 + $0x40] sm:$0xf]  ;;  %v5148_v43 = vld [vmem:[#allocation4 + $0x44] sm:$0xf0] }
 0x3b7   : > { %v5420_v6 = vpop.eup %5419  ;;  %v1084_v8 = vmul.f32 1.442695, %v1082_v5 }
 0x3b8   : > { %v6097_v10 = vpop.eup %5421  ;;  %v1024_v11 = vsel %vm600_vm5, %v5420_v6, 0.0 }
 0x3b9   : > { %5423 = vpow2.f32 %v1084_v8  ;;  %1025 = vadd.xlane.f32.xlu0 %v1024_v11  ;;  %v957_v13 = vsel %vm600_vm5, %v6097_v10, 0.0 }
 0x3ba   : > { %958 = vadd.xlane.f32.xlu1 %v957_v13  ;;  %5425 = vpow2.f32 %v1151_v14  ;;  %v6147_v13 = vpop.f32.mrf.mxu1 }
 0x3bc   : > { %v1081_v15 = vpop.xlane.xlu0 %1080  ;;  %v1148_v36 = vpop.xlane.xlu2 %1147 }
 0x3bd   : > { %v1083_v20 = vsub.f32 %v1073_v46, %v1081_v15  ;;  %v1150_v37 = vsub.f32 %v6084_v45, %v1148_v36 }
 0x3bf   : > { %v6102_v19 = vpop.eup %5423  ;;  %v1086_v28 = vmul.f32 1.442695, %v1083_v20  ;;  %v1153_v38 = vmul.f32 1.442695, %v1150_v37  ;;  %v1487_v37 = vrot.slane %v6131_v44, 7 }
 0x3c0   : > { %v1088_v21 = vsel %vm600_vm5, %v6102_v19, 0.0  ;;  %1032 = vrot.lane.b32.xlu2 %v5988_v18, %s7477_s13  ;;  %v6108_v29 = vpop.eup %5425  ;;  %s7490_s13 = smov 24  }
 0x3c1   : > { %1089 = vadd.xlane.f32.xlu0 %v1088_v21  ;;  %5427 = vpow2.f32 %v1086_v28  ;;  %v1155_v30 = vsel %vm600_vm5, %v6108_v29, 0.0 }
 0x3c2   : > { %5429 = vpow2.f32 %v1153_v38 }
 0x3c7   : > { %v5428_v35 = vpop.eup %5427 }
 0x3c8   : > { %1099 = vrot.lane.b32.xlu2 %v5988_v18, %s7478_s14  ;;  %v1091_v16 = vsel %vm600_vm5, %v5428_v35, 0.0  ;;  %v5430_v39 = vpop.eup %5429  ;;  %s7495_s14 = smov 48  }
 0x3c9   : > { %1156 = vadd.xlane.f32.xlu0 %v1155_v30  ;;  %v1158_v40 = vsel %vm600_vm5, %v5430_v39, 0.0 }
 0x3d0   : > { %1219 = vrot.lane.b32.xlu2 %v5922_v3, %s5785_s24 }
 0x3d1   : > { %1092 = vadd.xlane.f32.xlu0 %v1091_v16 }
 0x3d3   : > { %965 = vrot.lane.b32.xlu1 %v5988_v18, %s5783_s16 }
 0x3e5   : > { %1166 = vrot.lane.b32.xlu0 %v5988_v18, %s7476_s18  ;;  %v6129_v18 = vadd.f32 %v720_v41, %v6067_v31  ;;  %v5149_v41 = vld [vmem:[#allocation4 + $0x54] sm:$0xf0]  ;;  %s7491_s18 = smov 16  }
 0x3e7   : > { %v5293_v51 = vpack.i.bf16 %v6131_v44, %v6129_v18  ;;  %v1486_v36 = vrot.slane %v6129_v18, 7 }
 0x3e9   : > { %v1488_v38 = vsel %vm493_vm0, %v1486_v36, %v1487_v37 }
 0x3fd   : > { %1159 = vadd.xlane.f32.xlu1 %v1158_v40  ;;  %v4955_v40 = vld [vmem:[#allocation4 + $0x50] sm:$0xf] }
 0x416   : > { %5294 = vrot.lane.b32.xlu1 %v5293_v51, %s5783_s16  ;;  %v6164_v51 = vor.u32 %v5148_v43, %v4951_v42 }
 0x41b   : > { %v1023_v45 = vpop.xlane.xlu2 %1022 }
 0x41c   : > { %5431 = vrcp.f32 %v1023_v45  ;;  %v4947_v45 = vld [vmem:[#allocation4 + $0x30] sm:$0xf] }
 0x422   : > { %v5432_v26 = vpop.eup %5431 }
 0x423   : > { %v1033_v46 = vpop.permute.xlu2 %1032  ;;  %v1029_v47 = vmul.f32 %v5432_v26, %v6089_v55  ;;  %v5146_v26 = vld [vmem:[#allocation4 + $0x24] sm:$0xf0] }
 0x424   : > { %v956_v24 = vpop.xlane.xlu0 %955  ;;  %1045 = vmatpush.bf16.msra.mxu0 %v1033_v46  ;;  %v5147_v46 = vld [vmem:[#allocation4 + $0x34] sm:$0xf0] }
 0x42b   : > { %v1100_v58 = vpop.permute.xlu2 %1099 }
 0x42c   : > { %v1026_v25 = vpop.xlane.xlu0 %1025 }
 0x42d   : > { %5433 = vrcp.f32 %v1026_v25  ;;  %v959_v50 = vpop.xlane.xlu1 %958  ;;  %v4943_v25 = vld [vmem:[#allocation4 + $0x20] sm:$0xf] }
 0x42e   : > { %5435 = vrcp.f32 %v959_v50  ;;  %v5144_v50 = vld [vmem:[#allocation4 + $0x4] sm:$0xf0] }
 0x42f   : > { %5437 = vrcp.f32 %v956_v24  ;;  %v6167_v24 = vor.u32 %v5147_v46, %v4947_v45 }
 0x433   : > { %v5434_v27 = vpop.eup %5433 }
 0x434   : > { %v1030_v31 = vmul.f32 %v5434_v27, %v5420_v6  ;;  %v1090_v48 = vpop.xlane.xlu0 %1089  ;;  %v5436_v53 = vpop.eup %5435  ;;  %v6170_v27 = vor.u32 %v5146_v26, %v4943_v25 }
 0x435   : > { %v5438_v54 = vpop.eup %5437  ;;  %v963_v56 = vmul.f32 %v5436_v53, %v6097_v10  ;;  %v1509_v53 = vld [vmem:[%s7472_s8 + $0x1] sm:$0x3] }
 0x436   : > { %v1031_v49 = vpack.c.bf16 %v1030_v31, %v1029_v47  ;;  %v962_v57 = vmul.f32 %v5438_v54, %v6093_v62  ;;  %v4939_v47 = vld [vmem:[#allocation4 + $0x10] sm:$0xf]  ;;  %v5145_v31 = vld [vmem:[#allocation4 + $0x14] sm:$0xf0]  ;;  %v1511_v54 = vperm.slane %v1509_v53, 0 }
 0x438   : > { %4901 = vmatmul.msk.bf16.vlgmr.msra.gmra.mxu0 %vm600_vm5, %v1031_v49  ;;  %v964_v59 = vpack.c.bf16 %v963_v56, %v962_v57  ;;  %v4935_v49 = vld [vmem:[#allocation4] sm:$0xf]  ;;  %1549 = vrot.lane.b32.xlu1 %v1511_v54, %s5785_s24  ;;  %v1512_v57 = vperm.slane %v1509_v53, 1  ;;  %v4909_v53 = vld [vmem:[#allocation2 + $0x4] sm:$0xf] }
 0x439   : > { %v5138_v54 = vld [vmem:[#allocation2 + $0x20] sm:$0xf0] }
 0x43c   : > { %v1157_v52 = vpop.xlane.xlu0 %1156 }
 0x440   : > { %1551 = vrot.lane.b32.xlu1 %v1512_v57, %s5785_s24 }
 0x444   : > { %v1093_v60 = vpop.xlane.xlu0 %1092 }
 0x445   : > { %v966_v55 = vpop.permute.xlu1 %965  ;;  %5439 = vrcp.f32 %v1093_v60 }
 0x446   : > { %978 = vmatpush.bf16.msra.mxu1 %v966_v55  ;;  %5441 = vrcp.f32 %v1090_v48  ;;  %v6173_v48 = vor.u32 %v5145_v31, %v4939_v47 }
 0x447   : > { %5443 = vrcp.f32 %v1157_v52  ;;  %v6176_v52 = vor.u32 %v5144_v50, %v4935_v49 }
 0x449   : > { %4899 = vmatmul.msk.bf16.vlgmr.msra.gmra.mxu1 %vm600_vm5, %v964_v59 }
 0x44a   : > { %1112 = vmatpush.bf16.msrb.mxu1 %v1100_v58 }
 0x44b   : > { %v5440_v3 = vpop.eup %5439 }
 0x44c   : > { %v5442_v61 = vpop.eup %5441  ;;  %v1097_v63 = vmul.f32 %v5440_v3, %v5428_v35 }
 0x44d   : > { %v1096_v0 = vmul.f32 %v5442_v61, %v6102_v19  ;;  %v5444_v4 = vpop.eup %5443 }
 0x44e   : > { %v1163_v6 = vmul.f32 %v5444_v4, %v6108_v29  ;;  %v1220_v29 = vpop.permute.xlu2 %1219 }
 0x44f   : > { %v1098_v1 = vpack.c.bf16 %v1097_v63, %v1096_v0  ;;  %1235 = vmatpush.bf16.msrb.mxu3 %v1220_v29 }
 0x457   : > { %v1167_v2 = vpop.permute.xlu0 %1166 }
 0x458   : > { %1179 = vmatpush.bf16.msrb.mxu0 %v1167_v2 }
 0x459   : > { %4903 = vmatmul.msk.bf16.vlgmr.msrb.gmra.mxu1 %vm600_vm5, %v1098_v1 }
 0x470   : > { %v1160_v62 = vpop.xlane.xlu1 %1159 }
 0x471   : > { %5445 = vrcp.f32 %v1160_v62 }
 0x477   : > { %v5446_v5 = vpop.eup %5445 }
 0x478   : > { %v1164_v7 = vmul.f32 %v5446_v5, %v5430_v39  ;;  %v1490_v39 = vsel %vm493_vm0, 0.0, %v1486_v36 }
 0x47a   : > { %v1165_v8 = vpack.c.bf16 %v1164_v7, %v1163_v6 }
 0x47c   : > { %4905 = vmatmul.msk.bf16.vlgmr.msrb.gmra.mxu0 %vm600_vm5, %v1165_v8 }
 0x4b5   : > { %v1047_v10 = vpop.f32.mrf.mxu0 }
 0x4bd   : > { %v1049_v11 = vpop.f32.mrf.mxu0 }
 0x4be   : > { %v5273_v14 = vpack.i.bf16 %v1049_v11, %v1047_v10  ;;  %v1480_v10 = vrot.slane %v6129_v18, 6  ;;  %v1481_v11 = vrot.slane %v6131_v44, 6 }
 0x4c0   : > { %5274 = vrot.lane.b32.xlu2 %v5273_v14, %s5770_s21  ;;  %v5295_v14 = vpop.permute.xlu1 %5294  ;;  %v1482_v29 = vsel %vm679_vm11, %v1480_v10, %v1481_v11 }
 0x4c6   : > { %v980_v15 = vpop.f32.mrf.mxu1 }
 0x4c8   : > { %v1550_v49 = vpop.permute.xlu1 %1549 }
 0x4ce   : > { %v982_v19 = vpop.f32.mrf.mxu1 }
 0x4d6   : > { %v1114_v20 = vpop.f32.mrf.mxu1 }
 0x4de   : > { %v1116_v21 = vpop.f32.mrf.mxu1 }
 0x4df   : > { %v5278_v28 = vpack.i.bf16 %v1116_v21, %v1114_v20  ;;  %v5297_v21 = vunpack.i.h.bf16 %v5295_v14 }
 0x4e1   : > { %5279 = vrot.lane.b32.xlu0 %v5278_v28, %s7485_s22  ;;  %v5296_v28 = vunpack.i.l.bf16 %v5295_v14 }
 0x4e9   : > { %1217 = vrot.lane.b32.xlu0 %v5926_v9, %s5785_s24  ;;  %v5288_v9 = vpack.i.bf16 %v1488_v38, %v1490_v39  ;;  %v4913_v39 = vld [vmem:[#allocation2 + $0x44] sm:$0xf] }
 0x4f1   : > { %1223 = vrot.lane.b32.xlu0 %v5984_v12, %s5785_s24  ;;  %v6161_v12 = vor.u32 %v5149_v41, %v4955_v40 }
 0x4f3   : > { %1561 = vmatpush.bf16.msra.mxu0 %v6161_v12 }
 0x4f7   : > { %1562 = vmatpush.bf16.msra.mxu0 %v6164_v51 }
 0x4f9   : > { %v1181_v30 = vpop.f32.mrf.mxu0 }
 0x4fb   : > { %1563 = vmatpush.bf16.msra.mxu0 %v6167_v24 }
 0x4ff   : > { %1564 = vmatpush.bf16.msra.mxu0 %v6170_v27 }
 0x501   : > { %v1183_v35 = vpop.f32.mrf.mxu0 }
 0x502   : > { %v5283_v16 = vpack.i.bf16 %v1183_v35, %v1181_v30  ;;  %v1485_v30 = vsel %vm679_vm11, 0.0, %v1480_v10 }
 0x503   : > { %1565 = vmatpush.bf16.msra.mxu0 %v6173_v48 }
 0x504   : > { %5284 = vrot.lane.b32.xlu2 %v5283_v16, %s7487_s25  ;;  %s7493_s25 = smov 72  }
 0x507   : > { %1566 = vmatpush.bf16.msra.mxu0 %v6176_v52 }
 0x50c   : > { %5289 = vrot.lane.b32.xlu2 %v5288_v9, %s5785_s24  ;;  %v5139_v9 = vld [vmem:[#allocation2 + $0x60] sm:$0xf0] }
 0x50d   : > { %v6200_v40 = vor.u32 %v5139_v9, %v4913_v39 }
 0x50f   : > { %1341 = vmatpush.bf16.msra.mxu1 %v6200_v40 }
 0x51a   : > { %v5275_v55 = vpop.permute.xlu2 %5274 }
 0x51b   : > { %v5277_v58 = vunpack.i.h.bf16 %v5275_v55  ;;  %v5276_v59 = vunpack.i.l.bf16 %v5275_v55 }
 0x51d   : > { %v1210_v0 = vsel %vm597_vm4, %v980_v15, %v5276_v59  ;;  %v1211_v1 = vsel %vm597_vm4, %v982_v19, %v5277_v58 }
 0x553   : > { %v5280_v56 = vpop.permute.xlu0 %5279 }
 0x554   : > { %v5282_v3 = vunpack.i.h.bf16 %v5280_v56  ;;  %v5281_v61 = vunpack.i.l.bf16 %v5280_v56  ;;  %v6207_v56 = vor.u32 %v5138_v54, %v4909_v53 }
 0x556   : > { %v1213_v4 = vsel %vm600_vm5, %v1211_v1, %v5282_v3  ;;  %v1212_v5 = vsel %vm600_vm5, %v1210_v0, %v5281_v61  ;;  %1342 = vmatpush.bf16.msra.mxu1 %v6207_v56 }
 0x55b   : > { %v1218_v60 = vpop.permute.xlu0 %1217 }
 0x55c   : > { %1236 = vmatpush.bf16.msrb.mxu3 %v1218_v60  ;;  %v5787_v60 = vmov 32.0  }
 0x55d   : > { %5447 = vrcp.f32 %v5787_v60 }
 0x55e   : > { %v5285_v63 = vpop.permute.xlu2 %5284 }
 0x55f   : > { %v5287_v2 = vunpack.i.h.bf16 %v5285_v63  ;;  %v5286_v62 = vunpack.i.l.bf16 %v5285_v63 }
 0x561   : > { %v1215_v6 = vsel %vm613_vm6, %v1213_v4, %v5287_v2  ;;  %v1214_v7 = vsel %vm613_vm6, %v1212_v5, %v5286_v62 }
 0x562   : > { %v1216_v8 = vpack.c.bf16 %v1215_v6, %v1214_v7 }
 0x563   : > { %v1224_v41 = vpop.permute.xlu0 %1223  ;;  %v5448_v3 = vpop.eup %5447 }
 0x564   : > { %4906 = vmatmul.msk.bf16.vlgmr.msrb.gmra.mxu3 %vm900_vm7, %v1216_v8  ;;  %v1253_v61 = vmul.f32 32.0, %v5448_v3  ;;  %vm1257_vm14 = vweird.f32 %v5448_v3 }
 0x566   : > { %v5290_v15 = vpop.permute.xlu2 %5289  ;;  %v1254_v63 = vsub.f32 1.0, %v1253_v61 }
 0x567   : > { %v5292_v19 = vunpack.i.h.bf16 %v5290_v15  ;;  %v5291_v20 = vunpack.i.l.bf16 %v5290_v15 }
 0x568   : > { %v1255_v0 = vmul.f32 %v5448_v3, %v1254_v63 }
 0x569   : > { %v1505_v35 = vsel %vm900_vm7, %v1482_v29, %v5292_v19  ;;  %v1504_v16 = vsel %vm900_vm7, %v1485_v30, %v5291_v20 }
 0x56a   : > { %v1506_v36 = vsel %vm1395_vm12, %v1504_v16, %v5296_v28  ;;  %v1507_v37 = vsel %vm1395_vm12, %v1505_v35, %v5297_v21  ;;  %v1256_v1 = vadd.f32 %v5448_v3, %v1255_v0  ;;  %v1573_v21 = vpack.c.bf16 %v6131_v44, %v6129_v18 }
 0x56b   : > { %v1508_v38 = vpack.c.bf16 %v1507_v37, %v1506_v36 }
 0x56c   : > { %v6223_v2 = vsel %vm1257_vm14, %v5448_v3, %v1256_v1 }
 0x56d   : > { %4957 = vmatmul.msk.bf16.vlgmr.msra.gmra.mxu0 %vm1555_vm13, %v1508_v38 }
 0x5e7   : > { %v1238_v42 = vpop.f32.mrf.mxu3 }
 0x5e8   : > { %v1239_v43 = vadd.f32 %v1238_v42, %v1224_v41 }
 0x5ea   : > { %v1244_v45 = vadd.f32 %v1239_v43, %v5937_v22  ;;  %v1568_v50 = vpop.f32.mrf.mxu0  ;;  %v1552_v22 = vpop.permute.xlu1 %1551 }
 0x5ec   : > { %v1246_v46 = vsel %vm900_vm7, %v1244_v45, 0.0 }
 0x5ed   : > { %1247 = vadd.xlane.f32.xlu2 %v1246_v46 }
 0x5ef   : > { %v1240_v25 = vpop.f32.mrf.mxu3 }
 0x5f0   : > { %v1241_v26 = vadd.f32 %v1240_v25, %v1224_v41 }
 0x5f2   : > { %v1245_v47 = vadd.f32 %v1241_v26, %v5939_v23  ;;  %v1570_v57 = vpop.f32.mrf.mxu0  ;;  %v1553_v23 = vsel %vm900_vm7, %v1550_v49, %v1552_v22 }
 0x5f3   : > { %v1571_v55 = vadd.f32 %v1570_v57, %v1553_v23  ;;  %v1569_v58 = vadd.f32 %v1568_v50, %v1553_v23  ;;  %v1243_v50 = vld [vmem:[%s7473_s9] sm:$0x3] }
 0x5f4   : > { %v1249_v31 = vsel %vm900_vm7, %v1245_v47, 0.0  ;;  %v1300_v0 = vperm.slane %v1243_v50, 1 }
 0x5f5   : > { %1250 = vadd.xlane.f32.xlu0 %v1249_v31  ;;  %v6215_v59 = vpack.c.bf16 %v1571_v55, %v1569_v58  ;;  %v1297_v55 = vperm.slane %v1243_v50, 0 }
 0x605   : > { %1577 = vrot.lane.b32.xlu2 %v6207_v56, %s5783_s16 }
 0x609   : > { %1579 = vrot.lane.b32.xlu0 %v6200_v40, %s5783_s16 }
 0x611   : > { %1605 = vrot.lane.b32.xlu0 %v6215_v59, %s5776_s27 }
 0x619   : > { %1668 = vrot.lane.b32.xlu0 %v6215_v59, %s5774_s20 }
 0x621   : > { %1736 = vrot.lane.b32.xlu0 %v6215_v59, %s5777_s28 }
 0x660   : > { %v1248_v62 = vpop.xlane.xlu2 %1247 }
 0x661   : > { %v1259_v4 = vmul.f32 %v6223_v2, %v1248_v62 }
 0x663   : > { %v1261_v5 = vsub.f32 %v1244_v45, %v1259_v4 }
 0x665   : > { %v1263_v6 = vmul.f32 %v1261_v5, %v1261_v5 }
 0x667   : > { %v1265_v7 = vsel %vm900_vm7, %v1263_v6, 0.0 }
 0x668   : > { %v1251_v8 = vpop.xlane.xlu0 %1250  ;;  %1266 = vadd.xlane.f32.xlu1 %v1265_v7  ;;  %v1578_v20 = vpop.permute.xlu2 %1577 }
 0x669   : > { %v1260_v10 = vmul.f32 %v6223_v2, %v1251_v8 }
 0x66b   : > { %v1262_v11 = vsub.f32 %v1245_v47, %v1260_v10 }
 0x66d   : > { %v1264_v14 = vmul.f32 %v1262_v11, %v1262_v11 }
 0x66f   : > { %v1268_v15 = vsel %vm900_vm7, %v1264_v14, 0.0 }
 0x670   : > { %1269 = vadd.xlane.f32.xlu2 %v1268_v15  ;;  %v4930_v15 = vld [vmem:[%s7470_s6 + $0x30] sm:$0xf] }
 0x67b   : > { %v1580_v19 = vpop.permute.xlu0 %1579 }
 0x67c   : > { %1595 = vmatpush.bf16.msra.mxu3 %v1580_v19  ;;  %v5143_v19 = vld [vmem:[%s7470_s6 + $0x34] sm:$0xf0] }
 0x680   : > { %1596 = vmatpush.bf16.msra.mxu3 %v1578_v20  ;;  %v6271_v20 = vor.u32 %v5143_v19, %v4930_v15 }
 0x681   : > { %1738 = vrot.lane.b32.xlu1 %v6215_v59, %s7483_s30  ;;  %s7497_s30 = smov 40  }
 0x682   : > { %1403 = vmatpush.bf16.msra.mxu2 %v6271_v20 }
 0x683   : > { %4958 = vmatmul.msk.bf16.vlgmr.msra.gmra.mxu3 %vm900_vm7, %v1573_v21  ;;  %v1606_v28 = vpop.permute.xlu0 %1605  ;;  %v5142_v21 = vld [vmem:[%s7470_s6 + $0x24] sm:$0xf0] }
 0x684   : > { %v1611_v29 = vsel %vm597_vm4, %v1606_v28, 0 }
 0x685   : > { %1620 = vmatpush.bf16.xpose.msrb.mxu1 %v1611_v29 }
 0x688   : > { %1670 = vrot.lane.b32.xlu2 %v6215_v59, %s7479_s26  ;;  %s7494_s26 = smov 88  }
 0x68b   : > { %v1669_v49 = vpop.permute.xlu0 %1668 }
 0x690   : > { %1805 = vrot.lane.b32.xlu2 %v6215_v59, %s7481_s29  ;;  %s7492_s29 = smov 80  }
 0x693   : > { %v1737_v10 = vpop.permute.xlu0 %1736 }
 0x698   : > { %1803 = vrot.lane.b32.xlu2 %v6215_v59, %s5780_s12 }
 0x6db   : > { %v1267_v30 = vpop.xlane.xlu1 %1266 }
 0x6dc   : > { %v1271_v35 = vmul.f32 %v1267_v30, %v6223_v2 }
 0x6de   : > { %v1273_v16 = vadd.f32 1e-05, %v1271_v35  ;;  %v4922_v35 = vld [vmem:[%s7470_s6 + $0x10] sm:$0xf] }
 0x6e0   : > { %5449 = vrsqrt.f32 %v1273_v16  ;;  %vm1281_vm1 = vweird.f32 %v1273_v16 }
 0x6e3   : > { %v1270_v36 = vpop.xlane.xlu2 %1269 }
 0x6e4   : > { %v1272_v37 = vmul.f32 %v1270_v36, %v6223_v2 }
 0x6e6   : > { %v5450_v38 = vpop.eup %5449  ;;  %v1274_v39 = vadd.f32 1e-05, %v1272_v37  ;;  %v5404_v37 = vld [vmem:[%s7472_s8 + $0x1] ss:$0 sm:$0xff] }
 0x6e7   : > { %v1276_v9 = vmul.f32 %v5450_v38, %v1273_v16  ;;  %vm1282_vm15 = vweird.f32 %v5450_v38  ;;  %v5141_v16 = vld [vmem:[%s7470_s6 + $0x14] sm:$0xf0] }
 0x6e8   : > { %5451 = vrsqrt.f32 %v1274_v39  ;;  %vm1283_vm2 = vmor %vm1281_vm1, %vm1282_vm15  ;;  %vm1291_vm8 = vweird.f32 %v1274_v39  ;;  %v6293_v36 = vor.u32 %v5141_v16, %v4922_v35 }
 0x6e9   : > { %v1277_v41 = vmul.f32 %v5450_v38, %v1276_v9 }
 0x6eb   : > { %v1278_v42 = vmul.f32 0.5, %v1277_v41  ;;  %v1671_v43 = vpop.permute.xlu2 %1670 }
 0x6ec   : > { %v1676_v45 = vsel %vm597_vm4, %v1671_v43, 0 }
 0x6ed   : > { %v1279_v46 = vsub.f32 1.5, %v1278_v42  ;;  %1685 = vmatpush.bf16.xpose.msrb.mxu3 %v1676_v45 }
 0x6ee   : > { %v5452_v25 = vpop.eup %5451 }
 0x6ef   : > { %v1280_v26 = vmul.f32 %v5450_v38, %v1279_v46  ;;  %v1286_v47 = vmul.f32 %v5452_v25, %v1274_v39  ;;  %vm1292_vm3 = vweird.f32 %v5452_v25  ;;  %v5140_v39 = vld [vmem:[%s7470_s6 + $0x4] sm:$0xf0] }
 0x6f0   : > { %vm1293_vm9 = vmor %vm1291_vm8, %vm1292_vm3 }
 0x6f1   : > { %v1287_v31 = vmul.f32 %v5452_v25, %v1286_v47  ;;  %v1284_v53 = vsel %vm1283_vm2, %v5450_v38, %v1280_v26  ;;  %v4918_v38 = vld [vmem:[%s7470_s6] sm:$0xf] }
 0x6f2   : > { %v1295_v58 = vmul.f32 %v1284_v53, %v1261_v5  ;;  %v6305_v42 = vor.u32 %v5140_v39, %v4918_v38 }
 0x6f3   : > { %v1288_v54 = vmul.f32 0.5, %v1287_v31  ;;  %v1806_v22 = vpop.permute.xlu2 %1805  ;;  %v1739_v6 = vpop.permute.xlu1 %1738 }
 0x6f4   : > { %v1811_v57 = vsel %vm597_vm4, %v1806_v22, 0  ;;  %4961 = vmatmul.msk.bf16.vlgmr.msrb.gmra.mxu3 %vm597_vm4, %v1669_v49  ;;  %v1298_v61 = vmul.f32 %v1297_v55, %v1295_v58  ;;  %v1744_v8 = vsel %vm597_vm4, %v1739_v6, 0 }
 0x6f5   : > { %v1289_v23 = vsub.f32 1.5, %v1288_v54  ;;  %1820 = vmatpush.bf16.xpose.msra.mxu3 %v1811_v57 }
 0x6f6   : > { %v6249_v62 = vadd.f32 %v1300_v0, %v1298_v61 }
 0x6f7   : > { %v1290_v60 = vmul.f32 %v5452_v25, %v1289_v23 }
 0x6f9   : > { %v1294_v3 = vsel %vm1293_vm9, %v5452_v25, %v1290_v60 }
 0x6fa   : > { %v1296_v63 = vmul.f32 %v1294_v3, %v1262_v11 }
 0x6fb   : > { %v1804_v5 = vpop.permute.xlu2 %1803 }
 0x6fc   : > { %v1299_v1 = vmul.f32 %v1297_v55, %v1296_v63 }
 0x6fe   : > { %v6251_v4 = vadd.f32 %v1300_v0, %v1299_v1 }
 0x700   : > { %v1316_v7 = vpack.c.bf16 %v6251_v4, %v6249_v62 }
 0x702   : > { %4915 = vmatmul.msk.bf16.vlgmr.msra.gmra.mxu1 %vm900_vm7, %v1316_v7 }
 0x703   : > { %1753 = vmatpush.bf16.xpose.msra.mxu1 %v1744_v8 }
 0x704   : > { %4965 = vmatmul.msk.bf16.vlgmr.msra.gmra.mxu3 %vm597_vm4, %v1804_v5 }
 0x706   : > { %v6261_v11 = vpop.f32.mrf.mxu3 }
 0x70e   : > { %v6263_v14 = vpop.f32.mrf.mxu3 }
 0x712   : > { %4959 = vmatmul.msk.bf16.vlgmr.msrb.gmra.mxu1 %vm597_vm4, %v6215_v59  ;;  %v4926_v59 = vld [vmem:[%s7470_s6 + $0x20] sm:$0xf] }
 0x713   : > { %v6282_v29 = vor.u32 %v5142_v21, %v4926_v59 }
 0x715   : > { %1404 = vmatpush.bf16.msra.mxu2 %v6282_v29 }
 0x719   : > { %1405 = vmatpush.bf16.msra.mxu2 %v6293_v36 }
 0x71d   : > { %1406 = vmatpush.bf16.msra.mxu2 %v6305_v42 }
 0x722   : > { %4963 = vmatmul.msk.bf16.vlgmr.msra.gmra.mxu1 %vm597_vm4, %v1737_v10 }
 0x777   : > { %v6280_v28 = vpop.f32.mrf.mxu3 }
 0x778   : > { %v1692_v30 = vsel %vm600_vm5, %v6280_v28, -inf }
 0x779   : > { %1693 = vmax.xlane.f32.xlu1 %v1692_v30  ;;  %v6319_v30 = vld [vmem:[%s7472_s8 + $0x2] ss:$0 sm:$0xff] }
 0x77f   : > { %v1344_v9 = vpop.f32.mrf.mxu1  ;;  %v1689_v41 = vpop.f32.mrf.mxu3 }
 0x780   : > { %v1345_v43 = vadd.f32 %v5404_v37, %v1344_v9  ;;  %v1695_v45 = vsel %vm600_vm5, %v1689_v41, -inf }
 0x781   : > { %1696 = vmax.xlane.f32.xlu0 %v1695_v45 }
 0x782   : > { %v1349_v46 = vmul.f32 %v1345_v43, %v1345_v43 }
 0x784   : > { %v1351_v25 = vmul.f32 %v1349_v46, %v1345_v43 }
 0x786   : > { %v1353_v26 = vmul.f32 0.044715, %v1351_v25 }
 0x787   : > { %v1346_v47 = vpop.f32.mrf.mxu1  ;;  %v6309_v31 = vpop.f32.mrf.mxu3 }
 0x788   : > { %v1355_v49 = vadd.f32 %v1353_v26, %v1345_v43  ;;  %v1347_v50 = vadd.f32 %v5404_v37, %v1346_v47  ;;  %v1827_v53 = vsel %vm600_vm5, %v6309_v31, -inf }
 0x789   : > { %1828 = vmax.xlane.f32.xlu1 %v1827_v53 }
 0x78a   : > { %v1357_v54 = vmul.f32 0.7978846, %v1355_v49  ;;  %v1350_v22 = vmul.f32 %v1347_v50, %v1347_v50 }
 0x78c   : > { %v1352_v57 = vmul.f32 %v1350_v22, %v1347_v50  ;;  %5453 = vtanh.f32 %v1357_v54 }
 0x78e   : > { %v1354_v23 = vmul.f32 0.044715, %v1352_v57 }
 0x78f   : > { %v1622_v55 = vpop.f32.mrf.mxu1  ;;  %v1824_v10 = vpop.f32.mrf.mxu3 }
 0x790   : > { %v1356_v58 = vadd.f32 %v1354_v23, %v1347_v50  ;;  %v1627_v60 = vsel %vm600_vm5, %v1622_v55, -inf  ;;  %v1830_v59 = vsel %vm600_vm5, %v1824_v10, -inf }
 0x791   : > { %1628 = vmax.xlane.f32.xlu0 %v1627_v60 }
 0x792   : > { %v1358_v3 = vmul.f32 0.7978846, %v1356_v58  ;;  %v5454_v61 = vpop.eup %5453 }
 0x793   : > { %v1361_v63 = vadd.f32 1.0, %v5454_v61 }
 0x794   : > { %5455 = vtanh.f32 %v1358_v3 }
 0x795   : > { %v1363_v7 = vmul.f32 0.5, %v1361_v63 }
 0x797   : > { %v1624_v0 = vpop.f32.mrf.mxu1  ;;  %v1365_v15 = vmul.f32 %v1363_v7, %v1345_v43 }
 0x798   : > { %v1630_v1 = vsel %vm600_vm5, %v1624_v0, -inf }
 0x799   : > { %1631 = vmax.xlane.f32.xlu2 %v1630_v1 }
 0x79a   : > { %v5456_v6 = vpop.eup %5455 }
 0x79b   : > { %v1362_v8 = vadd.f32 1.0, %v5456_v6 }
 0x79d   : > { %v1364_v5 = vmul.f32 0.5, %v1362_v8 }
 0x79f   : > { %v1366_v19 = vmul.f32 %v1364_v5, %v1347_v50  ;;  %v1755_v35 = vpop.f32.mrf.mxu1 }
 0x7a0   : > { %v1760_v16 = vsel %vm600_vm5, %v1755_v35, -inf }
 0x7a1   : > { %v1367_v21 = vpack.c.bf16 %v1366_v19, %v1365_v15  ;;  %1831 = vmax.xlane.f32.xlu2 %v1830_v59 }
 0x7a3   : > { %4932 = vmatmul.msk.bf16.vlgmr.msra.gmra.mxu2 %vm1395_vm12, %v1367_v21 }
 0x7a5   : > { %1583 = vrot.lane.b32.xlu0 %v6319_v30, %s5776_s27 }
 0x7a7   : > { %v1757_v37 = vpop.f32.mrf.mxu1 }
 0x7a8   : > { %v1763_v38 = vsel %vm600_vm5, %v1757_v37, -inf }
 0x7a9   : > { %1761 = vmax.xlane.f32.xlu2 %v1760_v16 }
 0x7cf   : > { %1764 = vmax.xlane.f32.xlu0 %v1763_v38 }
 0x7ec   : > { %v1694_v39 = vpop.xlane.xlu1 %1693 }
 0x7ed   : > { %v1698_v9 = vsub.f32 %v6280_v28, %v1694_v39 }
 0x7ef   : > { %v1700_v43 = vmul.f32 1.442695, %v1698_v9 }
 0x7f1   : > { %5457 = vpow2.f32 %v1700_v43 }
 0x7f4   : > { %v1697_v45 = vpop.xlane.xlu0 %1696 }
 0x7f5   : > { %v1699_v46 = vsub.f32 %v1689_v41, %v1697_v45 }
 0x7f7   : > { %v6327_v25 = vpop.eup %5457  ;;  %v1702_v26 = vmul.f32 1.442695, %v1699_v46 }
 0x7f8   : > { %v1704_v47 = vsel %vm600_vm5, %v6327_v25, 0.0 }
 0x7f9   : > { %5459 = vpow2.f32 %v1702_v26  ;;  %1705 = vadd.xlane.f32.xlu1 %v1704_v47  ;;  %v5155_v26 = vld [vmem:[#allocation2 + $0x64] sm:$0xf0]  ;;  %v5154_v47 = vld [vmem:[#allocation2 + $0x4c] sm:$0xf] }
 0x7fc   : > { %v1829_v59 = vpop.xlane.xlu1 %1828 }
 0x7fd   : > { %v1833_v21 = vsub.f32 %v6309_v31, %v1829_v59  ;;  %v4988_v31 = vld [vmem:[#allocation2 + $0x48] sm:$0xf] }
 0x7ff   : > { %v6331_v49 = vpop.eup %5459 }
 0x800   : > { %v1707_v50 = vsel %vm600_vm5, %v6331_v49, 0.0 }
 0x801   : > { %1708 = vadd.xlane.f32.xlu2 %v1707_v50  ;;  %v4990_v50 = vld [vmem:[#allocation2 + $0x68] sm:$0xf0] }
 0x804   : > { %v1629_v54 = vpop.xlane.xlu0 %1628 }
 0x805   : > { %v1633_v58 = vsub.f32 %v1622_v55, %v1629_v54  ;;  %v5153_v54 = vld [vmem:[#allocation2 + $0x24] sm:$0xf0] }
 0x807   : > { %v1635_v6 = vmul.f32 1.442695, %v1633_v58 }
 0x80c   : > { %v1632_v53 = vpop.xlane.xlu2 %1631 }
 0x80d   : > { %v1634_v28 = vsub.f32 %v1624_v0, %v1632_v53  ;;  %v4993_v53 = vor.u32 %v5154_v47, %v4990_v50 }
 0x80f   : > { %v1637_v22 = vmul.f32 1.442695, %v1634_v28  ;;  %v4980_v28 = vld [vmem:[#allocation2 + $0x8] sm:$0xf] }
 0x811   : > { %5461 = vpow2.f32 %v1637_v22  ;;  %v4981_v22 = vor.u32 %v5153_v54, %v4980_v28 }
 0x814   : > { %v1832_v41 = vpop.xlane.xlu2 %1831 }
 0x815   : > { %v1834_v57 = vsub.f32 %v1824_v10, %v1832_v41  ;;  %v4982_v41 = vld [vmem:[#allocation2 + $0x28] sm:$0xf0] }
 0x817   : > { %v6335_v23 = vpop.eup %5461  ;;  %v1837_v60 = vmul.f32 1.442695, %v1834_v57  ;;  %v1584_v3 = vpop.permute.xlu0 %1583 }
 0x818   : > { %v1599_v61 = vadd.f32 %v6261_v11, %v1584_v3  ;;  %v1601_v63 = vadd.f32 %v6263_v14, %v1584_v3  ;;  %v1642_v1 = vsel %vm600_vm5, %v6335_v23, 0.0 }
 0x819   : > { %5463 = vpow2.f32 %v1837_v60  ;;  %1643 = vadd.xlane.f32.xlu2 %v1642_v1 }
 0x81a   : > { %v1650_v0 = vpack.c.bf16 %v1601_v63, %v1599_v61  ;;  %5465 = vpow2.f32 %v1635_v6 }
 0x81c   : > { %v1762_v7 = vpop.xlane.xlu2 %1761  ;;  %1716 = vrot.lane.b32.xlu0 %v1650_v0, %s5774_s20  ;;  %1661 = vmatpush.bf16.msrb.mxu2 %v1650_v0 }
 0x81d   : > { %v1766_v55 = vsub.f32 %v1755_v35, %v1762_v7  ;;  %v1835_v35 = vmul.f32 1.442695, %v1833_v21 }
 0x81f   : > { %v6342_v8 = vpop.eup %5463  ;;  %v1768_v14 = vmul.f32 1.442695, %v1766_v55 }
 0x820   : > { %v1842_v11 = vsel %vm600_vm5, %v6342_v8, 0.0  ;;  %v5466_v5 = vpop.eup %5465 }
 0x821   : > { %1843 = vadd.xlane.f32.xlu1 %v1842_v11  ;;  %5467 = vpow2.f32 %v1768_v14  ;;  %v1639_v10 = vsel %vm600_vm5, %v5466_v5, 0.0 }
 0x822   : > { %5469 = vpow2.f32 %v1835_v35 }
 0x827   : > { %v6347_v15 = vpop.eup %5467 }
 0x828   : > { %v1772_v19 = vsel %vm600_vm5, %v6347_v15, 0.0  ;;  %v6352_v16 = vpop.eup %5469 }
 0x829   : > { %1640 = vadd.xlane.f32.xlu1 %v1639_v10  ;;  %v1839_v43 = vsel %vm600_vm5, %v6352_v16, 0.0 }
 0x831   : > { %1773 = vadd.xlane.f32.xlu1 %v1772_v19 }
 0x842   : > { %v1765_v38 = vpop.xlane.xlu0 %1764 }
 0x843   : > { %v1767_v39 = vsub.f32 %v1757_v37, %v1765_v38  ;;  %v4989_v37 = vor.u32 %v5155_v26, %v4988_v31 }
 0x845   : > { %v1770_v9 = vmul.f32 1.442695, %v1767_v39 }
 0x846   : > { %1840 = vadd.xlane.f32.xlu0 %v1839_v43 }
 0x847   : > { %5471 = vpow2.f32 %v1770_v9 }
 0x84a   : > { %1850 = vrot.lane.b32.xlu1 %v1650_v0, %s5780_s12 }
 0x84d   : > { %v6357_v45 = vpop.eup %5471 }
 0x84e   : > { %v1775_v46 = vsel %vm600_vm5, %v6357_v45, 0.0 }
 0x84f   : > { %1776 = vadd.xlane.f32.xlu2 %v1775_v46 }
 0x85a   : > { %1901 = vrot.lane.b32.xlu0 %v6207_v56, %s5785_s24  ;;  %v5152_v56 = vld [vmem:[#allocation2 + $0xc] sm:$0xf] }
 0x85b   : > { %v4985_v57 = vor.u32 %v5152_v56, %v4982_v41 }
 0x862   : > { %2262 = vrot.lane.b32.xlu0 %v4989_v37, %s5783_s16 }
 0x867   : > { %1783 = vrot.lane.b32.xlu2 %v1650_v0, %s5777_s28 }
 0x86a   : > { %2264 = vrot.lane.b32.xlu0 %v4993_v53, %s5783_s16 }
 0x86c   : > { %v1706_v60 = vpop.xlane.xlu1 %1705 }
 0x86f   : > { %1903 = vrot.lane.b32.xlu2 %v6200_v40, %s5785_s24 }
 0x872   : > { %2258 = vrot.lane.b32.xlu0 %v4981_v22, %s5783_s16 }
 0x874   : > { %v1709_v58 = vpop.xlane.xlu2 %1708 }
 0x875   : > { %5473 = vrcp.f32 %v1709_v58 }
 0x876   : > { %5475 = vrcp.f32 %v1706_v60 }
 0x87a   : > { %2260 = vrot.lane.b32.xlu0 %v4985_v57, %s5783_s16  ;;  %v6387_v57 = vpop.f32.mrf.mxu2 }
 0x87b   : > { %v5474_v3 = vpop.eup %5473 }
 0x87c   : > { %v5476_v61 = vpop.eup %5475  ;;  %v1713_v63 = vmul.f32 %v5474_v3, %v6331_v49 }
 0x87d   : > { %v1712_v1 = vmul.f32 %v5476_v61, %v6327_v25 }
 0x87f   : > { %v1714_v40 = vpack.c.bf16 %v1713_v63, %v1712_v1 }
 0x882   : > { %v6389_v58 = vpop.f32.mrf.mxu2 }
 0x88c   : > { %v1644_v7 = vpop.xlane.xlu2 %1643 }
 0x88d   : > { %5477 = vrcp.f32 %v1644_v7 }
 0x88e   : > { %v1717_v0 = vpop.permute.xlu0 %1716 }
 0x88f   : > { %1729 = vmatpush.bf16.msrb.mxu0 %v1717_v0 }
 0x892   : > { %4962 = vmatmul.msk.bf16.vlgmr.msrb.gmra.mxu0 %vm600_vm5, %v1714_v40 }
 0x893   : > { %v5478_v11 = vpop.eup %5477 }
 0x894   : > { %v1844_v6 = vpop.xlane.xlu1 %1843  ;;  %v1648_v10 = vmul.f32 %v5478_v11, %v6335_v23 }
 0x89c   : > { %v1641_v55 = vpop.xlane.xlu1 %1640 }
 0x89d   : > { %5479 = vrcp.f32 %v1641_v55 }
 0x89e   : > { %5481 = vrcp.f32 %v1844_v6 }
 0x8a3   : > { %v5480_v14 = vpop.eup %5479 }
 0x8a4   : > { %v1647_v19 = vmul.f32 %v5480_v14, %v5466_v5  ;;  %v1774_v49 = vpop.xlane.xlu1 %1773  ;;  %v5482_v35 = vpop.eup %5481 }
 0x8a5   : > { %v1848_v39 = vmul.f32 %v5482_v35, %v6342_v8 }
 0x8a6   : > { %v1649_v59 = vpack.c.bf16 %v1648_v10, %v1647_v19 }
 0x8a8   : > { %4960 = vmatmul.msk.bf16.vlgmr.msrb.gmra.mxu2 %vm600_vm5, %v1649_v59 }
 0x8b9   : > { %v1841_v25 = vpop.xlane.xlu0 %1840 }
 0x8ba   : > { %5483 = vrcp.f32 %v1841_v25 }
 0x8bb   : > { %5485 = vrcp.f32 %v1774_v49 }
 0x8bc   : > { %v1851_v21 = vpop.permute.xlu1 %1850 }
 0x8bd   : > { %1863 = vmatpush.bf16.msra.mxu0 %v1851_v21 }
 0x8c0   : > { %v5484_v38 = vpop.eup %5483 }
 0x8c1   : > { %v1847_v9 = vmul.f32 %v5484_v38, %v6352_v16  ;;  %v5486_v23 = vpop.eup %5485 }
 0x8c2   : > { %v1777_v43 = vpop.xlane.xlu2 %1776  ;;  %v1780_v31 = vmul.f32 %v5486_v23, %v6347_v15  ;;  %v2237_v15 = vpack.c.bf16 %v6076_v17, %v6074_v34 }
 0x8c3   : > { %v1849_v46 = vpack.c.bf16 %v1848_v39, %v1847_v9  ;;  %5487 = vrcp.f32 %v1777_v43 }
 0x8c5   : > { %4966 = vmatmul.msk.bf16.vlgmr.msra.gmra.mxu0 %vm600_vm5, %v1849_v46 }
 0x8c9   : > { %v5488_v5 = vpop.eup %5487 }
 0x8ca   : > { %v1781_v26 = vmul.f32 %v5488_v5, %v6357_v45  ;;  %v1784_v37 = vpop.permute.xlu2 %1783 }
 0x8cb   : > { %1796 = vmatpush.bf16.msra.mxu2 %v1784_v37 }
 0x8cc   : > { %v1782_v47 = vpack.c.bf16 %v1781_v26, %v1780_v31  ;;  %v1902_v50 = vpop.permute.xlu0 %1901 }
 0x8ce   : > { %4964 = vmatmul.msk.bf16.vlgmr.msra.gmra.mxu2 %vm600_vm5, %v1782_v47 }
 0x8d2   : > { %v1904_v60 = vpop.permute.xlu2 %1903 }
 0x8d3   : > { %1919 = vmatpush.bf16.msrb.mxu1 %v1904_v60 }
 0x8d4   : > { %v2263_v8 = vpop.permute.xlu0 %2262 }
 0x8d7   : > { %1920 = vmatpush.bf16.msrb.mxu1 %v1902_v50 }
 0x8dc   : > { %v2265_v53 = vpop.permute.xlu0 %2264 }
 0x8dd   : > { %v2268_v16 = vsel %vm1395_vm12, %v2263_v8, %v2265_v53 }
 0x8de   : > { %2286 = vmatpush.bf16.msrb.mxu0 %v2268_v16  ;;  %v2238_v16 = vld [vmem:[%s7472_s8 + $0x3] sm:$0x3] }
 0x8e4   : > { %v2259_v28 = vpop.permute.xlu0 %2258 }
 0x8ec   : > { %v2261_v54 = vpop.permute.xlu0 %2260 }
 0x8ed   : > { %v2267_v22 = vsel %vm1395_vm12, %v2259_v28, %v2261_v54  ;;  %v2240_v28 = vperm.slane %v2238_v16, 0 }
 0x8ee   : > { %2287 = vmatpush.bf16.msrb.mxu0 %v2267_v22 }
 0x8ef   : > { %2271 = vrot.lane.b32.xlu0 %v2240_v28, %s5783_s16 }
 0x8f1   : > { %4994 = vmatmul.msk.bf16.vlgmr.msrb.gmra.mxu0 %vm900_vm7, %v2237_v15 }
 0x90f   : > { %v1731_v45 = vpop.f32.mrf.mxu0 }
 0x917   : > { %v1733_v56 = vpop.f32.mrf.mxu0 }
 0x918   : > { %v5298_v41 = vpack.i.bf16 %v1733_v56, %v1731_v45 }
 0x91a   : > { %5299 = vrot.lane.b32.xlu2 %v5298_v41, %s5770_s21 }
 0x92b   : > { %v1663_v3 = vpop.f32.mrf.mxu2 }
 0x933   : > { %v1665_v63 = vpop.f32.mrf.mxu2 }
 0x942   : > { %v1865_v61 = vpop.f32.mrf.mxu0 }
 0x94a   : > { %v1867_v1 = vpop.f32.mrf.mxu0 }
 0x94b   : > { %v5308_v0 = vpack.i.bf16 %v1867_v1, %v1865_v61  ;;  %v2241_v61 = vperm.slane %v2238_v16, 1  ;;  %v5151_v1 = vld [vmem:[#allocation2 + $0x64] sm:$0xf0]  ;;  %v1927_v16 = vld [vmem:[%s7473_s9 + $0x4] sm:$0x3] }
 0x94d   : > { %5309 = vrot.lane.b32.xlu2 %v5308_v0, %s7490_s13 }
 0x951   : > { %v1798_v40 = vpop.f32.mrf.mxu2 }
 0x959   : > { %v1800_v6 = vpop.f32.mrf.mxu2 }
 0x95a   : > { %v5303_v7 = vpack.i.bf16 %v1800_v6, %v1798_v40 }
 0x95c   : > { %5304 = vrot.lane.b32.xlu1 %v5303_v7, %s7491_s18 }
 0x964   : > { %1907 = vrot.lane.b32.xlu1 %v6319_v30, %s5783_s16 }
 0x96e   : > { %v2289_v0 = vpop.f32.mrf.mxu0 }
 0x974   : > { %v5300_v55 = vpop.permute.xlu2 %5299 }
 0x975   : > { %v5302_v11 = vunpack.i.h.bf16 %v5300_v55  ;;  %v5301_v14 = vunpack.i.l.bf16 %v5300_v55  ;;  %v4970_v55 = vld [vmem:[#allocation2 + $0x8] sm:$0xf] }
 0x977   : > { %v1895_v25 = vsel %vm597_vm4, %v1665_v63, %v5302_v11  ;;  %v1894_v21 = vsel %vm597_vm4, %v1663_v3, %v5301_v14  ;;  %v4974_v63 = vld [vmem:[#allocation2 + $0x48] sm:$0xf] }
 0x978   : > { %v4975_v40 = vor.u32 %v5151_v1, %v4974_v63  ;;  %v5150_v11 = vld [vmem:[#allocation2 + $0x24] sm:$0xf0]  ;;  %v1977_v63 = vperm.slane %v1927_v16, 1 }
 0x979   : > { %v4971_v14 = vor.u32 %v5150_v11, %v4970_v55 }
 0x97a   : > { %2017 = vmatpush.bf16.msrb.mxu2 %v4975_v40 }
 0x97e   : > { %2018 = vmatpush.bf16.msrb.mxu2 %v4971_v14 }
 0x9a7   : > { %v5310_v10 = vpop.permute.xlu2 %5309 }
 0x9a8   : > { %v5312_v35 = vunpack.i.h.bf16 %v5310_v10  ;;  %v5311_v38 = vunpack.i.l.bf16 %v5310_v10 }
 0x9ce   : > { %v5305_v19 = vpop.permute.xlu1 %5304 }
 0x9cf   : > { %v5307_v59 = vunpack.i.h.bf16 %v5305_v19  ;;  %v5306_v49 = vunpack.i.l.bf16 %v5305_v19  ;;  %v2272_v19 = vpop.permute.xlu0 %2271 }
 0x9d1   : > { %v1896_v39 = vsel %vm600_vm5, %v1894_v21, %v5306_v49  ;;  %v1897_v9 = vsel %vm600_vm5, %v1895_v25, %v5307_v59  ;;  %v2291_v25 = vpop.f32.mrf.mxu0 }
 0x9d2   : > { %v1898_v43 = vsel %vm613_vm6, %v1896_v39, %v5311_v38  ;;  %v1899_v30 = vsel %vm613_vm6, %v1897_v9, %v5312_v35 }
 0x9d3   : > { %v1900_v46 = vpack.c.bf16 %v1899_v30, %v1898_v43 }
 0x9d5   : > { %4967 = vmatmul.msk.bf16.vlgmr.msrb.gmra.mxu1 %vm900_vm7, %v1900_v46 }
 0x9d6   : > { %v1908_v23 = vpop.permute.xlu1 %1907 }
 0xa52   : > { %v1922_v5 = vpop.f32.mrf.mxu1 }
 0xa53   : > { %v1923_v31 = vadd.f32 %v1922_v5, %v1908_v23  ;;  %v1984_v5 = vld [vmem:[%s7472_s8 + $0x2] sm:$0x3] }
 0xa55   : > { %v1928_v26 = vadd.f32 %v1923_v31, %v6129_v18 }
 0xa57   : > { %v1930_v37 = vsel %vm900_vm7, %v1928_v26, 0.0 }
 0xa58   : > { %1931 = vadd.xlane.f32.xlu2 %v1930_v37  ;;  %v1988_v37 = vperm.slane %v1984_v5, 0 }
 0xa5a   : > { %v1924_v47 = vpop.f32.mrf.mxu1 }
 0xa5b   : > { %v1925_v50 = vadd.f32 %v1924_v47, %v1908_v23 }
 0xa5d   : > { %v1929_v8 = vadd.f32 %v1925_v50, %v6131_v44 }
 0xa5f   : > { %v1933_v53 = vsel %vm900_vm7, %v1929_v8, 0.0 }
 0xa60   : > { %1934 = vadd.xlane.f32.xlu1 %v1933_v53 }
 0xacb   : > { %v1932_v54 = vpop.xlane.xlu2 %1931 }
 0xacc   : > { %v1936_v18 = vmul.f32 %v1932_v54, %v6223_v2 }
 0xace   : > { %v6411_v22 = vsub.f32 %v1928_v26, %v1936_v18 }
 0xad0   : > { %v1940_v15 = vmul.f32 %v6411_v22, %v6411_v22 }
 0xad2   : > { %v1942_v44 = vsel %vm900_vm7, %v1940_v15, 0.0  ;;  %v1989_v15 = vperm.slane %v1984_v5, 1 }
 0xad3   : > { %v1935_v45 = vpop.xlane.xlu1 %1934  ;;  %1943 = vadd.xlane.f32.xlu2 %v1942_v44  ;;  %v1974_v44 = vperm.slane %v1927_v16, 0 }
 0xad4   : > { %v1937_v56 = vmul.f32 %v1935_v45, %v6223_v2 }
 0xad6   : > { %v6417_v41 = vsub.f32 %v1929_v8, %v1937_v56 }
 0xad8   : > { %v1941_v60 = vmul.f32 %v6417_v41, %v6417_v41 }
 0xada   : > { %v1945_v3 = vsel %vm900_vm7, %v1941_v60, 0.0 }
 0xadb   : > { %1946 = vadd.xlane.f32.xlu1 %v1945_v3 }
 0xaeb   : > { %2273 = vrot.lane.b32.xlu2 %v2241_v61, %s5783_s16 }
 0xb46   : > { %v1944_v6 = vpop.xlane.xlu2 %1943 }
 0xb47   : > { %v1948_v7 = vmul.f32 %v1944_v6, %v6223_v2 }
 0xb49   : > { %v1950_v10 = vadd.f32 1e-05, %v1948_v7 }
 0xb4b   : > { %5489 = vrsqrt.f32 %v1950_v10  ;;  %vm1958_vm14 = vweird.f32 %v1950_v10 }
 0xb4e   : > { %v1947_v59 = vpop.xlane.xlu1 %1946  ;;  %v2274_v49 = vpop.permute.xlu2 %2273 }
 0xb4f   : > { %v1949_v21 = vmul.f32 %v1947_v59, %v6223_v2  ;;  %v2275_v35 = vsel %vm1395_vm12, %v2272_v19, %v2274_v49 }
 0xb50   : > { %v2290_v38 = vadd.f32 %v2289_v0, %v2275_v35  ;;  %v2292_v39 = vadd.f32 %v2291_v25, %v2275_v35 }
 0xb51   : > { %v5490_v9 = vpop.eup %5489  ;;  %v1951_v43 = vadd.f32 1e-05, %v1949_v21 }
 0xb52   : > { %v1953_v30 = vmul.f32 %v5490_v9, %v1950_v10  ;;  %v6426_v46 = vpack.c.bf16 %v2292_v39, %v2290_v38  ;;  %vm1959_vm10 = vweird.f32 %v5490_v9 }
 0xb53   : > { %5491 = vrsqrt.f32 %v1951_v43  ;;  %vm1960_vm15 = vmor %vm1958_vm14, %vm1959_vm10  ;;  %vm1968_vm2 = vweird.f32 %v1951_v43 }
 0xb54   : > { %v1954_v23 = vmul.f32 %v5490_v9, %v1953_v30  ;;  %2433 = vrot.lane.b32.xlu2 %v6426_v46, %s5777_s28  ;;  %2435 = vrot.lane.b32.xlu0 %v6426_v46, %s7492_s29 }
 0xb55   : > { %2301 = vrot.lane.b32.xlu1 %v6426_v46, %s5776_s27 }
 0xb56   : > { %v1955_v31 = vmul.f32 0.5, %v1954_v23 }
 0xb58   : > { %v1956_v26 = vsub.f32 1.5, %v1955_v31 }
 0xb59   : > { %v5492_v47 = vpop.eup %5491 }
 0xb5a   : > { %v1957_v50 = vmul.f32 %v5490_v9, %v1956_v26  ;;  %v1963_v8 = vmul.f32 %v5492_v47, %v1951_v43  ;;  %vm1969_vm1 = vweird.f32 %v5492_v47 }
 0xb5b   : > { %vm1970_vm3 = vmor %vm1968_vm2, %vm1969_vm1 }
 0xb5c   : > { %v1964_v53 = vmul.f32 %v5492_v47, %v1963_v8  ;;  %2048 = vrot.lane.b32.xlu2 %v6293_v36, %s5776_s27  ;;  %2002 = vrot.lane.b32.xlu0 %v1988_v37, %s5785_s24  ;;  %v1961_v28 = vsel %vm1960_vm15, %v5490_v9, %v1957_v50 }
 0xb5d   : > { %2052 = vrot.lane.b32.xlu1 %v6271_v20, %s5776_s27  ;;  %v1972_v45 = vmul.f32 %v1961_v28, %v6411_v22 }
 0xb5e   : > { %v1965_v54 = vmul.f32 0.5, %v1964_v53 }
 0xb5f   : > { %v1975_v3 = vmul.f32 %v1974_v44, %v1972_v45 }
 0xb60   : > { %v1966_v18 = vsub.f32 1.5, %v1965_v54 }
 0xb61   : > { %v6452_v0 = vadd.f32 %v1977_v63, %v1975_v3 }
 0xb62   : > { %v1967_v56 = vmul.f32 %v5492_v47, %v1966_v18 }
 0xb64   : > { %v1971_v60 = vsel %vm1970_vm3, %v5492_v47, %v1967_v56  ;;  %2366 = vrot.lane.b32.xlu2 %v6426_v46, %s5774_s20  ;;  %2004 = vrot.lane.b32.xlu0 %v1989_v15, %s5785_s24 }
 0xb65   : > { %v1973_v61 = vmul.f32 %v1971_v60, %v6417_v41  ;;  %2046 = vrot.lane.b32.xlu1 %v6305_v42, %s5776_s27 }
 0xb67   : > { %v1976_v1 = vmul.f32 %v1974_v44, %v1973_v61 }
 0xb69   : > { %v6454_v22 = vadd.f32 %v1977_v63, %v1976_v1 }
 0xb6b   : > { %v1986_v40 = vpack.c.bf16 %v6454_v22, %v6452_v0 }
 0xb6c   : > { %2050 = vrot.lane.b32.xlu0 %v6282_v29, %s5776_s27 }
 0xb6d   : > { %2502 = vrot.lane.b32.xlu1 %v6426_v46, %s7493_s25  ;;  %4976 = vmatmul.msk.bf16.vlgmr.msrb.gmra.mxu2 %vm900_vm7, %v1986_v40 }
 0xb74   : > { %2368 = vrot.lane.b32.xlu0 %v6426_v46, %s7494_s26 }
 0xb7c   : > { %2500 = vrot.lane.b32.xlu0 %v6426_v46, %s5780_s12 }
 0xbae   : > { %v2434_v19 = vpop.permute.xlu2 %2433 }
 0xbb6   : > { %v2049_v49 = vpop.permute.xlu2 %2048 }
 0xbbe   : > { %v2367_v1 = vpop.permute.xlu2 %2366 }
 0xbc6   : > { %v2436_v41 = vpop.permute.xlu0 %2435 }
 0xbc7   : > { %v2441_v6 = vsel %vm597_vm4, %v2436_v41, 0  ;;  %v2302_v7 = vpop.permute.xlu1 %2301 }
 0xbc8   : > { %v2307_v55 = vsel %vm597_vm4, %v2302_v7, 0 }
 0xbc9   : > { %2316 = vmatpush.bf16.xpose.msra.mxu1 %v2307_v55 }
 0xbce   : > { %v2003_v11 = vpop.permute.xlu0 %2002 }
 0xbcf   : > { %v2053_v14 = vpop.permute.xlu1 %2052 }
 0xbd0   : > { %4995 = vmatmul.msk.bf16.vlgmr.msra.gmra.mxu1 %vm597_vm4, %v6426_v46  ;;  %2068 = vmatpush.bf16.msrb.mxu3 %v2053_v14 }
 0xbd1   : > { %2450 = vmatpush.bf16.xpose.msrb.mxu1 %v2441_v6 }
 0xbd6   : > { %v2005_v10 = vpop.permute.xlu0 %2004 }
 0xbd7   : > { %v2047_v25 = vpop.permute.xlu1 %2046  ;;  %v2006_v38 = vsel %vm900_vm7, %v2003_v11, %v2005_v10 }
 0xbde   : > { %v2051_v59 = vpop.permute.xlu0 %2050 }
 0xbdf   : > { %2069 = vmatpush.bf16.msrb.mxu3 %v2051_v59  ;;  %v2503_v3 = vpop.permute.xlu1 %2502  ;;  %v875_v59 = vadd.f32 %v6072_v33, %v6147_v13 }
 0xbe0   : > { %4999 = vmatmul.msk.bf16.vlgmr.msrb.gmra.mxu1 %vm597_vm4, %v2434_v19  ;;  %v2508_v63 = vsel %vm597_vm4, %v2503_v3, 0 }
 0xbe3   : > { %2070 = vmatpush.bf16.msrb.mxu3 %v2049_v49  ;;  %v5685_v49 = vld [vmem:[%s7474_s10 + $0x8] sm:$0xff] }
 0xbe6   : > { %v2369_v21 = vpop.permute.xlu0 %2368 }
 0xbe7   : > { %v2374_v35 = vsel %vm597_vm4, %v2369_v21, 0  ;;  %2071 = vmatpush.bf16.msrb.mxu3 %v2047_v25  ;;  %v2697_v25 = vrot.slane %v6070_v32, 7 }
 0xbe9   : > { %v2701_v13 = vsel %vm493_vm0, 0.0, %v2697_v25 }
 0xbeb   : > { %2383 = vmatpush.bf16.xpose.msra.mxu3 %v2374_v35 }
 0xbee   : > { %v2501_v40 = vpop.permute.xlu0 %2500 }
 0xbf0   : > { %v2020_v39 = vpop.f32.mrf.mxu2 }
 0xbf1   : > { %v2021_v9 = vadd.f32 %v2020_v39, %v2006_v38 }
 0xbf3   : > { %v2025_v43 = vmul.f32 %v2021_v9, %v2021_v9 }
 0xbf5   : > { %v2027_v30 = vmul.f32 %v2025_v43, %v2021_v9 }
 0xbf7   : > { %v2029_v23 = vmul.f32 0.044715, %v2027_v30 }
 0xbf8   : > { %v2022_v5 = vpop.f32.mrf.mxu2 }
 0xbf9   : > { %v2031_v31 = vadd.f32 %v2029_v23, %v2021_v9  ;;  %v2023_v26 = vadd.f32 %v2022_v5, %v2006_v38 }
 0xbfb   : > { %v2033_v37 = vmul.f32 0.7978846, %v2031_v31  ;;  %v2026_v47 = vmul.f32 %v2023_v26, %v2023_v26 }
 0xbfd   : > { %v2028_v50 = vmul.f32 %v2026_v47, %v2023_v26  ;;  %5493 = vtanh.f32 %v2033_v37 }
 0xbff   : > { %v2030_v8 = vmul.f32 0.044715, %v2028_v50 }
 0xc01   : > { %v2032_v53 = vadd.f32 %v2030_v8, %v2023_v26 }
 0xc03   : > { %v2034_v16 = vmul.f32 0.7978846, %v2032_v53  ;;  %v5494_v28 = vpop.eup %5493 }
 0xc04   : > { %v2037_v54 = vadd.f32 1.0, %v5494_v28 }
 0xc05   : > { %5495 = vtanh.f32 %v2034_v16 }
 0xc06   : > { %v2039_v15 = vmul.f32 0.5, %v2037_v54 }
 0xc08   : > { %v2041_v56 = vmul.f32 %v2039_v15, %v2021_v9 }
 0xc0b   : > { %v5496_v18 = vpop.eup %5495 }
 0xc0c   : > { %v2038_v44 = vadd.f32 1.0, %v5496_v18 }
 0xc0e   : > { %v2040_v45 = vmul.f32 0.5, %v2038_v44 }
 0xc10   : > { %v2042_v60 = vmul.f32 %v2040_v45, %v2023_v26 }
 0xc12   : > { %v2043_v61 = vpack.c.bf16 %v2042_v60, %v2041_v56 }
 0xc14   : > { %4977 = vmatmul.msk.bf16.vlgmr.msrb.gmra.mxu3 %vm1395_vm12, %v2043_v61 }
 0xc15   : > { %2517 = vmatpush.bf16.xpose.msrb.mxu3 %v2508_v63 }
 0xc24   : > { %4997 = vmatmul.msk.bf16.vlgmr.msra.gmra.mxu3 %vm597_vm4, %v2367_v1 }
 0xc34   : > { %5001 = vmatmul.msk.bf16.vlgmr.msrb.gmra.mxu3 %vm597_vm4, %v2501_v40 }
 0xc4d   : > { %v2318_v41 = vpop.f32.mrf.mxu1 }
 0xc4e   : > { %v2323_v6 = vsel %vm600_vm5, %v2318_v41, -inf }
 0xc4f   : > { %2324 = vmax.xlane.f32.xlu2 %v2323_v6 }
 0xc55   : > { %v2320_v7 = vpop.f32.mrf.mxu1 }
 0xc56   : > { %v2326_v55 = vsel %vm600_vm5, %v2320_v7, -inf }
 0xc57   : > { %2327 = vmax.xlane.f32.xlu1 %v2326_v55 }
 0xc5d   : > { %v2452_v11 = vpop.f32.mrf.mxu1 }
 0xc5e   : > { %v2457_v14 = vsel %vm600_vm5, %v2452_v11, -inf }
 0xc5f   : > { %2458 = vmax.xlane.f32.xlu0 %v2457_v14 }
 0xc65   : > { %v2454_v10 = vpop.f32.mrf.mxu1 }
 0xc66   : > { %v2460_v19 = vsel %vm600_vm5, %v2454_v10, -inf }
 0xc67   : > { %2461 = vmax.xlane.f32.xlu2 %v2460_v19 }
 0xc70   : > { %2730 = vrot.lane.b32.xlu1 %v6161_v12, %s5783_s16  ;;  %v6497_v12 = vadd.f32 %v5685_v49, %v875_v59 }
 0xc72   : > { %v2698_v21 = vrot.slane %v6497_v12, 7  ;;  %v5318_v47 = vpack.i.bf16 %v6497_v12, %v6070_v32 }
 0xc73   : > { %2480 = vrot.lane.b32.xlu0 %v6426_v46, %s7495_s14  ;;  %s7496_s14 = smov 56  }
 0xc74   : > { %v2699_v33 = vsel %vm493_vm0, %v2697_v25, %v2698_v21 }
 0xc78   : > { %2726 = vrot.lane.b32.xlu1 %v6167_v24, %s5783_s16  ;;  %v5313_v24 = vpack.i.bf16 %v2699_v33, %v2701_v13 }
 0xc7f   : > { %2346 = vrot.lane.b32.xlu2 %v6426_v46, %s5783_s16 }
 0xc80   : > { %2724 = vrot.lane.b32.xlu1 %v6170_v27, %s5783_s16 }
 0xc87   : > { %2728 = vrot.lane.b32.xlu2 %v6164_v51, %s5783_s16 }
 0xc88   : > { %2722 = vrot.lane.b32.xlu1 %v6173_v48, %s5783_s16 }
 0xc90   : > { %5314 = vrot.lane.b32.xlu1 %v5313_v24, %s5785_s24 }
 0xc97   : > { %v6508_v27 = vpop.f32.mrf.mxu3 }
 0xc9f   : > { %v6510_v35 = vpop.f32.mrf.mxu3 }
 0xca7   : > { %v6512_v38 = vpop.f32.mrf.mxu3 }
 0xca8   : > { %v2390_v61 = vsel %vm600_vm5, %v6512_v38, -inf }
 0xcaf   : > { %v6514_v39 = vpop.f32.mrf.mxu3 }
 0xcb0   : > { %v2393_v1 = vsel %vm600_vm5, %v6514_v39, -inf }
 0xcb7   : > { %v2519_v9 = vpop.f32.mrf.mxu3 }
 0xcb8   : > { %v2524_v51 = vsel %vm600_vm5, %v2519_v9, -inf }
 0xcb9   : > { %2525 = vmax.xlane.f32.xlu2 %v2524_v51 }
 0xcbf   : > { %v6528_v40 = vpop.f32.mrf.mxu3 }
 0xcc2   : > { %v2325_v48 = vpop.xlane.xlu2 %2324 }
 0xcc3   : > { %v2329_v43 = vsub.f32 %v2318_v41, %v2325_v48  ;;  %v2527_v41 = vsel %vm600_vm5, %v6528_v40, -inf }
 0xcc5   : > { %v2331_v30 = vmul.f32 1.442695, %v2329_v43 }
 0xcc7   : > { %5497 = vpow2.f32 %v2331_v30 }
 0xcca   : > { %v2328_v23 = vpop.xlane.xlu1 %2327 }
 0xccb   : > { %v2330_v5 = vsub.f32 %v2320_v7, %v2328_v23 }
 0xccd   : > { %v5498_v31 = vpop.eup %5497  ;;  %v2333_v26 = vmul.f32 1.442695, %v2330_v5 }
 0xcce   : > { %v2335_v37 = vsel %vm600_vm5, %v5498_v31, 0.0 }
 0xccf   : > { %5499 = vpow2.f32 %v2333_v26  ;;  %2336 = vadd.xlane.f32.xlu1 %v2335_v37 }
 0xcd1   : > { %5319 = vrot.lane.b32.xlu2 %v5318_v47, %s5783_s16 }
 0xcd2   : > { %v2459_v50 = vpop.xlane.xlu0 %2458 }
 0xcd3   : > { %v2463_v8 = vsub.f32 %v2452_v11, %v2459_v50 }
 0xcd5   : > { %v5500_v53 = vpop.eup %5499  ;;  %v2465_v16 = vmul.f32 1.442695, %v2463_v8 }
 0xcd6   : > { %v2338_v28 = vsel %vm600_vm5, %v5500_v53, 0.0 }
 0xcd7   : > { %5501 = vpow2.f32 %v2465_v16  ;;  %2339 = vadd.xlane.f32.xlu0 %v2338_v28 }
 0xcda   : > { %v2462_v54 = vpop.xlane.xlu2 %2461 }
 0xcdb   : > { %v2464_v18 = vsub.f32 %v2454_v10, %v2462_v54 }
 0xcdd   : > { %v5502_v15 = vpop.eup %5501  ;;  %v2467_v44 = vmul.f32 1.442695, %v2464_v18 }
 0xcde   : > { %v2469_v45 = vsel %vm600_vm5, %v5502_v15, 0.0 }
 0xcdf   : > { %5503 = vpow2.f32 %v2467_v44  ;;  %2470 = vadd.xlane.f32.xlu1 %v2469_v45  ;;  %v2692_v44 = vrot.slane %v6497_v12, 6 }
 0xce2   : > { %v2347_v56 = vpop.permute.xlu2 %2346  ;;  %v2731_v6 = vpop.permute.xlu1 %2730 }
 0xce3   : > { %2359 = vmatpush.bf16.msra.mxu2 %v2347_v56 }
 0xce5   : > { %v5504_v60 = vpop.eup %5503  ;;  %v2481_v3 = vpop.permute.xlu0 %2480 }
 0xce6   : > { %v2472_v63 = vsel %vm600_vm5, %v5504_v60, 0.0 }
 0xce7   : > { %2493 = vmatpush.bf16.msrb.mxu2 %v2481_v3  ;;  %2391 = vmax.xlane.f32.xlu1 %v2390_v61 }
 0xce8   : > { %2473 = vadd.xlane.f32.xlu0 %v2472_v63 }
 0xcea   : > { %v2727_v7 = vpop.permute.xlu1 %2726  ;;  %v2729_v55 = vpop.permute.xlu2 %2728 }
 0xcf0   : > { %2394 = vmax.xlane.f32.xlu0 %v2393_v1 }
 0xcf2   : > { %v2725_v11 = vpop.permute.xlu1 %2724 }
 0xcf8   : > { %2528 = vmax.xlane.f32.xlu0 %v2527_v41 }
 0xcfa   : > { %v2723_v59 = vpop.permute.xlu1 %2722 }
 0xd00   : > { %2720 = vrot.lane.b32.xlu1 %v6176_v52, %s5783_s16 }
 0xd02   : > { %v5315_v21 = vpop.permute.xlu1 %5314 }
 0xd03   : > { %v5317_v45 = vunpack.i.h.bf16 %v5315_v21  ;;  %v5316_v56 = vunpack.i.l.bf16 %v5315_v21  ;;  %v5157_v21 = vld [vmem:[#allocation2 + $0x68] sm:$0xf0] }
 0xd2c   : > { %v2526_v14 = vpop.xlane.xlu2 %2525 }
 0xd2d   : > { %v2530_v10 = vsub.f32 %v2519_v9, %v2526_v14 }
 0xd2f   : > { %v2532_v19 = vmul.f32 1.442695, %v2530_v10 }
 0xd31   : > { %5505 = vpow2.f32 %v2532_v19 }
 0xd37   : > { %v6534_v49 = vpop.eup %5505 }
 0xd38   : > { %v2536_v25 = vsel %vm600_vm5, %v6534_v49, 0.0 }
 0xd39   : > { %2537 = vadd.xlane.f32.xlu2 %v2536_v25  ;;  %v5009_v25 = vld [vmem:[#allocation2 + $0x4c] sm:$0xf] }
 0xd42   : > { %v2337_v33 = vpop.xlane.xlu1 %2336 }
 0xd43   : > { %5507 = vrcp.f32 %v2337_v33  ;;  %v6565_v33 = vor.u32 %v5157_v21, %v5009_v25 }
 0xd49   : > { %v5508_v52 = vpop.eup %5507 }
 0xd4a   : > { %v2340_v13 = vpop.xlane.xlu0 %2339  ;;  %v2343_v51 = vmul.f32 %v5508_v52, %v5498_v31 }
 0xd4b   : > { %5509 = vrcp.f32 %v2340_v13 }
 0xd51   : > { %v5510_v24 = vpop.eup %5509 }
 0xd52   : > { %v2344_v48 = vmul.f32 %v5510_v24, %v5500_v53  ;;  %v2471_v43 = vpop.xlane.xlu1 %2470 }
 0xd53   : > { %5511 = vrcp.f32 %v2471_v43 }
 0xd54   : > { %v2345_v9 = vpack.c.bf16 %v2344_v48, %v2343_v51  ;;  %v5005_v51 = vld [vmem:[#allocation2 + $0xc] sm:$0xf] }
 0xd55   : > { %v5156_v48 = vld [vmem:[#allocation2 + $0x28] sm:$0xf0] }
 0xd56   : > { %4996 = vmatmul.msk.bf16.vlgmr.msra.gmra.mxu2 %vm600_vm5, %v2345_v9  ;;  %v6570_v43 = vor.u32 %v5156_v48, %v5005_v51 }
 0xd57   : > { %2746 = vmatpush.bf16.msra.mxu2 %v2731_v6 }
 0xd59   : > { %v5512_v37 = vpop.eup %5511 }
 0xd5a   : > { %v2392_v23 = vpop.xlane.xlu1 %2391  ;;  %v2477_v50 = vmul.f32 %v5512_v37, %v5502_v15  ;;  %v5320_v15 = vpop.permute.xlu2 %5319 }
 0xd5b   : > { %v2474_v30 = vpop.xlane.xlu0 %2473  ;;  %2747 = vmatpush.bf16.msra.mxu2 %v2729_v55  ;;  %v2396_v5 = vsub.f32 %v6512_v38, %v2392_v23  ;;  %v6546_v38 = vld [vmem:[%s7472_s8 + $0x4] ss:$0 sm:$0xff]  ;;  %v5322_v3 = vunpack.i.h.bf16 %v5320_v15  ;;  %v5321_v61 = vunpack.i.l.bf16 %v5320_v15 }
 0xd5c   : > { %5513 = vrcp.f32 %v2474_v30  ;;  %2738 = vrot.lane.b32.xlu2 %v6546_v38, %s5783_s16 }
 0xd5d   : > { %v2398_v26 = vmul.f32 1.442695, %v2396_v5 }
 0xd5f   : > { %5515 = vpow2.f32 %v2398_v26  ;;  %2748 = vmatpush.bf16.msra.mxu2 %v2727_v7 }
 0xd62   : > { %v5514_v47 = vpop.eup %5513 }
 0xd63   : > { %v2478_v31 = vmul.f32 %v5514_v47, %v5504_v60  ;;  %v2395_v8 = vpop.xlane.xlu0 %2394  ;;  %2749 = vmatpush.bf16.msra.mxu2 %v2725_v11 }
 0xd64   : > { %v2397_v53 = vsub.f32 %v6514_v39, %v2395_v8  ;;  %v2691_v39 = vrot.slane %v6070_v32, 6 }
 0xd65   : > { %v2479_v16 = vpack.c.bf16 %v2478_v31, %v2477_v50  ;;  %v5516_v28 = vpop.eup %5515 }
 0xd66   : > { %v2400_v54 = vmul.f32 1.442695, %v2397_v53  ;;  %v2402_v18 = vsel %vm600_vm5, %v5516_v28, 0.0  ;;  %v2693_v1 = vsel %vm679_vm11, %v2691_v39, %v2692_v44  ;;  %v2696_v41 = vsel %vm679_vm11, 0.0, %v2691_v39 }
 0xd67   : > { %5000 = vmatmul.msk.bf16.vlgmr.msrb.gmra.mxu2 %vm600_vm5, %v2479_v16  ;;  %2403 = vadd.xlane.f32.xlu0 %v2402_v18  ;;  %v2716_v6 = vsel %vm900_vm7, %v2693_v1, %v5317_v45  ;;  %v2715_v7 = vsel %vm900_vm7, %v2696_v41, %v5316_v56 }
 0xd68   : > { %5517 = vpow2.f32 %v2400_v54  ;;  %2750 = vmatpush.bf16.msra.mxu2 %v2723_v59  ;;  %v2717_v55 = vsel %vm1395_vm12, %v2715_v7, %v5321_v61  ;;  %v2718_v11 = vsel %vm1395_vm12, %v2716_v6, %v5322_v3  ;;  %v5686_v6 = vld [vmem:[%s7472_s8 + $0x1] ss:$0 sm:$0xff] }
 0xd69   : > { %v2719_v10 = vpack.c.bf16 %v2718_v11, %v2717_v55  ;;  %v2758_v55 = vpack.c.bf16 %v6497_v12, %v6070_v32 }
 0xd6b   : > { %v2529_v19 = vpop.xlane.xlu0 %2528 }
 0xd6c   : > { %v2531_v59 = vsub.f32 %v6528_v40, %v2529_v19 }
 0xd6e   : > { %v5518_v60 = vpop.eup %5517  ;;  %v2534_v13 = vmul.f32 1.442695, %v2531_v59 }
 0xd6f   : > { %v2405_v63 = vsel %vm600_vm5, %v5518_v60, 0.0 }
 0xd70   : > { %2406 = vadd.xlane.f32.xlu1 %v2405_v63  ;;  %5519 = vpow2.f32 %v2534_v13 }
 0xd72   : > { %v2721_v14 = vpop.permute.xlu1 %2720 }
 0xd73   : > { %2751 = vmatpush.bf16.msra.mxu2 %v2721_v14 }
 0xd76   : > { %v5520_v52 = vpop.eup %5519 }
 0xd77   : > { %5012 = vmatmul.msk.bf16.vlgmr.msra.gmra.mxu2 %vm1555_vm13, %v2719_v10  ;;  %v2539_v24 = vsel %vm600_vm5, %v5520_v52, 0.0 }
 0xd7b   : > { %2413 = vrot.lane.b32.xlu0 %v6426_v46, %s7496_s14 }
 0xd89   : > { %2547 = vrot.lane.b32.xlu1 %v6426_v46, %s7497_s30 }
 0xd91   : > { %2765 = vrot.lane.b32.xlu1 %v6565_v33, %s5783_s16 }
 0xda5   : > { %2540 = vadd.xlane.f32.xlu0 %v2539_v24 }
 0xdac   : > { %v2538_v53 = vpop.xlane.xlu2 %2537 }
 0xdb6   : > { %v2739_v18 = vpop.permute.xlu2 %2738 }
 0xdb9   : > { %2763 = vrot.lane.b32.xlu0 %v6570_v43, %s5783_s16 }
 0xdd9   : > { %v6574_v46 = vpop.f32.mrf.mxu2 }
 0xdda   : > { %v2404_v40 = vpop.xlane.xlu0 %2403 }
 0xde1   : > { %v6576_v9 = vpop.f32.mrf.mxu2 }
 0xde3   : > { %v2407_v30 = vpop.xlane.xlu1 %2406 }
 0xde4   : > { %5521 = vrcp.f32 %v2407_v30 }
 0xde5   : > { %5523 = vrcp.f32 %v2404_v40 }
 0xde6   : > { %5525 = vrcp.f32 %v2538_v53 }
 0xdea   : > { %v5522_v23 = vpop.eup %5521  ;;  %v2495_v5 = vpop.f32.mrf.mxu2 }
 0xdeb   : > { %v5524_v26 = vpop.eup %5523  ;;  %v2411_v37 = vmul.f32 %v5522_v23, %v5518_v60 }
 0xdec   : > { %v2410_v47 = vmul.f32 %v5524_v26, %v5516_v28  ;;  %v5526_v3 = vpop.eup %5525 }
 0xded   : > { %v2414_v50 = vpop.permute.xlu0 %2413  ;;  %v2544_v63 = vmul.f32 %v5526_v3, %v6534_v49 }
 0xdee   : > { %2426 = vmatpush.bf16.msra.mxu0 %v2414_v50  ;;  %v2412_v31 = vpack.c.bf16 %v2411_v37, %v2410_v47 }
 0xdf1   : > { %4998 = vmatmul.msk.bf16.vlgmr.msra.gmra.mxu0 %vm600_vm5, %v2412_v31 }
 0xdf2   : > { %v2497_v8 = vpop.f32.mrf.mxu2 }
 0xdf3   : > { %v5323_v60 = vpack.i.bf16 %v2497_v8, %v2495_v5 }
 0xdfa   : > { %v2753_v16 = vpop.f32.mrf.mxu2 }
 0xdfb   : > { %v2548_v54 = vpop.permute.xlu1 %2547  ;;  %v2754_v39 = vadd.f32 %v2753_v16, %v2739_v18 }
 0xdfc   : > { %2560 = vmatpush.bf16.msrb.mxu0 %v2548_v54 }
 0xe02   : > { %v2755_v15 = vpop.f32.mrf.mxu2 }
 0xe03   : > { %v2756_v44 = vadd.f32 %v2755_v15, %v2739_v18  ;;  %v2766_v28 = vpop.permute.xlu1 %2765  ;;  %v6621_v15 = vld [vmem:[%s7472_s8 + $0x5] ss:$0 sm:$0xff] }
 0xe04   : > { %2778 = vmatpush.bf16.msra.mxu3 %v2766_v28 }
 0xe05   : > { %v2793_v45 = vpack.c.bf16 %v2756_v44, %v2754_v39 }
 0xe07   : > { %2999 = vrot.lane.b32.xlu0 %v2793_v45, %s5780_s12  ;;  %2860 = vrot.lane.b32.xlu2 %v2793_v45, %s5774_s20 }
 0xe08   : > { %2862 = vrot.lane.b32.xlu1 %v2793_v45, %s7494_s26 }
 0xe0f   : > { %2930 = vrot.lane.b32.xlu0 %v2793_v45, %s5777_s28  ;;  %3001 = vrot.lane.b32.xlu2 %v2793_v45, %s7493_s25 }
 0xe10   : > { %2795 = vrot.lane.b32.xlu1 %v2793_v45, %s5776_s27 }
 0xe17   : > { %2612 = vrot.lane.b32.xlu2 %v6565_v33, %s5776_s27 }
 0xe18   : > { %2932 = vrot.lane.b32.xlu1 %v2793_v45, %s7492_s29  ;;  %v2541_v56 = vpop.xlane.xlu0 %2540 }
 0xe19   : > { %5527 = vrcp.f32 %v2541_v56 }
 0xe1f   : > { %5324 = vrot.lane.b32.xlu2 %v5323_v60, %s7491_s18  ;;  %v5528_v61 = vpop.eup %5527 }
 0xe20   : > { %v2545_v1 = vmul.f32 %v5528_v61, %v5520_v52  ;;  %v2786_v61 = vlaneseq }
 0xe22   : > { %v2546_v41 = vpack.c.bf16 %v2545_v1, %v2544_v63 }
 0xe24   : > { %5002 = vmatmul.msk.bf16.vlgmr.msrb.gmra.mxu0 %vm600_vm5, %v2546_v41 }
 0xe27   : > { %1392 = vrot.lane.b32.xlu2 %v5686_v6, %s5783_s16 }
 0xe2b   : > { %v2764_v7 = vpop.permute.xlu0 %2763 }
 0xe2c   : > { %2779 = vmatpush.bf16.msra.mxu3 %v2764_v7 }
 0xe2f   : > { %5013 = vmatmul.msk.bf16.vlgmr.msra.gmra.mxu3 %vm900_vm7, %v2758_v55 }
 0xe61   : > { %v2861_v11 = vpop.permute.xlu2 %2860 }
 0xe69   : > { %v3002_v14 = vpop.permute.xlu2 %3001 }
 0xe6a   : > { %v3007_v13 = vsel %vm597_vm4, %v3002_v14, 0 }
 0xe6e   : > { %v2428_v49 = vpop.f32.mrf.mxu0 }
 0xe71   : > { %v2613_v10 = vpop.permute.xlu2 %2612 }
 0xe72   : > { %2628 = vmatpush.bf16.msra.mxu1 %v2613_v10  ;;  %v6635_v10 = vshrl.u32 %v2786_v61, 7 }
 0xe76   : > { %v2430_v19 = vpop.f32.mrf.mxu0 }
 0xe77   : > { %v5328_v59 = vpack.i.bf16 %v2430_v19, %v2428_v49 }
 0xe79   : > { %5329 = vrot.lane.b32.xlu1 %v5328_v59, %s5770_s21  ;;  %v3000_v40 = vpop.permute.xlu0 %2999  ;;  %v5325_v30 = vpop.permute.xlu2 %5324 }
 0xe7a   : > { %v2863_v25 = vpop.permute.xlu1 %2862  ;;  %v5327_v63 = vunpack.i.h.bf16 %v5325_v30  ;;  %v5326_v1 = vunpack.i.l.bf16 %v5325_v30 }
 0xe7b   : > { %v2868_v21 = vsel %vm597_vm4, %v2863_v25, 0  ;;  %v6640_v25 = vadd.s32 8, %v6635_v10 }
 0xe7c   : > { %2877 = vmatpush.bf16.xpose.msrb.mxu3 %v2868_v21 }
 0xe81   : > { %2610 = vrot.lane.b32.xlu1 %v6570_v43, %s5776_s27  ;;  %v2931_v23 = vpop.permute.xlu0 %2930  ;;  %v1393_v5 = vpop.permute.xlu2 %1392 }
 0xe82   : > { %v2796_v52 = vpop.permute.xlu1 %2795  ;;  %v1411_v37 = vadd.f32 %v6389_v58, %v1393_v5  ;;  %v1409_v53 = vadd.f32 %v6387_v57, %v1393_v5 }
 0xe83   : > { %v2801_v24 = vsel %vm597_vm4, %v2796_v52, 0  ;;  %5016 = vmatmul.msk.bf16.vlgmr.msrb.gmra.mxu3 %vm597_vm4, %v2861_v11 }
 0xe84   : > { %3016 = vmatpush.bf16.xpose.msra.mxu3 %v3007_v13  ;;  %2810 = vmatpush.bf16.xpose.msra.mxu0 %v2801_v24  ;;  %v1415_v47 = vadd.f32 %v1411_v37, %v6251_v4  ;;  %v1414_v16 = vadd.f32 %v1409_v53, %v6249_v62  ;;  %v6643_v13 = vand.u32 127, %v2786_v61 }
 0xe86   : > { %v1419_v8 = vsel %vm900_vm7, %v1415_v47, 0.0  ;;  %v1416_v54 = vsel %vm900_vm7, %v1414_v16, 0.0  ;;  %vm2792_vm8 = vcmp.le.s32.totalorder %v6643_v13, %v6640_v25  ;;  %vm2791_vm9 = vcmp.le.s32.totalorder %v6643_v13, %v6635_v10 }
 0xe8a   : > { %v2933_v51 = vpop.permute.xlu1 %2932 }
 0xe8b   : > { %v2938_v48 = vsel %vm597_vm4, %v2933_v51, 0  ;;  %5014 = vmatmul.msk.bf16.vlgmr.msra.gmra.mxu0 %vm597_vm4, %v2793_v45 }
 0xe8c   : > { %2947 = vmatpush.bf16.xpose.msrb.mxu0 %v2938_v48 }
 0xe93   : > { %5020 = vmatmul.msk.bf16.vlgmr.msra.gmra.mxu3 %vm597_vm4, %v3000_v40 }
 0xe9b   : > { %5018 = vmatmul.msk.bf16.vlgmr.msrb.gmra.mxu0 %vm597_vm4, %v2931_v23 }
 0xea1   : > { %v2562_v26 = vpop.f32.mrf.mxu0 }
 0xea9   : > { %v2564_v50 = vpop.f32.mrf.mxu0 }
 0xeaa   : > { %v5333_v31 = vpack.i.bf16 %v2564_v50, %v2562_v26 }
 0xeab   : > { %1420 = vadd.xlane.f32.xlu1 %v1419_v8 }
 0xeac   : > { %5334 = vrot.lane.b32.xlu0 %v5333_v31, %s7490_s13 }
 0xeb2   : > { %v2781_v58 = vpop.f32.mrf.mxu3 }
 0xeb3   : > { %v2782_v44 = vadd.f32 %v6621_v15, %v2781_v58 }
 0xeba   : > { %v2783_v4 = vpop.f32.mrf.mxu3 }
 0xebb   : > { %v2784_v39 = vadd.f32 %v6621_v15, %v2783_v4 }
 0xec4   : > { %2616 = vrot.lane.b32.xlu1 %v6546_v38, %s5776_s27  ;;  %v6625_v38 = vpack.c.bf16 %v2784_v39, %v2782_v44 }
 0xed6   : > { %1417 = vadd.xlane.f32.xlu0 %v1416_v54 }
 0xeeb   : > { %v5330_v18 = vpop.permute.xlu1 %5329 }
 0xeec   : > { %v5332_v45 = vunpack.i.h.bf16 %v5330_v18  ;;  %v5331_v28 = vunpack.i.l.bf16 %v5330_v18 }
 0xeee   : > { %v2592_v60 = vsel %vm597_vm4, %v6576_v9, %v5332_v45  ;;  %v2591_v3 = vsel %vm597_vm4, %v6574_v46, %v5331_v28 }
 0xeef   : > { %v2593_v14 = vsel %vm600_vm5, %v2591_v3, %v5326_v1  ;;  %v2594_v49 = vsel %vm600_vm5, %v2592_v60, %v5327_v63 }
 0xef3   : > { %v2611_v57 = vpop.permute.xlu1 %2610 }
 0xef4   : > { %2629 = vmatpush.bf16.msra.mxu1 %v2611_v57 }
 0xef8   : > { %2853 = vmatpush.bf16.msrb.mxu1 %v6625_v38 }
 0xf06   : > { %v2879_v62 = vpop.f32.mrf.mxu3 }
 0xf07   : > { %v2884_v31 = vsel %vm2791_vm9, %v2879_v62, -1e+30 }
 0xf08   : > { %v2886_v8 = vsel %vm600_vm5, %v2884_v31, -inf  ;;  %v2812_v62 = vpop.f32.mrf.mxu0 }
 0xf0e   : > { %v2881_v56 = vpop.f32.mrf.mxu3 }
 0xf0f   : > { %v2885_v51 = vsel %vm2792_vm8, %v2881_v56, -1e+30  ;;  %v1413_v56 = vld [vmem:[%s7473_s9 + $0x2] sm:$0x3] }
 0xf10   : > { %v2889_v48 = vsel %vm600_vm5, %v2885_v51, -inf  ;;  %v1460_v61 = vperm.slane %v1413_v56, 0 }
 0xf16   : > { %v3018_v52 = vpop.f32.mrf.mxu3 }
 0xf17   : > { %v6674_v53 = vsel %vm2791_vm9, %v3018_v52, -1e+30 }
 0xf1e   : > { %v5335_v41 = vpop.permute.xlu0 %5334  ;;  %v1421_v6 = vpop.xlane.xlu1 %1420 }
 0xf1f   : > { %v5337_v7 = vunpack.i.h.bf16 %v5335_v41  ;;  %v5336_v55 = vunpack.i.l.bf16 %v5335_v41  ;;  %v1423_v11 = vmul.f32 %v1421_v6, %v6223_v2  ;;  %v3020_v40 = vpop.f32.mrf.mxu3  ;;  %v1463_v41 = vperm.slane %v1413_v56, 1 }
 0xf20   : > { %v6655_v30 = vsel %vm2792_vm8, %v3020_v40, -1e+30 }
 0xf21   : > { %v2595_v9 = vsel %vm613_vm6, %v2593_v14, %v5336_v55  ;;  %v2596_v19 = vsel %vm613_vm6, %v2594_v49, %v5337_v7  ;;  %v1425_v46 = vsub.f32 %v1415_v47, %v1423_v11  ;;  %v3028_v23 = vsel %vm600_vm5, %v6655_v30, -inf  ;;  %v2814_v55 = vpop.f32.mrf.mxu0 }
 0xf22   : > { %v2597_v59 = vpack.c.bf16 %v2596_v19, %v2595_v9 }
 0xf23   : > { %v1427_v21 = vmul.f32 %v1425_v46, %v1425_v46 }
 0xf24   : > { %5011 = vmatmul.msk.bf16.vlgmr.msra.gmra.mxu1 %vm900_vm7, %v2597_v59 }
 0xf25   : > { %v1431_v24 = vsel %vm900_vm7, %v1427_v21, 0.0 }
 0xf26   : > { %1432 = vadd.xlane.f32.xlu0 %v1431_v24 }
 0xf29   : > { %v2949_v9 = vpop.f32.mrf.mxu0 }
 0xf2a   : > { %v6712_v56 = vsel %vm2791_vm9, %v2949_v9, -1e+30 }
 0xf2e   : > { %2890 = vmax.xlane.f32.xlu0 %v2889_v48 }
 0xf36   : > { %3029 = vmax.xlane.f32.xlu0 %v3028_v23 }
 0xf49   : > { %v1418_v5 = vpop.xlane.xlu0 %1417 }
 0xf4a   : > { %v1422_v26 = vmul.f32 %v1418_v5, %v6223_v2 }
 0xf4c   : > { %v6660_v37 = vsub.f32 %v1414_v16, %v1422_v26  ;;  %v3025_v16 = vsel %vm600_vm5, %v6674_v53, -inf }
 0xf4e   : > { %v1426_v47 = vmul.f32 %v6660_v37, %v6660_v37 }
 0xf50   : > { %v1428_v50 = vsel %vm900_vm7, %v1426_v47, 0.0 }
 0xf51   : > { %1429 = vadd.xlane.f32.xlu2 %v1428_v50 }
 0xf59   : > { %2887 = vmax.xlane.f32.xlu2 %v2886_v8 }
 0xf61   : > { %3026 = vmax.xlane.f32.xlu2 %v3025_v16 }
 0xf99   : > { %v1433_v54 = vpop.xlane.xlu0 %1432 }
 0xf9a   : > { %v1435_v58 = vmul.f32 %v1433_v54, %v6223_v2 }
 0xf9c   : > { %v1437_v18 = vadd.f32 1e-05, %v1435_v58 }
 0xf9e   : > { %5529 = vrsqrt.f32 %v1437_v18  ;;  %vm1454_vm14 = vweird.f32 %v1437_v18 }
 0xfa1   : > { %v2891_v45 = vpop.xlane.xlu0 %2890 }
 0xfa2   : > { %v2893_v3 = vsub.f32 %v2885_v51, %v2891_v45  ;;  %v2951_v51 = vpop.f32.mrf.mxu0 }
 0xfa3   : > { %v6695_v48 = vsel %vm2792_vm8, %v2951_v51, -1e+30 }
 0xfa4   : > { %v5530_v4 = vpop.eup %5529  ;;  %v2896_v6 = vmul.f32 1.442695, %v2893_v3  ;;  %v2959_v5 = vsel %vm600_vm5, %v6695_v48, -inf }
 0xfa5   : > { %v1449_v39 = vmul.f32 %v5530_v4, %v1437_v18  ;;  %vm1455_vm10 = vweird.f32 %v5530_v4 }
 0xfa6   : > { %vm1456_vm15 = vmor %vm1454_vm14, %vm1455_vm10  ;;  %5531 = vpow2.f32 %v2896_v6 }
 0xfa7   : > { %v1450_v44 = vmul.f32 %v5530_v4, %v1449_v39 }
 0xfa9   : > { %v1451_v57 = vmul.f32 0.5, %v1450_v44  ;;  %v2818_v44 = vsel %vm2792_vm8, %v2814_v55, -1e+30  ;;  %v3030_v25 = vpop.xlane.xlu0 %3029 }
 0xfaa   : > { %v2822_v45 = vsel %vm600_vm5, %v2818_v44, -inf  ;;  %v3032_v3 = vsub.f32 %v6655_v30, %v3030_v25 }
 0xfab   : > { %v1452_v28 = vsub.f32 1.5, %v1451_v57 }
 0xfac   : > { %v6683_v49 = vpop.eup %5531 }
 0xfad   : > { %v1453_v60 = vmul.f32 %v5530_v4, %v1452_v28  ;;  %v2901_v19 = vsel %vm600_vm5, %v6683_v49, 0.0 }
 0xfaf   : > { %v1457_v63 = vsel %vm1456_vm15, %v5530_v4, %v1453_v60 }
 0xfb0   : > { %v1459_v1 = vmul.f32 %v1457_v63, %v1425_v46  ;;  %v2817_v46 = vsel %vm2791_vm9, %v2812_v62, -1e+30 }
 0xfb1   : > { %v2819_v52 = vsel %vm600_vm5, %v2817_v46, -inf }
 0xfb2   : > { %v1462_v7 = vmul.f32 %v1460_v61, %v1459_v1  ;;  %v3035_v1 = vmul.f32 1.442695, %v3032_v3 }
 0xfb4   : > { %v1465_v11 = vadd.f32 %v1463_v41, %v1462_v7 }
 0xfb6   : > { %v2135_v14 = vsel %vm900_vm7, %v1465_v11, 0.0 }
 0xfb7   : > { %2136 = vadd.xlane.f32.xlu2 %v2135_v14 }
 0xfbf   : > { %2902 = vadd.xlane.f32.xlu2 %v2901_v19  ;;  %v2631_v19 = vpop.f32.mrf.mxu1 }
 0xfc4   : > { %v1430_v59 = vpop.xlane.xlu2 %1429 }
 0xfc5   : > { %v1434_v21 = vmul.f32 %v1430_v59, %v6223_v2 }
 0xfc7   : > { %v1436_v24 = vadd.f32 1e-05, %v1434_v21  ;;  %2820 = vmax.xlane.f32.xlu2 %v2819_v52 }
 0xfc9   : > { %5533 = vrsqrt.f32 %v1436_v24  ;;  %vm1444_vm2 = vweird.f32 %v1436_v24 }
 0xfcc   : > { %v2888_v40 = vpop.xlane.xlu2 %2887 }
 0xfcd   : > { %v2892_v23 = vsub.f32 %v2884_v31, %v2888_v40 }
 0xfcf   : > { %v5534_v26 = vpop.eup %5533  ;;  %v2894_v47 = vmul.f32 1.442695, %v2892_v23  ;;  %2960 = vmax.xlane.f32.xlu2 %v2959_v5  ;;  %v5029_v23 = vld [vmem:[#allocation2 + $0x50] sm:$0xf] }
 0xfd0   : > { %v1439_v50 = vmul.f32 %v5534_v26, %v1436_v24  ;;  %vm1445_vm1 = vweird.f32 %v5534_v26  ;;  %v5159_v5 = vld [vmem:[#allocation2 + $0x6c] sm:$0xf0] }
 0xfd1   : > { %5535 = vpow2.f32 %v2894_v47  ;;  %vm1446_vm3 = vmor %vm1444_vm2, %vm1445_vm1 }
 0xfd2   : > { %v1440_v8 = vmul.f32 %v5534_v26, %v1439_v50  ;;  %5537 = vpow2.f32 %v3035_v1  ;;  %v6742_v50 = vor.u32 %v5159_v5, %v5029_v23  ;;  %v5408_v1 = vld [vmem:[%s7472_s8 + $0x3] ss:$0 sm:$0xff] }
 0xfd4   : > { %v1441_v16 = vmul.f32 0.5, %v1440_v8  ;;  %v3027_v60 = vpop.xlane.xlu2 %3026 }
 0xfd6   : > { %v1442_v54 = vsub.f32 1.5, %v1441_v16  ;;  %v5025_v16 = vld [vmem:[#allocation2 + $0x10] sm:$0xf] }
 0xfd7   : > { %v6699_v58 = vpop.eup %5535 }
 0xfd8   : > { %v1443_v18 = vmul.f32 %v5534_v26, %v1442_v54  ;;  %v2898_v4 = vsel %vm600_vm5, %v6699_v58, 0.0  ;;  %v6725_v7 = vpop.eup %5537  ;;  %v5158_v54 = vld [vmem:[#allocation2 + $0x2c] sm:$0xf0] }
 0xfd9   : > { %2899 = vadd.xlane.f32.xlu0 %v2898_v4  ;;  %v3040_v30 = vsel %vm600_vm5, %v6725_v7, 0.0  ;;  %v3031_v4 = vsub.f32 %v6674_v53, %v3027_v60  ;;  %v6765_v53 = vld [vmem:[%s7472_s8 + $0x5] sm:$0x3] }
 0xfda   : > { %v1447_v31 = vsel %vm1446_vm3, %v5534_v26, %v1443_v18 }
 0xfdb   : > { %v1458_v39 = vmul.f32 %v1447_v31, %v6660_v37  ;;  %v2956_v37 = vsel %vm600_vm5, %v6712_v56, -inf  ;;  %v6750_v31 = vor.u32 %v5158_v54, %v5025_v16 }
 0xfdd   : > { %v1461_v57 = vmul.f32 %v1460_v61, %v1458_v39 }
 0xfdf   : > { %v1464_v62 = vadd.f32 %v1463_v41, %v1461_v57  ;;  %v3033_v57 = vmul.f32 1.442695, %v3031_v4 }
 0xfe1   : > { %2823 = vmax.xlane.f32.xlu0 %v2822_v45  ;;  %v2132_v28 = vsel %vm900_vm7, %v1464_v62, 0.0 }
 0xfe2   : > { %2133 = vadd.xlane.f32.xlu1 %v2132_v28 }
 0xfe9   : > { %2957 = vmax.xlane.f32.xlu0 %v2956_v37  ;;  %v3219_v37 = vperm.slane %v6765_v53, 1 }
0x102a   : > { %v2137_v61 = vpop.xlane.xlu2 %2136 }
0x102b   : > { %v2139_v63 = vmul.f32 %v2137_v61, %v6223_v2 }
0x102d   : > { %v6718_v41 = vsub.f32 %v1465_v11, %v2139_v63  ;;  %v2617_v11 = vpop.permute.xlu1 %2616 }
0x102e   : > { %v2632_v21 = vadd.f32 %v2631_v19, %v2617_v11 }
0x102f   : > { %v2143_v6 = vmul.f32 %v6718_v41, %v6718_v41 }
0x1030   : > { %v6734_v24 = vadd.f32 %v2632_v21, %v6074_v34 }
0x1031   : > { %v2147_v10 = vsel %vm900_vm7, %v2143_v6, 0.0 }
0x1032   : > { %2148 = vadd.xlane.f32.xlu1 %v2147_v10  ;;  %v6723_v13 = vpop.xlane.xlu2 %2902  ;;  %v2639_v40 = vsel %vm900_vm7, %v6734_v24, 0.0 }
0x103a   : > { %v2821_v55 = vpop.xlane.xlu2 %2820  ;;  %3041 = vadd.xlane.f32.xlu1 %v3040_v30 }
0x103b   : > { %v2825_v14 = vsub.f32 %v2817_v46, %v2821_v55 }
0x103d   : > { %v2827_v9 = vmul.f32 1.442695, %v2825_v14 }
0x103f   : > { %5539 = vpow2.f32 %v2827_v9 }
0x1042   : > { %v2961_v45 = vpop.xlane.xlu2 %2960 }
0x1045   : > { %v6729_v59 = vpop.eup %5539 }
0x1046   : > { %v2831_v52 = vsel %vm600_vm5, %v6729_v59, 0.0 }
0x1047   : > { %2832 = vadd.xlane.f32.xlu0 %v2831_v52 }
0x104c   : > { %v6736_v51 = vpop.xlane.xlu0 %2899 }
0x104f   : > { %2640 = vadd.xlane.f32.xlu0 %v2639_v40 }
0x1053   : > { %3048 = vrot.lane.b32.xlu1 %v6625_v38, %s5780_s12 }
0x1054   : > { %v2824_v46 = vpop.xlane.xlu0 %2823 }
0x1055   : > { %v2826_v26 = vsub.f32 %v2818_v44, %v2824_v46  ;;  %v2134_v8 = vpop.xlane.xlu1 %2133 }
0x1056   : > { %v2138_v34 = vmul.f32 %v2134_v8, %v6223_v2 }
0x1057   : > { %v2829_v47 = vmul.f32 1.442695, %v2826_v26 }
0x1058   : > { %v6752_v39 = vsub.f32 %v1464_v62, %v2138_v34  ;;  %v2963_v62 = vsub.f32 %v6695_v48, %v2961_v45  ;;  %v2633_v48 = vpop.f32.mrf.mxu1 }
0x1059   : > { %5541 = vpow2.f32 %v2829_v47  ;;  %v2634_v6 = vadd.f32 %v2633_v48, %v2617_v11 }
0x105a   : > { %v2142_v28 = vmul.f32 %v6752_v39, %v6752_v39  ;;  %5543 = vpow2.f32 %v3033_v57  ;;  %v2966_v25 = vmul.f32 1.442695, %v2963_v62 }
0x105b   : > { %3222 = vrot.lane.b32.xlu1 %v6742_v50, %s5776_s27  ;;  %v6787_v14 = vadd.f32 %v2634_v6, %v6076_v17 }
0x105c   : > { %v2144_v60 = vsel %vm900_vm7, %v2142_v28, 0.0  ;;  %5545 = vpow2.f32 %v2966_v25  ;;  %v2958_v10 = vpop.xlane.xlu0 %2957 }
0x105d   : > { %v2962_v55 = vsub.f32 %v6712_v56, %v2958_v10  ;;  %v2642_v9 = vsel %vm900_vm7, %v6787_v14, 0.0 }
0x105f   : > { %v6747_v18 = vpop.eup %5541 }
0x1060   : > { %v2834_v44 = vsel %vm600_vm5, %v6747_v18, 0.0  ;;  %v6771_v3 = vpop.eup %5543 }
0x1061   : > { %2835 = vadd.xlane.f32.xlu2 %v2834_v44  ;;  %v3037_v61 = vsel %vm600_vm5, %v6771_v3, 0.0 }
0x1062   : > { %v6777_v63 = vpop.eup %5545 }
0x1063   : > { %3220 = vrot.lane.b32.xlu1 %v6750_v31, %s5776_s27  ;;  %2910 = vrot.lane.b32.xlu0 %v6625_v38, %s5774_s20  ;;  %v2971_v30 = vsel %vm600_vm5, %v6777_v63, 0.0 }
0x1069   : > { %2145 = vadd.xlane.f32.xlu2 %v2144_v60 }
0x106b   : > { %3228 = vrot.lane.b32.xlu1 %v3219_v37, %s5785_s24 }
0x1071   : > { %3038 = vadd.xlane.f32.xlu2 %v3037_v61 }
0x1073   : > { %3101 = vrot.lane.b32.xlu1 %v6565_v33, %s5785_s24  ;;  %v2964_v33 = vmul.f32 1.442695, %v2962_v55 }
0x1075   : > { %5547 = vpow2.f32 %v2964_v33 }
0x1076   : > { %5549 = vrcp.f32 %v6736_v51 }
0x1077   : > { %5551 = vrcp.f32 %v6723_v13 }
0x1079   : > { %2972 = vadd.xlane.f32.xlu2 %v2971_v30 }
0x107b   : > { %2058 = vrot.lane.b32.xlu1 %v5408_v1, %s5776_s27  ;;  %v6791_v19 = vpop.eup %5547 }
0x107c   : > { %v2968_v11 = vsel %vm600_vm5, %v6791_v19, 0.0  ;;  %v5550_v16 = vpop.eup %5549 }
0x107d   : > { %v2906_v54 = vmul.f32 %v5550_v16, %v6699_v58 }
0x1081   : > { %2643 = vadd.xlane.f32.xlu2 %v2642_v9 }
0x108d   : > { %2969 = vadd.xlane.f32.xlu0 %v2968_v11 }
0x10a5   : > { %v2149_v21 = vpop.xlane.xlu1 %2148 }
0x10a6   : > { %v2151_v5 = vmul.f32 %v2149_v21, %v6223_v2 }
0x10a8   : > { %v2153_v8 = vadd.f32 1e-05, %v2151_v5 }
0x10aa   : > { %5553 = vrsqrt.f32 %v2153_v8  ;;  %vm2170_vm9 = vweird.f32 %v2153_v8 }
0x10ad   : > { %v3042_v56 = vpop.xlane.xlu1 %3041 }
0x10ba   : > { %v2833_v52 = vpop.xlane.xlu0 %2832 }
0x10bb   : > { %5555 = vrcp.f32 %v2833_v52  ;;  %v3218_v52 = vperm.slane %v6765_v53, 0 }
0x10bd   : > { %3226 = vrot.lane.b32.xlu0 %v3218_v52, %s5785_s24 }
0x10c2   : > { %v2641_v40 = vpop.xlane.xlu0 %2640 }
0x10c3   : > { %v2645_v46 = vmul.f32 %v2641_v40, %v6223_v2 }
0x10c5   : > { %v6797_v17 = vsub.f32 %v6734_v24, %v2645_v46  ;;  %v3049_v23 = vpop.permute.xlu1 %3048  ;;  %v5552_v24 = vpop.eup %5551 }
0x10c6   : > { %v5554_v44 = vpop.eup %5553  ;;  %v2907_v57 = vmul.f32 %v5552_v24, %v6683_v49 }
0x10c7   : > { %v2649_v26 = vmul.f32 %v6797_v17, %v6797_v17  ;;  %v2165_v13 = vmul.f32 %v5554_v44, %v2153_v8  ;;  %v5556_v62 = vpop.eup %5555  ;;  %vm2171_vm8 = vweird.f32 %v5554_v44 }
0x10c8   : > { %v2908_v51 = vpack.c.bf16 %v2907_v57, %v2906_v54  ;;  %v2839_v58 = vmul.f32 %v5556_v62, %v6729_v59  ;;  %vm2172_vm10 = vmor %vm2170_vm9, %vm2171_vm8 }
0x10c9   : > { %v2651_v47 = vsel %vm900_vm7, %v2649_v26, 0.0  ;;  %v2166_v60 = vmul.f32 %v5554_v44, %v2165_v13 }
0x10ca   : > { %2652 = vadd.xlane.f32.xlu2 %v2651_v47 }
0x10cb   : > { %v2167_v10 = vmul.f32 0.5, %v2166_v60 }
0x10cd   : > { %v3223_v34 = vpop.permute.xlu1 %3222  ;;  %v2168_v30 = vsub.f32 1.5, %v2167_v10 }
0x10ce   : > { %3241 = vmatpush.bf16.msrb.mxu3 %v3223_v34 }
0x10cf   : > { %v2169_v9 = vmul.f32 %v5554_v44, %v2168_v30 }
0x10d1   : > { %v2173_v46 = vsel %vm2172_vm10, %v5554_v44, %v2169_v9 }
0x10d2   : > { %v2175_v53 = vmul.f32 %v2173_v46, %v6718_v41 }
0x10d4   : > { %v2836_v4 = vpop.xlane.xlu2 %2835 }
0x10d5   : > { %5557 = vrcp.f32 %v2836_v4  ;;  %v3221_v45 = vpop.permute.xlu1 %3220  ;;  %v2911_v28 = vpop.permute.xlu0 %2910 }
0x10d6   : > { %2923 = vmatpush.bf16.msrb.mxu2 %v2911_v28  ;;  %3242 = vmatpush.bf16.msrb.mxu3 %v3221_v45 }
0x10d9   : > { %5017 = vmatmul.msk.bf16.vlgmr.msrb.gmra.mxu2 %vm600_vm5, %v2908_v51 }
0x10da   : > { %3061 = vmatpush.bf16.msra.mxu2 %v3049_v23 }
0x10db   : > { %v5558_v37 = vpop.eup %5557 }
0x10dc   : > { %v2840_v25 = vmul.f32 %v5558_v37, %v6747_v18  ;;  %v2146_v61 = vpop.xlane.xlu2 %2145 }
0x10dd   : > { %v2150_v49 = vmul.f32 %v2146_v61, %v6223_v2  ;;  %v6811_v48 = vpop.permute.xlu1 %3228 }
0x10de   : > { %v2841_v1 = vpack.c.bf16 %v2840_v25, %v2839_v58 }
0x10df   : > { %v2152_v6 = vadd.f32 1e-05, %v2150_v49 }
0x10e0   : > { %5015 = vmatmul.msk.bf16.vlgmr.msrb.gmra.mxu1 %vm600_vm5, %v2841_v1 }
0x10e1   : > { %5559 = vrsqrt.f32 %v2152_v6  ;;  %vm2160_vm15 = vweird.f32 %v2152_v6 }
0x10e2   : > { %5561 = vrcp.f32 %v3042_v56  ;;  %v2131_v56 = vld [vmem:[%s7473_s9 + $0x8] sm:$0x3] }
0x10e3   : > { %v2176_v16 = vperm.slane %v2131_v56, 0  ;;  %v2179_v4 = vperm.slane %v2131_v56, 1 }
0x10e4   : > { %v3039_v55 = vpop.xlane.xlu2 %3038 }
0x10e5   : > { %5563 = vrcp.f32 %v3039_v55  ;;  %v3102_v33 = vpop.permute.xlu1 %3101 }
0x10e6   : > { %3117 = vmatpush.bf16.msra.mxu0 %v3102_v33 }
0x10e7   : > { %v5560_v59 = vpop.eup %5559 }
0x10e8   : > { %v2155_v18 = vmul.f32 %v5560_v59, %v2152_v6  ;;  %v5562_v11 = vpop.eup %5561  ;;  %vm2161_vm14 = vweird.f32 %v5560_v59 }
0x10e9   : > { %v3046_v23 = vmul.f32 %v5562_v11, %v6725_v7  ;;  %vm2162_vm1 = vmor %vm2160_vm15, %vm2161_vm14  ;;  %v2178_v7 = vmul.f32 %v2176_v16, %v2175_v53 }
0x10ea   : > { %v2156_v21 = vmul.f32 %v5560_v59, %v2155_v18 }
0x10eb   : > { %v5564_v40 = vpop.eup %5563  ;;  %v2181_v28 = vadd.f32 %v2179_v4, %v2178_v7 }
0x10ec   : > { %v2157_v5 = vmul.f32 0.5, %v2156_v21  ;;  %v3045_v26 = vmul.f32 %v5564_v40, %v6771_v3  ;;  %v2973_v47 = vpop.xlane.xlu2 %2972 }
0x10ee   : > { %v2158_v34 = vsub.f32 1.5, %v2157_v5  ;;  %v3047_v8 = vpack.c.bf16 %v3046_v23, %v3045_v26 }
0x10f0   : > { %v2159_v24 = vmul.f32 %v5560_v59, %v2158_v34  ;;  %5021 = vmatmul.msk.bf16.vlgmr.msra.gmra.mxu2 %vm600_vm5, %v3047_v8 }
0x10f2   : > { %v2163_v54 = vsel %vm2162_vm1, %v5560_v59, %v2159_v24 }
0x10f3   : > { %v2174_v44 = vmul.f32 %v2163_v54, %v6752_v39 }
0x10f4   : > { %v2644_v3 = vpop.xlane.xlu2 %2643 }
0x10f5   : > { %v2177_v57 = vmul.f32 %v2176_v16, %v2174_v44  ;;  %v2646_v45 = vmul.f32 %v2644_v3, %v6223_v2 }
0x10f7   : > { %v2180_v51 = vadd.f32 %v2179_v4, %v2177_v57  ;;  %v6826_v13 = vsub.f32 %v6787_v14, %v2646_v45 }
0x10f9   : > { %v3215_v41 = vpack.c.bf16 %v2181_v28, %v2180_v51  ;;  %v2650_v62 = vmul.f32 %v6826_v13, %v6826_v13 }
0x10fb   : > { %5032 = vmatmul.msk.bf16.vlgmr.msrb.gmra.mxu3 %vm900_vm7, %v3215_v41  ;;  %v2654_v37 = vsel %vm900_vm7, %v2650_v62, 0.0 }
0x10fc   : > { %2655 = vadd.xlane.f32.xlu2 %v2654_v37 }
0x1100   : > { %v2970_v1 = vpop.xlane.xlu0 %2969 }
0x1114   : > { %2979 = vrot.lane.b32.xlu2 %v6625_v38, %s5777_s28 }
0x111c   : > { %3195 = vrot.lane.b32.xlu2 %v6621_v15, %s5783_s16 }
0x112f   : > { %v3227_v53 = vpop.permute.xlu0 %3226 }
0x1130   : > { %v3230_v7 = vsel %vm900_vm7, %v3227_v53, %v6811_v48 }
0x113d   : > { %v2653_v39 = vpop.xlane.xlu2 %2652 }
0x113e   : > { %v2657_v60 = vmul.f32 %v2653_v39, %v6223_v2 }
0x1140   : > { %v2659_v58 = vadd.f32 1e-05, %v2657_v60  ;;  %v2059_v60 = vpop.permute.xlu1 %2058 }
0x1142   : > { %5565 = vrsqrt.f32 %v2659_v58  ;;  %vm2667_vm3 = vweird.f32 %v2659_v58 }
0x1143   : > { %5567 = vrcp.f32 %v2970_v1 }
0x1144   : > { %5569 = vrcp.f32 %v2973_v47 }
0x1148   : > { %v5566_v49 = vpop.eup %5565 }
0x1149   : > { %v2662_v6 = vmul.f32 %v5566_v49, %v2659_v58  ;;  %v5568_v55 = vpop.eup %5567  ;;  %vm2668_vm2 = vweird.f32 %v5566_v49 }
0x114a   : > { %v5570_v18 = vpop.eup %5569  ;;  %v2976_v11 = vmul.f32 %v5568_v55, %v6791_v19  ;;  %vm2669_vm8 = vmor %vm2667_vm3, %vm2668_vm2  ;;  %v2636_v19 = vld [vmem:[%s7473_s9 + $0xc] sm:$0x3] }
0x114b   : > { %v2663_v10 = vmul.f32 %v5566_v49, %v2662_v6  ;;  %v2977_v21 = vmul.f32 %v5570_v18, %v6777_v63  ;;  %v2683_v24 = vperm.slane %v2636_v19, 0  ;;  %v2686_v3 = vperm.slane %v2636_v19, 1 }
0x114d   : > { %v2664_v59 = vmul.f32 0.5, %v2663_v10  ;;  %v2978_v56 = vpack.c.bf16 %v2977_v21, %v2976_v11 }
0x114f   : > { %v2665_v52 = vsub.f32 1.5, %v2664_v59 }
0x115c   : > { %v2925_v14 = vpop.f32.mrf.mxu2 }
0x1164   : > { %v2927_v25 = vpop.f32.mrf.mxu2 }
0x1165   : > { %v5338_v61 = vpack.i.bf16 %v2927_v25, %v2925_v14  ;;  %v2074_v14 = vadd.f32 %v6508_v27, %v2059_v60 }
0x1167   : > { %5339 = vrot.lane.b32.xlu2 %v5338_v61, %s5770_s21  ;;  %v2079_v58 = vadd.f32 %v2074_v14, %v6452_v0  ;;  %v2855_v61 = vpop.f32.mrf.mxu1 }
0x1169   : > { %v2081_v25 = vsel %vm900_vm7, %v2079_v58, 0.0 }
0x116f   : > { %v2656_v38 = vpop.xlane.xlu2 %2655  ;;  %3099 = vrot.lane.b32.xlu2 %v6570_v43, %s5785_s24  ;;  %v2666_v43 = vmul.f32 %v5566_v49, %v2665_v52 }
0x1170   : > { %v2658_v30 = vmul.f32 %v2656_v38, %v6223_v2 }
0x1171   : > { %v2670_v34 = vsel %vm2669_vm8, %v5566_v49, %v2666_v43  ;;  %v2857_v49 = vpop.f32.mrf.mxu1 }
0x1172   : > { %v2660_v33 = vadd.f32 1e-05, %v2658_v30  ;;  %v2681_v54 = vmul.f32 %v2670_v34, %v6797_v17 }
0x1173   : > { %v3063_v9 = vpop.f32.mrf.mxu2 }
0x1174   : > { %5571 = vrsqrt.f32 %v2660_v33  ;;  %vm2677_vm10 = vweird.f32 %v2660_v33  ;;  %v2684_v57 = vmul.f32 %v2683_v24, %v2681_v54 }
0x1176   : > { %v6856_v39 = vadd.f32 %v2686_v3, %v2684_v57 }
0x1177   : > { %v2980_v40 = vpop.permute.xlu2 %2979 }
0x1178   : > { %2992 = vmatpush.bf16.msra.mxu1 %v2980_v40 }
0x117a   : > { %v5572_v46 = vpop.eup %5571 }
0x117b   : > { %v2672_v23 = vmul.f32 %v5572_v46, %v2660_v33  ;;  %5019 = vmatmul.msk.bf16.vlgmr.msra.gmra.mxu1 %vm600_vm5, %v2978_v56  ;;  %v3065_v5 = vpop.f32.mrf.mxu2  ;;  %vm2678_vm9 = vweird.f32 %v5572_v46 }
0x117c   : > { %3207 = vmatpush.bf16.msrb.mxu1 %v6742_v50  ;;  %v5343_v26 = vpack.i.bf16 %v3065_v5, %v3063_v9  ;;  %vm2679_vm14 = vmor %vm2677_vm10, %vm2678_vm9 }
0x117d   : > { %v2673_v47 = vmul.f32 %v5572_v46, %v2672_v23 }
0x117e   : > { %v3244_v63 = vpop.f32.mrf.mxu3  ;;  %5344 = vrot.lane.b32.xlu0 %v5343_v26, %s7490_s13  ;;  %v2076_v26 = vadd.f32 %v6510_v35, %v2059_v60 }
0x117f   : > { %v2674_v8 = vmul.f32 0.5, %v2673_v47  ;;  %v3245_v51 = vadd.f32 %v3244_v63, %v3230_v7  ;;  %v3196_v18 = vpop.permute.xlu2 %3195 }
0x1180   : > { %3208 = vmatpush.bf16.msrb.mxu1 %v6750_v31  ;;  %v2080_v63 = vadd.f32 %v2076_v26, %v6454_v22 }
0x1181   : > { %v2675_v16 = vsub.f32 1.5, %v2674_v8 }
0x1182   : > { %v2084_v19 = vsel %vm900_vm7, %v2080_v63, 0.0 }
0x1183   : > { %v2676_v4 = vmul.f32 %v5572_v46, %v2675_v16 }
0x1185   : > { %v2680_v44 = vsel %vm2679_vm14, %v5572_v46, %v2676_v4 }
0x1186   : > { %v2682_v45 = vmul.f32 %v2680_v44, %v6826_v13  ;;  %v3246_v28 = vpop.f32.mrf.mxu3 }
0x1187   : > { %v3247_v41 = vadd.f32 %v3246_v28, %v3230_v7 }
0x1188   : > { %v2685_v62 = vmul.f32 %v2683_v24, %v2682_v45 }
0x1189   : > { %v6854_v37 = vpack.c.bf16 %v3247_v41, %v3245_v51 }
0x118a   : > { %v6858_v17 = vadd.f32 %v2686_v3, %v2685_v62 }
0x118b   : > { %3386 = vrot.lane.b32.xlu1 %v6854_v37, %s5777_s28  ;;  %3319 = vrot.lane.b32.xlu0 %v6854_v37, %s5774_s20  ;;  %v3256_v48 = vsel %vm597_vm4, %v6854_v37, 0 }
0x118c   : > { %v3182_v13 = vpack.c.bf16 %v6858_v17, %v6856_v39  ;;  %3265 = vmatpush.bf16.xpose.msrb.mxu2 %v3256_v48 }
0x118e   : > { %5031 = vmatmul.msk.bf16.vlgmr.msrb.gmra.mxu1 %vm900_vm7, %v3182_v13 }
0x1193   : > { %3453 = vrot.lane.b32.xlu0 %v6854_v37, %s5780_s12 }
0x11bd   : > { %2082 = vadd.xlane.f32.xlu0 %v2081_v25 }
0x11c1   : > { %v5340_v47 = vpop.permute.xlu2 %5339 }
0x11c2   : > { %v5342_v16 = vunpack.i.h.bf16 %v5340_v47  ;;  %v5341_v53 = vunpack.i.l.bf16 %v5340_v47 }
0x11c4   : > { %v3093_v54 = vsel %vm597_vm4, %v2857_v49, %v5342_v16  ;;  %v3092_v4 = vsel %vm597_vm4, %v2855_v61, %v5341_v53 }
0x11c9   : > { %v3100_v34 = vpop.permute.xlu2 %3099 }
0x11ca   : > { %3118 = vmatpush.bf16.msra.mxu0 %v3100_v34 }
0x11f0   : > { %v5345_v1 = vpop.permute.xlu0 %5344 }
0x11f1   : > { %v5347_v7 = vunpack.i.h.bf16 %v5345_v1  ;;  %v5346_v44 = vunpack.i.l.bf16 %v5345_v1 }
0x11f8   : > { %v2994_v6 = vpop.f32.mrf.mxu1 }
0x11fd   : > { %v3387_v10 = vpop.permute.xlu1 %3386  ;;  %v3320_v38 = vpop.permute.xlu0 %3319 }
0x11fe   : > { %v3392_v30 = vsel %vm597_vm4, %v3387_v10, 0  ;;  %v3325_v55 = vsel %vm597_vm4, %v3320_v38, 0  ;;  %v2078_v10 = vld [vmem:[%s7473_s9 + $0x6] sm:$0x3] }
0x11ff   : > { %3334 = vmatpush.bf16.xpose.msra.mxu1 %v3325_v55  ;;  %3401 = vmatpush.bf16.xpose.msra.mxu2 %v3392_v30  ;;  %v2125_v55 = vperm.slane %v2078_v10, 0 }
0x1200   : > { %v2996_v33 = vpop.f32.mrf.mxu1 }
0x1201   : > { %v5348_v59 = vpack.i.bf16 %v2996_v33, %v2994_v6 }
0x1203   : > { %5349 = vrot.lane.b32.xlu1 %v5348_v59, %s7491_s18 }
0x1205   : > { %v3454_v0 = vpop.permute.xlu0 %3453 }
0x1206   : > { %v3459_v27 = vsel %vm597_vm4, %v3454_v0, 0 }
0x1207   : > { %3468 = vmatpush.bf16.xpose.msrb.mxu1 %v3459_v27  ;;  %v2128_v27 = vperm.slane %v2078_v10, 1 }
0x120b   : > { %v3210_v9 = vpop.f32.mrf.mxu1 }
0x120c   : > { %v3211_v21 = vadd.f32 %v3210_v9, %v3196_v18 }
0x1213   : > { %v3212_v11 = vpop.f32.mrf.mxu1 }
0x1214   : > { %v3213_v52 = vadd.f32 %v3212_v11, %v3196_v18 }
0x1216   : > { %v3250_v40 = vpack.c.bf16 %v3213_v52, %v3211_v21 }
0x1218   : > { %3317 = vrot.lane.b32.xlu2 %v3250_v40, %s5774_s20  ;;  %5033 = vmatmul.msk.bf16.vlgmr.msrb.gmra.mxu2 %vm597_vm4, %v3250_v40 }
0x1220   : > { %3384 = vrot.lane.b32.xlu2 %v3250_v40, %s5777_s28 }
0x1230   : > { %v2083_v56 = vpop.xlane.xlu0 %2082 }
0x1231   : > { %v2087_v46 = vmul.f32 %v2083_v56, %v6223_v2 }
0x1233   : > { %v2089_v43 = vsub.f32 %v2079_v58, %v2087_v46 }
0x1235   : > { %v2091_v23 = vmul.f32 %v2089_v43, %v2089_v43 }
0x1237   : > { %v2093_v5 = vsel %vm900_vm7, %v2091_v23, 0.0 }
0x1238   : > { %2094 = vadd.xlane.f32.xlu1 %v2093_v5 }
0x1249   : > { %2085 = vadd.xlane.f32.xlu2 %v2084_v19 }
0x1251   : > { %3451 = vrot.lane.b32.xlu1 %v3250_v40, %s5780_s12 }
0x1261   : > { %3105 = vrot.lane.b32.xlu2 %v6621_v15, %s5776_s27 }
0x1269   : > { %3364 = vrot.lane.b32.xlu2 %v6854_v37, %s7494_s26 }
0x1272   : > { %v3318_v8 = vpop.permute.xlu2 %3317 }
0x1273   : > { %5035 = vmatmul.msk.bf16.vlgmr.msra.gmra.mxu1 %vm597_vm4, %v3318_v8 }
0x1275   : > { %v5350_v35 = vpop.permute.xlu1 %5349 }
0x1276   : > { %v5352_v22 = vunpack.i.h.bf16 %v5350_v35  ;;  %v5351_v24 = vunpack.i.l.bf16 %v5350_v35 }
0x1278   : > { %v3095_v3 = vsel %vm600_vm5, %v3093_v54, %v5352_v22  ;;  %v3094_v15 = vsel %vm600_vm5, %v3092_v4, %v5351_v24 }
0x1279   : > { %v3096_v57 = vsel %vm613_vm6, %v3094_v15, %v5346_v44  ;;  %v3097_v45 = vsel %vm613_vm6, %v3095_v3, %v5347_v7 }
0x127a   : > { %v3098_v28 = vpack.c.bf16 %v3097_v45, %v3096_v57  ;;  %v3385_v51 = vpop.permute.xlu2 %3384  ;;  %v5064_v57 = vld [vmem:[#allocation4 + $0x54] sm:$0xf]  ;;  %v5165_v45 = vld [vmem:[#allocation4 + $0x58] sm:$0xf0] }
0x127b   : > { %5037 = vmatmul.msk.bf16.vlgmr.msra.gmra.mxu2 %vm597_vm4, %v3385_v51  ;;  %v5060_v51 = vld [vmem:[#allocation4 + $0x44] sm:$0xf] }
0x127c   : > { %5022 = vmatmul.msk.bf16.vlgmr.msra.gmra.mxu0 %vm900_vm7, %v3098_v28  ;;  %v6922_v28 = vor.u32 %v5165_v45, %v5064_v57 }
0x129b   : > { %v6900_v41 = vpop.f32.mrf.mxu2 }
0x129c   : > { %v3272_v62 = vsel %vm600_vm5, %v6900_v41, -inf }
0x129d   : > { %3273 = vmax.xlane.f32.xlu2 %v3272_v62  ;;  %v5164_v62 = vld [vmem:[#allocation4 + $0x48] sm:$0xf0] }
0x12ab   : > { %v2095_v48 = vpop.xlane.xlu1 %2094 }
0x12ac   : > { %v2099_v13 = vmul.f32 %v2095_v48, %v6223_v2  ;;  %v6926_v48 = vor.u32 %v5164_v62, %v5060_v51  ;;  %v5052_v62 = vld [vmem:[#allocation4 + $0x24] sm:$0xf] }
0x12ae   : > { %v2101_v60 = vadd.f32 1e-05, %v2099_v13  ;;  %v5056_v13 = vld [vmem:[#allocation4 + $0x34] sm:$0xf] }
0x12b0   : > { %5573 = vrsqrt.f32 %v2101_v60  ;;  %vm2109_vm1 = vweird.f32 %v2101_v60 }
0x12b5   : > { %3431 = vrot.lane.b32.xlu2 %v6854_v37, %s7492_s29 }
0x12b6   : > { %v5574_v14 = vpop.eup %5573 }
0x12b7   : > { %v2104_v58 = vmul.f32 %v5574_v14, %v2101_v60  ;;  %vm2110_vm15 = vweird.f32 %v5574_v14  ;;  %v5163_v60 = vld [vmem:[#allocation4 + $0x38] sm:$0xf0] }
0x12b8   : > { %vm2111_vm2 = vmor %vm2109_vm1, %vm2110_vm15 }
0x12b9   : > { %v2105_v25 = vmul.f32 %v5574_v14, %v2104_v58 }
0x12bb   : > { %v2106_v61 = vmul.f32 0.5, %v2105_v25 }
0x12bc   : > { %v2086_v49 = vpop.xlane.xlu2 %2085 }
0x12bd   : > { %v2107_v1 = vsub.f32 1.5, %v2106_v61  ;;  %v2088_v6 = vmul.f32 %v2086_v49, %v6223_v2 }
0x12bf   : > { %v2108_v38 = vmul.f32 %v5574_v14, %v2107_v1  ;;  %v2090_v30 = vsub.f32 %v2080_v63, %v2088_v6 }
0x12c1   : > { %v2092_v33 = vmul.f32 %v2090_v30, %v2090_v30  ;;  %v2112_v59 = vsel %vm2111_vm2, %v5574_v14, %v2108_v38  ;;  %v6932_v14 = vor.u32 %v5163_v60, %v5056_v13  ;;  %v5162_v13 = vld [vmem:[#allocation4 + $0x28] sm:$0xf0] }
0x12c2   : > { %v2123_v0 = vmul.f32 %v2112_v59, %v2089_v43  ;;  %v6990_v60 = vor.u32 %v5162_v13, %v5052_v62 }
0x12c3   : > { %v3452_v9 = vpop.permute.xlu1 %3451  ;;  %v2096_v18 = vsel %vm900_vm7, %v2092_v33, 0.0 }
0x12c4   : > { %v3106_v11 = vpop.permute.xlu2 %3105  ;;  %2097 = vadd.xlane.f32.xlu0 %v2096_v18  ;;  %5039 = vmatmul.msk.bf16.vlgmr.msrb.gmra.mxu1 %vm597_vm4, %v3452_v9  ;;  %v2126_v21 = vmul.f32 %v2125_v55, %v2123_v0 }
0x12c6   : > { %v2129_v52 = vadd.f32 %v2128_v27, %v2126_v21 }
0x12c8   : > { %v2183_v40 = vsel %vm900_vm7, %v2129_v52, 0.0 }
0x12c9   : > { %2184 = vadd.xlane.f32.xlu1 %v2183_v40  ;;  %v6956_v40 = vpop.f32.mrf.mxu2 }
0x12cc   : > { %v3365_v56 = vpop.permute.xlu2 %3364 }
0x12cd   : > { %3377 = vmatpush.bf16.msra.mxu3 %v3365_v56  ;;  %v3275_v56 = vsel %vm600_vm5, %v6956_v40, -inf }
0x12f9   : > { %v3120_v46 = vpop.f32.mrf.mxu0 }
0x12fa   : > { %v3121_v23 = vadd.f32 %v3120_v46, %v3106_v11 }
0x12fe   : > { %v6962_v46 = vpop.f32.mrf.mxu2 }
0x1301   : > { %v3122_v58 = vpop.f32.mrf.mxu0 }
0x1302   : > { %v3123_v25 = vadd.f32 %v3122_v58, %v3106_v11 }
0x1304   : > { %v3127_v61 = vadd.f32 %v3123_v25, %v6497_v12 }
0x1306   : > { %v3131_v49 = vsel %vm900_vm7, %v3127_v61, 0.0 }
0x1337   : > { %v2098_v5 = vpop.xlane.xlu0 %2097 }
0x1338   : > { %v2100_v43 = vmul.f32 %v2098_v5, %v6223_v2 }
0x133a   : > { %v2102_v26 = vadd.f32 1e-05, %v2100_v43 }
0x133c   : > { %5575 = vrsqrt.f32 %v2102_v26  ;;  %vm2119_vm8 = vweird.f32 %v2102_v26  ;;  %v2185_v53 = vpop.xlane.xlu1 %2184 }
0x133d   : > { %v2189_v24 = vmul.f32 %v2185_v53, %v6223_v2 }
0x133f   : > { %v6916_v7 = vsub.f32 %v2129_v52, %v2189_v24 }
0x1341   : > { %v2193_v3 = vmul.f32 %v6916_v7, %v6916_v7 }
0x1342   : > { %v5576_v47 = vpop.eup %5575 }
0x1343   : > { %v2114_v63 = vmul.f32 %v5576_v47, %v2102_v26  ;;  %vm2120_vm3 = vweird.f32 %v5576_v47  ;;  %v2195_v15 = vsel %vm900_vm7, %v2193_v3, 0.0 }
0x1344   : > { %vm2121_vm9 = vmor %vm2119_vm8, %vm2120_vm3 }
0x1345   : > { %v2115_v19 = vmul.f32 %v5576_v47, %v2114_v63  ;;  %v3405_v63 = vpop.f32.mrf.mxu2 }
0x1347   : > { %v2116_v34 = vmul.f32 0.5, %v2115_v19  ;;  %v3411_v19 = vsel %vm600_vm5, %v3405_v63, -inf }
0x1349   : > { %v2117_v8 = vsub.f32 1.5, %v2116_v34 }
0x134b   : > { %v2118_v16 = vmul.f32 %v5576_v47, %v2117_v8 }
0x134d   : > { %v2122_v35 = vsel %vm2121_vm9, %v5576_v47, %v2118_v16 }
0x134e   : > { %v2124_v22 = vmul.f32 %v2122_v35, %v2090_v30 }
0x1350   : > { %v2127_v54 = vmul.f32 %v2125_v55, %v2124_v22 }
0x1352   : > { %v2130_v4 = vadd.f32 %v2128_v27, %v2127_v54  ;;  %v3126_v27 = vadd.f32 %v3121_v23, %v6070_v32  ;;  %v6960_v32 = vpop.f32.mrf.mxu1  ;;  %v3274_v23 = vpop.xlane.xlu2 %3273  ;;  %v5048_v54 = vld [vmem:[#allocation4 + $0x14] sm:$0xf] }
0x1353   : > { %v3278_v5 = vsub.f32 %v6900_v41, %v3274_v23  ;;  %v3341_v43 = vsel %vm600_vm5, %v6960_v32, -inf }
0x1354   : > { %v2186_v44 = vsel %vm900_vm7, %v2130_v4, 0.0  ;;  %v3128_v9 = vsel %vm900_vm7, %v3126_v27, 0.0 }
0x1355   : > { %2187 = vadd.xlane.f32.xlu0 %v2186_v44  ;;  %v3280_v47 = vmul.f32 1.442695, %v3278_v5 }
0x1357   : > { %5577 = vpow2.f32 %v3280_v47 }
0x135a   : > { %v6967_v26 = vpop.f32.mrf.mxu1  ;;  %v3432_v24 = vpop.permute.xlu2 %3431 }
0x135b   : > { %v3344_v47 = vsel %vm600_vm5, %v6967_v26, -inf }
0x135d   : > { %2196 = vadd.xlane.f32.xlu0 %v2195_v15  ;;  %v6972_v8 = vpop.eup %5577 }
0x135e   : > { %v3284_v16 = vsel %vm600_vm5, %v6972_v8, 0.0 }
0x1362   : > { %v6970_v34 = vpop.f32.mrf.mxu1 }
0x136a   : > { %v6976_v41 = vpop.f32.mrf.mxu1 }
0x136b   : > { %v3478_v35 = vsel %vm600_vm5, %v6976_v41, -inf }
0x1371   : > { %3770 = vrot.lane.b32.xlu0 %v6922_v28, %s5776_s27 }
0x1379   : > { %3768 = vrot.lane.b32.xlu0 %v6926_v48, %s5776_s27 }
0x1381   : > { %3498 = vrot.lane.b32.xlu0 %v6854_v37, %s7493_s25 }
0x1389   : > { %3766 = vrot.lane.b32.xlu0 %v6932_v14, %s5776_s27 }
0x13b3   : > { %3132 = vadd.xlane.f32.xlu0 %v3131_v49 }
0x13c8   : > { %v2188_v1 = vpop.xlane.xlu0 %2187 }
0x13c9   : > { %v2190_v6 = vmul.f32 %v2188_v1, %v6223_v2 }
0x13cb   : > { %v6939_v10 = vsub.f32 %v2130_v4, %v2190_v6  ;;  %v5161_v4 = vld [vmem:[#allocation4 + $0x18] sm:$0xf0] }
0x13cc   : > { %v6980_v44 = vor.u32 %v5161_v4, %v5048_v54 }
0x13cd   : > { %v2194_v38 = vmul.f32 %v6939_v10, %v6939_v10 }
0x13cf   : > { %v2198_v30 = vsel %vm900_vm7, %v2194_v38, 0.0 }
0x13d0   : > { %2199 = vadd.xlane.f32.xlu1 %v2198_v30  ;;  %v6944_v55 = vpop.xlane.xlu0 %2196 }
0x13d1   : > { %v2201_v1 = vmul.f32 %v6944_v55, %v6223_v2 }
0x13d3   : > { %v2203_v38 = vadd.f32 1e-05, %v2201_v1 }
0x13d5   : > { %vm2211_vm2 = vweird.f32 %v2203_v38 }
0x13e3   : > { %v3771_v33 = vpop.permute.xlu0 %3770 }
0x13e4   : > { %3786 = vmatpush.bf16.msra.mxu1 %v3771_v33 }
0x13e9   : > { %3296 = vrot.lane.b32.xlu1 %v6854_v37, %s5776_s27 }
0x13eb   : > { %v3769_v12 = vpop.permute.xlu0 %3768 }
0x13ec   : > { %3787 = vmatpush.bf16.msra.mxu1 %v3769_v12 }
0x13f3   : > { %v3499_v59 = vpop.permute.xlu0 %3498 }
0x13f4   : > { %3511 = vmatpush.bf16.msrb.mxu3 %v3499_v59 }
0x13fb   : > { %v3767_v0 = vpop.permute.xlu0 %3766 }
0x13fc   : > { %3788 = vmatpush.bf16.msra.mxu1 %v3767_v0 }
0x1413   : > { %3129 = vadd.xlane.f32.xlu1 %v3128_v9 }
0x1426   : > { %v3133_v18 = vpop.xlane.xlu0 %3132 }
0x1427   : > { %v3135_v11 = vmul.f32 %v3133_v18, %v6223_v2 }
0x1429   : > { %v6951_v21 = vsub.f32 %v3127_v61, %v3135_v11 }
0x142b   : > { %v3139_v52 = vmul.f32 %v6951_v21, %v6951_v21 }
0x142d   : > { %v3143_v37 = vsel %vm900_vm7, %v3139_v52, 0.0 }
0x142e   : > { %3144 = vadd.xlane.f32.xlu1 %v3143_v37  ;;  %v3408_v37 = vsel %vm600_vm5, %v6962_v46, -inf }
0x1436   : > { %3276 = vmax.xlane.f32.xlu1 %v3275_v56 }
0x143e   : > { %3342 = vmax.xlane.f32.xlu1 %v3341_v43 }
0x1443   : > { %v2200_v53 = vpop.xlane.xlu1 %2199 }
0x1444   : > { %v2202_v49 = vmul.f32 %v2200_v53, %v6223_v2  ;;  %v2182_v53 = vld [vmem:[%s7473_s9 + $0xa] sm:$0x3] }
0x1445   : > { %v2227_v54 = vperm.slane %v2182_v53, 0 }
0x1446   : > { %3412 = vmax.xlane.f32.xlu1 %v3411_v19  ;;  %v2204_v6 = vadd.f32 1e-05, %v2202_v49 }
0x1448   : > { %5579 = vrsqrt.f32 %v2204_v6  ;;  %vm2221_vm15 = vweird.f32 %v2204_v6 }
0x1449   : > { %5581 = vrsqrt.f32 %v2203_v38 }
0x144e   : > { %3285 = vadd.xlane.f32.xlu1 %v3284_v16  ;;  %v5580_v59 = vpop.eup %5579 }
0x144f   : > { %v5582_v0 = vpop.eup %5581  ;;  %v2216_v9 = vmul.f32 %v5580_v59, %v2204_v6  ;;  %vm2222_vm10 = vweird.f32 %v5580_v59 }
0x1450   : > { %v2206_v11 = vmul.f32 %v5582_v0, %v2203_v38  ;;  %vm2212_vm14 = vweird.f32 %v5582_v0  ;;  %vm2223_vm1 = vmor %vm2221_vm15, %vm2222_vm10 }
0x1451   : > { %v2217_v52 = vmul.f32 %v5580_v59, %v2216_v9  ;;  %vm2213_vm3 = vmor %vm2211_vm2, %vm2212_vm14 }
0x1452   : > { %v2207_v55 = vmul.f32 %v5582_v0, %v2206_v11 }
0x1453   : > { %v2218_v56 = vmul.f32 0.5, %v2217_v52 }
0x1454   : > { %v2208_v23 = vmul.f32 0.5, %v2207_v55 }
0x1455   : > { %v2219_v5 = vsub.f32 1.5, %v2218_v56 }
0x1456   : > { %3479 = vmax.xlane.f32.xlu1 %v3478_v35  ;;  %v2209_v43 = vsub.f32 1.5, %v2208_v23 }
0x1458   : > { %v2210_v19 = vmul.f32 %v5582_v0, %v2209_v43 }
0x145a   : > { %v2214_v35 = vsel %vm2213_vm3, %v5582_v0, %v2210_v19 }
0x145b   : > { %v3297_v22 = vpop.permute.xlu1 %3296  ;;  %v2225_v4 = vmul.f32 %v2214_v35, %v6916_v7 }
0x145c   : > { %3309 = vmatpush.bf16.msrb.mxu0 %v3297_v22 }
0x1460   : > { %3444 = vmatpush.bf16.msra.mxu0 %v3432_v24  ;;  %v3475_v24 = vsel %vm600_vm5, %v6970_v34, -inf }
0x146f   : > { %3762 = vrot.lane.b32.xlu1 %v6980_v44, %s5776_s27 }
0x1486   : > { %v3130_v3 = vpop.xlane.xlu1 %3129 }
0x1487   : > { %v3134_v15 = vmul.f32 %v3130_v3, %v6223_v2 }
0x1489   : > { %v6985_v57 = vsub.f32 %v3126_v27, %v3134_v15  ;;  %v2230_v15 = vperm.slane %v2182_v53, 1 }
0x148b   : > { %v3138_v45 = vmul.f32 %v6985_v57, %v6985_v57 }
0x148d   : > { %v3140_v51 = vsel %vm900_vm7, %v3138_v45, 0.0  ;;  %v2228_v45 = vmul.f32 %v2227_v54, %v2225_v4 }
0x148e   : > { %3141 = vadd.xlane.f32.xlu0 %v3140_v51 }
0x148f   : > { %v7018_v62 = vadd.f32 %v2230_v15, %v2228_v45 }
0x1491   : > { %v3737_v49 = vrot.slane %v7018_v62, 7 }
0x1493   : > { %v3741_v6 = vsel %vm493_vm0, 0.0, %v3737_v49 }
0x14a1   : > { %v3145_v58 = vpop.xlane.xlu1 %3144 }
0x14a2   : > { %3764 = vrot.lane.b32.xlu0 %v6990_v60, %s5776_s27  ;;  %v3147_v1 = vmul.f32 %v3145_v58, %v6223_v2 }
0x14a9   : > { %v6994_v25 = vpop.xlane.xlu1 %3276 }
0x14b1   : > { %v6996_v61 = vpop.xlane.xlu1 %3342 }
0x14b9   : > { %v3413_v30 = vpop.xlane.xlu1 %3412 }
0x14ba   : > { %v3415_v33 = vsub.f32 %v3405_v63, %v3413_v30  ;;  %v2220_v63 = vmul.f32 %v5580_v59, %v2219_v5  ;;  %v3149_v30 = vadd.f32 1e-05, %v3147_v1  ;;  %v3279_v5 = vsub.f32 %v6956_v40, %v6994_v25 }
0x14bc   : > { %v3418_v12 = vmul.f32 1.442695, %v3415_v33  ;;  %v2224_v16 = vsel %vm2223_vm1, %v5580_v59, %v2220_v63  ;;  %vm3166_vm9 = vweird.f32 %v3149_v30 }
0x14bd   : > { %v2226_v22 = vmul.f32 %v2224_v16, %v6939_v10 }
0x14be   : > { %5583 = vpow2.f32 %v3418_v12 }
0x14bf   : > { %v2229_v3 = vmul.f32 %v2227_v54, %v2226_v22  ;;  %5585 = vrsqrt.f32 %v3149_v30  ;;  %v3282_v22 = vmul.f32 1.442695, %v3279_v5 }
0x14c1   : > { %v7016_v51 = vadd.f32 %v2230_v15, %v2229_v3  ;;  %v7030_v11 = vpop.xlane.xlu1 %3285  ;;  %v3347_v3 = vsub.f32 %v6960_v32, %v6996_v61 }
0x14c3   : > { %v3738_v13 = vrot.slane %v7016_v51, 7  ;;  %v5358_v7 = vpack.i.bf16 %v7016_v51, %v7018_v62 }
0x14c4   : > { %v7001_v27 = vpop.eup %5583 }
0x14c5   : > { %v3423_v18 = vsel %vm600_vm5, %v7001_v27, 0.0  ;;  %v3739_v10 = vsel %vm493_vm0, %v3737_v49, %v3738_v13  ;;  %v5586_v33 = vpop.eup %5585 }
0x14c6   : > { %3424 = vadd.xlane.f32.xlu1 %v3423_v18  ;;  %v5353_v38 = vpack.i.bf16 %v3739_v10, %v3741_v6  ;;  %v3161_v12 = vmul.f32 %v5586_v33, %v3149_v30  ;;  %vm3167_vm8 = vweird.f32 %v5586_v33 }
0x14c7   : > { %vm3168_vm10 = vmor %vm3166_vm9, %vm3167_vm8 }
0x14c8   : > { %v3162_v59 = vmul.f32 %v5586_v33, %v3161_v12 }
0x14c9   : > { %v3480_v43 = vpop.xlane.xlu1 %3479 }
0x14ca   : > { %v3163_v58 = vmul.f32 0.5, %v3162_v59 }
0x14cc   : > { %3409 = vmax.xlane.f32.xlu0 %v3408_v37  ;;  %v3164_v52 = vsub.f32 1.5, %v3163_v58 }
0x14ce   : > { %v3165_v37 = vmul.f32 %v5586_v33, %v3164_v52 }
0x14d0   : > { %v3169_v63 = vsel %vm3168_vm10, %v5586_v33, %v3165_v37 }
0x14d1   : > { %v3171_v35 = vmul.f32 %v3169_v63, %v6951_v21  ;;  %v3349_v21 = vmul.f32 1.442695, %v3347_v3 }
0x14d4   : > { %3345 = vmax.xlane.f32.xlu0 %v3344_v47  ;;  %v3125_v47 = vld [vmem:[%s7473_s9 + $0xe] sm:$0x3] }
0x14d5   : > { %v3172_v53 = vperm.slane %v3125_v47, 0  ;;  %v3175_v4 = vperm.slane %v3125_v47, 1 }
0x14d7   : > { %v3174_v25 = vmul.f32 %v3172_v53, %v3171_v35 }
0x14d9   : > { %v7041_v49 = vadd.f32 %v3175_v4, %v3174_v25 }
0x14dc   : > { %3476 = vmax.xlane.f32.xlu0 %v3475_v24 }
0x14e1   : > { %v3763_v45 = vpop.permute.xlu1 %3762 }
0x14f0   : > { %5354 = vrot.lane.b32.xlu0 %v5353_v38, %s5785_s24 }
0x14f8   : > { %5359 = vrot.lane.b32.xlu0 %v5358_v7, %s5783_s16 }
0x1501   : > { %v3142_v0 = vpop.xlane.xlu0 %3141 }
0x1502   : > { %v3146_v9 = vmul.f32 %v3142_v0, %v6223_v2 }
0x1504   : > { %v3148_v18 = vadd.f32 1e-05, %v3146_v9 }
0x1506   : > { %5587 = vrsqrt.f32 %v3148_v18  ;;  %vm3156_vm15 = vweird.f32 %v3148_v18 }
0x1507   : > { %5589 = vpow2.f32 %v3282_v22 }
0x1508   : > { %5591 = vpow2.f32 %v3349_v21  ;;  %v3651_v21 = vrot.slane %v7041_v49, 7 }
0x150c   : > { %v5588_v55 = vpop.eup %5587 }
0x150d   : > { %v3151_v56 = vmul.f32 %v5588_v55, %v3148_v18  ;;  %vm3157_vm14 = vweird.f32 %v5588_v55  ;;  %v7045_v1 = vpop.eup %5589 }
0x150e   : > { %vm3158_vm1 = vmor %vm3156_vm15, %vm3157_vm14  ;;  %v3287_v32 = vsel %vm600_vm5, %v7045_v1, 0.0 }
0x150f   : > { %v3152_v23 = vmul.f32 %v5588_v55, %v3151_v56 }
0x1511   : > { %v3153_v19 = vmul.f32 0.5, %v3152_v23 }
0x1513   : > { %v3154_v16 = vsub.f32 1.5, %v3153_v19 }
0x1514   : > { %v3765_v24 = vpop.permute.xlu0 %3764 }
0x1515   : > { %v3155_v54 = vmul.f32 %v5588_v55, %v3154_v16  ;;  %3789 = vmatpush.bf16.msra.mxu1 %v3765_v24  ;;  %v5044_v16 = vld [vmem:[#allocation4 + $0x4] sm:$0xf] }
0x1517   : > { %v3159_v40 = vsel %vm3158_vm1, %v5588_v55, %v3155_v54 }
0x1518   : > { %v3170_v15 = vmul.f32 %v3159_v40, %v6985_v57  ;;  %v7052_v57 = vpop.eup %5591 }
0x1519   : > { %3790 = vmatpush.bf16.msra.mxu1 %v3763_v45  ;;  %v3353_v61 = vsel %vm600_vm5, %v7052_v57, 0.0 }
0x151a   : > { %v3173_v13 = vmul.f32 %v3172_v53, %v3170_v15  ;;  %v5160_v53 = vld [vmem:[#allocation4 + $0x8] sm:$0xf0] }
0x151b   : > { %v5045_v22 = vor.u32 %v5160_v53, %v5044_v16 }
0x151c   : > { %v7043_v10 = vadd.f32 %v3175_v4, %v3173_v13 }
0x151e   : > { %v5368_v6 = vpack.i.bf16 %v7041_v49, %v7043_v10  ;;  %v3650_v13 = vrot.slane %v7043_v10, 7 }
0x1520   : > { %5369 = vrot.lane.b32.xlu1 %v5368_v6, %s5783_s16  ;;  %v3652_v6 = vsel %vm493_vm0, %v3650_v13, %v3651_v21 }
0x1522   : > { %3288 = vadd.xlane.f32.xlu0 %v3287_v32  ;;  %v3654_v32 = vsel %vm493_vm0, 0.0, %v3650_v13 }
0x1528   : > { %3553 = vrot.lane.b32.xlu1 %v6742_v50, %s5785_s24 }
0x152a   : > { %3354 = vadd.xlane.f32.xlu0 %v3353_v61  ;;  %v5363_v61 = vpack.i.bf16 %v3652_v6, %v3654_v32  ;;  %v3802_v32 = vpack.c.bf16 %v7016_v51, %v7018_v62 }
0x153f   : > { %v3410_v38 = vpop.xlane.xlu0 %3409 }
0x1540   : > { %v3414_v30 = vsub.f32 %v6962_v46, %v3410_v38  ;;  %v3482_v46 = vsub.f32 %v6976_v41, %v3480_v43  ;;  %v3731_v41 = vrot.slane %v7018_v62, 6 }
0x1542   : > { %v3416_v7 = vmul.f32 1.442695, %v3414_v30  ;;  %v3736_v54 = vsel %vm679_vm11, 0.0, %v3731_v41 }
0x1544   : > { %5593 = vpow2.f32 %v3416_v7 }
0x1547   : > { %v3346_v33 = vpop.xlane.xlu0 %3345 }
0x1548   : > { %v3348_v12 = vsub.f32 %v6967_v26, %v3346_v33  ;;  %v3485_v26 = vmul.f32 1.442695, %v3482_v46  ;;  %v5167_v46 = vld [vmem:[#allocation2 + $0x70] sm:$0xf0] }
0x154a   : > { %v7060_v59 = vpop.eup %5593  ;;  %v3351_v0 = vmul.f32 1.442695, %v3348_v12 }
0x154b   : > { %v3420_v9 = vsel %vm600_vm5, %v7060_v59, 0.0 }
0x154c   : > { %5595 = vpow2.f32 %v3351_v0  ;;  %3421 = vadd.xlane.f32.xlu2 %v3420_v9 }
0x154f   : > { %v3477_v50 = vpop.xlane.xlu0 %3476 }
0x1550   : > { %v3481_v18 = vsub.f32 %v6970_v34, %v3477_v50  ;;  %v3732_v34 = vrot.slane %v7016_v51, 6 }
0x1552   : > { %v7065_v58 = vpop.eup %5595  ;;  %v3483_v52 = vmul.f32 1.442695, %v3481_v18  ;;  %v3733_v63 = vsel %vm679_vm11, %v3731_v41, %v3732_v34 }
0x1553   : > { %v3356_v55 = vsel %vm600_vm5, %v7065_v58, 0.0 }
0x1554   : > { %5597 = vpow2.f32 %v3483_v52  ;;  %3357 = vadd.xlane.f32.xlu2 %v3356_v55 }
0x1555   : > { %5599 = vpow2.f32 %v3485_v26 }
0x1556   : > { %5601 = vrcp.f32 %v7030_v11  ;;  %v3425_v11 = vpop.xlane.xlu1 %3424 }
0x155a   : > { %v7070_v37 = vpop.eup %5597 }
0x155b   : > { %v3487_v56 = vsel %vm600_vm5, %v7070_v37, 0.0  ;;  %v7074_v23 = vpop.eup %5599 }
0x155c   : > { %3488 = vadd.xlane.f32.xlu0 %v3487_v56  ;;  %v3490_v47 = vsel %vm600_vm5, %v7074_v23, 0.0  ;;  %v5602_v30 = vpop.eup %5601 }
0x155d   : > { %v3292_v33 = vmul.f32 %v5602_v30, %v6972_v8 }
0x1562   : > { %v5355_v5 = vpop.permute.xlu0 %5354 }
0x1563   : > { %v5357_v43 = vunpack.i.h.bf16 %v5355_v5  ;;  %v5356_v35 = vunpack.i.l.bf16 %v5355_v5  ;;  %v5166_v5 = vld [vmem:[#allocation2 + $0x30] sm:$0xf0] }
0x1564   : > { %3491 = vadd.xlane.f32.xlu0 %v3490_v47 }
0x1565   : > { %v3756_v19 = vsel %vm900_vm7, %v3733_v63, %v5357_v43  ;;  %v3755_v25 = vsel %vm900_vm7, %v3736_v54, %v5356_v35  ;;  %v7113_v43 = vld [vmem:[%s7472_s8 + $0x6] ss:$0 sm:$0xff]  ;;  %v3644_v35 = vrot.slane %v7043_v10, 6 }
0x156a   : > { %v5360_v24 = vpop.permute.xlu0 %5359 }
0x156b   : > { %v5362_v4 = vunpack.i.h.bf16 %v5360_v24  ;;  %v5361_v40 = vunpack.i.l.bf16 %v5360_v24  ;;  %v3645_v24 = vrot.slane %v7041_v49, 6 }
0x156c   : > { %3760 = vrot.lane.b32.xlu2 %v5045_v22, %s5776_s27 }
0x156d   : > { %v3757_v3 = vsel %vm1395_vm12, %v3755_v25, %v5361_v40  ;;  %v3758_v15 = vsel %vm1395_vm12, %v3756_v19, %v5362_v4 }
0x156e   : > { %v3759_v45 = vpack.c.bf16 %v3758_v15, %v3757_v3  ;;  %v3646_v15 = vsel %vm679_vm11, %v3644_v35, %v3645_v24 }
0x1574   : > { %3778 = vrot.lane.b32.xlu2 %v7113_v43, %s5785_s24 }
0x1578   : > { %5364 = vrot.lane.b32.xlu0 %v5363_v61, %s5785_s24 }
0x1580   : > { %3709 = vrot.lane.b32.xlu0 %v7113_v43, %s5783_s16 }
0x1595   : > { %v3289_v38 = vpop.xlane.xlu0 %3288 }
0x1596   : > { %5603 = vrcp.f32 %v3289_v38 }
0x1597   : > { %5605 = vrcp.f32 %v3425_v11 }
0x159c   : > { %v5604_v7 = vpop.eup %5603 }
0x159d   : > { %v3293_v12 = vmul.f32 %v5604_v7, %v7045_v1  ;;  %v3355_v8 = vpop.xlane.xlu0 %3354  ;;  %v5606_v1 = vpop.eup %5605 }
0x159e   : > { %v3429_v18 = vmul.f32 %v5606_v1, %v7001_v27 }
0x159f   : > { %v3294_v0 = vpack.c.bf16 %v3293_v12, %v3292_v33 }
0x15a1   : > { %5034 = vmatmul.msk.bf16.vlgmr.msrb.gmra.mxu0 %vm600_vm5, %v3294_v0 }
0x15a2   : > { %3717 = vmatpush.bf16.msrb.mxu0 %v6922_v28 }
0x15a6   : > { %3718 = vmatpush.bf16.msrb.mxu0 %v6926_v48 }
0x15aa   : > { %3719 = vmatpush.bf16.msrb.mxu0 %v6932_v14 }
0x15ae   : > { %3720 = vmatpush.bf16.msrb.mxu0 %v6990_v60 }
0x15b2   : > { %3721 = vmatpush.bf16.msrb.mxu0 %v6980_v44  ;;  %v5074_v44 = vld [vmem:[#allocation2 + $0x54] sm:$0xf] }
0x15b3   : > { %v7106_v41 = vor.u32 %v5167_v46, %v5074_v44 }
0x15b6   : > { %3722 = vmatpush.bf16.msrb.mxu0 %v5045_v22  ;;  %v5370_v22 = vpop.permute.xlu1 %5369 }
0x15b7   : > { %v5372_v25 = vunpack.i.h.bf16 %v5370_v22  ;;  %v5371_v3 = vunpack.i.l.bf16 %v5370_v22 }
0x15bf   : > { %v3422_v9 = vpop.xlane.xlu2 %3421 }
0x15c0   : > { %5607 = vrcp.f32 %v3422_v9 }
0x15c1   : > { %5609 = vrcp.f32 %v3355_v8 }
0x15c6   : > { %v5608_v50 = vpop.eup %5607 }
0x15c7   : > { %v3428_v28 = vmul.f32 %v5608_v50, %v7060_v59  ;;  %v3358_v48 = vpop.xlane.xlu2 %3357  ;;  %v5610_v60 = vpop.eup %5609  ;;  %v5070_v59 = vld [vmem:[#allocation2 + $0x14] sm:$0xf] }
0x15c8   : > { %5611 = vrcp.f32 %v3358_v48  ;;  %v3361_v55 = vmul.f32 %v5610_v60, %v7052_v57  ;;  %v7116_v57 = vor.u32 %v5166_v5, %v5070_v59  ;;  %v3554_v5 = vpop.permute.xlu1 %3553 }
0x15c9   : > { %v3430_v14 = vpack.c.bf16 %v3429_v18, %v3428_v28  ;;  %3569 = vmatpush.bf16.msrb.mxu2 %v3554_v5 }
0x15cb   : > { %5038 = vmatmul.msk.bf16.vlgmr.msra.gmra.mxu0 %vm600_vm5, %v3430_v14 }
0x15ce   : > { %v5612_v52 = vpop.eup %5611 }
0x15cf   : > { %v3362_v26 = vmul.f32 %v5612_v52, %v7065_v58  ;;  %v3761_v56 = vpop.permute.xlu2 %3760  ;;  %v3489_v34 = vpop.xlane.xlu0 %3488 }
0x15d0   : > { %3791 = vmatpush.bf16.msra.mxu1 %v3761_v56  ;;  %5613 = vrcp.f32 %v3489_v34  ;;  %v7149_v56 = vld [vmem:[%s7472_s8 + $0x7] ss:$0 sm:$0xff] }
0x15d1   : > { %v3363_v27 = vpack.c.bf16 %v3362_v26, %v3361_v55 }
0x15d3   : > { %5036 = vmatmul.msk.bf16.vlgmr.msra.gmra.mxu3 %vm600_vm5, %v3363_v27  ;;  %5067 = vmatmul.msk.bf16.vlgmr.msra.gmra.mxu1 %vm1555_vm13, %v3759_v45  ;;  %v3649_v45 = vsel %vm679_vm11, 0.0, %v3644_v35 }
0x15d4   : > { %3828 = vmatpush.bf16.msra.mxu3 %v7106_v41 }
0x15d6   : > { %v5614_v47 = vpop.eup %5613 }
0x15d7   : > { %v3492_v58 = vpop.xlane.xlu0 %3491  ;;  %v3495_v19 = vmul.f32 %v5614_v47, %v7070_v37  ;;  %v3779_v0 = vpop.permute.xlu2 %3778 }
0x15d8   : > { %5615 = vrcp.f32 %v3492_v58  ;;  %3829 = vmatpush.bf16.msra.mxu3 %v7116_v57 }
0x15de   : > { %v5616_v63 = vpop.eup %5615 }
0x15df   : > { %v3496_v16 = vmul.f32 %v5616_v63, %v7074_v23 }
0x15e1   : > { %v3497_v53 = vpack.c.bf16 %v3496_v16, %v3495_v19 }
0x15e3   : > { %5040 = vmatmul.msk.bf16.vlgmr.msrb.gmra.mxu3 %vm600_vm5, %v3497_v53 }
0x15ea   : > { %v5365_v54 = vpop.permute.xlu0 %5364 }
0x15eb   : > { %v5367_v4 = vunpack.i.h.bf16 %v5365_v54  ;;  %v5366_v40 = vunpack.i.l.bf16 %v5365_v54 }
0x15ed   : > { %v3669_v37 = vsel %vm900_vm7, %v3646_v15, %v5367_v4  ;;  %v3668_v23 = vsel %vm900_vm7, %v3649_v45, %v5366_v40 }
0x15ee   : > { %v3670_v13 = vsel %vm1395_vm12, %v3668_v23, %v5371_v3  ;;  %v3671_v21 = vsel %vm1395_vm12, %v3669_v37, %v5372_v25 }
0x15ef   : > { %v3672_v6 = vpack.c.bf16 %v3671_v21, %v3670_v13 }
0x15f1   : > { %5066 = vmatmul.msk.bf16.vlgmr.msrb.gmra.mxu0 %vm1555_vm13, %v3672_v6 }
0x15f2   : > { %v3710_v60 = vpop.permute.xlu0 %3709 }
0x15f3   : > { %5076 = vmatmul.msk.bf16.vlgmr.msra.gmra.mxu3 %vm900_vm7, %v3802_v32 }
0x161e   : > { %v3311_v61 = vpop.f32.mrf.mxu0 }
0x1626   : > { %v3313_v38 = vpop.f32.mrf.mxu0 }
0x1648   : > { %v3446_v30 = vpop.f32.mrf.mxu0 }
0x1650   : > { %v3448_v7 = vpop.f32.mrf.mxu0  ;;  %v3793_v33 = vpop.f32.mrf.mxu1 }
0x1651   : > { %v5378_v12 = vpack.i.bf16 %v3448_v7, %v3446_v30  ;;  %v3794_v8 = vadd.f32 %v3793_v33, %v3779_v0 }
0x1653   : > { %5379 = vrot.lane.b32.xlu0 %v5378_v12, %s7491_s18 }
0x1656   : > { %v3379_v11 = vpop.f32.mrf.mxu3 }
0x1658   : > { %v3795_v9 = vpop.f32.mrf.mxu1 }
0x1659   : > { %v3796_v1 = vadd.f32 %v3795_v9, %v3779_v0 }
0x165b   : > { %v3837_v50 = vpack.c.bf16 %v3796_v1, %v3794_v8 }
0x165d   : > { %3903 = vrot.lane.b32.xlu0 %v3837_v50, %s5774_s20  ;;  %v3842_v63 = vsel %vm597_vm4, %v3837_v50, 0 }
0x165e   : > { %v3381_v18 = vpop.f32.mrf.mxu3 }
0x165f   : > { %v5373_v51 = vpack.i.bf16 %v3381_v18, %v3379_v11 }
0x1661   : > { %5374 = vrot.lane.b32.xlu2 %v5373_v51, %s5770_s21 }
0x1665   : > { %4038 = vrot.lane.b32.xlu0 %v3837_v50, %s5780_s12 }
0x1666   : > { %v3513_v62 = vpop.f32.mrf.mxu3 }
0x1669   : > { %3551 = vrot.lane.b32.xlu2 %v6750_v31, %s5785_s24 }
0x166e   : > { %v3515_v28 = vpop.f32.mrf.mxu3  ;;  %v3724_v48 = vpop.f32.mrf.mxu0 }
0x166f   : > { %v5383_v14 = vpack.i.bf16 %v3515_v28, %v3513_v62  ;;  %v3725_v52 = vadd.f32 %v3724_v48, %v3710_v60 }
0x1671   : > { %5384 = vrot.lane.b32.xlu1 %v5383_v14, %s7490_s13  ;;  %3971 = vrot.lane.b32.xlu2 %v3837_v50, %s5777_s28 }
0x1676   : > { %v3726_v44 = vpop.f32.mrf.mxu0  ;;  %v3831_v46 = vpop.f32.mrf.mxu3 }
0x1677   : > { %v3727_v55 = vadd.f32 %v3726_v44, %v3710_v60  ;;  %v3832_v34 = vadd.f32 %v7149_v56, %v3831_v46 }
0x1679   : > { %v3836_v26 = vpack.c.bf16 %v3727_v55, %v3725_v52 }
0x167b   : > { %4036 = vrot.lane.b32.xlu2 %v3836_v26, %s5780_s12  ;;  %3900 = vrot.lane.b32.xlu1 %v3836_v26, %s5774_s20 }
0x167e   : > { %v3833_v31 = vpop.f32.mrf.mxu3 }
0x167f   : > { %v3834_v27 = vadd.f32 %v7149_v56, %v3833_v31 }
0x1681   : > { %v7155_v59 = vpack.c.bf16 %v3834_v27, %v3832_v34 }
0x1683   : > { %3892 = vmatpush.bf16.msra.mxu0 %v7155_v59  ;;  %3969 = vrot.lane.b32.xlu1 %v3836_v26, %s5777_s28 }
0x16bb   : > { %v5375_v58 = vpop.permute.xlu2 %5374 }
0x16bc   : > { %v5377_v24 = vunpack.i.h.bf16 %v5375_v58  ;;  %v5376_v54 = vunpack.i.l.bf16 %v5375_v58 }
0x16be   : > { %v3542_v3 = vsel %vm597_vm4, %v3311_v61, %v5376_v54  ;;  %v3543_v15 = vsel %vm597_vm4, %v3313_v38, %v5377_v24 }
0x16c3   : > { %v3552_v47 = vpop.permute.xlu2 %3551 }
0x16c4   : > { %3570 = vmatpush.bf16.msrb.mxu2 %v3552_v47 }
0x16c5   : > { %v5380_v19 = vpop.permute.xlu0 %5379 }
0x16c6   : > { %v5382_v4 = vunpack.i.h.bf16 %v5380_v19  ;;  %v5381_v40 = vunpack.i.l.bf16 %v5380_v19 }
0x16c8   : > { %3851 = vmatpush.bf16.xpose.msra.mxu2 %v3842_v63  ;;  %v3545_v23 = vsel %vm600_vm5, %v3543_v15, %v5382_v4  ;;  %v3544_v13 = vsel %vm600_vm5, %v3542_v3, %v5381_v40 }
0x16cb   : > { %v3972_v21 = vpop.permute.xlu2 %3971 }
0x16cc   : > { %v3977_v7 = vsel %vm597_vm4, %v3972_v21, 0 }
0x16cf   : > { %v3904_v16 = vpop.permute.xlu0 %3903 }
0x16d0   : > { %v3909_v53 = vsel %vm597_vm4, %v3904_v16, 0 }
0x16d1   : > { %3918 = vmatpush.bf16.xpose.msrb.mxu3 %v3909_v53 }
0x16d5   : > { %v4037_v38 = vpop.permute.xlu2 %4036 }
0x16d7   : > { %v4039_v35 = vpop.permute.xlu0 %4038 }
0x16d8   : > { %v4044_v22 = vsel %vm597_vm4, %v4039_v35, 0 }
0x16d9   : > { %4053 = vmatpush.bf16.xpose.msra.mxu3 %v4044_v22 }
0x16e3   : > { %v5385_v25 = vpop.permute.xlu1 %5384 }
0x16e4   : > { %v5387_v45 = vunpack.i.h.bf16 %v5385_v25  ;;  %v5386_v37 = vunpack.i.l.bf16 %v5385_v25 }
0x16e6   : > { %v3547_v6 = vsel %vm613_vm6, %v3545_v23, %v5387_v45  ;;  %v3546_v32 = vsel %vm613_vm6, %v3544_v13, %v5386_v37 }
0x16e7   : > { %v3548_v30 = vpack.c.bf16 %v3547_v6, %v3546_v32 }
0x16e9   : > { %5041 = vmatmul.msk.bf16.vlgmr.msrb.gmra.mxu2 %vm900_vm7, %v3548_v30 }
0x16ea   : > { %3986 = vmatpush.bf16.xpose.msrb.mxu2 %v3977_v7 }
0x16ed   : > { %v3901_v61 = vpop.permute.xlu1 %3900 }
0x16ee   : > { %5079 = vmatmul.msk.bf16.vlgmr.msrb.gmra.mxu3 %vm597_vm4, %v3901_v61 }
0x16f5   : > { %v3970_v33 = vpop.permute.xlu1 %3969 }
0x16f9   : > { %5077 = vmatmul.msk.bf16.vlgmr.msra.gmra.mxu2 %vm597_vm4, %v3836_v26 }
0x16fe   : > { %5083 = vmatmul.msk.bf16.vlgmr.msra.gmra.mxu3 %vm597_vm4, %v4037_v38 }
0x1709   : > { %5081 = vmatmul.msk.bf16.vlgmr.msrb.gmra.mxu2 %vm597_vm4, %v3970_v33 }
0x176c   : > { %v7174_v12 = vpop.f32.mrf.mxu2 }
0x1771   : > { %v3920_v0 = vpop.f32.mrf.mxu3 }
0x1772   : > { %v3925_v11 = vsel %vm600_vm5, %v3920_v0, -inf }
0x1773   : > { %3926 = vmax.xlane.f32.xlu2 %v3925_v11 }
0x1774   : > { %v7177_v9 = vpop.f32.mrf.mxu2 }
0x1779   : > { %v3922_v8 = vpop.f32.mrf.mxu3 }
0x177a   : > { %v3928_v1 = vsel %vm600_vm5, %v3922_v8, -inf }
0x177b   : > { %3929 = vmax.xlane.f32.xlu0 %v3928_v1 }
0x177c   : > { %v3853_v50 = vpop.f32.mrf.mxu2 }
0x177d   : > { %v3858_v18 = vsel %vm600_vm5, %v3853_v50, -inf }
0x1781   : > { %v4055_v28 = vpop.f32.mrf.mxu3 }
0x1782   : > { %v4060_v48 = vsel %vm600_vm5, %v4055_v28, -inf }
0x1783   : > { %3859 = vmax.xlane.f32.xlu0 %v3858_v18 }
0x1784   : > { %v3855_v51 = vpop.f32.mrf.mxu2 }
0x1785   : > { %v3861_v62 = vsel %vm600_vm5, %v3855_v51, -inf }
0x1786   : > { %3862 = vmax.xlane.f32.xlu1 %v3861_v62 }
0x1789   : > { %v4057_v44 = vpop.f32.mrf.mxu3 }
0x178a   : > { %v4063_v55 = vsel %vm600_vm5, %v4057_v44, -inf }
0x178b   : > { %4061 = vmax.xlane.f32.xlu0 %v4060_v48 }
0x178c   : > { %v3988_v14 = vpop.f32.mrf.mxu2 }
0x178d   : > { %v3993_v60 = vsel %vm600_vm5, %v3988_v14, -inf }
0x178e   : > { %3994 = vmax.xlane.f32.xlu1 %v3993_v60 }
0x1794   : > { %v3990_v46 = vpop.f32.mrf.mxu2 }
0x1795   : > { %v3996_v52 = vsel %vm600_vm5, %v3990_v46, -inf }
0x1796   : > { %3997 = vmax.xlane.f32.xlu2 %v3996_v52  ;;  %4064 = vmax.xlane.f32.xlu1 %v4063_v55 }
0x179f   : > { %3949 = vrot.lane.b32.xlu0 %v7155_v59, %s5774_s20 }
0x17e6   : > { %v3927_v26 = vpop.xlane.xlu2 %3926 }
0x17e7   : > { %v3931_v31 = vsub.f32 %v3920_v0, %v3927_v26 }
0x17e9   : > { %v3933_v34 = vmul.f32 1.442695, %v3931_v31 }
0x17eb   : > { %5617 = vpow2.f32 %v3933_v34 }
0x17ee   : > { %v3930_v27 = vpop.xlane.xlu0 %3929 }
0x17ef   : > { %v3932_v19 = vsub.f32 %v3922_v8, %v3930_v27 }
0x17f1   : > { %v7188_v5 = vpop.eup %5617  ;;  %v3935_v24 = vmul.f32 1.442695, %v3932_v19 }
0x17f2   : > { %v3937_v58 = vsel %vm600_vm5, %v7188_v5, 0.0 }
0x17f3   : > { %3938 = vadd.xlane.f32.xlu1 %v3937_v58 }
0x17f6   : > { %v3860_v47 = vpop.xlane.xlu0 %3859 }
0x17f7   : > { %v3864_v63 = vsub.f32 %v3853_v50, %v3860_v47 }
0x17f9   : > { %v3866_v16 = vmul.f32 1.442695, %v3864_v63  ;;  %v3863_v53 = vpop.xlane.xlu1 %3862 }
0x17fa   : > { %v3865_v35 = vsub.f32 %v3855_v51, %v3863_v53 }
0x17fb   : > { %5619 = vpow2.f32 %v3866_v16 }
0x17fc   : > { %v3868_v22 = vmul.f32 1.442695, %v3865_v35 }
0x17fe   : > { %5621 = vpow2.f32 %v3868_v22  ;;  %v4062_v54 = vpop.xlane.xlu0 %4061 }
0x17ff   : > { %v4066_v4 = vsub.f32 %v4055_v28, %v4062_v54  ;;  %5623 = vpow2.f32 %v3935_v24 }
0x1801   : > { %v5620_v40 = vpop.eup %5619  ;;  %v4068_v25 = vmul.f32 1.442695, %v4066_v4  ;;  %v3995_v3 = vpop.xlane.xlu1 %3994 }
0x1802   : > { %v3999_v15 = vsub.f32 %v3988_v14, %v3995_v3  ;;  %v3870_v45 = vsel %vm600_vm5, %v5620_v40, 0.0 }
0x1803   : > { %5625 = vpow2.f32 %v4068_v25  ;;  %3871 = vadd.xlane.f32.xlu2 %v3870_v45 }
0x1804   : > { %v5622_v37 = vpop.eup %5621  ;;  %v4001_v23 = vmul.f32 1.442695, %v3999_v15 }
0x1805   : > { %v3873_v13 = vsel %vm600_vm5, %v5622_v37, 0.0  ;;  %v5624_v21 = vpop.eup %5623 }
0x1806   : > { %3874 = vadd.xlane.f32.xlu0 %v3873_v13  ;;  %5627 = vpow2.f32 %v4001_v23  ;;  %v3940_v61 = vsel %vm600_vm5, %v5624_v21, 0.0 }
0x1809   : > { %v7194_v6 = vpop.eup %5625  ;;  %v3998_v32 = vpop.xlane.xlu2 %3997 }
0x180a   : > { %v4065_v30 = vpop.xlane.xlu1 %4064  ;;  %v4000_v7 = vsub.f32 %v3990_v46, %v3998_v32  ;;  %v4072_v38 = vsel %vm600_vm5, %v7194_v6, 0.0 }
0x180b   : > { %3941 = vadd.xlane.f32.xlu2 %v3940_v61  ;;  %4073 = vadd.xlane.f32.xlu1 %v4072_v38  ;;  %v4067_v0 = vsub.f32 %v4057_v44, %v4065_v30 }
0x180c   : > { %v4003_v33 = vmul.f32 1.442695, %v4000_v7  ;;  %v5628_v11 = vpop.eup %5627 }
0x180d   : > { %v4070_v8 = vmul.f32 1.442695, %v4067_v0  ;;  %v4005_v50 = vsel %vm600_vm5, %v5628_v11, 0.0 }
0x180e   : > { %5629 = vpow2.f32 %v4003_v33 }
0x180f   : > { %5631 = vpow2.f32 %v4070_v8 }
0x1811   : > { %v3950_v1 = vpop.permute.xlu0 %3949 }
0x1812   : > { %3962 = vmatpush.bf16.msrb.mxu1 %v3950_v1 }
0x1813   : > { %4006 = vadd.xlane.f32.xlu1 %v4005_v50 }
0x1814   : > { %v5630_v18 = vpop.eup %5629 }
0x1815   : > { %v4008_v51 = vsel %vm600_vm5, %v5630_v18, 0.0  ;;  %v5632_v62 = vpop.eup %5631 }
0x1816   : > { %4009 = vadd.xlane.f32.xlu2 %v4008_v51  ;;  %v4075_v28 = vsel %vm600_vm5, %v5632_v62, 0.0 }
0x181a   : > { %4016 = vrot.lane.b32.xlu0 %v7155_v59, %s5777_s28 }
0x181e   : > { %4076 = vadd.xlane.f32.xlu2 %v4075_v28 }
0x182c   : > { %4083 = vrot.lane.b32.xlu1 %v7155_v59, %s5780_s12 }
0x1834   : > { %4134 = vrot.lane.b32.xlu1 %v7116_v57, %s5776_s27 }
0x1836   : > { %4136 = vrot.lane.b32.xlu2 %v7106_v41, %s5776_s27 }
0x183e   : > { %3557 = vrot.lane.b32.xlu2 %v7113_v43, %s5776_s27 }
0x1866   : > { %v3939_v48 = vpop.xlane.xlu1 %3938 }
0x1876   : > { %v3872_v14 = vpop.xlane.xlu2 %3871 }
0x1877   : > { %5633 = vrcp.f32 %v3872_v14 }
0x1879   : > { %v3875_v60 = vpop.xlane.xlu0 %3874 }
0x187a   : > { %5635 = vrcp.f32 %v3875_v60 }
0x187b   : > { %5637 = vrcp.f32 %v3939_v48 }
0x187d   : > { %v5634_v44 = vpop.eup %5633 }
0x187e   : > { %v3942_v46 = vpop.xlane.xlu2 %3941  ;;  %v4074_v52 = vpop.xlane.xlu1 %4073  ;;  %v3878_v55 = vmul.f32 %v5634_v44, %v5620_v40 }
0x187f   : > { %5639 = vrcp.f32 %v3942_v46 }
0x1880   : > { %v5636_v59 = vpop.eup %5635 }
0x1881   : > { %v3879_v26 = vmul.f32 %v5636_v59, %v5622_v37  ;;  %v5638_v31 = vpop.eup %5637 }
0x1882   : > { %v3945_v43 = vmul.f32 %v5638_v31, %v7188_v5 }
0x1883   : > { %v3880_v34 = vpack.c.bf16 %v3879_v26, %v3878_v55 }
0x1885   : > { %v5640_v27 = vpop.eup %5639  ;;  %5078 = vmatmul.msk.bf16.vlgmr.msra.gmra.mxu0 %vm600_vm5, %v3880_v34 }
0x1886   : > { %v3946_v58 = vmul.f32 %v5640_v27, %v5624_v21  ;;  %v4007_v47 = vpop.xlane.xlu1 %4006 }
0x1887   : > { %5641 = vrcp.f32 %v4007_v47 }
0x1888   : > { %v3947_v63 = vpack.c.bf16 %v3946_v58, %v3945_v43 }
0x1889   : > { %v4010_v19 = vpop.xlane.xlu2 %4009 }
0x188a   : > { %5643 = vrcp.f32 %v4010_v19  ;;  %5080 = vmatmul.msk.bf16.vlgmr.msrb.gmra.mxu1 %vm600_vm5, %v3947_v63 }
0x188c   : > { %v4017_v16 = vpop.permute.xlu0 %4016 }
0x188d   : > { %4029 = vmatpush.bf16.msrb.mxu0 %v4017_v16  ;;  %v5642_v53 = vpop.eup %5641 }
0x188e   : > { %v4013_v22 = vmul.f32 %v5642_v53, %v5628_v11 }
0x1890   : > { %v5644_v35 = vpop.eup %5643 }
0x1891   : > { %v4014_v24 = vmul.f32 %v5644_v35, %v5630_v18  ;;  %v4077_v54 = vpop.xlane.xlu2 %4076 }
0x1892   : > { %5645 = vrcp.f32 %v4077_v54 }
0x1893   : > { %v4015_v4 = vpack.c.bf16 %v4014_v24, %v4013_v22  ;;  %5647 = vrcp.f32 %v4074_v52 }
0x1895   : > { %5082 = vmatmul.msk.bf16.vlgmr.msrb.gmra.mxu0 %vm600_vm5, %v4015_v4 }
0x1898   : > { %v5646_v5 = vpop.eup %5645 }
0x1899   : > { %v4137_v40 = vpop.permute.xlu2 %4136  ;;  %v5648_v25 = vpop.eup %5647  ;;  %v4081_v3 = vmul.f32 %v5646_v5, %v5632_v62 }
0x189a   : > { %4152 = vmatpush.bf16.msra.mxu2 %v4137_v40  ;;  %v4080_v15 = vmul.f32 %v5648_v25, %v7194_v6 }
0x189c   : > { %v4082_v37 = vpack.c.bf16 %v4081_v3, %v4080_v15 }
0x189e   : > { %v4084_v45 = vpop.permute.xlu1 %4083 }
0x189f   : > { %4096 = vmatpush.bf16.msra.mxu1 %v4084_v45 }
0x18a1   : > { %v3558_v23 = vpop.permute.xlu2 %3557 }
0x18a2   : > { %v3573_v13 = vadd.f32 %v7174_v12, %v3558_v23  ;;  %v3575_v21 = vadd.f32 %v7177_v9, %v3558_v23  ;;  %5084 = vmatmul.msk.bf16.vlgmr.msra.gmra.mxu1 %vm600_vm5, %v4082_v37 }
0x18a4   : > { %v3579_v32 = vadd.f32 %v3575_v21, %v6858_v17  ;;  %v3578_v30 = vadd.f32 %v3573_v13, %v6856_v39 }
0x18a6   : > { %v3583_v7 = vsel %vm900_vm7, %v3579_v32, 0.0  ;;  %v3580_v61 = vsel %vm900_vm7, %v3578_v30, 0.0  ;;  %v4135_v6 = vpop.permute.xlu1 %4134 }
0x18a7   : > { %3584 = vadd.xlane.f32.xlu2 %v3583_v7  ;;  %3581 = vadd.xlane.f32.xlu1 %v3580_v61 }
0x18a8   : > { %4153 = vmatpush.bf16.msra.mxu2 %v4135_v6 }
0x1902   : > { %v3894_v38 = vpop.f32.mrf.mxu0 }
0x1907   : > { %v3964_v33 = vpop.f32.mrf.mxu1 }
0x190a   : > { %v3896_v0 = vpop.f32.mrf.mxu0 }
0x190f   : > { %v3966_v12 = vpop.f32.mrf.mxu1 }
0x1910   : > { %v5388_v11 = vpack.i.bf16 %v3966_v12, %v3964_v33 }
0x1912   : > { %5389 = vrot.lane.b32.xlu0 %v5388_v11, %s5770_s21  ;;  %v4031_v9 = vpop.f32.mrf.mxu0 }
0x191a   : > { %v4033_v8 = vpop.f32.mrf.mxu0  ;;  %v3582_v1 = vpop.xlane.xlu1 %3581 }
0x191b   : > { %v5393_v17 = vpack.i.bf16 %v4033_v8, %v4031_v9  ;;  %v3586_v39 = vmul.f32 %v3582_v1, %v6223_v2  ;;  %v3585_v16 = vpop.xlane.xlu2 %3584 }
0x191c   : > { %v3587_v22 = vmul.f32 %v3585_v16, %v6223_v2 }
0x191d   : > { %5394 = vrot.lane.b32.xlu0 %v5393_v17, %s7491_s18  ;;  %v7227_v50 = vsub.f32 %v3578_v30, %v3586_v39 }
0x191e   : > { %v7244_v4 = vsub.f32 %v3579_v32, %v3587_v22 }
0x191f   : > { %v4098_v18 = vpop.f32.mrf.mxu1  ;;  %v3590_v51 = vmul.f32 %v7227_v50, %v7227_v50 }
0x1920   : > { %v3591_v3 = vmul.f32 %v7244_v4, %v7244_v4 }
0x1921   : > { %v3592_v62 = vsel %vm900_vm7, %v3590_v51, 0.0 }
0x1922   : > { %3593 = vadd.xlane.f32.xlu1 %v3592_v62  ;;  %v3595_v37 = vsel %vm900_vm7, %v3591_v3, 0.0 }
0x1927   : > { %v4100_v28 = vpop.f32.mrf.mxu1 }
0x1928   : > { %v5398_v48 = vpack.i.bf16 %v4100_v28, %v4098_v18 }
0x192a   : > { %5399 = vrot.lane.b32.xlu0 %v5398_v48, %s7490_s13 }
0x1932   : > { %4140 = vrot.lane.b32.xlu0 %v7149_v56, %s5776_s27 }
0x1984   : > { %v5390_v14 = vpop.permute.xlu0 %5389 }
0x1985   : > { %v5392_v44 = vunpack.i.h.bf16 %v5390_v14  ;;  %v5391_v46 = vunpack.i.l.bf16 %v5390_v14  ;;  %v3577_v14 = vld [vmem:[%s7473_s9 + $0x10] sm:$0x3] }
0x1987   : > { %v4128_v26 = vsel %vm597_vm4, %v3896_v0, %v5392_v44  ;;  %v4127_v31 = vsel %vm597_vm4, %v3894_v38, %v5391_v46  ;;  %v5094_v46 = vld [vmem:[#allocation2 + $0x58] sm:$0xf] }
0x198f   : > { %v5395_v60 = vpop.permute.xlu0 %5394 }
0x1990   : > { %v5397_v52 = vunpack.i.h.bf16 %v5395_v60  ;;  %v5396_v59 = vunpack.i.l.bf16 %v5395_v60 }
0x1992   : > { %v4130_v43 = vsel %vm600_vm5, %v4128_v26, %v5397_v52  ;;  %v4129_v58 = vsel %vm600_vm5, %v4127_v31, %v5396_v59  ;;  %v5169_v52 = vld [vmem:[#allocation2 + $0x74] sm:$0xf0] }
0x1993   : > { %v7288_v59 = vor.u32 %v5169_v52, %v5094_v46 }
0x1995   : > { %v3594_v6 = vpop.xlane.xlu1 %3593  ;;  %4374 = vmatpush.bf16.msrb.mxu1 %v7288_v59 }
0x199c   : > { %v5400_v55 = vpop.permute.xlu0 %5399 }
0x199d   : > { %v5402_v34 = vunpack.i.h.bf16 %v5400_v55  ;;  %v5401_v27 = vunpack.i.l.bf16 %v5400_v55  ;;  %v3624_v55 = vperm.slane %v3577_v14, 0 }
0x199f   : > { %v4132_v47 = vsel %vm613_vm6, %v4130_v43, %v5402_v34  ;;  %v4131_v63 = vsel %vm613_vm6, %v4129_v58, %v5401_v27  ;;  %v5090_v43 = vld [vmem:[#allocation2 + $0x18] sm:$0xf] }
0x19a0   : > { %v4133_v19 = vpack.c.bf16 %v4132_v47, %v4131_v63  ;;  %v5168_v58 = vld [vmem:[#allocation2 + $0x34] sm:$0xf0] }
0x19a1   : > { %v7293_v63 = vor.u32 %v5168_v58, %v5090_v43 }
0x19a2   : > { %5085 = vmatmul.msk.bf16.vlgmr.msra.gmra.mxu2 %vm900_vm7, %v4133_v19  ;;  %v3627_v19 = vperm.slane %v3577_v14, 1 }
0x19a3   : > { %4375 = vmatpush.bf16.msrb.mxu1 %v7293_v63 }
0x19a4   : > { %v4141_v53 = vpop.permute.xlu0 %4140 }
0x1a25   : > { %v4155_v35 = vpop.f32.mrf.mxu2 }
0x1a26   : > { %v4156_v24 = vadd.f32 %v4155_v35, %v4141_v53 }
0x1a28   : > { %v4161_v54 = vadd.f32 %v4156_v24, %v7043_v10 }
0x1a2a   : > { %v4163_v5 = vsel %vm900_vm7, %v4161_v54, 0.0 }
0x1a2b   : > { %4164 = vadd.xlane.f32.xlu0 %v4163_v5 }
0x1a2d   : > { %v4157_v40 = vpop.f32.mrf.mxu2 }
0x1a2e   : > { %v4158_v25 = vadd.f32 %v4157_v40, %v4141_v53 }
0x1a30   : > { %v4162_v15 = vadd.f32 %v4158_v25, %v7041_v49 }
0x1a32   : > { %v4166_v45 = vsel %vm900_vm7, %v4162_v15, 0.0 }
0x1a33   : > { %4167 = vadd.xlane.f32.xlu2 %v4166_v45  ;;  %3596 = vadd.xlane.f32.xlu0 %v3595_v37 }
0x1a47   : > { %4217 = vrot.lane.b32.xlu0 %v7106_v41, %s5783_s16 }
0x1a9e   : > { %v4165_v10 = vpop.xlane.xlu0 %4164 }
0x1a9f   : > { %v4169_v23 = vmul.f32 %v4165_v10, %v6223_v2 }
0x1aa1   : > { %v7255_v13 = vsub.f32 %v4161_v54, %v4169_v23 }
0x1aa3   : > { %v4173_v21 = vmul.f32 %v7255_v13, %v7255_v13 }
0x1aa5   : > { %v4175_v32 = vsel %vm900_vm7, %v4173_v21, 0.0 }
0x1aa6   : > { %v4168_v49 = vpop.xlane.xlu2 %4167  ;;  %4176 = vadd.xlane.f32.xlu2 %v4175_v32  ;;  %v4160_v32 = vld [vmem:[%s7473_s9 + $0x12] sm:$0x3] }
0x1aa7   : > { %v4170_v30 = vmul.f32 %v4168_v49, %v6223_v2 }
0x1aa9   : > { %v7261_v7 = vsub.f32 %v4162_v15, %v4170_v30 }
0x1aab   : > { %v4174_v61 = vmul.f32 %v7261_v7, %v7261_v7 }
0x1aad   : > { %v4178_v41 = vsel %vm900_vm7, %v4174_v61, 0.0 }
0x1aae   : > { %4179 = vadd.xlane.f32.xlu1 %v4178_v41 }
0x1abe   : > { %4215 = vrot.lane.b32.xlu2 %v7116_v57, %s5783_s16  ;;  %v3597_v57 = vpop.xlane.xlu0 %3596 }
0x1abf   : > { %v3599_v38 = vmul.f32 %v3597_v57, %v6223_v2 }
0x1ac1   : > { %v3601_v33 = vadd.f32 1e-05, %v3599_v38  ;;  %v4210_v38 = vperm.slane %v4160_v32, 1 }
0x1ac3   : > { %5649 = vrsqrt.f32 %v3601_v33  ;;  %vm3618_vm5 = vweird.f32 %v3601_v33 }
0x1ac6   : > { %4269 = vrot.lane.b32.xlu2 %v6271_v20, %s5783_s16  ;;  %v4218_v12 = vpop.permute.xlu0 %4217 }
0x1ac7   : > { %4221 = vrot.lane.b32.xlu1 %v7149_v56, %s5783_s16  ;;  %v3598_v56 = vmul.f32 %v3594_v6, %v6223_v2  ;;  %4233 = vmatpush.bf16.msra.mxu0 %v4218_v12 }
0x1ac9   : > { %v3600_v0 = vadd.f32 1e-05, %v3598_v56 }
0x1acb   : > { %5651 = vrsqrt.f32 %v3600_v0  ;;  %vm3608_vm11 = vweird.f32 %v3600_v0 }
0x1ace   : > { %4405 = vrot.lane.b32.xlu2 %v6282_v29, %s5785_s24 }
0x1acf   : > { %4407 = vrot.lane.b32.xlu1 %v6271_v20, %s5785_s24  ;;  %v5650_v20 = vpop.eup %5649 }
0x1ad0   : > { %v3613_v9 = vmul.f32 %v5650_v20, %v3601_v33  ;;  %vm3619_vm0 = vweird.f32 %v5650_v20 }
0x1ad1   : > { %v5652_v11 = vpop.eup %5651  ;;  %vm3620_vm6 = vmor %vm3618_vm5, %vm3619_vm0 }
0x1ad2   : > { %v3603_v8 = vmul.f32 %v5652_v11, %v3600_v0  ;;  %v3614_v17 = vmul.f32 %v5650_v20, %v3613_v9  ;;  %vm3609_vm4 = vweird.f32 %v5652_v11 }
0x1ad3   : > { %vm3610_vm13 = vmor %vm3608_vm11, %vm3609_vm4 }
0x1ad4   : > { %v3604_v1 = vmul.f32 %v5652_v11, %v3603_v8  ;;  %v3615_v39 = vmul.f32 0.5, %v3614_v17 }
0x1ad6   : > { %4263 = vrot.lane.b32.xlu2 %v6305_v42, %s5783_s16  ;;  %v3616_v18 = vsub.f32 1.5, %v3615_v39 }
0x1ad7   : > { %4265 = vrot.lane.b32.xlu1 %v6293_v36, %s5783_s16 }
0x1ad8   : > { %v3617_v62 = vmul.f32 %v5650_v20, %v3616_v18 }
0x1ada   : > { %v3621_v48 = vsel %vm3620_vm6, %v5650_v20, %v3617_v62 }
0x1adb   : > { %v3623_v44 = vmul.f32 %v3621_v48, %v7244_v4 }
0x1add   : > { %v3626_v27 = vmul.f32 %v3624_v55, %v3623_v44 }
0x1adf   : > { %4401 = vrot.lane.b32.xlu1 %v6305_v42, %s5785_s24  ;;  %v3605_v42 = vmul.f32 0.5, %v3604_v1  ;;  %v7301_v53 = vadd.f32 %v3627_v19, %v3626_v27 }
0x1ae1   : > { %v3606_v51 = vsub.f32 1.5, %v3605_v42 }
0x1ae3   : > { %v3607_v28 = vmul.f32 %v5652_v11, %v3606_v51 }
0x1ae5   : > { %v3611_v60 = vsel %vm3610_vm13, %v5652_v11, %v3607_v28 }
0x1ae6   : > { %v3622_v26 = vmul.f32 %v3611_v60, %v7227_v50  ;;  %v7299_v50 = vld [vmem:[%s7472_s8 + $0x8] ss:$0 sm:$0xff] }
0x1ae7   : > { %4362 = vrot.lane.b32.xlu0 %v7299_v50, %s5776_s27  ;;  %s480_s27 = scalar_lea.vmem %s7475_s11, %s5875_s15 }
0x1ae8   : > { %v3625_v16 = vmul.f32 %v3624_v55, %v3622_v26 }
0x1aea   : > { %v7305_v35 = vadd.f32 %v3627_v19, %v3625_v16 }
0x1aec   : > { %v4214_v4 = vpack.c.bf16 %v7301_v53, %v7305_v35 }
0x1aef   : > { %4267 = vrot.lane.b32.xlu0 %v6282_v29, %s5783_s16  ;;  %v4207_v29 = vperm.slane %v4160_v32, 0 }
0x1af7   : > { %4403 = vrot.lane.b32.xlu0 %v6293_v36, %s5785_s24 }
0x1aff   : > { %4413 = vrot.lane.b32.xlu0 %v7299_v50, %s5785_s24 }
0x1b19   : > { %v4177_v31 = vpop.xlane.xlu2 %4176 }
0x1b1a   : > { %v4181_v34 = vmul.f32 %v4177_v31, %v6223_v2 }
0x1b1c   : > { %v4183_v47 = vadd.f32 1e-05, %v4181_v34 }
0x1b1e   : > { %5653 = vrsqrt.f32 %v4183_v47  ;;  %vm4191_vm3 = vweird.f32 %v4183_v47 }
0x1b21   : > { %v4216_v22 = vpop.permute.xlu2 %4215  ;;  %v4180_v24 = vpop.xlane.xlu1 %4179 }
0x1b22   : > { %v4182_v54 = vmul.f32 %v4180_v24, %v6223_v2  ;;  %4234 = vmatpush.bf16.msra.mxu0 %v4216_v22 }
0x1b24   : > { %v5654_v5 = vpop.eup %5653  ;;  %v4184_v40 = vadd.f32 1e-05, %v4182_v54 }
0x1b25   : > { %v4186_v25 = vmul.f32 %v5654_v5, %v4183_v47  ;;  %5086 = vmatmul.msk.bf16.vlgmr.msra.gmra.mxu0 %vm900_vm7, %v4214_v4  ;;  %vm4192_vm2 = vweird.f32 %v5654_v5 }
0x1b26   : > { %5655 = vrsqrt.f32 %v4184_v40  ;;  %vm4193_vm8 = vmor %vm4191_vm3, %vm4192_vm2  ;;  %vm4201_vm10 = vweird.f32 %v4184_v40 }
0x1b27   : > { %v4187_v3 = vmul.f32 %v5654_v5, %v4186_v25 }
0x1b29   : > { %v4188_v15 = vmul.f32 0.5, %v4187_v3  ;;  %v4270_v11 = vpop.permute.xlu2 %4269 }
0x1b2a   : > { %4282 = vmatpush.bf16.msrb.mxu3 %v4270_v11 }
0x1b2b   : > { %v4189_v45 = vsub.f32 1.5, %v4188_v15 }
0x1b2c   : > { %v5656_v37 = vpop.eup %5655 }
0x1b2d   : > { %v4190_v10 = vmul.f32 %v5654_v5, %v4189_v45  ;;  %v4196_v23 = vmul.f32 %v5656_v37, %v4184_v40  ;;  %vm4202_vm9 = vweird.f32 %v5656_v37 }
0x1b2e   : > { %vm4203_vm14 = vmor %vm4201_vm10, %vm4202_vm9 }
0x1b2f   : > { %v4197_v21 = vmul.f32 %v5656_v37, %v4196_v23  ;;  %v4194_v49 = vsel %vm4193_vm8, %v5654_v5, %v4190_v10 }
0x1b30   : > { %v4205_v41 = vmul.f32 %v4194_v49, %v7255_v13 }
0x1b31   : > { %v4198_v30 = vmul.f32 0.5, %v4197_v21 }
0x1b32   : > { %v4208_v56 = vmul.f32 %v4207_v29, %v4205_v41 }
0x1b33   : > { %v4199_v61 = vsub.f32 1.5, %v4198_v30 }
0x1b34   : > { %v7322_v0 = vadd.f32 %v4210_v38, %v4208_v56 }
0x1b35   : > { %v4200_v57 = vmul.f32 %v5656_v37, %v4199_v61 }
0x1b37   : > { %v4204_v6 = vsel %vm4203_vm14, %v5656_v37, %v4200_v57 }
0x1b38   : > { %v4206_v33 = vmul.f32 %v4204_v6, %v7261_v7  ;;  %v4406_v7 = vpop.permute.xlu2 %4405 }
0x1b39   : > { %v4222_v13 = vpop.permute.xlu1 %4221 }
0x1b3a   : > { %v4209_v36 = vmul.f32 %v4207_v29, %v4206_v33 }
0x1b3c   : > { %v7324_v20 = vadd.f32 %v4210_v38, %v4209_v36 }
0x1b3e   : > { %v4349_v12 = vpack.c.bf16 %v7324_v20, %v7322_v0 }
0x1b40   : > { %5096 = vmatmul.msk.bf16.vlgmr.msrb.gmra.mxu1 %vm900_vm7, %v4349_v12  ;;  %v4264_v18 = vpop.permute.xlu2 %4263 }
0x1b41   : > { %v4408_v8 = vpop.permute.xlu1 %4407 }
0x1b42   : > { %4423 = vmatpush.bf16.msrb.mxu2 %v4408_v8 }
0x1b46   : > { %4424 = vmatpush.bf16.msrb.mxu2 %v4406_v7 }
0x1b49   : > { %v4266_v1 = vpop.permute.xlu1 %4265 }
0x1b51   : > { %v4402_v24 = vpop.permute.xlu1 %4401 }
0x1b59   : > { %v4363_v9 = vpop.permute.xlu0 %4362 }
0x1b61   : > { %v4268_v17 = vpop.permute.xlu0 %4267 }
0x1b62   : > { %4283 = vmatpush.bf16.msrb.mxu3 %v4268_v17 }
0x1b66   : > { %4284 = vmatpush.bf16.msrb.mxu3 %v4266_v1 }
0x1b69   : > { %v4404_v43 = vpop.permute.xlu0 %4403 }
0x1b6a   : > { %4285 = vmatpush.bf16.msrb.mxu3 %v4264_v18  ;;  %4425 = vmatpush.bf16.msrb.mxu2 %v4404_v43 }
0x1b6e   : > { %4426 = vmatpush.bf16.msrb.mxu2 %v4402_v24 }
0x1ba2   : > { %v4236_v39 = vpop.f32.mrf.mxu0 }
0x1ba3   : > { %v4237_v42 = vadd.f32 %v4236_v39, %v4222_v13 }
0x1ba5   : > { %v4241_v51 = vmul.f32 %v4237_v42, %v4237_v42 }
0x1ba7   : > { %v4243_v62 = vmul.f32 %v4241_v51, %v4237_v42 }
0x1ba9   : > { %v4245_v28 = vmul.f32 0.044715, %v4243_v62 }
0x1baa   : > { %v4238_v48 = vpop.f32.mrf.mxu0 }
0x1bab   : > { %v4247_v14 = vadd.f32 %v4245_v28, %v4237_v42  ;;  %v4239_v60 = vadd.f32 %v4238_v48, %v4222_v13 }
0x1bad   : > { %v4249_v44 = vmul.f32 0.7978846, %v4247_v14  ;;  %v4242_v46 = vmul.f32 %v4239_v60, %v4239_v60 }
0x1baf   : > { %v4244_v52 = vmul.f32 %v4242_v46, %v4239_v60  ;;  %5657 = vtanh.f32 %v4249_v44 }
0x1bb1   : > { %v4246_v55 = vmul.f32 0.044715, %v4244_v52 }
0x1bb3   : > { %v4248_v26 = vadd.f32 %v4246_v55, %v4239_v60 }
0x1bb5   : > { %v4250_v31 = vmul.f32 0.7978846, %v4248_v26  ;;  %v5658_v34 = vpop.eup %5657 }
0x1bb6   : > { %v4253_v27 = vadd.f32 1.0, %v5658_v34 }
0x1bb7   : > { %5659 = vtanh.f32 %v4250_v31 }
0x1bb8   : > { %v4255_v19 = vmul.f32 0.5, %v4253_v27 }
0x1bba   : > { %v4257_v5 = vmul.f32 %v4255_v19, %v4237_v42  ;;  %v4414_v42 = vpop.permute.xlu0 %4413 }
0x1bbd   : > { %v5660_v58 = vpop.eup %5659  ;;  %v4377_v47 = vpop.f32.mrf.mxu1 }
0x1bbe   : > { %v4254_v16 = vadd.f32 1.0, %v5660_v58  ;;  %v4378_v22 = vadd.f32 %v4377_v47, %v4363_v9 }
0x1bc0   : > { %v4256_v54 = vmul.f32 0.5, %v4254_v16  ;;  %v4382_v4 = vmul.f32 %v4378_v22, %v4378_v22 }
0x1bc2   : > { %v4258_v40 = vmul.f32 %v4256_v54, %v4239_v60  ;;  %v4384_v25 = vmul.f32 %v4382_v4, %v4378_v22 }
0x1bc4   : > { %v4259_v3 = vpack.c.bf16 %v4258_v40, %v4257_v5  ;;  %v4386_v15 = vmul.f32 0.044715, %v4384_v25 }
0x1bc5   : > { %v4379_v45 = vpop.f32.mrf.mxu1 }
0x1bc6   : > { %v4388_v37 = vadd.f32 %v4386_v15, %v4378_v22  ;;  %v4380_v10 = vadd.f32 %v4379_v45, %v4363_v9  ;;  %5087 = vmatmul.msk.bf16.vlgmr.msrb.gmra.mxu3 %vm1395_vm12, %v4259_v3 }
0x1bc8   : > { %v4390_v23 = vmul.f32 0.7978846, %v4388_v37  ;;  %v4383_v21 = vmul.f32 %v4380_v10, %v4380_v10 }
0x1bca   : > { %v4385_v32 = vmul.f32 %v4383_v21, %v4380_v10  ;;  %5661 = vtanh.f32 %v4390_v23 }
0x1bcc   : > { %v4387_v49 = vmul.f32 0.044715, %v4385_v32  ;;  %v4292_v32 = vld [vmem:[%s7473_s9 + $0x14] sm:$0x3] }
0x1bce   : > { %v4389_v30 = vadd.f32 %v4387_v49, %v4380_v10 }
0x1bd0   : > { %v4391_v61 = vmul.f32 0.7978846, %v4389_v30  ;;  %v5662_v29 = vpop.eup %5661 }
0x1bd1   : > { %v4394_v41 = vadd.f32 1.0, %v5662_v29  ;;  %v4339_v29 = vperm.slane %v4292_v32, 0 }
0x1bd2   : > { %5663 = vtanh.f32 %v4391_v61 }
0x1bd3   : > { %v4396_v6 = vmul.f32 0.5, %v4394_v41 }
0x1bd5   : > { %v4398_v33 = vmul.f32 %v4396_v6, %v4378_v22 }
0x1bd8   : > { %v5664_v57 = vpop.eup %5663 }
0x1bd9   : > { %v4395_v38 = vadd.f32 1.0, %v5664_v57 }
0x1bdb   : > { %v4397_v56 = vmul.f32 0.5, %v4395_v38  ;;  %v4342_v38 = vperm.slane %v4292_v32, 1 }
0x1bdd   : > { %v4399_v36 = vmul.f32 %v4397_v56, %v4380_v10 }
0x1bdf   : > { %v4400_v12 = vpack.c.bf16 %v4399_v36, %v4398_v33 }
0x1be1   : > { %5097 = vmatmul.msk.bf16.vlgmr.msrb.gmra.mxu2 %vm1395_vm12, %v4400_v12 }
0x1c49   : > { %v4287_v13 = vpop.f32.mrf.mxu3 }
0x1c4a   : > { %v4288_v11 = vadd.f32 %v7299_v50, %v4287_v13 }
0x1c4c   : > { %v4293_v9 = vadd.f32 %v4288_v11, %v7305_v35 }
0x1c4e   : > { %v4295_v8 = vsel %vm900_vm7, %v4293_v9, 0.0 }
0x1c4f   : > { %4296 = vadd.xlane.f32.xlu2 %v4295_v8 }
0x1c51   : > { %v4289_v7 = vpop.f32.mrf.mxu3 }
0x1c52   : > { %v4290_v17 = vadd.f32 %v7299_v50, %v4289_v7 }
0x1c54   : > { %v4294_v1 = vadd.f32 %v4290_v17, %v7301_v53 }
0x1c56   : > { %v4298_v39 = vsel %vm900_vm7, %v4294_v1, 0.0 }
0x1c57   : > { %4299 = vadd.xlane.f32.xlu1 %v4298_v39 }
0x1c64   : > { %v4428_v18 = vpop.f32.mrf.mxu2 }
0x1c65   : > { %v4429_v51 = vadd.f32 %v4428_v18, %v4414_v42 }
0x1c67   : > { %v4434_v62 = vadd.f32 %v4429_v51, %v7322_v0 }
0x1c69   : > { %v4436_v28 = vsel %vm900_vm7, %v4434_v62, 0.0 }
0x1c6a   : > { %4437 = vadd.xlane.f32.xlu0 %v4436_v28 }
0x1c6c   : > { %v4430_v35 = vpop.f32.mrf.mxu2 }
0x1c6d   : > { %v4431_v48 = vadd.f32 %v4430_v35, %v4414_v42 }
0x1c6f   : > { %v4435_v14 = vadd.f32 %v4431_v48, %v7324_v20 }
0x1c71   : > { %v4439_v60 = vsel %vm900_vm7, %v4435_v14, 0.0 }
0x1c72   : > { %4440 = vadd.xlane.f32.xlu2 %v4439_v60 }
0x1cc2   : > { %v4297_v50 = vpop.xlane.xlu2 %4296 }
0x1cc3   : > { %v4301_v53 = vmul.f32 %v4297_v50, %v6223_v2 }
0x1cc5   : > { %v4303_v44 = vsub.f32 %v4293_v9, %v4301_v53  ;;  %v4433_v53 = vld [vmem:[%s7473_s9 + $0x16] sm:$0x3] }
0x1cc7   : > { %v4305_v46 = vmul.f32 %v4303_v44, %v4303_v44 }
0x1cc9   : > { %v4307_v52 = vsel %vm900_vm7, %v4305_v46, 0.0 }
0x1cca   : > { %4308 = vadd.xlane.f32.xlu1 %v4307_v52  ;;  %v4300_v55 = vpop.xlane.xlu1 %4299 }
0x1ccb   : > { %v4302_v0 = vmul.f32 %v4300_v55, %v6223_v2  ;;  %v4480_v55 = vperm.slane %v4433_v53, 0 }
0x1ccd   : > { %v4304_v26 = vsub.f32 %v4294_v1, %v4302_v0 }
0x1ccf   : > { %v4306_v31 = vmul.f32 %v4304_v26, %v4304_v26 }
0x1cd1   : > { %v4310_v34 = vsel %vm900_vm7, %v4306_v31, 0.0 }
0x1cd2   : > { %4311 = vadd.xlane.f32.xlu0 %v4310_v34  ;;  %v4483_v34 = vperm.slane %v4433_v53, 1 }
0x1cdd   : > { %v4438_v20 = vpop.xlane.xlu0 %4437 }
0x1cde   : > { %v4442_v27 = vmul.f32 %v4438_v20, %v6223_v2 }
0x1ce0   : > { %v7346_v43 = vsub.f32 %v4434_v62, %v4442_v27 }
0x1ce2   : > { %v4446_v58 = vmul.f32 %v7346_v43, %v7346_v43 }
0x1ce4   : > { %v4448_v47 = vsel %vm900_vm7, %v4446_v58, 0.0 }
0x1ce5   : > { %v4441_v19 = vpop.xlane.xlu2 %4440  ;;  %4449 = vadd.xlane.f32.xlu2 %v4448_v47 }
0x1ce6   : > { %v4443_v16 = vmul.f32 %v4441_v19, %v6223_v2 }
0x1ce8   : > { %v7352_v22 = vsub.f32 %v4435_v14, %v4443_v16 }
0x1cea   : > { %v4447_v24 = vmul.f32 %v7352_v22, %v7352_v22 }
0x1cec   : > { %v4451_v54 = vsel %vm900_vm7, %v4447_v24, 0.0 }
0x1ced   : > { %4452 = vadd.xlane.f32.xlu1 %v4451_v54 }
0x1d3d   : > { %v4309_v4 = vpop.xlane.xlu1 %4308 }
0x1d3e   : > { %v4313_v5 = vmul.f32 %v4309_v4, %v6223_v2 }
0x1d40   : > { %v4315_v40 = vadd.f32 1e-05, %v4313_v5 }
0x1d42   : > { %5665 = vrsqrt.f32 %v4315_v40  ;;  %vm4323_vm1 = vweird.f32 %v4315_v40 }
0x1d45   : > { %v4312_v25 = vpop.xlane.xlu0 %4311 }
0x1d46   : > { %v4314_v3 = vmul.f32 %v4312_v25, %v6223_v2 }
0x1d48   : > { %v5666_v15 = vpop.eup %5665  ;;  %v4316_v45 = vadd.f32 1e-05, %v4314_v3 }
0x1d49   : > { %v4318_v37 = vmul.f32 %v5666_v15, %v4315_v40  ;;  %vm4324_vm15 = vweird.f32 %v5666_v15 }
0x1d4a   : > { %5667 = vrsqrt.f32 %v4316_v45  ;;  %vm4325_vm0 = vmor %vm4323_vm1, %vm4324_vm15  ;;  %vm4333_vm5 = vweird.f32 %v4316_v45 }
0x1d4b   : > { %v4319_v10 = vmul.f32 %v5666_v15, %v4318_v37 }
0x1d4d   : > { %v4320_v23 = vmul.f32 0.5, %v4319_v10 }
0x1d4f   : > { %v4321_v21 = vsub.f32 1.5, %v4320_v23 }
0x1d50   : > { %v5668_v49 = vpop.eup %5667 }
0x1d51   : > { %v4322_v30 = vmul.f32 %v5666_v15, %v4321_v21  ;;  %v4328_v61 = vmul.f32 %v5668_v49, %v4316_v45  ;;  %vm4334_vm4 = vweird.f32 %v5668_v49 }
0x1d52   : > { %vm4335_vm6 = vmor %vm4333_vm5, %vm4334_vm4 }
0x1d53   : > { %v4329_v41 = vmul.f32 %v5668_v49, %v4328_v61  ;;  %v4326_v57 = vsel %vm4325_vm0, %v5666_v15, %v4322_v30 }
0x1d54   : > { %v4337_v6 = vmul.f32 %v4326_v57, %v4303_v44 }
0x1d55   : > { %v4330_v56 = vmul.f32 0.5, %v4329_v41 }
0x1d56   : > { %v4340_v33 = vmul.f32 %v4339_v29, %v4337_v6 }
0x1d57   : > { %v4331_v36 = vsub.f32 1.5, %v4330_v56 }
0x1d58   : > { %v4450_v12 = vpop.xlane.xlu2 %4449  ;;  %v4343_v13 = vadd.f32 %v4342_v38, %v4340_v33 }
0x1d59   : > { %v4332_v11 = vmul.f32 %v5668_v49, %v4331_v36  ;;  %v4454_v9 = vmul.f32 %v4450_v12, %v6223_v2 }
0x1d5a   : > { %v4487_v8 = vsel %vm900_vm7, %v4343_v13, 0.0 }
0x1d5b   : > { %v4456_v7 = vadd.f32 1e-05, %v4454_v9  ;;  %4488 = vadd.xlane.f32.xlu0 %v4487_v8  ;;  %v4336_v17 = vsel %vm4335_vm6, %v5668_v49, %v4332_v11 }
0x1d5c   : > { %v4338_v1 = vmul.f32 %v4336_v17, %v4304_v26 }
0x1d5d   : > { %5669 = vrsqrt.f32 %v4456_v7  ;;  %vm4464_vm13 = vweird.f32 %v4456_v7 }
0x1d5e   : > { %v4341_v39 = vmul.f32 %v4339_v29, %v4338_v1 }
0x1d60   : > { %v4453_v42 = vpop.xlane.xlu1 %4452  ;;  %v4344_v18 = vadd.f32 %v4342_v38, %v4341_v39 }
0x1d61   : > { %v4455_v51 = vmul.f32 %v4453_v42, %v6223_v2 }
0x1d62   : > { %v4490_v62 = vsel %vm900_vm7, %v4344_v18, 0.0 }
0x1d63   : > { %v5670_v28 = vpop.eup %5669  ;;  %v4457_v35 = vadd.f32 1e-05, %v4455_v51  ;;  %4491 = vadd.xlane.f32.xlu2 %v4490_v62 }
0x1d64   : > { %v4459_v48 = vmul.f32 %v5670_v28, %v4456_v7  ;;  %vm4465_vm11 = vweird.f32 %v5670_v28 }
0x1d65   : > { %5671 = vrsqrt.f32 %v4457_v35  ;;  %vm4466_vm2 = vmor %vm4464_vm13, %vm4465_vm11  ;;  %vm4474_vm8 = vweird.f32 %v4457_v35 }
0x1d66   : > { %v4460_v14 = vmul.f32 %v5670_v28, %v4459_v48 }
0x1d68   : > { %v4461_v60 = vmul.f32 0.5, %v4460_v14 }
0x1d6a   : > { %v4462_v50 = vsub.f32 1.5, %v4461_v60 }
0x1d6b   : > { %v5672_v44 = vpop.eup %5671 }
0x1d6c   : > { %v4463_v46 = vmul.f32 %v5670_v28, %v4462_v50  ;;  %v4469_v52 = vmul.f32 %v5672_v44, %v4457_v35  ;;  %vm4475_vm3 = vweird.f32 %v5672_v44  ;;  %v7408_v35 = vld [vmem:[%s7472_s8 + $0x9] ss:$0 sm:$0xff] }
0x1d6d   : > { %vm4476_vm9 = vmor %vm4474_vm8, %vm4475_vm3 }
0x1d6e   : > { %v4470_v0 = vmul.f32 %v5672_v44, %v4469_v52  ;;  %v4467_v26 = vsel %vm4466_vm2, %v5670_v28, %v4463_v46 }
0x1d6f   : > { %v4478_v31 = vmul.f32 %v4467_v26, %v7346_v43 }
0x1d70   : > { %v4471_v20 = vmul.f32 0.5, %v4470_v0 }
0x1d71   : > { %v4481_v27 = vmul.f32 %v4480_v55, %v4478_v31 }
0x1d72   : > { %v4472_v58 = vsub.f32 1.5, %v4471_v20 }
0x1d73   : > { %v4484_v47 = vadd.f32 %v4483_v34, %v4481_v27 }
0x1d74   : > { %v4473_v19 = vmul.f32 %v5672_v44, %v4472_v58  ;;  %v4537_v58 = vld [vmem:[%s7473_s9 + $0x1a] sm:$0x3] }
0x1d75   : > { %v4538_v16 = vsel %vm900_vm7, %v4484_v47, 0.0 }
0x1d76   : > { %4539 = vadd.xlane.f32.xlu1 %v4538_v16  ;;  %v4477_v24 = vsel %vm4476_vm9, %v5672_v44, %v4473_v19  ;;  %v4486_v16 = vld [vmem:[%s7473_s9 + $0x18] sm:$0x3] }
0x1d77   : > { %v4479_v54 = vmul.f32 %v4477_v24, %v7352_v22 }
0x1d79   : > { %v4482_v4 = vmul.f32 %v4480_v55, %v4479_v54 }
0x1d7b   : > { %v4485_v5 = vadd.f32 %v4483_v34, %v4482_v4 }
0x1d7d   : > { %v4541_v40 = vsel %vm900_vm7, %v4485_v5, 0.0 }
0x1d7e   : > { %4542 = vadd.xlane.f32.xlu0 %v4541_v40 }
0x1dce   : > { %v4489_v43 = vpop.xlane.xlu0 %4488 }
0x1dcf   : > { %v4493_v25 = vmul.f32 %v4489_v43, %v6223_v2 }
0x1dd1   : > { %v7374_v3 = vsub.f32 %v4343_v13, %v4493_v25  ;;  %v4531_v25 = vperm.slane %v4486_v16, 0 }
0x1dd3   : > { %v4497_v15 = vmul.f32 %v7374_v3, %v7374_v3 }
0x1dd5   : > { %v4499_v45 = vsel %vm900_vm7, %v4497_v15, 0.0 }
0x1dd6   : > { %v4492_v37 = vpop.xlane.xlu2 %4491  ;;  %4500 = vadd.xlane.f32.xlu2 %v4499_v45 }
0x1dd7   : > { %v4494_v10 = vmul.f32 %v4492_v37, %v6223_v2 }
0x1dd9   : > { %v7380_v22 = vsub.f32 %v4344_v18, %v4494_v10  ;;  %v4585_v10 = vperm.slane %v4537_v58, 1 }
0x1ddb   : > { %v4498_v23 = vmul.f32 %v7380_v22, %v7380_v22 }
0x1ddd   : > { %v4502_v21 = vsel %vm900_vm7, %v4498_v23, 0.0 }
0x1dde   : > { %4503 = vadd.xlane.f32.xlu1 %v4502_v21 }
0x1de9   : > { %v4540_v32 = vpop.xlane.xlu1 %4539 }
0x1dea   : > { %v4544_v49 = vmul.f32 %v4540_v32, %v6223_v2  ;;  %v4534_v32 = vperm.slane %v4486_v16, 1  ;;  %v5118_v16 = vld [vmem:[#allocation2 + $0x1c] sm:$0xf] }
0x1dec   : > { %v7386_v30 = vsub.f32 %v4484_v47, %v4544_v49 }
0x1dee   : > { %v4548_v61 = vmul.f32 %v7386_v30, %v7386_v30 }
0x1df0   : > { %v4550_v29 = vsel %vm900_vm7, %v4548_v61, 0.0 }
0x1df1   : > { %v4543_v41 = vpop.xlane.xlu0 %4542  ;;  %4551 = vadd.xlane.f32.xlu0 %v4550_v29 }
0x1df2   : > { %v4545_v57 = vmul.f32 %v4543_v41, %v6223_v2 }
0x1df4   : > { %v7392_v6 = vsub.f32 %v4485_v5, %v4545_v57  ;;  %v4582_v5 = vperm.slane %v4537_v58, 0 }
0x1df6   : > { %v4549_v38 = vmul.f32 %v7392_v6, %v7392_v6 }
0x1df7   : > { %4605 = vrot.lane.b32.xlu1 %v7288_v59, %s5783_s16 }
0x1df8   : > { %v4553_v56 = vsel %vm900_vm7, %v4549_v38, 0.0 }
0x1df9   : > { %4554 = vadd.xlane.f32.xlu2 %v4553_v56 }
0x1e05   : > { %4603 = vrot.lane.b32.xlu0 %v7293_v63, %s5783_s16 }
0x1e11   : > { %4669 = vrot.lane.b32.xlu2 %v7408_v35, %s5783_s16 }
0x1e49   : > { %v4501_v33 = vpop.xlane.xlu2 %4500 }
0x1e4a   : > { %v4505_v12 = vmul.f32 %v4501_v33, %v6223_v2 }
0x1e4c   : > { %v4507_v11 = vadd.f32 1e-05, %v4505_v12  ;;  %v5173_v12 = vld [vmem:[%s7470_s6 + $0x38] sm:$0xf0] }
0x1e4e   : > { %5673 = vrsqrt.f32 %v4507_v11  ;;  %vm4515_vm0 = vweird.f32 %v4507_v11 }
0x1e51   : > { %v4504_v36 = vpop.xlane.xlu1 %4503 }
0x1e52   : > { %v4506_v13 = vmul.f32 %v4504_v36, %v6223_v2 }
0x1e54   : > { %v4508_v9 = vadd.f32 1e-05, %v4506_v13  ;;  %v5674_v8 = vpop.eup %5673 }
0x1e55   : > { %v4510_v1 = vmul.f32 %v5674_v8, %v4507_v11  ;;  %vm4516_vm14 = vweird.f32 %v5674_v8  ;;  %v5172_v11 = vld [vmem:[%s7470_s6 + $0x28] sm:$0xf0] }
0x1e56   : > { %5675 = vrsqrt.f32 %v4508_v9  ;;  %vm4517_vm5 = vmor %vm4515_vm0, %vm4516_vm14  ;;  %vm4525_vm6 = vweird.f32 %v4508_v9 }
0x1e57   : > { %v4511_v18 = vmul.f32 %v5674_v8, %v4510_v1  ;;  %v5170_v1 = vld [vmem:[%s7470_s6 + $0x8] sm:$0xf0] }
0x1e59   : > { %v4512_v14 = vmul.f32 0.5, %v4511_v18 }
0x1e5b   : > { %v4513_v46 = vsub.f32 1.5, %v4512_v14 }
0x1e5c   : > { %v5676_v17 = vpop.eup %5675 }
0x1e5d   : > { %v4520_v42 = vmul.f32 %v5676_v17, %v4508_v9  ;;  %v4514_v26 = vmul.f32 %v5674_v8, %v4513_v46  ;;  %vm4526_vm15 = vweird.f32 %v5676_v17 }
0x1e5e   : > { %vm4527_vm11 = vmor %vm4525_vm6, %vm4526_vm15 }
0x1e5f   : > { %v4521_v51 = vmul.f32 %v5676_v17, %v4520_v42  ;;  %v4518_v24 = vsel %vm4517_vm5, %v5674_v8, %v4514_v26  ;;  %v5105_v8 = vld [vmem:[%s7470_s6 + $0x14] sm:$0xf] }
0x1e60   : > { %v4529_v15 = vmul.f32 %v4518_v24, %v7374_v3  ;;  %v5174_v24 = vld [vmem:[#allocation2 + $0x38] sm:$0xf0] }
0x1e61   : > { %v4522_v50 = vmul.f32 0.5, %v4521_v51 }
0x1e62   : > { %v4532_v49 = vmul.f32 %v4531_v25, %v4529_v15 }
0x1e63   : > { %v4523_v52 = vsub.f32 1.5, %v4522_v50 }
0x1e64   : > { %v4552_v7 = vpop.xlane.xlu0 %4551  ;;  %v4535_v57 = vadd.f32 %v4534_v32, %v4532_v49 }
0x1e65   : > { %v4556_v59 = vmul.f32 %v4552_v7, %v6223_v2  ;;  %v4524_v34 = vmul.f32 %v5676_v17, %v4523_v52  ;;  %v5171_v7 = vld [vmem:[%s7470_s6 + $0x18] sm:$0xf0] }
0x1e67   : > { %v4558_v39 = vadd.f32 1e-05, %v4556_v59  ;;  %v4528_v54 = vsel %vm4527_vm11, %v5676_v17, %v4524_v34  ;;  %v5106_v17 = vor.u32 %v5171_v7, %v5105_v8  ;;  %v5101_v59 = vld [vmem:[%s7470_s6 + $0x4] sm:$0xf] }
0x1e68   : > { %v4530_v45 = vmul.f32 %v4528_v54, %v7380_v22  ;;  %v5113_v22 = vld [vmem:[%s7470_s6 + $0x34] sm:$0xf]  ;;  %v5102_v42 = vor.u32 %v5170_v1, %v5101_v59  ;;  %v5119_v54 = vor.u32 %v5174_v24, %v5118_v16 }
0x1e69   : > { %5677 = vrsqrt.f32 %v4558_v39  ;;  %v4606_v63 = vpop.permute.xlu1 %4605  ;;  %vm4566_vm1 = vweird.f32 %v4558_v39  ;;  %v5114_v13 = vor.u32 %v5173_v12, %v5113_v22 }
0x1e6a   : > { %4618 = vmatpush.bf16.msrb.mxu0 %v4606_v63  ;;  %v4533_v61 = vmul.f32 %v4531_v25, %v4530_v45 }
0x1e6b   : > { %4679 = vmatpush.bf16.msra.mxu3 %v5114_v13 }
0x1e6c   : > { %v4555_v62 = vpop.xlane.xlu2 %4554  ;;  %v4536_v38 = vadd.f32 %v4534_v32, %v4533_v61 }
0x1e6d   : > { %v4557_v28 = vmul.f32 %v4555_v62, %v6223_v2 }
0x1e6f   : > { %v5678_v48 = vpop.eup %5677  ;;  %v4559_v60 = vadd.f32 1e-05, %v4557_v28 }
0x1e70   : > { %v4561_v53 = vmul.f32 %v5678_v48, %v4558_v39  ;;  %vm4567_vm10 = vweird.f32 %v5678_v48 }
0x1e71   : > { %5679 = vrsqrt.f32 %v4559_v60  ;;  %vm4568_vm4 = vmor %vm4566_vm1, %vm4567_vm10  ;;  %vm4576_vm2 = vweird.f32 %v4559_v60 }
0x1e72   : > { %v4562_v44 = vmul.f32 %v5678_v48, %v4561_v53 }
0x1e74   : > { %v4563_v55 = vmul.f32 0.5, %v4562_v44  ;;  %v4670_v25 = vpop.permute.xlu2 %4669 }
0x1e76   : > { %v4564_v0 = vsub.f32 1.5, %v4563_v55 }
0x1e77   : > { %v5680_v2 = vpop.eup %5679  ;;  %v4604_v31 = vpop.permute.xlu0 %4603 }
0x1e78   : > { %v4565_v20 = vmul.f32 %v5678_v48, %v4564_v0  ;;  %v4571_v27 = vmul.f32 %v5680_v2, %v4559_v60  ;;  %4619 = vmatpush.bf16.msrb.mxu0 %v4604_v31  ;;  %vm4577_vm13 = vweird.f32 %v5680_v2 }
0x1e79   : > { %vm4578_vm3 = vmor %vm4576_vm2, %vm4577_vm13 }
0x1e7a   : > { %v4569_v47 = vsel %vm4568_vm4, %v5678_v48, %v4565_v20  ;;  %v4572_v19 = vmul.f32 %v5680_v2, %v4571_v27 }
0x1e7b   : > { %v4580_v40 = vmul.f32 %v4569_v47, %v7386_v30  ;;  %v5175_v47 = vld [vmem:[#allocation2 + $0x78] sm:$0xf0] }
0x1e7c   : > { %v4573_v4 = vmul.f32 0.5, %v4572_v19 }
0x1e7d   : > { %v4583_v23 = vmul.f32 %v4582_v5, %v4580_v40 }
0x1e7e   : > { %v4574_v43 = vsub.f32 1.5, %v4573_v4  ;;  %v4694_v4 = vld [vmem:[%s7472_s8 + $0x9] sm:$0x3] }
0x1e7f   : > { %v4586_v41 = vadd.f32 %v4585_v10, %v4583_v23  ;;  %v4696_v40 = vperm.slane %v4694_v4, 0 }
0x1e80   : > { %v4575_v37 = vmul.f32 %v5680_v2, %v4574_v43 }
0x1e81   : > { %v4588_v33 = vadd.f32 %v4586_v41, %v4535_v57  ;;  %4710 = vrot.lane.b32.xlu0 %v4696_v40, %s5785_s24 }
0x1e82   : > { %v4579_v21 = vsel %vm4578_vm3, %v5680_v2, %v4575_v37 }
0x1e83   : > { %v4581_v29 = vmul.f32 %v4579_v21, %v7392_v6  ;;  %v5109_v6 = vld [vmem:[%s7470_s6 + $0x24] sm:$0xf] }
0x1e84   : > { %v5110_v9 = vor.u32 %v5172_v11, %v5109_v6 }
0x1e85   : > { %v4584_v30 = vmul.f32 %v4582_v5, %v4581_v29  ;;  %v4697_v5 = vperm.slane %v4694_v4, 1 }
0x1e86   : > { %4680 = vmatpush.bf16.msra.mxu3 %v5110_v9 }
0x1e87   : > { %v4587_v56 = vadd.f32 %v4585_v10, %v4584_v30  ;;  %4712 = vrot.lane.b32.xlu1 %v4697_v5, %s5785_s24 }
0x1e89   : > { %v4589_v3 = vadd.f32 %v4587_v56, %v4536_v38 }
0x1e8a   : > { %4681 = vmatpush.bf16.msra.mxu3 %v5106_v17 }
0x1e8b   : > { %v4599_v36 = vpack.c.bf16 %v4589_v3, %v4588_v33 }
0x1e8d   : > { %5098 = vmatmul.msk.bf16.vlgmr.msrb.gmra.mxu0 %vm900_vm7, %v4599_v36 }
0x1e8e   : > { %4682 = vmatpush.bf16.msra.mxu3 %v5102_v42 }
0x1ef3   : > { %v4711_v23 = vpop.permute.xlu0 %4710 }
0x1ef9   : > { %v4713_v21 = vpop.permute.xlu1 %4712 }
0x1efa   : > { %v4714_v32 = vsel %vm900_vm7, %v4711_v23, %v4713_v21 }
0x1f0a   : > { %v4621_v39 = vpop.f32.mrf.mxu0 }
0x1f0b   : > { %v4622_v63 = vadd.f32 %v7408_v35, %v4621_v39 }
0x1f0d   : > { %v4626_v18 = vmul.f32 %v4622_v63, %v4622_v63 }
0x1f0f   : > { %v4628_v51 = vmul.f32 %v4626_v18, %v4622_v63 }
0x1f11   : > { %v4630_v62 = vmul.f32 0.044715, %v4628_v51 }
0x1f12   : > { %v4623_v28 = vpop.f32.mrf.mxu0 }
0x1f13   : > { %v4632_v48 = vadd.f32 %v4630_v62, %v4622_v63  ;;  %v4624_v14 = vadd.f32 %v7408_v35, %v4623_v28  ;;  %v5122_v35 = vld [vmem:[#allocation2 + $0x5c] sm:$0xf] }
0x1f14   : > { %v5123_v19 = vor.u32 %v5175_v47, %v5122_v35 }
0x1f15   : > { %v4634_v60 = vmul.f32 0.7978846, %v4632_v48  ;;  %v4627_v50 = vmul.f32 %v4624_v14, %v4624_v14 }
0x1f16   : > { %4725 = vmatpush.bf16.msra.mxu1 %v5123_v19 }
0x1f17   : > { %v4629_v53 = vmul.f32 %v4627_v50, %v4624_v14  ;;  %5681 = vtanh.f32 %v4634_v60 }
0x1f19   : > { %v4631_v44 = vmul.f32 0.044715, %v4629_v53 }
0x1f1a   : > { %4726 = vmatpush.bf16.msra.mxu1 %v5119_v54 }
0x1f1b   : > { %v4633_v46 = vadd.f32 %v4631_v44, %v4624_v14 }
0x1f1d   : > { %v4635_v52 = vmul.f32 0.7978846, %v4633_v46  ;;  %v5682_v55 = vpop.eup %5681 }
0x1f1e   : > { %v4638_v0 = vadd.f32 1.0, %v5682_v55 }
0x1f1f   : > { %5683 = vtanh.f32 %v4635_v52 }
0x1f20   : > { %v4640_v26 = vmul.f32 0.5, %v4638_v0 }
0x1f22   : > { %v4642_v20 = vmul.f32 %v4640_v26, %v4622_v63 }
0x1f25   : > { %v5684_v2 = vpop.eup %5683 }
0x1f26   : > { %v4639_v31 = vadd.f32 1.0, %v5684_v2 }
0x1f28   : > { %v4641_v34 = vmul.f32 0.5, %v4639_v31 }
0x1f2a   : > { %v4643_v27 = vmul.f32 %v4641_v34, %v4624_v14 }
0x1f2c   : > { %v4644_v58 = vpack.c.bf16 %v4643_v27, %v4642_v20 }
0x1f2e   : > { %5115 = vmatmul.msk.bf16.vlgmr.msra.gmra.mxu3 %vm1395_vm12, %v4644_v58 }
0x1fb1   : > { %v4684_v43 = vpop.f32.mrf.mxu3 }
0x1fb2   : > { %v4685_v45 = vadd.f32 %v4684_v43, %v4670_v25 }
0x1fb9   : > { %v4686_v15 = vpop.f32.mrf.mxu3 }
0x1fba   : > { %v4687_v37 = vadd.f32 %v4686_v15, %v4670_v25 }
0x1fbc   : > { %v4693_v10 = vpack.c.bf16 %v4687_v37, %v4685_v45 }
0x1fbe   : > { %5124 = vmatmul.msk.bf16.vlgmr.msra.gmra.mxu1 %vm900_vm7, %v4693_v10 }
0x203b   : > { %v4728_v49 = vpop.f32.mrf.mxu1 }
0x203c   : > { %v4729_v61 = vadd.f32 %v4728_v49, %v4714_v32 }
0x203e   : > { %4733 = vst [vmem:[%s480_s27] sm:$0xff] %v4729_v61 }
0x2043   : > { %v4730_v29 = vpop.f32.mrf.mxu1 }
0x2044   : > { %v4731_v41 = vadd.f32 %v4730_v29, %v4714_v32 }
0x2046   : > { %4734 = vst [vmem:[%s480_s27 + $0x8] sm:$0xff] %v4731_v41 }
0x2047 PF: > { %s23_s17 = sadd.s32 1, %s5761_s17  }
0x2048   : > { %p20_p7 = scmp.ge.s32.totalorder %s23_s17, 4  }
0x204a   :  { %22 = sbr.rel (!%p20_p7) target bundleno = 2 (0x2), region = 112 }
0x204f   :  { %4756 = vsyncpa [#allocation3], 1 }
0x2050   :  { %4758 = vsyncpa [#allocation3 + $0x1], 1 }
0x2051   :  { %4759 = vsyncpa [#allocation5], 1 }

</bundles_post_ra>
